<compile_context>
chip_gen: v7x
topology: tpu7x:2x2x1
jax: 0.10.0
libtpu: 0.0.40
codegen_flags: <defaults>
</compile_context>

<pallas_src>
import functools
import math

import jax
import jax.numpy as jnp
from jax import lax
from jax.experimental import pallas as pl
from jax.experimental.pallas import tpu as pltpu

# MXU operand dtype (accumulation is always f32). Use jnp.float32 for strict
# numerical parity with the f32 PyTorch reference.
_MXU_DTYPE = jnp.bfloat16


# ----------------------------------------------------------------------------
# In-kernel helpers
# ----------------------------------------------------------------------------
def _mm(a, b):
    """[M, K] @ [K, N] on the MXU with f32 accumulation."""
    return lax.dot_general(
        a.astype(_MXU_DTYPE), b.astype(_MXU_DTYPE),
        dimension_numbers=(((1,), (0,)), ((), ())),
        preferred_element_type=jnp.float32)


def _mm_nt(a, b):
    """[M, K] contracted with [N, K] over the last dims (i.e. a @ b.T, no .T op)."""
    return lax.dot_general(
        a.astype(_MXU_DTYPE), b.astype(_MXU_DTYPE),
        dimension_numbers=(((1,), (1,)), ((), ())),
        preferred_element_type=jnp.float32)


def _row_to_col(row):
    """[1, N] -> [N, 1] (lane -> sublane) via diagonal extract; avoids transpose."""
    n = row.shape[-1]
    m = jnp.broadcast_to(row, (n, n))                          # m[i, j] = row[j]
    i = lax.broadcasted_iota(jnp.int32, (n, n), 0)
    j = lax.broadcasted_iota(jnp.int32, (n, n), 1)
    return jnp.sum(jnp.where(i == j, m, 0.0), axis=1, keepdims=True)


def _attn_update_proj(qx, kx, vx, key_bias, w2, num_head, scale):
    """sum_h softmax((q_h @ k_h^T + key_bias) * scale) @ v_h @ w2[h*dh:(h+1)*dh].

    qx: [Nq, D], kx/vx: [Nk, D], key_bias: [1, Nk] (0 or -1e9), w2: [D, Dout].
    Returns [Nq, Dout]. Matches torch masked_fill(-1e9)/sqrt(dh) up to exp()
    saturation of the masked logits (exactly 0 after exp in both cases).
    The per-head concat is folded into the w2 projection (no [Nq, D] temp).
    """
    d = qx.shape[-1]
    dh = d // num_head
    out = None
    for h in range(num_head):
        sl = slice(h * dh, (h + 1) * dh)
        s = (_mm_nt(qx[:, sl], kx[:, sl]) + key_bias) * scale      # [Nq, Nk]
        s = s - jnp.max(s, axis=-1, keepdims=True)
        p = jnp.exp(s)
        p = p * pl.reciprocal(jnp.sum(p, axis=-1, keepdims=True), approx=True)
        contrib = _mm(_mm(p, vx[:, sl]), w2[sl, :])                # [Nq, Dout]
        out = contrib if out is None else out + contrib
    return out


# ----------------------------------------------------------------------------
# The single fused kernel (one grid step = one group of Bb batch elements)
# ----------------------------------------------------------------------------
def _single_block_kernel(
        # per-grid-step activations & masks
        v_in_ref, q_in_ref, vmask_ref, qmask_ref,
        # initial projection
        pv_w_ref, pv_b_ref, pq_w_ref, pq_b_ref,
        # InterModalityUpdate
        iv_lin_w_ref, iv_lin_b_ref, iq_lin_w_ref, iq_lin_b_ref,
        iv_out_w_ref, iv_out_b_ref, iq_out_w_ref, iq_out_b_ref,
        # DyIntraModalityUpdate
        av4q_w_ref, av4q_b_ref, aq4v_w_ref, aq4v_b_ref,
        av_lin_w_ref, av_lin_b_ref, aq_lin_w_ref, aq_lin_b_ref,
        av_out_w_ref, av_out_b_ref, aq_out_w_ref, aq_out_b_ref,
        # outputs
        v_out_ref, q_out_ref,
        *, num_block, num_inter_head, num_intra_head, d, bb, no, nl):
    # TODO(synk): dropout layers are identity (drop=0.0 / eval mode) and are omitted.

    # ---- masks: per-batch row bias + column forms, derived once per grid step ----
    vmask = vmask_ref[...]                                   # [Bb, 1, No] (0/1 f32)
    qmask = qmask_ref[...]                                   # [Bb, 1, Nl]
    v_rows = [vmask[b] for b in range(bb)]                   # [1, No]
    q_rows = [qmask[b] for b in range(bb)]                   # [1, Nl]
    v_bias = [jnp.where(r == 0.0, -1.0e9, 0.0) for r in v_rows]
    q_bias = [jnp.where(r == 0.0, -1.0e9, 0.0) for r in q_rows]
    v_cols = [_row_to_col(r) for r in v_rows]                # [No, 1]
    q_cols = [_row_to_col(r) for r in q_rows]                # [Nl, 1]
    v_col_flat = v_cols[0] if bb == 1 else jnp.concatenate(v_cols, axis=0)
    q_col_flat = q_cols[0] if bb == 1 else jnp.concatenate(q_cols, axis=0)

    # ---- load all weights / biases once (resident across the unrolled blocks) ----
    pv_w, pv_b, pq_w, pq_b = pv_w_ref[...], pv_b_ref[...], pq_w_ref[...], pq_b_ref[...]
    iv_lin_w, iv_lin_b = iv_lin_w_ref[...], iv_lin_b_ref[...]
    iq_lin_w, iq_lin_b = iq_lin_w_ref[...], iq_lin_b_ref[...]
    iv_out_w, iv_out_b = iv_out_w_ref[...], iv_out_b_ref[...]   # [2D, D]
    iq_out_w, iq_out_b = iq_out_w_ref[...], iq_out_b_ref[...]
    av4q_w, av4q_b = av4q_w_ref[...], av4q_b_ref[...]
    aq4v_w, aq4v_b = aq4v_w_ref[...], aq4v_b_ref[...]
    av_lin_w, av_lin_b = av_lin_w_ref[...], av_lin_b_ref[...]
    aq_lin_w, aq_lin_b = aq_lin_w_ref[...], aq_lin_b_ref[...]
    av_out_w, av_out_b = av_out_w_ref[...], av_out_b_ref[...]   # [D, D]
    aq_out_w, aq_out_b = aq_out_w_ref[...], aq_out_b_ref[...]

    # ---- initial projection (batch folded into M; no relu, per reference) ----
    v = _mm(v_in_ref[...], pv_w) + pv_b                      # [Bb*No, D] f32
    q = _mm(q_in_ref[...], pq_w) + pq_b                      # [Bb*Nl, D] f32

    scale_inter = 1.0 / math.sqrt(d // num_inter_head)
    scale_intra = 1.0 / math.sqrt(d // num_intra_head)

    for _ in range(num_block):                               # static unroll
        # ===================== InterModalityUpdate =====================
        v_trans = (_mm(jnp.maximum(v, 0.0), iv_lin_w) + iv_lin_b) * v_col_flat
        q_trans = (_mm(jnp.maximum(q, 0.0), iq_lin_w) + iq_lin_b) * q_col_flat
        # cat([x, x_update]) @ W  ==  x @ W[:D] + x_update @ W[D:]
        v_new = _mm(v, iv_out_w[:d]) + iv_out_b
        q_new = _mm(q, iq_out_w[:d]) + iq_out_b
        v_upd, q_upd = [], []
        for b in range(bb):
            vs, qs = slice(b * no, (b + 1) * no), slice(b * nl, (b + 1) * nl)
            v_k, v_q_, v_v = v_trans[vs, 0:d], v_trans[vs, d:2 * d], v_trans[vs, 2 * d:3 * d]
            q_k, q_q_, q_v = q_trans[qs, 0:d], q_trans[qs, d:2 * d], q_trans[qs, 2 * d:3 * d]
            # q2v: visual queries attend over question keys/values (key mask = q_mask)
            v_upd.append(_attn_update_proj(v_q_, q_k, q_v, q_bias[b],
                                           iv_out_w[d:], num_inter_head, scale_inter))
            # v2q: question queries attend over visual keys/values (key mask = v_mask)
            q_upd.append(_attn_update_proj(q_q_, v_k, v_v, v_bias[b],
                                           iq_out_w[d:], num_inter_head, scale_inter))
        v = v_new + (v_upd[0] if bb == 1 else jnp.concatenate(v_upd, axis=0))
        q = q_new + (q_upd[0] if bb == 1 else jnp.concatenate(q_upd, axis=0))

        # ===================== DyIntraModalityUpdate =====================
        v_trans = (_mm(jnp.maximum(v, 0.0), av_lin_w) + av_lin_b) * v_col_flat
        q_trans = (_mm(jnp.maximum(q, 0.0), aq_lin_w) + aq_lin_b) * q_col_flat
        # (x + x_update) @ W  ==  x @ W + x_update @ W
        v_new = _mm(v, av_out_w) + av_out_b
        q_new = _mm(q, aq_out_w) + aq_out_b
        v_upd, q_upd = [], []
        for b in range(bb):
            vs, qs = slice(b * no, (b + 1) * no), slice(b * nl, (b + 1) * nl)
            v_b, q_b = v[vs], q[qs]
            # masked means (matches reference; a fully-masked row would divide by 0)
            v_cnt = jnp.sum(v_rows[b], axis=-1, keepdims=True)                 # [1, 1]
            q_cnt = jnp.sum(q_rows[b], axis=-1, keepdims=True)                 # [1, 1]
            v_mean = jnp.sum(v_b * v_cols[b], axis=0, keepdims=True) / v_cnt   # [1, D]
            q_mean = jnp.sum(q_b * q_cols[b], axis=0, keepdims=True) / q_cnt   # [1, D]
            v4q_gate = jax.nn.sigmoid(_mm(jnp.maximum(v_mean, 0.0), av4q_w) + av4q_b)
            q4v_gate = jax.nn.sigmoid(_mm(jnp.maximum(q_mean, 0.0), aq4v_w) + aq4v_b)
            gate_v = 1.0 + q4v_gate                                            # [1, D]
            gate_q = 1.0 + v4q_gate
            v_k, v_q_, v_v = v_trans[vs, 0:d], v_trans[vs, d:2 * d], v_trans[vs, 2 * d:3 * d]
            q_k, q_q_, q_v = q_trans[qs, 0:d], q_trans[qs, d:2 * d], q_trans[qs, 2 * d:3 * d]
            v_upd.append(_attn_update_proj(gate_v * v_q_, gate_v * v_k, v_v, v_bias[b],
                                           av_out_w, num_intra_head, scale_intra))
            q_upd.append(_attn_update_proj(gate_q * q_q_, gate_q * q_k, q_v, q_bias[b],
                                           aq_out_w, num_intra_head, scale_intra))
        v = v_new + (v_upd[0] if bb == 1 else jnp.concatenate(v_upd, axis=0))
        q = q_new + (q_upd[0] if bb == 1 else jnp.concatenate(q_upd, axis=0))

    # D(=32) < 128 lanes -> masked final stores, but after whole-stack fusion the
    # only HBM writes are these few-KB slabs, so lane-packing is not worth it here.
    v_out_ref[...] = v
    q_out_ref[...] = q


# ----------------------------------------------------------------------------
# Wrapper: one pallas_call for the whole SingleBlock forward
# ----------------------------------------------------------------------------
def single_block_forward(params, v, q, v_mask, q_mask, *, num_block,
                         num_inter_head, num_intra_head, output_size):
    B, No, Dv = v.shape
    _, Nl, Dq = q.shape
    D = output_size

    # >=2 grid steps when possible so both v7x TensorCores get a batch group;
    # each step processes Bb batch elements folded into the matmul M dimension.
    G = 2 if (B >= 2 and B % 2 == 0) else 1
    Bb = B // G

    v2 = v.reshape(B * No, Dv).astype(jnp.float32)
    q2 = q.reshape(B * Nl, Dq).astype(jnp.float32)
    vm = v_mask.astype(jnp.float32).reshape(B, 1, No)   # row-form masks (2 streams)
    qm = q_mask.astype(jnp.float32).reshape(B, 1, Nl)

    inter, intra = params["inter"], params["intra"]

    def rows2(r, c):        # per-grid-step activation / output slab
        return pl.BlockSpec((r, c), lambda g: (g, 0))

    def mask3(c):           # per-grid-step mask rows
        return pl.BlockSpec((Bb, 1, c), lambda g: (g, 0, 0))

    def w2d(r, c):          # weights / biases: whole array, constant block index
        return pl.BlockSpec((r, c), lambda g: (0, 0))

    kernel = functools.partial(
        _single_block_kernel,
        num_block=num_block, num_inter_head=num_inter_head,
        num_intra_head=num_intra_head, d=D, bb=Bb, no=No, nl=Nl)

    out_v, out_q = pl.pallas_call(
        kernel,
        out_shape=(jax.ShapeDtypeStruct((B * No, D), jnp.float32),
                   jax.ShapeDtypeStruct((B * Nl, D), jnp.float32)),
        grid=(G,),
        in_specs=[
            rows2(Bb * No, Dv), rows2(Bb * Nl, Dq), mask3(No), mask3(Nl),
            w2d(Dv, D), w2d(1, D), w2d(Dq, D), w2d(1, D),
            w2d(D, 3 * D), w2d(1, 3 * D), w2d(D, 3 * D), w2d(1, 3 * D),
            w2d(2 * D, D), w2d(1, D), w2d(2 * D, D), w2d(1, D),
            w2d(D, D), w2d(1, D), w2d(D, D), w2d(1, D),
            w2d(D, 3 * D), w2d(1, 3 * D), w2d(D, 3 * D), w2d(1, 3 * D),
            w2d(D, D), w2d(1, D), w2d(D, D), w2d(1, D),
        ],
        out_specs=(rows2(Bb * No, D), rows2(Bb * Nl, D)),
        compiler_params=pltpu.CompilerParams(
            dimension_semantics=("parallel",)),
    )(v2, q2, vm, qm,
      params["v_lin_w"], params["v_lin_b"], params["q_lin_w"], params["q_lin_b"],
      inter["v_lin_w"], inter["v_lin_b"], inter["q_lin_w"], inter["q_lin_b"],
      inter["v_out_w"], inter["v_out_b"], inter["q_out_w"], inter["q_out_b"],
      intra["v4q_w"], intra["v4q_b"], intra["q4v_w"], intra["q4v_b"],
      intra["v_lin_w"], intra["v_lin_b"], intra["q_lin_w"], intra["q_lin_b"],
      intra["v_out_w"], intra["v_out_b"], intra["q_out_w"], intra["q_out_b"])

    return out_v.reshape(B, No, D), out_q.reshape(B, Nl, D)


# ----------------------------------------------------------------------------
# Deterministic parameter init (shapes follow the nn.Module __init__)
# ----------------------------------------------------------------------------
def _init_linear(key, din, dout, scale=0.05):
    kw, kb = jax.random.split(key)
    w = scale * jax.random.normal(kw, (din, dout), jnp.float32)
    b = scale * jax.random.normal(kb, (1, dout), jnp.float32)
    return w, b


def init_params(key, v_size, q_size, output_size):
    keys = jax.random.split(key, 14)
    p = {}
    p["v_lin_w"], p["v_lin_b"] = _init_linear(keys[0], v_size, output_size)
    p["q_lin_w"], p["q_lin_b"] = _init_linear(keys[1], q_size, output_size)

    inter = {}
    inter["v_lin_w"], inter["v_lin_b"] = _init_linear(keys[2], output_size, output_size * 3)
    inter["q_lin_w"], inter["q_lin_b"] = _init_linear(keys[3], output_size, output_size * 3)
    inter["v_out_w"], inter["v_out_b"] = _init_linear(keys[4], output_size * 2, output_size)
    inter["q_out_w"], inter["q_out_b"] = _init_linear(keys[5], output_size * 2, output_size)
    p["inter"] = inter

    intra = {}
    intra["v4q_w"], intra["v4q_b"] = _init_linear(keys[6], output_size, output_size)
    intra["q4v_w"], intra["q4v_b"] = _init_linear(keys[7], output_size, output_size)
    intra["v_lin_w"], intra["v_lin_b"] = _init_linear(keys[8], output_size, output_size * 3)
    intra["q_lin_w"], intra["q_lin_b"] = _init_linear(keys[9], output_size, output_size * 3)
    intra["v_out_w"], intra["v_out_b"] = _init_linear(keys[10], output_size, output_size)
    intra["q_out_w"], intra["q_out_b"] = _init_linear(keys[11], output_size, output_size)
    p["intra"] = intra
    return p


# ----------------------------------------------------------------------------
if __name__ == "__main__":
    key = jax.random.PRNGKey(0)
    B, num_obj, max_len = 2, 16, 8
    v_size = q_size = 32
    output_size = 32
    num_block = 2
    num_inter_head = 4
    num_intra_head = 4

    k_params, k_v, k_q = jax.random.split(key, 3)
    params = init_params(k_params, v_size, q_size, output_size)

    v = jax.random.normal(k_v, (B, num_obj, v_size), jnp.float32)
    q = jax.random.normal(k_q, (B, max_len, q_size), jnp.float32)
    # masks: 1.0 for valid positions, 0.0 for padding (at least one valid per row)
    v_mask = jnp.concatenate(
        [jnp.ones((B, 12), jnp.float32), jnp.zeros((B, 4), jnp.float32)], axis=1)
    q_mask = jnp.concatenate(
        [jnp.ones((B, 6), jnp.float32), jnp.zeros((B, 2), jnp.float32)], axis=1)

    fwd = jax.jit(functools.partial(
        single_block_forward,
        num_block=num_block,
        num_inter_head=num_inter_head,
        num_intra_head=num_intra_head,
        output_size=output_size,
    ))
    out_v, out_q = fwd(params, v, q, v_mask, q_mask)
    jax.block_until_ready((out_v, out_q))
    assert out_v.shape == (B, num_obj, output_size)
    assert out_q.shape == (B, max_len, output_size)
    assert bool(jnp.all(jnp.isfinite(out_v))) and bool(jnp.all(jnp.isfinite(out_q)))
    print("KERNEL_OK")
</pallas_src>

<mosaic_0001>
module attributes {stable_mosaic.version = 11 : i64} {
  func.func @_single_block_kernel(%arg0: i32, %arg1: memref<16x32xf32, #tpu.memory_space<vmem>>, %arg2: memref<8x32xf32, #tpu.memory_space<vmem>>, %arg3: memref<1x1x16xf32, #tpu.memory_space<vmem>>, %arg4: memref<1x1x8xf32, #tpu.memory_space<vmem>>, %arg5: memref<32x32xf32, #tpu.memory_space<vmem>>, %arg6: memref<1x32xf32, #tpu.memory_space<vmem>>, %arg7: memref<32x32xf32, #tpu.memory_space<vmem>>, %arg8: memref<1x32xf32, #tpu.memory_space<vmem>>, %arg9: memref<32x96xf32, #tpu.memory_space<vmem>>, %arg10: memref<1x96xf32, #tpu.memory_space<vmem>>, %arg11: memref<32x96xf32, #tpu.memory_space<vmem>>, %arg12: memref<1x96xf32, #tpu.memory_space<vmem>>, %arg13: memref<64x32xf32, #tpu.memory_space<vmem>>, %arg14: memref<1x32xf32, #tpu.memory_space<vmem>>, %arg15: memref<64x32xf32, #tpu.memory_space<vmem>>, %arg16: memref<1x32xf32, #tpu.memory_space<vmem>>, %arg17: memref<32x32xf32, #tpu.memory_space<vmem>>, %arg18: memref<1x32xf32, #tpu.memory_space<vmem>>, %arg19: memref<32x32xf32, #tpu.memory_space<vmem>>, %arg20: memref<1x32xf32, #tpu.memory_space<vmem>>, %arg21: memref<32x96xf32, #tpu.memory_space<vmem>>, %arg22: memref<1x96xf32, #tpu.memory_space<vmem>>, %arg23: memref<32x96xf32, #tpu.memory_space<vmem>>, %arg24: memref<1x96xf32, #tpu.memory_space<vmem>>, %arg25: memref<32x32xf32, #tpu.memory_space<vmem>>, %arg26: memref<1x32xf32, #tpu.memory_space<vmem>>, %arg27: memref<32x32xf32, #tpu.memory_space<vmem>>, %arg28: memref<1x32xf32, #tpu.memory_space<vmem>>, %arg29: memref<16x32xf32, #tpu.memory_space<vmem>>, %arg30: memref<8x32xf32, #tpu.memory_space<vmem>>) attributes {dimension_semantics = [#tpu.dimension_semantics<parallel>], iteration_bounds = array<i64: 2>, scalar_prefetch = 0 : i64, scratch_operands = 0 : i64, tpu.core_type = #tpu.core_type<tc>, window_params = [{transform_indices = @transform_0, window_bounds = array<i64: 16, 32>}, {transform_indices = @transform_1, window_bounds = array<i64: 8, 32>}, {transform_indices = @transform_2, window_bounds = array<i64: 1, 1, 16>}, {transform_indices = @transform_3, window_bounds = array<i64: 1, 1, 8>}, {pipeline_mode = #tpu.pipeline_mode<synchronous>, transform_indices = @transform_4, window_bounds = array<i64: 32, 32>}, {pipeline_mode = #tpu.pipeline_mode<synchronous>, transform_indices = @transform_5, window_bounds = array<i64: 1, 32>}, {pipeline_mode = #tpu.pipeline_mode<synchronous>, transform_indices = @transform_6, window_bounds = array<i64: 32, 32>}, {pipeline_mode = #tpu.pipeline_mode<synchronous>, transform_indices = @transform_7, window_bounds = array<i64: 1, 32>}, {pipeline_mode = #tpu.pipeline_mode<synchronous>, transform_indices = @transform_8, window_bounds = array<i64: 32, 96>}, {pipeline_mode = #tpu.pipeline_mode<synchronous>, transform_indices = @transform_9, window_bounds = array<i64: 1, 96>}, {pipeline_mode = #tpu.pipeline_mode<synchronous>, transform_indices = @transform_10, window_bounds = array<i64: 32, 96>}, {pipeline_mode = #tpu.pipeline_mode<synchronous>, transform_indices = @transform_11, window_bounds = array<i64: 1, 96>}, {pipeline_mode = #tpu.pipeline_mode<synchronous>, transform_indices = @transform_12, window_bounds = array<i64: 64, 32>}, {pipeline_mode = #tpu.pipeline_mode<synchronous>, transform_indices = @transform_13, window_bounds = array<i64: 1, 32>}, {pipeline_mode = #tpu.pipeline_mode<synchronous>, transform_indices = @transform_14, window_bounds = array<i64: 64, 32>}, {pipeline_mode = #tpu.pipeline_mode<synchronous>, transform_indices = @transform_15, window_bounds = array<i64: 1, 32>}, {pipeline_mode = #tpu.pipeline_mode<synchronous>, transform_indices = @transform_16, window_bounds = array<i64: 32, 32>}, {pipeline_mode = #tpu.pipeline_mode<synchronous>, transform_indices = @transform_17, window_bounds = array<i64: 1, 32>}, {pipeline_mode = #tpu.pipeline_mode<synchronous>, transform_indices = @transform_18, window_bounds = array<i64: 32, 32>}, {pipeline_mode = #tpu.pipeline_mode<synchronous>, transform_indices = @transform_19, window_bounds = array<i64: 1, 32>}, {pipeline_mode = #tpu.pipeline_mode<synchronous>, transform_indices = @transform_20, window_bounds = array<i64: 32, 96>}, {pipeline_mode = #tpu.pipeline_mode<synchronous>, transform_indices = @transform_21, window_bounds = array<i64: 1, 96>}, {pipeline_mode = #tpu.pipeline_mode<synchronous>, transform_indices = @transform_22, window_bounds = array<i64: 32, 96>}, {pipeline_mode = #tpu.pipeline_mode<synchronous>, transform_indices = @transform_23, window_bounds = array<i64: 1, 96>}, {pipeline_mode = #tpu.pipeline_mode<synchronous>, transform_indices = @transform_24, window_bounds = array<i64: 32, 32>}, {pipeline_mode = #tpu.pipeline_mode<synchronous>, transform_indices = @transform_25, window_bounds = array<i64: 1, 32>}, {pipeline_mode = #tpu.pipeline_mode<synchronous>, transform_indices = @transform_26, window_bounds = array<i64: 32, 32>}, {pipeline_mode = #tpu.pipeline_mode<synchronous>, transform_indices = @transform_27, window_bounds = array<i64: 1, 32>}, {transform_indices = @transform_28, window_bounds = array<i64: 16, 32>}, {transform_indices = @transform_29, window_bounds = array<i64: 8, 32>}]} {
    %c0 = arith.constant 0 : index
    %c0_0 = arith.constant 0 : index
    %c0_1 = arith.constant 0 : index
    %0 = vector.load %arg3[%c0, %c0_0, %c0_1] : memref<1x1x16xf32, #tpu.memory_space<vmem>>, vector<1x1x16xf32>
    %c0_2 = arith.constant 0 : index
    %c0_3 = arith.constant 0 : index
    %c0_4 = arith.constant 0 : index
    %1 = vector.load %arg4[%c0_2, %c0_3, %c0_4] : memref<1x1x8xf32, #tpu.memory_space<vmem>>, vector<1x1x8xf32>
    %2 = vector.shape_cast %0 : vector<1x1x16xf32> to vector<1x16xf32>
    %3 = vector.shape_cast %1 : vector<1x1x8xf32> to vector<1x8xf32>
    %cst = arith.constant 0.000000e+00 : f32
    %4 = vector.broadcast %cst : f32 to vector<1x16xf32>
    %5 = arith.cmpf oeq, %2, %4 : vector<1x16xf32>
    %cst_5 = arith.constant -1.000000e+09 : f32
    %cst_6 = arith.constant 0.000000e+00 : f32
    %6 = vector.broadcast %cst_5 : f32 to vector<1x16xf32>
    %7 = vector.broadcast %cst_6 : f32 to vector<1x16xf32>
    %8 = arith.select %5, %6, %7 : vector<1x16xi1>, vector<1x16xf32>
    %cst_7 = arith.constant 0.000000e+00 : f32
    %9 = vector.broadcast %cst_7 : f32 to vector<1x8xf32>
    %10 = arith.cmpf oeq, %3, %9 : vector<1x8xf32>
    %cst_8 = arith.constant -1.000000e+09 : f32
    %cst_9 = arith.constant 0.000000e+00 : f32
    %11 = vector.broadcast %cst_8 : f32 to vector<1x8xf32>
    %12 = vector.broadcast %cst_9 : f32 to vector<1x8xf32>
    %13 = arith.select %10, %11, %12 : vector<1x8xi1>, vector<1x8xf32>
    %14 = vector.shape_cast %2 : vector<1x16xf32> to vector<1x16xf32>
    %15 = vector.broadcast %14 : vector<1x16xf32> to vector<16x16xf32>
    %16 = tpu.iota {dimensions = array<i32: 0>} : vector<16x16xi32>
    %17 = tpu.iota {dimensions = array<i32: 1>} : vector<16x16xi32>
    %18 = arith.cmpi eq, %16, %17 : vector<16x16xi32>
    %cst_10 = arith.constant 0.000000e+00 : f32
    %19 = vector.broadcast %cst_10 : f32 to vector<16x16xf32>
    %20 = arith.select %18, %15, %19 : vector<16x16xi1>, vector<16x16xf32>
    %cst_11 = arith.constant dense<0.000000e+00> : vector<16xf32>
    %21 = vector.multi_reduction <add>, %20, %cst_11 [1] : vector<16x16xf32> to vector<16xf32>
    %22 = vector.shape_cast %21 : vector<16xf32> to vector<16x1xf32>
    %23 = vector.shape_cast %3 : vector<1x8xf32> to vector<1x8xf32>
    %24 = vector.broadcast %23 : vector<1x8xf32> to vector<8x8xf32>
    %25 = tpu.iota {dimensions = array<i32: 0>} : vector<8x8xi32>
    %26 = tpu.iota {dimensions = array<i32: 1>} : vector<8x8xi32>
    %27 = arith.cmpi eq, %25, %26 : vector<8x8xi32>
    %cst_12 = arith.constant 0.000000e+00 : f32
    %28 = vector.broadcast %cst_12 : f32 to vector<8x8xf32>
    %29 = arith.select %27, %24, %28 : vector<8x8xi1>, vector<8x8xf32>
    %cst_13 = arith.constant dense<0.000000e+00> : vector<8xf32>
    %30 = vector.multi_reduction <add>, %29, %cst_13 [1] : vector<8x8xf32> to vector<8xf32>
    %31 = vector.shape_cast %30 : vector<8xf32> to vector<8x1xf32>
    %c0_14 = arith.constant 0 : index
    %c0_15 = arith.constant 0 : index
    %32 = vector.load %arg5[%c0_14, %c0_15] : memref<32x32xf32, #tpu.memory_space<vmem>>, vector<32x32xf32>
    %c0_16 = arith.constant 0 : index
    %c0_17 = arith.constant 0 : index
    %33 = vector.load %arg6[%c0_16, %c0_17] : memref<1x32xf32, #tpu.memory_space<vmem>>, vector<1x32xf32>
    %c0_18 = arith.constant 0 : index
    %c0_19 = arith.constant 0 : index
    %34 = vector.load %arg7[%c0_18, %c0_19] : memref<32x32xf32, #tpu.memory_space<vmem>>, vector<32x32xf32>
    %c0_20 = arith.constant 0 : index
    %c0_21 = arith.constant 0 : index
    %35 = vector.load %arg8[%c0_20, %c0_21] : memref<1x32xf32, #tpu.memory_space<vmem>>, vector<1x32xf32>
    %c0_22 = arith.constant 0 : index
    %c0_23 = arith.constant 0 : index
    %36 = vector.load %arg9[%c0_22, %c0_23] : memref<32x96xf32, #tpu.memory_space<vmem>>, vector<32x96xf32>
    %c0_24 = arith.constant 0 : index
    %c0_25 = arith.constant 0 : index
    %37 = vector.load %arg10[%c0_24, %c0_25] : memref<1x96xf32, #tpu.memory_space<vmem>>, vector<1x96xf32>
    %c0_26 = arith.constant 0 : index
    %c0_27 = arith.constant 0 : index
    %38 = vector.load %arg11[%c0_26, %c0_27] : memref<32x96xf32, #tpu.memory_space<vmem>>, vector<32x96xf32>
    %c0_28 = arith.constant 0 : index
    %c0_29 = arith.constant 0 : index
    %39 = vector.load %arg12[%c0_28, %c0_29] : memref<1x96xf32, #tpu.memory_space<vmem>>, vector<1x96xf32>
    %c0_30 = arith.constant 0 : index
    %c0_31 = arith.constant 0 : index
    %40 = vector.load %arg13[%c0_30, %c0_31] : memref<64x32xf32, #tpu.memory_space<vmem>>, vector<64x32xf32>
    %c0_32 = arith.constant 0 : index
    %c0_33 = arith.constant 0 : index
    %41 = vector.load %arg14[%c0_32, %c0_33] : memref<1x32xf32, #tpu.memory_space<vmem>>, vector<1x32xf32>
    %c0_34 = arith.constant 0 : index
    %c0_35 = arith.constant 0 : index
    %42 = vector.load %arg15[%c0_34, %c0_35] : memref<64x32xf32, #tpu.memory_space<vmem>>, vector<64x32xf32>
    %c0_36 = arith.constant 0 : index
    %c0_37 = arith.constant 0 : index
    %43 = vector.load %arg16[%c0_36, %c0_37] : memref<1x32xf32, #tpu.memory_space<vmem>>, vector<1x32xf32>
    %c0_38 = arith.constant 0 : index
    %c0_39 = arith.constant 0 : index
    %44 = vector.load %arg17[%c0_38, %c0_39] : memref<32x32xf32, #tpu.memory_space<vmem>>, vector<32x32xf32>
    %c0_40 = arith.constant 0 : index
    %c0_41 = arith.constant 0 : index
    %45 = vector.load %arg18[%c0_40, %c0_41] : memref<1x32xf32, #tpu.memory_space<vmem>>, vector<1x32xf32>
    %c0_42 = arith.constant 0 : index
    %c0_43 = arith.constant 0 : index
    %46 = vector.load %arg19[%c0_42, %c0_43] : memref<32x32xf32, #tpu.memory_space<vmem>>, vector<32x32xf32>
    %c0_44 = arith.constant 0 : index
    %c0_45 = arith.constant 0 : index
    %47 = vector.load %arg20[%c0_44, %c0_45] : memref<1x32xf32, #tpu.memory_space<vmem>>, vector<1x32xf32>
    %c0_46 = arith.constant 0 : index
    %c0_47 = arith.constant 0 : index
    %48 = vector.load %arg21[%c0_46, %c0_47] : memref<32x96xf32, #tpu.memory_space<vmem>>, vector<32x96xf32>
    %c0_48 = arith.constant 0 : index
    %c0_49 = arith.constant 0 : index
    %49 = vector.load %arg22[%c0_48, %c0_49] : memref<1x96xf32, #tpu.memory_space<vmem>>, vector<1x96xf32>
    %c0_50 = arith.constant 0 : index
    %c0_51 = arith.constant 0 : index
    %50 = vector.load %arg23[%c0_50, %c0_51] : memref<32x96xf32, #tpu.memory_space<vmem>>, vector<32x96xf32>
    %c0_52 = arith.constant 0 : index
    %c0_53 = arith.constant 0 : index
    %51 = vector.load %arg24[%c0_52, %c0_53] : memref<1x96xf32, #tpu.memory_space<vmem>>, vector<1x96xf32>
    %c0_54 = arith.constant 0 : index
    %c0_55 = arith.constant 0 : index
    %52 = vector.load %arg25[%c0_54, %c0_55] : memref<32x32xf32, #tpu.memory_space<vmem>>, vector<32x32xf32>
    %c0_56 = arith.constant 0 : index
    %c0_57 = arith.constant 0 : index
    %53 = vector.load %arg26[%c0_56, %c0_57] : memref<1x32xf32, #tpu.memory_space<vmem>>, vector<1x32xf32>
    %c0_58 = arith.constant 0 : index
    %c0_59 = arith.constant 0 : index
    %54 = vector.load %arg27[%c0_58, %c0_59] : memref<32x32xf32, #tpu.memory_space<vmem>>, vector<32x32xf32>
    %c0_60 = arith.constant 0 : index
    %c0_61 = arith.constant 0 : index
    %55 = vector.load %arg28[%c0_60, %c0_61] : memref<1x32xf32, #tpu.memory_space<vmem>>, vector<1x32xf32>
    %c0_62 = arith.constant 0 : index
    %c0_63 = arith.constant 0 : index
    %56 = vector.load %arg1[%c0_62, %c0_63] : memref<16x32xf32, #tpu.memory_space<vmem>>, vector<16x32xf32>
    %57 = arith.truncf %56 : vector<16x32xf32> to vector<16x32xbf16>
    %58 = arith.truncf %32 : vector<32x32xf32> to vector<32x32xbf16>
    %cst_64 = arith.constant dense<0.000000e+00> : vector<16x32xf32>
    %59 = tpu.matmul %57, %58, %cst_64 {dimension_numbers = #tpu.dot_dimension_numbers<[1], [0], [0], [1], [0, 0, 1, 1], [], []>} : vector<16x32xbf16>, vector<32x32xbf16>, vector<16x32xf32> -> vector<16x32xf32>
    %60 = vector.broadcast %33 : vector<1x32xf32> to vector<16x32xf32>
    %61 = arith.addf %59, %60 : vector<16x32xf32>
    %c0_65 = arith.constant 0 : index
    %c0_66 = arith.constant 0 : index
    %62 = vector.load %arg2[%c0_65, %c0_66] : memref<8x32xf32, #tpu.memory_space<vmem>>, vector<8x32xf32>
    %63 = arith.truncf %62 : vector<8x32xf32> to vector<8x32xbf16>
    %64 = arith.truncf %34 : vector<32x32xf32> to vector<32x32xbf16>
    %cst_67 = arith.constant dense<0.000000e+00> : vector<8x32xf32>
    %65 = tpu.matmul %63, %64, %cst_67 {dimension_numbers = #tpu.dot_dimension_numbers<[1], [0], [0], [1], [0, 0, 1, 1], [], []>} : vector<8x32xbf16>, vector<32x32xbf16>, vector<8x32xf32> -> vector<8x32xf32>
    %66 = vector.broadcast %35 : vector<1x32xf32> to vector<8x32xf32>
    %67 = arith.addf %65, %66 : vector<8x32xf32>
    %cst_68 = arith.constant 0.000000e+00 : f32
    %68 = vector.broadcast %cst_68 : f32 to vector<16x32xf32>
    %69 = arith.maximumf %61, %68 : vector<16x32xf32>
    %70 = arith.truncf %69 : vector<16x32xf32> to vector<16x32xbf16>
    %71 = arith.truncf %36 : vector<32x96xf32> to vector<32x96xbf16>
    %cst_69 = arith.constant dense<0.000000e+00> : vector<16x96xf32>
    %72 = tpu.matmul %70, %71, %cst_69 {dimension_numbers = #tpu.dot_dimension_numbers<[1], [0], [0], [1], [0, 0, 1, 1], [], []>} : vector<16x32xbf16>, vector<32x96xbf16>, vector<16x96xf32> -> vector<16x96xf32>
    %73 = vector.broadcast %37 : vector<1x96xf32> to vector<16x96xf32>
    %74 = arith.addf %72, %73 : vector<16x96xf32>
    %75 = vector.broadcast %22 : vector<16x1xf32> to vector<16x96xf32>
    %76 = arith.mulf %74, %75 : vector<16x96xf32>
    %cst_70 = arith.constant 0.000000e+00 : f32
    %77 = vector.broadcast %cst_70 : f32 to vector<8x32xf32>
    %78 = arith.maximumf %67, %77 : vector<8x32xf32>
    %79 = arith.truncf %78 : vector<8x32xf32> to vector<8x32xbf16>
    %80 = arith.truncf %38 : vector<32x96xf32> to vector<32x96xbf16>
    %cst_71 = arith.constant dense<0.000000e+00> : vector<8x96xf32>
    %81 = tpu.matmul %79, %80, %cst_71 {dimension_numbers = #tpu.dot_dimension_numbers<[1], [0], [0], [1], [0, 0, 1, 1], [], []>} : vector<8x32xbf16>, vector<32x96xbf16>, vector<8x96xf32> -> vector<8x96xf32>
    %82 = vector.broadcast %39 : vector<1x96xf32> to vector<8x96xf32>
    %83 = arith.addf %81, %82 : vector<8x96xf32>
    %84 = vector.broadcast %31 : vector<8x1xf32> to vector<8x96xf32>
    %85 = arith.mulf %83, %84 : vector<8x96xf32>
    %86 = vector.extract_strided_slice %40 {offsets = [0, 0], sizes = [32, 32], strides = [1, 1]} : vector<64x32xf32> to vector<32x32xf32>
    %87 = arith.truncf %61 : vector<16x32xf32> to vector<16x32xbf16>
    %88 = arith.truncf %86 : vector<32x32xf32> to vector<32x32xbf16>
    %cst_72 = arith.constant dense<0.000000e+00> : vector<16x32xf32>
    %89 = tpu.matmul %87, %88, %cst_72 {dimension_numbers = #tpu.dot_dimension_numbers<[1], [0], [0], [1], [0, 0, 1, 1], [], []>} : vector<16x32xbf16>, vector<32x32xbf16>, vector<16x32xf32> -> vector<16x32xf32>
    %90 = vector.broadcast %41 : vector<1x32xf32> to vector<16x32xf32>
    %91 = arith.addf %89, %90 : vector<16x32xf32>
    %92 = vector.extract_strided_slice %42 {offsets = [0, 0], sizes = [32, 32], strides = [1, 1]} : vector<64x32xf32> to vector<32x32xf32>
    %93 = arith.truncf %67 : vector<8x32xf32> to vector<8x32xbf16>
    %94 = arith.truncf %92 : vector<32x32xf32> to vector<32x32xbf16>
    %cst_73 = arith.constant dense<0.000000e+00> : vector<8x32xf32>
    %95 = tpu.matmul %93, %94, %cst_73 {dimension_numbers = #tpu.dot_dimension_numbers<[1], [0], [0], [1], [0, 0, 1, 1], [], []>} : vector<8x32xbf16>, vector<32x32xbf16>, vector<8x32xf32> -> vector<8x32xf32>
    %96 = vector.broadcast %43 : vector<1x32xf32> to vector<8x32xf32>
    %97 = arith.addf %95, %96 : vector<8x32xf32>
    %98 = vector.extract_strided_slice %76 {offsets = [0, 0], sizes = [16, 32], strides = [1, 1]} : vector<16x96xf32> to vector<16x32xf32>
    %99 = vector.extract_strided_slice %76 {offsets = [0, 32], sizes = [16, 32], strides = [1, 1]} : vector<16x96xf32> to vector<16x32xf32>
    %100 = vector.extract_strided_slice %76 {offsets = [0, 64], sizes = [16, 32], strides = [1, 1]} : vector<16x96xf32> to vector<16x32xf32>
    %101 = vector.extract_strided_slice %85 {offsets = [0, 0], sizes = [8, 32], strides = [1, 1]} : vector<8x96xf32> to vector<8x32xf32>
    %102 = vector.extract_strided_slice %85 {offsets = [0, 32], sizes = [8, 32], strides = [1, 1]} : vector<8x96xf32> to vector<8x32xf32>
    %103 = vector.extract_strided_slice %85 {offsets = [0, 64], sizes = [8, 32], strides = [1, 1]} : vector<8x96xf32> to vector<8x32xf32>
    %104 = vector.extract_strided_slice %40 {offsets = [32, 0], sizes = [32, 32], strides = [1, 1]} : vector<64x32xf32> to vector<32x32xf32>
    %105 = vector.extract_strided_slice %99 {offsets = [0, 0], sizes = [16, 8], strides = [1, 1]} : vector<16x32xf32> to vector<16x8xf32>
    %106 = vector.extract_strided_slice %101 {offsets = [0, 0], sizes = [8, 8], strides = [1, 1]} : vector<8x32xf32> to vector<8x8xf32>
    %107 = arith.truncf %105 : vector<16x8xf32> to vector<16x8xbf16>
    %108 = arith.truncf %106 : vector<8x8xf32> to vector<8x8xbf16>
    %cst_74 = arith.constant dense<0.000000e+00> : vector<16x8xf32>
    %109 = tpu.matmul %107, %108, %cst_74 {dimension_numbers = #tpu.dot_dimension_numbers<[1], [1], [0], [0], [0, 0, 1, 0], [], []>} : vector<16x8xbf16>, vector<8x8xbf16>, vector<16x8xf32> -> vector<16x8xf32>
    %110 = vector.broadcast %13 : vector<1x8xf32> to vector<16x8xf32>
    %111 = arith.addf %109, %110 : vector<16x8xf32>
    %cst_75 = arith.constant 0.353553385 : f32
    %112 = vector.broadcast %cst_75 : f32 to vector<16x8xf32>
    %113 = arith.mulf %111, %112 : vector<16x8xf32>
    %cst_76 = arith.constant dense<0xFF800000> : vector<16xf32>
    %114 = vector.multi_reduction <maximumf>, %113, %cst_76 [1] : vector<16x8xf32> to vector<16xf32>
    %115 = vector.shape_cast %114 : vector<16xf32> to vector<16x1xf32>
    %116 = vector.broadcast %115 : vector<16x1xf32> to vector<16x8xf32>
    %117 = arith.subf %113, %116 : vector<16x8xf32>
    %118 = math.exp %117 : vector<16x8xf32>
    %cst_77 = arith.constant dense<0.000000e+00> : vector<16xf32>
    %119 = vector.multi_reduction <add>, %118, %cst_77 [1] : vector<16x8xf32> to vector<16xf32>
    %120 = vector.shape_cast %119 : vector<16xf32> to vector<16x1xf32>
    %121 = tpu.reciprocal %120 {approx = true} : vector<16x1xf32> -> vector<16x1xf32>
    %122 = vector.broadcast %121 : vector<16x1xf32> to vector<16x8xf32>
    %123 = arith.mulf %118, %122 : vector<16x8xf32>
    %124 = vector.extract_strided_slice %103 {offsets = [0, 0], sizes = [8, 8], strides = [1, 1]} : vector<8x32xf32> to vector<8x8xf32>
    %125 = arith.truncf %123 : vector<16x8xf32> to vector<16x8xbf16>
    %126 = arith.truncf %124 : vector<8x8xf32> to vector<8x8xbf16>
    %cst_78 = arith.constant dense<0.000000e+00> : vector<16x8xf32>
    %127 = tpu.matmul %125, %126, %cst_78 {dimension_numbers = #tpu.dot_dimension_numbers<[1], [0], [0], [1], [0, 0, 1, 1], [], []>} : vector<16x8xbf16>, vector<8x8xbf16>, vector<16x8xf32> -> vector<16x8xf32>
    %128 = vector.extract_strided_slice %104 {offsets = [0, 0], sizes = [8, 32], strides = [1, 1]} : vector<32x32xf32> to vector<8x32xf32>
    %129 = arith.truncf %127 : vector<16x8xf32> to vector<16x8xbf16>
    %130 = arith.truncf %128 : vector<8x32xf32> to vector<8x32xbf16>
    %cst_79 = arith.constant dense<0.000000e+00> : vector<16x32xf32>
    %131 = tpu.matmul %129, %130, %cst_79 {dimension_numbers = #tpu.dot_dimension_numbers<[1], [0], [0], [1], [0, 0, 1, 1], [], []>} : vector<16x8xbf16>, vector<8x32xbf16>, vector<16x32xf32> -> vector<16x32xf32>
    %132 = vector.extract_strided_slice %99 {offsets = [0, 8], sizes = [16, 8], strides = [1, 1]} : vector<16x32xf32> to vector<16x8xf32>
    %133 = vector.extract_strided_slice %101 {offsets = [0, 8], sizes = [8, 8], strides = [1, 1]} : vector<8x32xf32> to vector<8x8xf32>
    %134 = arith.truncf %132 : vector<16x8xf32> to vector<16x8xbf16>
    %135 = arith.truncf %133 : vector<8x8xf32> to vector<8x8xbf16>
    %cst_80 = arith.constant dense<0.000000e+00> : vector<16x8xf32>
    %136 = tpu.matmul %134, %135, %cst_80 {dimension_numbers = #tpu.dot_dimension_numbers<[1], [1], [0], [0], [0, 0, 1, 0], [], []>} : vector<16x8xbf16>, vector<8x8xbf16>, vector<16x8xf32> -> vector<16x8xf32>
    %137 = vector.broadcast %13 : vector<1x8xf32> to vector<16x8xf32>
    %138 = arith.addf %136, %137 : vector<16x8xf32>
    %cst_81 = arith.constant 0.353553385 : f32
    %139 = vector.broadcast %cst_81 : f32 to vector<16x8xf32>
    %140 = arith.mulf %138, %139 : vector<16x8xf32>
    %cst_82 = arith.constant dense<0xFF800000> : vector<16xf32>
    %141 = vector.multi_reduction <maximumf>, %140, %cst_82 [1] : vector<16x8xf32> to vector<16xf32>
    %142 = vector.shape_cast %141 : vector<16xf32> to vector<16x1xf32>
    %143 = vector.broadcast %142 : vector<16x1xf32> to vector<16x8xf32>
    %144 = arith.subf %140, %143 : vector<16x8xf32>
    %145 = math.exp %144 : vector<16x8xf32>
    %cst_83 = arith.constant dense<0.000000e+00> : vector<16xf32>
    %146 = vector.multi_reduction <add>, %145, %cst_83 [1] : vector<16x8xf32> to vector<16xf32>
    %147 = vector.shape_cast %146 : vector<16xf32> to vector<16x1xf32>
    %148 = tpu.reciprocal %147 {approx = true} : vector<16x1xf32> -> vector<16x1xf32>
    %149 = vector.broadcast %148 : vector<16x1xf32> to vector<16x8xf32>
    %150 = arith.mulf %145, %149 : vector<16x8xf32>
    %151 = vector.extract_strided_slice %103 {offsets = [0, 8], sizes = [8, 8], strides = [1, 1]} : vector<8x32xf32> to vector<8x8xf32>
    %152 = arith.truncf %150 : vector<16x8xf32> to vector<16x8xbf16>
    %153 = arith.truncf %151 : vector<8x8xf32> to vector<8x8xbf16>
    %cst_84 = arith.constant dense<0.000000e+00> : vector<16x8xf32>
    %154 = tpu.matmul %152, %153, %cst_84 {dimension_numbers = #tpu.dot_dimension_numbers<[1], [0], [0], [1], [0, 0, 1, 1], [], []>} : vector<16x8xbf16>, vector<8x8xbf16>, vector<16x8xf32> -> vector<16x8xf32>
    %155 = vector.extract_strided_slice %104 {offsets = [8, 0], sizes = [8, 32], strides = [1, 1]} : vector<32x32xf32> to vector<8x32xf32>
    %156 = arith.truncf %154 : vector<16x8xf32> to vector<16x8xbf16>
    %157 = arith.truncf %155 : vector<8x32xf32> to vector<8x32xbf16>
    %cst_85 = arith.constant dense<0.000000e+00> : vector<16x32xf32>
    %158 = tpu.matmul %156, %157, %cst_85 {dimension_numbers = #tpu.dot_dimension_numbers<[1], [0], [0], [1], [0, 0, 1, 1], [], []>} : vector<16x8xbf16>, vector<8x32xbf16>, vector<16x32xf32> -> vector<16x32xf32>
    %159 = arith.addf %131, %158 : vector<16x32xf32>
    %160 = vector.extract_strided_slice %99 {offsets = [0, 16], sizes = [16, 8], strides = [1, 1]} : vector<16x32xf32> to vector<16x8xf32>
    %161 = vector.extract_strided_slice %101 {offsets = [0, 16], sizes = [8, 8], strides = [1, 1]} : vector<8x32xf32> to vector<8x8xf32>
    %162 = arith.truncf %160 : vector<16x8xf32> to vector<16x8xbf16>
    %163 = arith.truncf %161 : vector<8x8xf32> to vector<8x8xbf16>
    %cst_86 = arith.constant dense<0.000000e+00> : vector<16x8xf32>
    %164 = tpu.matmul %162, %163, %cst_86 {dimension_numbers = #tpu.dot_dimension_numbers<[1], [1], [0], [0], [0, 0, 1, 0], [], []>} : vector<16x8xbf16>, vector<8x8xbf16>, vector<16x8xf32> -> vector<16x8xf32>
    %165 = vector.broadcast %13 : vector<1x8xf32> to vector<16x8xf32>
    %166 = arith.addf %164, %165 : vector<16x8xf32>
    %cst_87 = arith.constant 0.353553385 : f32
    %167 = vector.broadcast %cst_87 : f32 to vector<16x8xf32>
    %168 = arith.mulf %166, %167 : vector<16x8xf32>
    %cst_88 = arith.constant dense<0xFF800000> : vector<16xf32>
    %169 = vector.multi_reduction <maximumf>, %168, %cst_88 [1] : vector<16x8xf32> to vector<16xf32>
    %170 = vector.shape_cast %169 : vector<16xf32> to vector<16x1xf32>
    %171 = vector.broadcast %170 : vector<16x1xf32> to vector<16x8xf32>
    %172 = arith.subf %168, %171 : vector<16x8xf32>
    %173 = math.exp %172 : vector<16x8xf32>
    %cst_89 = arith.constant dense<0.000000e+00> : vector<16xf32>
    %174 = vector.multi_reduction <add>, %173, %cst_89 [1] : vector<16x8xf32> to vector<16xf32>
    %175 = vector.shape_cast %174 : vector<16xf32> to vector<16x1xf32>
    %176 = tpu.reciprocal %175 {approx = true} : vector<16x1xf32> -> vector<16x1xf32>
    %177 = vector.broadcast %176 : vector<16x1xf32> to vector<16x8xf32>
    %178 = arith.mulf %173, %177 : vector<16x8xf32>
    %179 = vector.extract_strided_slice %103 {offsets = [0, 16], sizes = [8, 8], strides = [1, 1]} : vector<8x32xf32> to vector<8x8xf32>
    %180 = arith.truncf %178 : vector<16x8xf32> to vector<16x8xbf16>
    %181 = arith.truncf %179 : vector<8x8xf32> to vector<8x8xbf16>
    %cst_90 = arith.constant dense<0.000000e+00> : vector<16x8xf32>
    %182 = tpu.matmul %180, %181, %cst_90 {dimension_numbers = #tpu.dot_dimension_numbers<[1], [0], [0], [1], [0, 0, 1, 1], [], []>} : vector<16x8xbf16>, vector<8x8xbf16>, vector<16x8xf32> -> vector<16x8xf32>
    %183 = vector.extract_strided_slice %104 {offsets = [16, 0], sizes = [8, 32], strides = [1, 1]} : vector<32x32xf32> to vector<8x32xf32>
    %184 = arith.truncf %182 : vector<16x8xf32> to vector<16x8xbf16>
    %185 = arith.truncf %183 : vector<8x32xf32> to vector<8x32xbf16>
    %cst_91 = arith.constant dense<0.000000e+00> : vector<16x32xf32>
    %186 = tpu.matmul %184, %185, %cst_91 {dimension_numbers = #tpu.dot_dimension_numbers<[1], [0], [0], [1], [0, 0, 1, 1], [], []>} : vector<16x8xbf16>, vector<8x32xbf16>, vector<16x32xf32> -> vector<16x32xf32>
    %187 = arith.addf %159, %186 : vector<16x32xf32>
    %188 = vector.extract_strided_slice %99 {offsets = [0, 24], sizes = [16, 8], strides = [1, 1]} : vector<16x32xf32> to vector<16x8xf32>
    %189 = vector.extract_strided_slice %101 {offsets = [0, 24], sizes = [8, 8], strides = [1, 1]} : vector<8x32xf32> to vector<8x8xf32>
    %190 = arith.truncf %188 : vector<16x8xf32> to vector<16x8xbf16>
    %191 = arith.truncf %189 : vector<8x8xf32> to vector<8x8xbf16>
    %cst_92 = arith.constant dense<0.000000e+00> : vector<16x8xf32>
    %192 = tpu.matmul %190, %191, %cst_92 {dimension_numbers = #tpu.dot_dimension_numbers<[1], [1], [0], [0], [0, 0, 1, 0], [], []>} : vector<16x8xbf16>, vector<8x8xbf16>, vector<16x8xf32> -> vector<16x8xf32>
    %193 = vector.broadcast %13 : vector<1x8xf32> to vector<16x8xf32>
    %194 = arith.addf %192, %193 : vector<16x8xf32>
    %cst_93 = arith.constant 0.353553385 : f32
    %195 = vector.broadcast %cst_93 : f32 to vector<16x8xf32>
    %196 = arith.mulf %194, %195 : vector<16x8xf32>
    %cst_94 = arith.constant dense<0xFF800000> : vector<16xf32>
    %197 = vector.multi_reduction <maximumf>, %196, %cst_94 [1] : vector<16x8xf32> to vector<16xf32>
    %198 = vector.shape_cast %197 : vector<16xf32> to vector<16x1xf32>
    %199 = vector.broadcast %198 : vector<16x1xf32> to vector<16x8xf32>
    %200 = arith.subf %196, %199 : vector<16x8xf32>
    %201 = math.exp %200 : vector<16x8xf32>
    %cst_95 = arith.constant dense<0.000000e+00> : vector<16xf32>
    %202 = vector.multi_reduction <add>, %201, %cst_95 [1] : vector<16x8xf32> to vector<16xf32>
    %203 = vector.shape_cast %202 : vector<16xf32> to vector<16x1xf32>
    %204 = tpu.reciprocal %203 {approx = true} : vector<16x1xf32> -> vector<16x1xf32>
    %205 = vector.broadcast %204 : vector<16x1xf32> to vector<16x8xf32>
    %206 = arith.mulf %201, %205 : vector<16x8xf32>
    %207 = vector.extract_strided_slice %103 {offsets = [0, 24], sizes = [8, 8], strides = [1, 1]} : vector<8x32xf32> to vector<8x8xf32>
    %208 = arith.truncf %206 : vector<16x8xf32> to vector<16x8xbf16>
    %209 = arith.truncf %207 : vector<8x8xf32> to vector<8x8xbf16>
    %cst_96 = arith.constant dense<0.000000e+00> : vector<16x8xf32>
    %210 = tpu.matmul %208, %209, %cst_96 {dimension_numbers = #tpu.dot_dimension_numbers<[1], [0], [0], [1], [0, 0, 1, 1], [], []>} : vector<16x8xbf16>, vector<8x8xbf16>, vector<16x8xf32> -> vector<16x8xf32>
    %211 = vector.extract_strided_slice %104 {offsets = [24, 0], sizes = [8, 32], strides = [1, 1]} : vector<32x32xf32> to vector<8x32xf32>
    %212 = arith.truncf %210 : vector<16x8xf32> to vector<16x8xbf16>
    %213 = arith.truncf %211 : vector<8x32xf32> to vector<8x32xbf16>
    %cst_97 = arith.constant dense<0.000000e+00> : vector<16x32xf32>
    %214 = tpu.matmul %212, %213, %cst_97 {dimension_numbers = #tpu.dot_dimension_numbers<[1], [0], [0], [1], [0, 0, 1, 1], [], []>} : vector<16x8xbf16>, vector<8x32xbf16>, vector<16x32xf32> -> vector<16x32xf32>
    %215 = arith.addf %187, %214 : vector<16x32xf32>
    %216 = vector.extract_strided_slice %42 {offsets = [32, 0], sizes = [32, 32], strides = [1, 1]} : vector<64x32xf32> to vector<32x32xf32>
    %217 = vector.extract_strided_slice %102 {offsets = [0, 0], sizes = [8, 8], strides = [1, 1]} : vector<8x32xf32> to vector<8x8xf32>
    %218 = vector.extract_strided_slice %98 {offsets = [0, 0], sizes = [16, 8], strides = [1, 1]} : vector<16x32xf32> to vector<16x8xf32>
    %219 = arith.truncf %217 : vector<8x8xf32> to vector<8x8xbf16>
    %220 = arith.truncf %218 : vector<16x8xf32> to vector<16x8xbf16>
    %cst_98 = arith.constant dense<0.000000e+00> : vector<8x16xf32>
    %221 = tpu.matmul %219, %220, %cst_98 {dimension_numbers = #tpu.dot_dimension_numbers<[1], [1], [0], [0], [0, 0, 1, 0], [], []>} : vector<8x8xbf16>, vector<16x8xbf16>, vector<8x16xf32> -> vector<8x16xf32>
    %222 = vector.broadcast %8 : vector<1x16xf32> to vector<8x16xf32>
    %223 = arith.addf %221, %222 : vector<8x16xf32>
    %cst_99 = arith.constant 0.353553385 : f32
    %224 = vector.broadcast %cst_99 : f32 to vector<8x16xf32>
    %225 = arith.mulf %223, %224 : vector<8x16xf32>
    %cst_100 = arith.constant dense<0xFF800000> : vector<8xf32>
    %226 = vector.multi_reduction <maximumf>, %225, %cst_100 [1] : vector<8x16xf32> to vector<8xf32>
    %227 = vector.shape_cast %226 : vector<8xf32> to vector<8x1xf32>
    %228 = vector.broadcast %227 : vector<8x1xf32> to vector<8x16xf32>
    %229 = arith.subf %225, %228 : vector<8x16xf32>
    %230 = math.exp %229 : vector<8x16xf32>
    %cst_101 = arith.constant dense<0.000000e+00> : vector<8xf32>
    %231 = vector.multi_reduction <add>, %230, %cst_101 [1] : vector<8x16xf32> to vector<8xf32>
    %232 = vector.shape_cast %231 : vector<8xf32> to vector<8x1xf32>
    %233 = tpu.reciprocal %232 {approx = true} : vector<8x1xf32> -> vector<8x1xf32>
    %234 = vector.broadcast %233 : vector<8x1xf32> to vector<8x16xf32>
    %235 = arith.mulf %230, %234 : vector<8x16xf32>
    %236 = vector.extract_strided_slice %100 {offsets = [0, 0], sizes = [16, 8], strides = [1, 1]} : vector<16x32xf32> to vector<16x8xf32>
    %237 = arith.truncf %235 : vector<8x16xf32> to vector<8x16xbf16>
    %238 = arith.truncf %236 : vector<16x8xf32> to vector<16x8xbf16>
    %cst_102 = arith.constant dense<0.000000e+00> : vector<8x8xf32>
    %239 = tpu.matmul %237, %238, %cst_102 {dimension_numbers = #tpu.dot_dimension_numbers<[1], [0], [0], [1], [0, 0, 1, 1], [], []>} : vector<8x16xbf16>, vector<16x8xbf16>, vector<8x8xf32> -> vector<8x8xf32>
    %240 = vector.extract_strided_slice %216 {offsets = [0, 0], sizes = [8, 32], strides = [1, 1]} : vector<32x32xf32> to vector<8x32xf32>
    %241 = arith.truncf %239 : vector<8x8xf32> to vector<8x8xbf16>
    %242 = arith.truncf %240 : vector<8x32xf32> to vector<8x32xbf16>
    %cst_103 = arith.constant dense<0.000000e+00> : vector<8x32xf32>
    %243 = tpu.matmul %241, %242, %cst_103 {dimension_numbers = #tpu.dot_dimension_numbers<[1], [0], [0], [1], [0, 0, 1, 1], [], []>} : vector<8x8xbf16>, vector<8x32xbf16>, vector<8x32xf32> -> vector<8x32xf32>
    %244 = vector.extract_strided_slice %102 {offsets = [0, 8], sizes = [8, 8], strides = [1, 1]} : vector<8x32xf32> to vector<8x8xf32>
    %245 = vector.extract_strided_slice %98 {offsets = [0, 8], sizes = [16, 8], strides = [1, 1]} : vector<16x32xf32> to vector<16x8xf32>
    %246 = arith.truncf %244 : vector<8x8xf32> to vector<8x8xbf16>
    %247 = arith.truncf %245 : vector<16x8xf32> to vector<16x8xbf16>
    %cst_104 = arith.constant dense<0.000000e+00> : vector<8x16xf32>
    %248 = tpu.matmul %246, %247, %cst_104 {dimension_numbers = #tpu.dot_dimension_numbers<[1], [1], [0], [0], [0, 0, 1, 0], [], []>} : vector<8x8xbf16>, vector<16x8xbf16>, vector<8x16xf32> -> vector<8x16xf32>
    %249 = vector.broadcast %8 : vector<1x16xf32> to vector<8x16xf32>
    %250 = arith.addf %248, %249 : vector<8x16xf32>
    %cst_105 = arith.constant 0.353553385 : f32
    %251 = vector.broadcast %cst_105 : f32 to vector<8x16xf32>
    %252 = arith.mulf %250, %251 : vector<8x16xf32>
    %cst_106 = arith.constant dense<0xFF800000> : vector<8xf32>
    %253 = vector.multi_reduction <maximumf>, %252, %cst_106 [1] : vector<8x16xf32> to vector<8xf32>
    %254 = vector.shape_cast %253 : vector<8xf32> to vector<8x1xf32>
    %255 = vector.broadcast %254 : vector<8x1xf32> to vector<8x16xf32>
    %256 = arith.subf %252, %255 : vector<8x16xf32>
    %257 = math.exp %256 : vector<8x16xf32>
    %cst_107 = arith.constant dense<0.000000e+00> : vector<8xf32>
    %258 = vector.multi_reduction <add>, %257, %cst_107 [1] : vector<8x16xf32> to vector<8xf32>
    %259 = vector.shape_cast %258 : vector<8xf32> to vector<8x1xf32>
    %260 = tpu.reciprocal %259 {approx = true} : vector<8x1xf32> -> vector<8x1xf32>
    %261 = vector.broadcast %260 : vector<8x1xf32> to vector<8x16xf32>
    %262 = arith.mulf %257, %261 : vector<8x16xf32>
    %263 = vector.extract_strided_slice %100 {offsets = [0, 8], sizes = [16, 8], strides = [1, 1]} : vector<16x32xf32> to vector<16x8xf32>
    %264 = arith.truncf %262 : vector<8x16xf32> to vector<8x16xbf16>
    %265 = arith.truncf %263 : vector<16x8xf32> to vector<16x8xbf16>
    %cst_108 = arith.constant dense<0.000000e+00> : vector<8x8xf32>
    %266 = tpu.matmul %264, %265, %cst_108 {dimension_numbers = #tpu.dot_dimension_numbers<[1], [0], [0], [1], [0, 0, 1, 1], [], []>} : vector<8x16xbf16>, vector<16x8xbf16>, vector<8x8xf32> -> vector<8x8xf32>
    %267 = vector.extract_strided_slice %216 {offsets = [8, 0], sizes = [8, 32], strides = [1, 1]} : vector<32x32xf32> to vector<8x32xf32>
    %268 = arith.truncf %266 : vector<8x8xf32> to vector<8x8xbf16>
    %269 = arith.truncf %267 : vector<8x32xf32> to vector<8x32xbf16>
    %cst_109 = arith.constant dense<0.000000e+00> : vector<8x32xf32>
    %270 = tpu.matmul %268, %269, %cst_109 {dimension_numbers = #tpu.dot_dimension_numbers<[1], [0], [0], [1], [0, 0, 1, 1], [], []>} : vector<8x8xbf16>, vector<8x32xbf16>, vector<8x32xf32> -> vector<8x32xf32>
    %271 = arith.addf %243, %270 : vector<8x32xf32>
    %272 = vector.extract_strided_slice %102 {offsets = [0, 16], sizes = [8, 8], strides = [1, 1]} : vector<8x32xf32> to vector<8x8xf32>
    %273 = vector.extract_strided_slice %98 {offsets = [0, 16], sizes = [16, 8], strides = [1, 1]} : vector<16x32xf32> to vector<16x8xf32>
    %274 = arith.truncf %272 : vector<8x8xf32> to vector<8x8xbf16>
    %275 = arith.truncf %273 : vector<16x8xf32> to vector<16x8xbf16>
    %cst_110 = arith.constant dense<0.000000e+00> : vector<8x16xf32>
    %276 = tpu.matmul %274, %275, %cst_110 {dimension_numbers = #tpu.dot_dimension_numbers<[1], [1], [0], [0], [0, 0, 1, 0], [], []>} : vector<8x8xbf16>, vector<16x8xbf16>, vector<8x16xf32> -> vector<8x16xf32>
    %277 = vector.broadcast %8 : vector<1x16xf32> to vector<8x16xf32>
    %278 = arith.addf %276, %277 : vector<8x16xf32>
    %cst_111 = arith.constant 0.353553385 : f32
    %279 = vector.broadcast %cst_111 : f32 to vector<8x16xf32>
    %280 = arith.mulf %278, %279 : vector<8x16xf32>
    %cst_112 = arith.constant dense<0xFF800000> : vector<8xf32>
    %281 = vector.multi_reduction <maximumf>, %280, %cst_112 [1] : vector<8x16xf32> to vector<8xf32>
    %282 = vector.shape_cast %281 : vector<8xf32> to vector<8x1xf32>
    %283 = vector.broadcast %282 : vector<8x1xf32> to vector<8x16xf32>
    %284 = arith.subf %280, %283 : vector<8x16xf32>
    %285 = math.exp %284 : vector<8x16xf32>
    %cst_113 = arith.constant dense<0.000000e+00> : vector<8xf32>
    %286 = vector.multi_reduction <add>, %285, %cst_113 [1] : vector<8x16xf32> to vector<8xf32>
    %287 = vector.shape_cast %286 : vector<8xf32> to vector<8x1xf32>
    %288 = tpu.reciprocal %287 {approx = true} : vector<8x1xf32> -> vector<8x1xf32>
    %289 = vector.broadcast %288 : vector<8x1xf32> to vector<8x16xf32>
    %290 = arith.mulf %285, %289 : vector<8x16xf32>
    %291 = vector.extract_strided_slice %100 {offsets = [0, 16], sizes = [16, 8], strides = [1, 1]} : vector<16x32xf32> to vector<16x8xf32>
    %292 = arith.truncf %290 : vector<8x16xf32> to vector<8x16xbf16>
    %293 = arith.truncf %291 : vector<16x8xf32> to vector<16x8xbf16>
    %cst_114 = arith.constant dense<0.000000e+00> : vector<8x8xf32>
    %294 = tpu.matmul %292, %293, %cst_114 {dimension_numbers = #tpu.dot_dimension_numbers<[1], [0], [0], [1], [0, 0, 1, 1], [], []>} : vector<8x16xbf16>, vector<16x8xbf16>, vector<8x8xf32> -> vector<8x8xf32>
    %295 = vector.extract_strided_slice %216 {offsets = [16, 0], sizes = [8, 32], strides = [1, 1]} : vector<32x32xf32> to vector<8x32xf32>
    %296 = arith.truncf %294 : vector<8x8xf32> to vector<8x8xbf16>
    %297 = arith.truncf %295 : vector<8x32xf32> to vector<8x32xbf16>
    %cst_115 = arith.constant dense<0.000000e+00> : vector<8x32xf32>
    %298 = tpu.matmul %296, %297, %cst_115 {dimension_numbers = #tpu.dot_dimension_numbers<[1], [0], [0], [1], [0, 0, 1, 1], [], []>} : vector<8x8xbf16>, vector<8x32xbf16>, vector<8x32xf32> -> vector<8x32xf32>
    %299 = arith.addf %271, %298 : vector<8x32xf32>
    %300 = vector.extract_strided_slice %102 {offsets = [0, 24], sizes = [8, 8], strides = [1, 1]} : vector<8x32xf32> to vector<8x8xf32>
    %301 = vector.extract_strided_slice %98 {offsets = [0, 24], sizes = [16, 8], strides = [1, 1]} : vector<16x32xf32> to vector<16x8xf32>
    %302 = arith.truncf %300 : vector<8x8xf32> to vector<8x8xbf16>
    %303 = arith.truncf %301 : vector<16x8xf32> to vector<16x8xbf16>
    %cst_116 = arith.constant dense<0.000000e+00> : vector<8x16xf32>
    %304 = tpu.matmul %302, %303, %cst_116 {dimension_numbers = #tpu.dot_dimension_numbers<[1], [1], [0], [0], [0, 0, 1, 0], [], []>} : vector<8x8xbf16>, vector<16x8xbf16>, vector<8x16xf32> -> vector<8x16xf32>
    %305 = vector.broadcast %8 : vector<1x16xf32> to vector<8x16xf32>
    %306 = arith.addf %304, %305 : vector<8x16xf32>
    %cst_117 = arith.constant 0.353553385 : f32
    %307 = vector.broadcast %cst_117 : f32 to vector<8x16xf32>
    %308 = arith.mulf %306, %307 : vector<8x16xf32>
    %cst_118 = arith.constant dense<0xFF800000> : vector<8xf32>
    %309 = vector.multi_reduction <maximumf>, %308, %cst_118 [1] : vector<8x16xf32> to vector<8xf32>
    %310 = vector.shape_cast %309 : vector<8xf32> to vector<8x1xf32>
    %311 = vector.broadcast %310 : vector<8x1xf32> to vector<8x16xf32>
    %312 = arith.subf %308, %311 : vector<8x16xf32>
    %313 = math.exp %312 : vector<8x16xf32>
    %cst_119 = arith.constant dense<0.000000e+00> : vector<8xf32>
    %314 = vector.multi_reduction <add>, %313, %cst_119 [1] : vector<8x16xf32> to vector<8xf32>
    %315 = vector.shape_cast %314 : vector<8xf32> to vector<8x1xf32>
    %316 = tpu.reciprocal %315 {approx = true} : vector<8x1xf32> -> vector<8x1xf32>
    %317 = vector.broadcast %316 : vector<8x1xf32> to vector<8x16xf32>
    %318 = arith.mulf %313, %317 : vector<8x16xf32>
    %319 = vector.extract_strided_slice %100 {offsets = [0, 24], sizes = [16, 8], strides = [1, 1]} : vector<16x32xf32> to vector<16x8xf32>
    %320 = arith.truncf %318 : vector<8x16xf32> to vector<8x16xbf16>
    %321 = arith.truncf %319 : vector<16x8xf32> to vector<16x8xbf16>
    %cst_120 = arith.constant dense<0.000000e+00> : vector<8x8xf32>
    %322 = tpu.matmul %320, %321, %cst_120 {dimension_numbers = #tpu.dot_dimension_numbers<[1], [0], [0], [1], [0, 0, 1, 1], [], []>} : vector<8x16xbf16>, vector<16x8xbf16>, vector<8x8xf32> -> vector<8x8xf32>
    %323 = vector.extract_strided_slice %216 {offsets = [24, 0], sizes = [8, 32], strides = [1, 1]} : vector<32x32xf32> to vector<8x32xf32>
    %324 = arith.truncf %322 : vector<8x8xf32> to vector<8x8xbf16>
    %325 = arith.truncf %323 : vector<8x32xf32> to vector<8x32xbf16>
    %cst_121 = arith.constant dense<0.000000e+00> : vector<8x32xf32>
    %326 = tpu.matmul %324, %325, %cst_121 {dimension_numbers = #tpu.dot_dimension_numbers<[1], [0], [0], [1], [0, 0, 1, 1], [], []>} : vector<8x8xbf16>, vector<8x32xbf16>, vector<8x32xf32> -> vector<8x32xf32>
    %327 = arith.addf %299, %326 : vector<8x32xf32>
    %328 = arith.addf %91, %215 : vector<16x32xf32>
    %329 = arith.addf %97, %327 : vector<8x32xf32>
    %cst_122 = arith.constant 0.000000e+00 : f32
    %330 = vector.broadcast %cst_122 : f32 to vector<16x32xf32>
    %331 = arith.maximumf %328, %330 : vector<16x32xf32>
    %332 = arith.truncf %331 : vector<16x32xf32> to vector<16x32xbf16>
    %333 = arith.truncf %48 : vector<32x96xf32> to vector<32x96xbf16>
    %cst_123 = arith.constant dense<0.000000e+00> : vector<16x96xf32>
    %334 = tpu.matmul %332, %333, %cst_123 {dimension_numbers = #tpu.dot_dimension_numbers<[1], [0], [0], [1], [0, 0, 1, 1], [], []>} : vector<16x32xbf16>, vector<32x96xbf16>, vector<16x96xf32> -> vector<16x96xf32>
    %335 = vector.broadcast %49 : vector<1x96xf32> to vector<16x96xf32>
    %336 = arith.addf %334, %335 : vector<16x96xf32>
    %337 = vector.broadcast %22 : vector<16x1xf32> to vector<16x96xf32>
    %338 = arith.mulf %336, %337 : vector<16x96xf32>
    %cst_124 = arith.constant 0.000000e+00 : f32
    %339 = vector.broadcast %cst_124 : f32 to vector<8x32xf32>
    %340 = arith.maximumf %329, %339 : vector<8x32xf32>
    %341 = arith.truncf %340 : vector<8x32xf32> to vector<8x32xbf16>
    %342 = arith.truncf %50 : vector<32x96xf32> to vector<32x96xbf16>
    %cst_125 = arith.constant dense<0.000000e+00> : vector<8x96xf32>
    %343 = tpu.matmul %341, %342, %cst_125 {dimension_numbers = #tpu.dot_dimension_numbers<[1], [0], [0], [1], [0, 0, 1, 1], [], []>} : vector<8x32xbf16>, vector<32x96xbf16>, vector<8x96xf32> -> vector<8x96xf32>
    %344 = vector.broadcast %51 : vector<1x96xf32> to vector<8x96xf32>
    %345 = arith.addf %343, %344 : vector<8x96xf32>
    %346 = vector.broadcast %31 : vector<8x1xf32> to vector<8x96xf32>
    %347 = arith.mulf %345, %346 : vector<8x96xf32>
    %348 = arith.truncf %328 : vector<16x32xf32> to vector<16x32xbf16>
    %349 = arith.truncf %52 : vector<32x32xf32> to vector<32x32xbf16>
    %cst_126 = arith.constant dense<0.000000e+00> : vector<16x32xf32>
    %350 = tpu.matmul %348, %349, %cst_126 {dimension_numbers = #tpu.dot_dimension_numbers<[1], [0], [0], [1], [0, 0, 1, 1], [], []>} : vector<16x32xbf16>, vector<32x32xbf16>, vector<16x32xf32> -> vector<16x32xf32>
    %351 = vector.broadcast %53 : vector<1x32xf32> to vector<16x32xf32>
    %352 = arith.addf %350, %351 : vector<16x32xf32>
    %353 = arith.truncf %329 : vector<8x32xf32> to vector<8x32xbf16>
    %354 = arith.truncf %54 : vector<32x32xf32> to vector<32x32xbf16>
    %cst_127 = arith.constant dense<0.000000e+00> : vector<8x32xf32>
    %355 = tpu.matmul %353, %354, %cst_127 {dimension_numbers = #tpu.dot_dimension_numbers<[1], [0], [0], [1], [0, 0, 1, 1], [], []>} : vector<8x32xbf16>, vector<32x32xbf16>, vector<8x32xf32> -> vector<8x32xf32>
    %356 = vector.broadcast %55 : vector<1x32xf32> to vector<8x32xf32>
    %357 = arith.addf %355, %356 : vector<8x32xf32>
    %cst_128 = arith.constant dense<0.000000e+00> : vector<1xf32>
    %358 = vector.multi_reduction <add>, %2, %cst_128 [1] : vector<1x16xf32> to vector<1xf32>
    %359 = vector.shape_cast %358 : vector<1xf32> to vector<1x1xf32>
    %cst_129 = arith.constant dense<0.000000e+00> : vector<1xf32>
    %360 = vector.multi_reduction <add>, %3, %cst_129 [1] : vector<1x8xf32> to vector<1xf32>
    %361 = vector.shape_cast %360 : vector<1xf32> to vector<1x1xf32>
    %362 = vector.broadcast %22 : vector<16x1xf32> to vector<16x32xf32>
    %363 = arith.mulf %328, %362 : vector<16x32xf32>
    %cst_130 = arith.constant dense<0.000000e+00> : vector<32xf32>
    %364 = vector.multi_reduction <add>, %363, %cst_130 [0] : vector<16x32xf32> to vector<32xf32>
    %365 = vector.shape_cast %364 : vector<32xf32> to vector<1x32xf32>
    %366 = vector.broadcast %359 : vector<1x1xf32> to vector<1x32xf32>
    %367 = arith.divf %365, %366 : vector<1x32xf32>
    %368 = vector.broadcast %31 : vector<8x1xf32> to vector<8x32xf32>
    %369 = arith.mulf %329, %368 : vector<8x32xf32>
    %cst_131 = arith.constant dense<0.000000e+00> : vector<32xf32>
    %370 = vector.multi_reduction <add>, %369, %cst_131 [0] : vector<8x32xf32> to vector<32xf32>
    %371 = vector.shape_cast %370 : vector<32xf32> to vector<1x32xf32>
    %372 = vector.broadcast %361 : vector<1x1xf32> to vector<1x32xf32>
    %373 = arith.divf %371, %372 : vector<1x32xf32>
    %cst_132 = arith.constant 0.000000e+00 : f32
    %374 = vector.broadcast %cst_132 : f32 to vector<1x32xf32>
    %375 = arith.maximumf %367, %374 : vector<1x32xf32>
    %376 = arith.truncf %375 : vector<1x32xf32> to vector<1x32xbf16>
    %377 = arith.truncf %44 : vector<32x32xf32> to vector<32x32xbf16>
    %cst_133 = arith.constant dense<0.000000e+00> : vector<1x32xf32>
    %378 = tpu.matmul %376, %377, %cst_133 {dimension_numbers = #tpu.dot_dimension_numbers<[1], [0], [0], [1], [0, 0, 1, 1], [], []>} : vector<1x32xbf16>, vector<32x32xbf16>, vector<1x32xf32> -> vector<1x32xf32>
    %379 = arith.addf %378, %45 : vector<1x32xf32>
    %380 = arith.negf %379 : vector<1x32xf32>
    %381 = math.exp %380 : vector<1x32xf32>
    %cst_134 = arith.constant 1.000000e+00 : f32
    %382 = vector.broadcast %cst_134 : f32 to vector<1x32xf32>
    %383 = arith.addf %382, %381 : vector<1x32xf32>
    %384 = arith.divf %382, %383 : vector<1x32xf32>
    %cst_135 = arith.constant 0.000000e+00 : f32
    %385 = vector.broadcast %cst_135 : f32 to vector<1x32xf32>
    %386 = arith.maximumf %373, %385 : vector<1x32xf32>
    %387 = arith.truncf %386 : vector<1x32xf32> to vector<1x32xbf16>
    %388 = arith.truncf %46 : vector<32x32xf32> to vector<32x32xbf16>
    %cst_136 = arith.constant dense<0.000000e+00> : vector<1x32xf32>
    %389 = tpu.matmul %387, %388, %cst_136 {dimension_numbers = #tpu.dot_dimension_numbers<[1], [0], [0], [1], [0, 0, 1, 1], [], []>} : vector<1x32xbf16>, vector<32x32xbf16>, vector<1x32xf32> -> vector<1x32xf32>
    %390 = arith.addf %389, %47 : vector<1x32xf32>
    %391 = arith.negf %390 : vector<1x32xf32>
    %392 = math.exp %391 : vector<1x32xf32>
    %cst_137 = arith.constant 1.000000e+00 : f32
    %393 = vector.broadcast %cst_137 : f32 to vector<1x32xf32>
    %394 = arith.addf %393, %392 : vector<1x32xf32>
    %395 = arith.divf %393, %394 : vector<1x32xf32>
    %cst_138 = arith.constant 1.000000e+00 : f32
    %396 = vector.broadcast %cst_138 : f32 to vector<1x32xf32>
    %397 = arith.addf %396, %395 : vector<1x32xf32>
    %cst_139 = arith.constant 1.000000e+00 : f32
    %398 = vector.broadcast %cst_139 : f32 to vector<1x32xf32>
    %399 = arith.addf %398, %384 : vector<1x32xf32>
    %400 = vector.extract_strided_slice %338 {offsets = [0, 0], sizes = [16, 32], strides = [1, 1]} : vector<16x96xf32> to vector<16x32xf32>
    %401 = vector.extract_strided_slice %338 {offsets = [0, 32], sizes = [16, 32], strides = [1, 1]} : vector<16x96xf32> to vector<16x32xf32>
    %402 = vector.extract_strided_slice %338 {offsets = [0, 64], sizes = [16, 32], strides = [1, 1]} : vector<16x96xf32> to vector<16x32xf32>
    %403 = vector.extract_strided_slice %347 {offsets = [0, 0], sizes = [8, 32], strides = [1, 1]} : vector<8x96xf32> to vector<8x32xf32>
    %404 = vector.extract_strided_slice %347 {offsets = [0, 32], sizes = [8, 32], strides = [1, 1]} : vector<8x96xf32> to vector<8x32xf32>
    %405 = vector.extract_strided_slice %347 {offsets = [0, 64], sizes = [8, 32], strides = [1, 1]} : vector<8x96xf32> to vector<8x32xf32>
    %406 = vector.broadcast %397 : vector<1x32xf32> to vector<16x32xf32>
    %407 = arith.mulf %406, %401 : vector<16x32xf32>
    %408 = vector.broadcast %397 : vector<1x32xf32> to vector<16x32xf32>
    %409 = arith.mulf %408, %400 : vector<16x32xf32>
    %410 = vector.extract_strided_slice %407 {offsets = [0, 0], sizes = [16, 8], strides = [1, 1]} : vector<16x32xf32> to vector<16x8xf32>
    %411 = vector.extract_strided_slice %409 {offsets = [0, 0], sizes = [16, 8], strides = [1, 1]} : vector<16x32xf32> to vector<16x8xf32>
    %412 = arith.truncf %410 : vector<16x8xf32> to vector<16x8xbf16>
    %413 = arith.truncf %411 : vector<16x8xf32> to vector<16x8xbf16>
    %cst_140 = arith.constant dense<0.000000e+00> : vector<16x16xf32>
    %414 = tpu.matmul %412, %413, %cst_140 {dimension_numbers = #tpu.dot_dimension_numbers<[1], [1], [0], [0], [0, 0, 1, 0], [], []>} : vector<16x8xbf16>, vector<16x8xbf16>, vector<16x16xf32> -> vector<16x16xf32>
    %415 = vector.broadcast %8 : vector<1x16xf32> to vector<16x16xf32>
    %416 = arith.addf %414, %415 : vector<16x16xf32>
    %cst_141 = arith.constant 0.353553385 : f32
    %417 = vector.broadcast %cst_141 : f32 to vector<16x16xf32>
    %418 = arith.mulf %416, %417 : vector<16x16xf32>
    %cst_142 = arith.constant dense<0xFF800000> : vector<16xf32>
    %419 = vector.multi_reduction <maximumf>, %418, %cst_142 [1] : vector<16x16xf32> to vector<16xf32>
    %420 = vector.shape_cast %419 : vector<16xf32> to vector<16x1xf32>
    %421 = vector.broadcast %420 : vector<16x1xf32> to vector<16x16xf32>
    %422 = arith.subf %418, %421 : vector<16x16xf32>
    %423 = math.exp %422 : vector<16x16xf32>
    %cst_143 = arith.constant dense<0.000000e+00> : vector<16xf32>
    %424 = vector.multi_reduction <add>, %423, %cst_143 [1] : vector<16x16xf32> to vector<16xf32>
    %425 = vector.shape_cast %424 : vector<16xf32> to vector<16x1xf32>
    %426 = tpu.reciprocal %425 {approx = true} : vector<16x1xf32> -> vector<16x1xf32>
    %427 = vector.broadcast %426 : vector<16x1xf32> to vector<16x16xf32>
    %428 = arith.mulf %423, %427 : vector<16x16xf32>
    %429 = vector.extract_strided_slice %402 {offsets = [0, 0], sizes = [16, 8], strides = [1, 1]} : vector<16x32xf32> to vector<16x8xf32>
    %430 = arith.truncf %428 : vector<16x16xf32> to vector<16x16xbf16>
    %431 = arith.truncf %429 : vector<16x8xf32> to vector<16x8xbf16>
    %cst_144 = arith.constant dense<0.000000e+00> : vector<16x8xf32>
    %432 = tpu.matmul %430, %431, %cst_144 {dimension_numbers = #tpu.dot_dimension_numbers<[1], [0], [0], [1], [0, 0, 1, 1], [], []>} : vector<16x16xbf16>, vector<16x8xbf16>, vector<16x8xf32> -> vector<16x8xf32>
    %433 = vector.extract_strided_slice %52 {offsets = [0, 0], sizes = [8, 32], strides = [1, 1]} : vector<32x32xf32> to vector<8x32xf32>
    %434 = arith.truncf %432 : vector<16x8xf32> to vector<16x8xbf16>
    %435 = arith.truncf %433 : vector<8x32xf32> to vector<8x32xbf16>
    %cst_145 = arith.constant dense<0.000000e+00> : vector<16x32xf32>
    %436 = tpu.matmul %434, %435, %cst_145 {dimension_numbers = #tpu.dot_dimension_numbers<[1], [0], [0], [1], [0, 0, 1, 1], [], []>} : vector<16x8xbf16>, vector<8x32xbf16>, vector<16x32xf32> -> vector<16x32xf32>
    %437 = vector.extract_strided_slice %407 {offsets = [0, 8], sizes = [16, 8], strides = [1, 1]} : vector<16x32xf32> to vector<16x8xf32>
    %438 = vector.extract_strided_slice %409 {offsets = [0, 8], sizes = [16, 8], strides = [1, 1]} : vector<16x32xf32> to vector<16x8xf32>
    %439 = arith.truncf %437 : vector<16x8xf32> to vector<16x8xbf16>
    %440 = arith.truncf %438 : vector<16x8xf32> to vector<16x8xbf16>
    %cst_146 = arith.constant dense<0.000000e+00> : vector<16x16xf32>
    %441 = tpu.matmul %439, %440, %cst_146 {dimension_numbers = #tpu.dot_dimension_numbers<[1], [1], [0], [0], [0, 0, 1, 0], [], []>} : vector<16x8xbf16>, vector<16x8xbf16>, vector<16x16xf32> -> vector<16x16xf32>
    %442 = vector.broadcast %8 : vector<1x16xf32> to vector<16x16xf32>
    %443 = arith.addf %441, %442 : vector<16x16xf32>
    %cst_147 = arith.constant 0.353553385 : f32
    %444 = vector.broadcast %cst_147 : f32 to vector<16x16xf32>
    %445 = arith.mulf %443, %444 : vector<16x16xf32>
    %cst_148 = arith.constant dense<0xFF800000> : vector<16xf32>
    %446 = vector.multi_reduction <maximumf>, %445, %cst_148 [1] : vector<16x16xf32> to vector<16xf32>
    %447 = vector.shape_cast %446 : vector<16xf32> to vector<16x1xf32>
    %448 = vector.broadcast %447 : vector<16x1xf32> to vector<16x16xf32>
    %449 = arith.subf %445, %448 : vector<16x16xf32>
    %450 = math.exp %449 : vector<16x16xf32>
    %cst_149 = arith.constant dense<0.000000e+00> : vector<16xf32>
    %451 = vector.multi_reduction <add>, %450, %cst_149 [1] : vector<16x16xf32> to vector<16xf32>
    %452 = vector.shape_cast %451 : vector<16xf32> to vector<16x1xf32>
    %453 = tpu.reciprocal %452 {approx = true} : vector<16x1xf32> -> vector<16x1xf32>
    %454 = vector.broadcast %453 : vector<16x1xf32> to vector<16x16xf32>
    %455 = arith.mulf %450, %454 : vector<16x16xf32>
    %456 = vector.extract_strided_slice %402 {offsets = [0, 8], sizes = [16, 8], strides = [1, 1]} : vector<16x32xf32> to vector<16x8xf32>
    %457 = arith.truncf %455 : vector<16x16xf32> to vector<16x16xbf16>
    %458 = arith.truncf %456 : vector<16x8xf32> to vector<16x8xbf16>
    %cst_150 = arith.constant dense<0.000000e+00> : vector<16x8xf32>
    %459 = tpu.matmul %457, %458, %cst_150 {dimension_numbers = #tpu.dot_dimension_numbers<[1], [0], [0], [1], [0, 0, 1, 1], [], []>} : vector<16x16xbf16>, vector<16x8xbf16>, vector<16x8xf32> -> vector<16x8xf32>
    %460 = vector.extract_strided_slice %52 {offsets = [8, 0], sizes = [8, 32], strides = [1, 1]} : vector<32x32xf32> to vector<8x32xf32>
    %461 = arith.truncf %459 : vector<16x8xf32> to vector<16x8xbf16>
    %462 = arith.truncf %460 : vector<8x32xf32> to vector<8x32xbf16>
    %cst_151 = arith.constant dense<0.000000e+00> : vector<16x32xf32>
    %463 = tpu.matmul %461, %462, %cst_151 {dimension_numbers = #tpu.dot_dimension_numbers<[1], [0], [0], [1], [0, 0, 1, 1], [], []>} : vector<16x8xbf16>, vector<8x32xbf16>, vector<16x32xf32> -> vector<16x32xf32>
    %464 = arith.addf %436, %463 : vector<16x32xf32>
    %465 = vector.extract_strided_slice %407 {offsets = [0, 16], sizes = [16, 8], strides = [1, 1]} : vector<16x32xf32> to vector<16x8xf32>
    %466 = vector.extract_strided_slice %409 {offsets = [0, 16], sizes = [16, 8], strides = [1, 1]} : vector<16x32xf32> to vector<16x8xf32>
    %467 = arith.truncf %465 : vector<16x8xf32> to vector<16x8xbf16>
    %468 = arith.truncf %466 : vector<16x8xf32> to vector<16x8xbf16>
    %cst_152 = arith.constant dense<0.000000e+00> : vector<16x16xf32>
    %469 = tpu.matmul %467, %468, %cst_152 {dimension_numbers = #tpu.dot_dimension_numbers<[1], [1], [0], [0], [0, 0, 1, 0], [], []>} : vector<16x8xbf16>, vector<16x8xbf16>, vector<16x16xf32> -> vector<16x16xf32>
    %470 = vector.broadcast %8 : vector<1x16xf32> to vector<16x16xf32>
    %471 = arith.addf %469, %470 : vector<16x16xf32>
    %cst_153 = arith.constant 0.353553385 : f32
    %472 = vector.broadcast %cst_153 : f32 to vector<16x16xf32>
    %473 = arith.mulf %471, %472 : vector<16x16xf32>
    %cst_154 = arith.constant dense<0xFF800000> : vector<16xf32>
    %474 = vector.multi_reduction <maximumf>, %473, %cst_154 [1] : vector<16x16xf32> to vector<16xf32>
    %475 = vector.shape_cast %474 : vector<16xf32> to vector<16x1xf32>
    %476 = vector.broadcast %475 : vector<16x1xf32> to vector<16x16xf32>
    %477 = arith.subf %473, %476 : vector<16x16xf32>
    %478 = math.exp %477 : vector<16x16xf32>
    %cst_155 = arith.constant dense<0.000000e+00> : vector<16xf32>
    %479 = vector.multi_reduction <add>, %478, %cst_155 [1] : vector<16x16xf32> to vector<16xf32>
    %480 = vector.shape_cast %479 : vector<16xf32> to vector<16x1xf32>
    %481 = tpu.reciprocal %480 {approx = true} : vector<16x1xf32> -> vector<16x1xf32>
    %482 = vector.broadcast %481 : vector<16x1xf32> to vector<16x16xf32>
    %483 = arith.mulf %478, %482 : vector<16x16xf32>
    %484 = vector.extract_strided_slice %402 {offsets = [0, 16], sizes = [16, 8], strides = [1, 1]} : vector<16x32xf32> to vector<16x8xf32>
    %485 = arith.truncf %483 : vector<16x16xf32> to vector<16x16xbf16>
    %486 = arith.truncf %484 : vector<16x8xf32> to vector<16x8xbf16>
    %cst_156 = arith.constant dense<0.000000e+00> : vector<16x8xf32>
    %487 = tpu.matmul %485, %486, %cst_156 {dimension_numbers = #tpu.dot_dimension_numbers<[1], [0], [0], [1], [0, 0, 1, 1], [], []>} : vector<16x16xbf16>, vector<16x8xbf16>, vector<16x8xf32> -> vector<16x8xf32>
    %488 = vector.extract_strided_slice %52 {offsets = [16, 0], sizes = [8, 32], strides = [1, 1]} : vector<32x32xf32> to vector<8x32xf32>
    %489 = arith.truncf %487 : vector<16x8xf32> to vector<16x8xbf16>
    %490 = arith.truncf %488 : vector<8x32xf32> to vector<8x32xbf16>
    %cst_157 = arith.constant dense<0.000000e+00> : vector<16x32xf32>
    %491 = tpu.matmul %489, %490, %cst_157 {dimension_numbers = #tpu.dot_dimension_numbers<[1], [0], [0], [1], [0, 0, 1, 1], [], []>} : vector<16x8xbf16>, vector<8x32xbf16>, vector<16x32xf32> -> vector<16x32xf32>
    %492 = arith.addf %464, %491 : vector<16x32xf32>
    %493 = vector.extract_strided_slice %407 {offsets = [0, 24], sizes = [16, 8], strides = [1, 1]} : vector<16x32xf32> to vector<16x8xf32>
    %494 = vector.extract_strided_slice %409 {offsets = [0, 24], sizes = [16, 8], strides = [1, 1]} : vector<16x32xf32> to vector<16x8xf32>
    %495 = arith.truncf %493 : vector<16x8xf32> to vector<16x8xbf16>
    %496 = arith.truncf %494 : vector<16x8xf32> to vector<16x8xbf16>
    %cst_158 = arith.constant dense<0.000000e+00> : vector<16x16xf32>
    %497 = tpu.matmul %495, %496, %cst_158 {dimension_numbers = #tpu.dot_dimension_numbers<[1], [1], [0], [0], [0, 0, 1, 0], [], []>} : vector<16x8xbf16>, vector<16x8xbf16>, vector<16x16xf32> -> vector<16x16xf32>
    %498 = vector.broadcast %8 : vector<1x16xf32> to vector<16x16xf32>
    %499 = arith.addf %497, %498 : vector<16x16xf32>
    %cst_159 = arith.constant 0.353553385 : f32
    %500 = vector.broadcast %cst_159 : f32 to vector<16x16xf32>
    %501 = arith.mulf %499, %500 : vector<16x16xf32>
    %cst_160 = arith.constant dense<0xFF800000> : vector<16xf32>
    %502 = vector.multi_reduction <maximumf>, %501, %cst_160 [1] : vector<16x16xf32> to vector<16xf32>
    %503 = vector.shape_cast %502 : vector<16xf32> to vector<16x1xf32>
    %504 = vector.broadcast %503 : vector<16x1xf32> to vector<16x16xf32>
    %505 = arith.subf %501, %504 : vector<16x16xf32>
    %506 = math.exp %505 : vector<16x16xf32>
    %cst_161 = arith.constant dense<0.000000e+00> : vector<16xf32>
    %507 = vector.multi_reduction <add>, %506, %cst_161 [1] : vector<16x16xf32> to vector<16xf32>
    %508 = vector.shape_cast %507 : vector<16xf32> to vector<16x1xf32>
    %509 = tpu.reciprocal %508 {approx = true} : vector<16x1xf32> -> vector<16x1xf32>
    %510 = vector.broadcast %509 : vector<16x1xf32> to vector<16x16xf32>
    %511 = arith.mulf %506, %510 : vector<16x16xf32>
    %512 = vector.extract_strided_slice %402 {offsets = [0, 24], sizes = [16, 8], strides = [1, 1]} : vector<16x32xf32> to vector<16x8xf32>
    %513 = arith.truncf %511 : vector<16x16xf32> to vector<16x16xbf16>
    %514 = arith.truncf %512 : vector<16x8xf32> to vector<16x8xbf16>
    %cst_162 = arith.constant dense<0.000000e+00> : vector<16x8xf32>
    %515 = tpu.matmul %513, %514, %cst_162 {dimension_numbers = #tpu.dot_dimension_numbers<[1], [0], [0], [1], [0, 0, 1, 1], [], []>} : vector<16x16xbf16>, vector<16x8xbf16>, vector<16x8xf32> -> vector<16x8xf32>
    %516 = vector.extract_strided_slice %52 {offsets = [24, 0], sizes = [8, 32], strides = [1, 1]} : vector<32x32xf32> to vector<8x32xf32>
    %517 = arith.truncf %515 : vector<16x8xf32> to vector<16x8xbf16>
    %518 = arith.truncf %516 : vector<8x32xf32> to vector<8x32xbf16>
    %cst_163 = arith.constant dense<0.000000e+00> : vector<16x32xf32>
    %519 = tpu.matmul %517, %518, %cst_163 {dimension_numbers = #tpu.dot_dimension_numbers<[1], [0], [0], [1], [0, 0, 1, 1], [], []>} : vector<16x8xbf16>, vector<8x32xbf16>, vector<16x32xf32> -> vector<16x32xf32>
    %520 = arith.addf %492, %519 : vector<16x32xf32>
    %521 = vector.broadcast %399 : vector<1x32xf32> to vector<8x32xf32>
    %522 = arith.mulf %521, %404 : vector<8x32xf32>
    %523 = vector.broadcast %399 : vector<1x32xf32> to vector<8x32xf32>
    %524 = arith.mulf %523, %403 : vector<8x32xf32>
    %525 = vector.extract_strided_slice %522 {offsets = [0, 0], sizes = [8, 8], strides = [1, 1]} : vector<8x32xf32> to vector<8x8xf32>
    %526 = vector.extract_strided_slice %524 {offsets = [0, 0], sizes = [8, 8], strides = [1, 1]} : vector<8x32xf32> to vector<8x8xf32>
    %527 = arith.truncf %525 : vector<8x8xf32> to vector<8x8xbf16>
    %528 = arith.truncf %526 : vector<8x8xf32> to vector<8x8xbf16>
    %cst_164 = arith.constant dense<0.000000e+00> : vector<8x8xf32>
    %529 = tpu.matmul %527, %528, %cst_164 {dimension_numbers = #tpu.dot_dimension_numbers<[1], [1], [0], [0], [0, 0, 1, 0], [], []>} : vector<8x8xbf16>, vector<8x8xbf16>, vector<8x8xf32> -> vector<8x8xf32>
    %530 = vector.broadcast %13 : vector<1x8xf32> to vector<8x8xf32>
    %531 = arith.addf %529, %530 : vector<8x8xf32>
    %cst_165 = arith.constant 0.353553385 : f32
    %532 = vector.broadcast %cst_165 : f32 to vector<8x8xf32>
    %533 = arith.mulf %531, %532 : vector<8x8xf32>
    %cst_166 = arith.constant dense<0xFF800000> : vector<8xf32>
    %534 = vector.multi_reduction <maximumf>, %533, %cst_166 [1] : vector<8x8xf32> to vector<8xf32>
    %535 = vector.shape_cast %534 : vector<8xf32> to vector<8x1xf32>
    %536 = vector.broadcast %535 : vector<8x1xf32> to vector<8x8xf32>
    %537 = arith.subf %533, %536 : vector<8x8xf32>
    %538 = math.exp %537 : vector<8x8xf32>
    %cst_167 = arith.constant dense<0.000000e+00> : vector<8xf32>
    %539 = vector.multi_reduction <add>, %538, %cst_167 [1] : vector<8x8xf32> to vector<8xf32>
    %540 = vector.shape_cast %539 : vector<8xf32> to vector<8x1xf32>
    %541 = tpu.reciprocal %540 {approx = true} : vector<8x1xf32> -> vector<8x1xf32>
    %542 = vector.broadcast %541 : vector<8x1xf32> to vector<8x8xf32>
    %543 = arith.mulf %538, %542 : vector<8x8xf32>
    %544 = vector.extract_strided_slice %405 {offsets = [0, 0], sizes = [8, 8], strides = [1, 1]} : vector<8x32xf32> to vector<8x8xf32>
    %545 = arith.truncf %543 : vector<8x8xf32> to vector<8x8xbf16>
    %546 = arith.truncf %544 : vector<8x8xf32> to vector<8x8xbf16>
    %cst_168 = arith.constant dense<0.000000e+00> : vector<8x8xf32>
    %547 = tpu.matmul %545, %546, %cst_168 {dimension_numbers = #tpu.dot_dimension_numbers<[1], [0], [0], [1], [0, 0, 1, 1], [], []>} : vector<8x8xbf16>, vector<8x8xbf16>, vector<8x8xf32> -> vector<8x8xf32>
    %548 = vector.extract_strided_slice %54 {offsets = [0, 0], sizes = [8, 32], strides = [1, 1]} : vector<32x32xf32> to vector<8x32xf32>
    %549 = arith.truncf %547 : vector<8x8xf32> to vector<8x8xbf16>
    %550 = arith.truncf %548 : vector<8x32xf32> to vector<8x32xbf16>
    %cst_169 = arith.constant dense<0.000000e+00> : vector<8x32xf32>
    %551 = tpu.matmul %549, %550, %cst_169 {dimension_numbers = #tpu.dot_dimension_numbers<[1], [0], [0], [1], [0, 0, 1, 1], [], []>} : vector<8x8xbf16>, vector<8x32xbf16>, vector<8x32xf32> -> vector<8x32xf32>
    %552 = vector.extract_strided_slice %522 {offsets = [0, 8], sizes = [8, 8], strides = [1, 1]} : vector<8x32xf32> to vector<8x8xf32>
    %553 = vector.extract_strided_slice %524 {offsets = [0, 8], sizes = [8, 8], strides = [1, 1]} : vector<8x32xf32> to vector<8x8xf32>
    %554 = arith.truncf %552 : vector<8x8xf32> to vector<8x8xbf16>
    %555 = arith.truncf %553 : vector<8x8xf32> to vector<8x8xbf16>
    %cst_170 = arith.constant dense<0.000000e+00> : vector<8x8xf32>
    %556 = tpu.matmul %554, %555, %cst_170 {dimension_numbers = #tpu.dot_dimension_numbers<[1], [1], [0], [0], [0, 0, 1, 0], [], []>} : vector<8x8xbf16>, vector<8x8xbf16>, vector<8x8xf32> -> vector<8x8xf32>
    %557 = vector.broadcast %13 : vector<1x8xf32> to vector<8x8xf32>
    %558 = arith.addf %556, %557 : vector<8x8xf32>
    %cst_171 = arith.constant 0.353553385 : f32
    %559 = vector.broadcast %cst_171 : f32 to vector<8x8xf32>
    %560 = arith.mulf %558, %559 : vector<8x8xf32>
    %cst_172 = arith.constant dense<0xFF800000> : vector<8xf32>
    %561 = vector.multi_reduction <maximumf>, %560, %cst_172 [1] : vector<8x8xf32> to vector<8xf32>
    %562 = vector.shape_cast %561 : vector<8xf32> to vector<8x1xf32>
    %563 = vector.broadcast %562 : vector<8x1xf32> to vector<8x8xf32>
    %564 = arith.subf %560, %563 : vector<8x8xf32>
    %565 = math.exp %564 : vector<8x8xf32>
    %cst_173 = arith.constant dense<0.000000e+00> : vector<8xf32>
    %566 = vector.multi_reduction <add>, %565, %cst_173 [1] : vector<8x8xf32> to vector<8xf32>
    %567 = vector.shape_cast %566 : vector<8xf32> to vector<8x1xf32>
    %568 = tpu.reciprocal %567 {approx = true} : vector<8x1xf32> -> vector<8x1xf32>
    %569 = vector.broadcast %568 : vector<8x1xf32> to vector<8x8xf32>
    %570 = arith.mulf %565, %569 : vector<8x8xf32>
    %571 = vector.extract_strided_slice %405 {offsets = [0, 8], sizes = [8, 8], strides = [1, 1]} : vector<8x32xf32> to vector<8x8xf32>
    %572 = arith.truncf %570 : vector<8x8xf32> to vector<8x8xbf16>
    %573 = arith.truncf %571 : vector<8x8xf32> to vector<8x8xbf16>
    %cst_174 = arith.constant dense<0.000000e+00> : vector<8x8xf32>
    %574 = tpu.matmul %572, %573, %cst_174 {dimension_numbers = #tpu.dot_dimension_numbers<[1], [0], [0], [1], [0, 0, 1, 1], [], []>} : vector<8x8xbf16>, vector<8x8xbf16>, vector<8x8xf32> -> vector<8x8xf32>
    %575 = vector.extract_strided_slice %54 {offsets = [8, 0], sizes = [8, 32], strides = [1, 1]} : vector<32x32xf32> to vector<8x32xf32>
    %576 = arith.truncf %574 : vector<8x8xf32> to vector<8x8xbf16>
    %577 = arith.truncf %575 : vector<8x32xf32> to vector<8x32xbf16>
    %cst_175 = arith.constant dense<0.000000e+00> : vector<8x32xf32>
    %578 = tpu.matmul %576, %577, %cst_175 {dimension_numbers = #tpu.dot_dimension_numbers<[1], [0], [0], [1], [0, 0, 1, 1], [], []>} : vector<8x8xbf16>, vector<8x32xbf16>, vector<8x32xf32> -> vector<8x32xf32>
    %579 = arith.addf %551, %578 : vector<8x32xf32>
    %580 = vector.extract_strided_slice %522 {offsets = [0, 16], sizes = [8, 8], strides = [1, 1]} : vector<8x32xf32> to vector<8x8xf32>
    %581 = vector.extract_strided_slice %524 {offsets = [0, 16], sizes = [8, 8], strides = [1, 1]} : vector<8x32xf32> to vector<8x8xf32>
    %582 = arith.truncf %580 : vector<8x8xf32> to vector<8x8xbf16>
    %583 = arith.truncf %581 : vector<8x8xf32> to vector<8x8xbf16>
    %cst_176 = arith.constant dense<0.000000e+00> : vector<8x8xf32>
    %584 = tpu.matmul %582, %583, %cst_176 {dimension_numbers = #tpu.dot_dimension_numbers<[1], [1], [0], [0], [0, 0, 1, 0], [], []>} : vector<8x8xbf16>, vector<8x8xbf16>, vector<8x8xf32> -> vector<8x8xf32>
    %585 = vector.broadcast %13 : vector<1x8xf32> to vector<8x8xf32>
    %586 = arith.addf %584, %585 : vector<8x8xf32>
    %cst_177 = arith.constant 0.353553385 : f32
    %587 = vector.broadcast %cst_177 : f32 to vector<8x8xf32>
    %588 = arith.mulf %586, %587 : vector<8x8xf32>
    %cst_178 = arith.constant dense<0xFF800000> : vector<8xf32>
    %589 = vector.multi_reduction <maximumf>, %588, %cst_178 [1] : vector<8x8xf32> to vector<8xf32>
    %590 = vector.shape_cast %589 : vector<8xf32> to vector<8x1xf32>
    %591 = vector.broadcast %590 : vector<8x1xf32> to vector<8x8xf32>
    %592 = arith.subf %588, %591 : vector<8x8xf32>
    %593 = math.exp %592 : vector<8x8xf32>
    %cst_179 = arith.constant dense<0.000000e+00> : vector<8xf32>
    %594 = vector.multi_reduction <add>, %593, %cst_179 [1] : vector<8x8xf32> to vector<8xf32>
    %595 = vector.shape_cast %594 : vector<8xf32> to vector<8x1xf32>
    %596 = tpu.reciprocal %595 {approx = true} : vector<8x1xf32> -> vector<8x1xf32>
    %597 = vector.broadcast %596 : vector<8x1xf32> to vector<8x8xf32>
    %598 = arith.mulf %593, %597 : vector<8x8xf32>
    %599 = vector.extract_strided_slice %405 {offsets = [0, 16], sizes = [8, 8], strides = [1, 1]} : vector<8x32xf32> to vector<8x8xf32>
    %600 = arith.truncf %598 : vector<8x8xf32> to vector<8x8xbf16>
    %601 = arith.truncf %599 : vector<8x8xf32> to vector<8x8xbf16>
    %cst_180 = arith.constant dense<0.000000e+00> : vector<8x8xf32>
    %602 = tpu.matmul %600, %601, %cst_180 {dimension_numbers = #tpu.dot_dimension_numbers<[1], [0], [0], [1], [0, 0, 1, 1], [], []>} : vector<8x8xbf16>, vector<8x8xbf16>, vector<8x8xf32> -> vector<8x8xf32>
    %603 = vector.extract_strided_slice %54 {offsets = [16, 0], sizes = [8, 32], strides = [1, 1]} : vector<32x32xf32> to vector<8x32xf32>
    %604 = arith.truncf %602 : vector<8x8xf32> to vector<8x8xbf16>
    %605 = arith.truncf %603 : vector<8x32xf32> to vector<8x32xbf16>
    %cst_181 = arith.constant dense<0.000000e+00> : vector<8x32xf32>
    %606 = tpu.matmul %604, %605, %cst_181 {dimension_numbers = #tpu.dot_dimension_numbers<[1], [0], [0], [1], [0, 0, 1, 1], [], []>} : vector<8x8xbf16>, vector<8x32xbf16>, vector<8x32xf32> -> vector<8x32xf32>
    %607 = arith.addf %579, %606 : vector<8x32xf32>
    %608 = vector.extract_strided_slice %522 {offsets = [0, 24], sizes = [8, 8], strides = [1, 1]} : vector<8x32xf32> to vector<8x8xf32>
    %609 = vector.extract_strided_slice %524 {offsets = [0, 24], sizes = [8, 8], strides = [1, 1]} : vector<8x32xf32> to vector<8x8xf32>
    %610 = arith.truncf %608 : vector<8x8xf32> to vector<8x8xbf16>
    %611 = arith.truncf %609 : vector<8x8xf32> to vector<8x8xbf16>
    %cst_182 = arith.constant dense<0.000000e+00> : vector<8x8xf32>
    %612 = tpu.matmul %610, %611, %cst_182 {dimension_numbers = #tpu.dot_dimension_numbers<[1], [1], [0], [0], [0, 0, 1, 0], [], []>} : vector<8x8xbf16>, vector<8x8xbf16>, vector<8x8xf32> -> vector<8x8xf32>
    %613 = vector.broadcast %13 : vector<1x8xf32> to vector<8x8xf32>
    %614 = arith.addf %612, %613 : vector<8x8xf32>
    %cst_183 = arith.constant 0.353553385 : f32
    %615 = vector.broadcast %cst_183 : f32 to vector<8x8xf32>
    %616 = arith.mulf %614, %615 : vector<8x8xf32>
    %cst_184 = arith.constant dense<0xFF800000> : vector<8xf32>
    %617 = vector.multi_reduction <maximumf>, %616, %cst_184 [1] : vector<8x8xf32> to vector<8xf32>
    %618 = vector.shape_cast %617 : vector<8xf32> to vector<8x1xf32>
    %619 = vector.broadcast %618 : vector<8x1xf32> to vector<8x8xf32>
    %620 = arith.subf %616, %619 : vector<8x8xf32>
    %621 = math.exp %620 : vector<8x8xf32>
    %cst_185 = arith.constant dense<0.000000e+00> : vector<8xf32>
    %622 = vector.multi_reduction <add>, %621, %cst_185 [1] : vector<8x8xf32> to vector<8xf32>
    %623 = vector.shape_cast %622 : vector<8xf32> to vector<8x1xf32>
    %624 = tpu.reciprocal %623 {approx = true} : vector<8x1xf32> -> vector<8x1xf32>
    %625 = vector.broadcast %624 : vector<8x1xf32> to vector<8x8xf32>
    %626 = arith.mulf %621, %625 : vector<8x8xf32>
    %627 = vector.extract_strided_slice %405 {offsets = [0, 24], sizes = [8, 8], strides = [1, 1]} : vector<8x32xf32> to vector<8x8xf32>
    %628 = arith.truncf %626 : vector<8x8xf32> to vector<8x8xbf16>
    %629 = arith.truncf %627 : vector<8x8xf32> to vector<8x8xbf16>
    %cst_186 = arith.constant dense<0.000000e+00> : vector<8x8xf32>
    %630 = tpu.matmul %628, %629, %cst_186 {dimension_numbers = #tpu.dot_dimension_numbers<[1], [0], [0], [1], [0, 0, 1, 1], [], []>} : vector<8x8xbf16>, vector<8x8xbf16>, vector<8x8xf32> -> vector<8x8xf32>
    %631 = vector.extract_strided_slice %54 {offsets = [24, 0], sizes = [8, 32], strides = [1, 1]} : vector<32x32xf32> to vector<8x32xf32>
    %632 = arith.truncf %630 : vector<8x8xf32> to vector<8x8xbf16>
    %633 = arith.truncf %631 : vector<8x32xf32> to vector<8x32xbf16>
    %cst_187 = arith.constant dense<0.000000e+00> : vector<8x32xf32>
    %634 = tpu.matmul %632, %633, %cst_187 {dimension_numbers = #tpu.dot_dimension_numbers<[1], [0], [0], [1], [0, 0, 1, 1], [], []>} : vector<8x8xbf16>, vector<8x32xbf16>, vector<8x32xf32> -> vector<8x32xf32>
    %635 = arith.addf %607, %634 : vector<8x32xf32>
    %636 = arith.addf %352, %520 : vector<16x32xf32>
    %637 = arith.addf %357, %635 : vector<8x32xf32>
    %cst_188 = arith.constant 0.000000e+00 : f32
    %638 = vector.broadcast %cst_188 : f32 to vector<16x32xf32>
    %639 = arith.maximumf %636, %638 : vector<16x32xf32>
    %640 = arith.truncf %639 : vector<16x32xf32> to vector<16x32xbf16>
    %641 = arith.truncf %36 : vector<32x96xf32> to vector<32x96xbf16>
    %cst_189 = arith.constant dense<0.000000e+00> : vector<16x96xf32>
    %642 = tpu.matmul %640, %641, %cst_189 {dimension_numbers = #tpu.dot_dimension_numbers<[1], [0], [0], [1], [0, 0, 1, 1], [], []>} : vector<16x32xbf16>, vector<32x96xbf16>, vector<16x96xf32> -> vector<16x96xf32>
    %643 = vector.broadcast %37 : vector<1x96xf32> to vector<16x96xf32>
    %644 = arith.addf %642, %643 : vector<16x96xf32>
    %645 = vector.broadcast %22 : vector<16x1xf32> to vector<16x96xf32>
    %646 = arith.mulf %644, %645 : vector<16x96xf32>
    %cst_190 = arith.constant 0.000000e+00 : f32
    %647 = vector.broadcast %cst_190 : f32 to vector<8x32xf32>
    %648 = arith.maximumf %637, %647 : vector<8x32xf32>
    %649 = arith.truncf %648 : vector<8x32xf32> to vector<8x32xbf16>
    %650 = arith.truncf %38 : vector<32x96xf32> to vector<32x96xbf16>
    %cst_191 = arith.constant dense<0.000000e+00> : vector<8x96xf32>
    %651 = tpu.matmul %649, %650, %cst_191 {dimension_numbers = #tpu.dot_dimension_numbers<[1], [0], [0], [1], [0, 0, 1, 1], [], []>} : vector<8x32xbf16>, vector<32x96xbf16>, vector<8x96xf32> -> vector<8x96xf32>
    %652 = vector.broadcast %39 : vector<1x96xf32> to vector<8x96xf32>
    %653 = arith.addf %651, %652 : vector<8x96xf32>
    %654 = vector.broadcast %31 : vector<8x1xf32> to vector<8x96xf32>
    %655 = arith.mulf %653, %654 : vector<8x96xf32>
    %656 = vector.extract_strided_slice %40 {offsets = [0, 0], sizes = [32, 32], strides = [1, 1]} : vector<64x32xf32> to vector<32x32xf32>
    %657 = arith.truncf %636 : vector<16x32xf32> to vector<16x32xbf16>
    %658 = arith.truncf %656 : vector<32x32xf32> to vector<32x32xbf16>
    %cst_192 = arith.constant dense<0.000000e+00> : vector<16x32xf32>
    %659 = tpu.matmul %657, %658, %cst_192 {dimension_numbers = #tpu.dot_dimension_numbers<[1], [0], [0], [1], [0, 0, 1, 1], [], []>} : vector<16x32xbf16>, vector<32x32xbf16>, vector<16x32xf32> -> vector<16x32xf32>
    %660 = vector.broadcast %41 : vector<1x32xf32> to vector<16x32xf32>
    %661 = arith.addf %659, %660 : vector<16x32xf32>
    %662 = vector.extract_strided_slice %42 {offsets = [0, 0], sizes = [32, 32], strides = [1, 1]} : vector<64x32xf32> to vector<32x32xf32>
    %663 = arith.truncf %637 : vector<8x32xf32> to vector<8x32xbf16>
    %664 = arith.truncf %662 : vector<32x32xf32> to vector<32x32xbf16>
    %cst_193 = arith.constant dense<0.000000e+00> : vector<8x32xf32>
    %665 = tpu.matmul %663, %664, %cst_193 {dimension_numbers = #tpu.dot_dimension_numbers<[1], [0], [0], [1], [0, 0, 1, 1], [], []>} : vector<8x32xbf16>, vector<32x32xbf16>, vector<8x32xf32> -> vector<8x32xf32>
    %666 = vector.broadcast %43 : vector<1x32xf32> to vector<8x32xf32>
    %667 = arith.addf %665, %666 : vector<8x32xf32>
    %668 = vector.extract_strided_slice %646 {offsets = [0, 0], sizes = [16, 32], strides = [1, 1]} : vector<16x96xf32> to vector<16x32xf32>
    %669 = vector.extract_strided_slice %646 {offsets = [0, 32], sizes = [16, 32], strides = [1, 1]} : vector<16x96xf32> to vector<16x32xf32>
    %670 = vector.extract_strided_slice %646 {offsets = [0, 64], sizes = [16, 32], strides = [1, 1]} : vector<16x96xf32> to vector<16x32xf32>
    %671 = vector.extract_strided_slice %655 {offsets = [0, 0], sizes = [8, 32], strides = [1, 1]} : vector<8x96xf32> to vector<8x32xf32>
    %672 = vector.extract_strided_slice %655 {offsets = [0, 32], sizes = [8, 32], strides = [1, 1]} : vector<8x96xf32> to vector<8x32xf32>
    %673 = vector.extract_strided_slice %655 {offsets = [0, 64], sizes = [8, 32], strides = [1, 1]} : vector<8x96xf32> to vector<8x32xf32>
    %674 = vector.extract_strided_slice %40 {offsets = [32, 0], sizes = [32, 32], strides = [1, 1]} : vector<64x32xf32> to vector<32x32xf32>
    %675 = vector.extract_strided_slice %669 {offsets = [0, 0], sizes = [16, 8], strides = [1, 1]} : vector<16x32xf32> to vector<16x8xf32>
    %676 = vector.extract_strided_slice %671 {offsets = [0, 0], sizes = [8, 8], strides = [1, 1]} : vector<8x32xf32> to vector<8x8xf32>
    %677 = arith.truncf %675 : vector<16x8xf32> to vector<16x8xbf16>
    %678 = arith.truncf %676 : vector<8x8xf32> to vector<8x8xbf16>
    %cst_194 = arith.constant dense<0.000000e+00> : vector<16x8xf32>
    %679 = tpu.matmul %677, %678, %cst_194 {dimension_numbers = #tpu.dot_dimension_numbers<[1], [1], [0], [0], [0, 0, 1, 0], [], []>} : vector<16x8xbf16>, vector<8x8xbf16>, vector<16x8xf32> -> vector<16x8xf32>
    %680 = vector.broadcast %13 : vector<1x8xf32> to vector<16x8xf32>
    %681 = arith.addf %679, %680 : vector<16x8xf32>
    %cst_195 = arith.constant 0.353553385 : f32
    %682 = vector.broadcast %cst_195 : f32 to vector<16x8xf32>
    %683 = arith.mulf %681, %682 : vector<16x8xf32>
    %cst_196 = arith.constant dense<0xFF800000> : vector<16xf32>
    %684 = vector.multi_reduction <maximumf>, %683, %cst_196 [1] : vector<16x8xf32> to vector<16xf32>
    %685 = vector.shape_cast %684 : vector<16xf32> to vector<16x1xf32>
    %686 = vector.broadcast %685 : vector<16x1xf32> to vector<16x8xf32>
    %687 = arith.subf %683, %686 : vector<16x8xf32>
    %688 = math.exp %687 : vector<16x8xf32>
    %cst_197 = arith.constant dense<0.000000e+00> : vector<16xf32>
    %689 = vector.multi_reduction <add>, %688, %cst_197 [1] : vector<16x8xf32> to vector<16xf32>
    %690 = vector.shape_cast %689 : vector<16xf32> to vector<16x1xf32>
    %691 = tpu.reciprocal %690 {approx = true} : vector<16x1xf32> -> vector<16x1xf32>
    %692 = vector.broadcast %691 : vector<16x1xf32> to vector<16x8xf32>
    %693 = arith.mulf %688, %692 : vector<16x8xf32>
    %694 = vector.extract_strided_slice %673 {offsets = [0, 0], sizes = [8, 8], strides = [1, 1]} : vector<8x32xf32> to vector<8x8xf32>
    %695 = arith.truncf %693 : vector<16x8xf32> to vector<16x8xbf16>
    %696 = arith.truncf %694 : vector<8x8xf32> to vector<8x8xbf16>
    %cst_198 = arith.constant dense<0.000000e+00> : vector<16x8xf32>
    %697 = tpu.matmul %695, %696, %cst_198 {dimension_numbers = #tpu.dot_dimension_numbers<[1], [0], [0], [1], [0, 0, 1, 1], [], []>} : vector<16x8xbf16>, vector<8x8xbf16>, vector<16x8xf32> -> vector<16x8xf32>
    %698 = vector.extract_strided_slice %674 {offsets = [0, 0], sizes = [8, 32], strides = [1, 1]} : vector<32x32xf32> to vector<8x32xf32>
    %699 = arith.truncf %697 : vector<16x8xf32> to vector<16x8xbf16>
    %700 = arith.truncf %698 : vector<8x32xf32> to vector<8x32xbf16>
    %cst_199 = arith.constant dense<0.000000e+00> : vector<16x32xf32>
    %701 = tpu.matmul %699, %700, %cst_199 {dimension_numbers = #tpu.dot_dimension_numbers<[1], [0], [0], [1], [0, 0, 1, 1], [], []>} : vector<16x8xbf16>, vector<8x32xbf16>, vector<16x32xf32> -> vector<16x32xf32>
    %702 = vector.extract_strided_slice %669 {offsets = [0, 8], sizes = [16, 8], strides = [1, 1]} : vector<16x32xf32> to vector<16x8xf32>
    %703 = vector.extract_strided_slice %671 {offsets = [0, 8], sizes = [8, 8], strides = [1, 1]} : vector<8x32xf32> to vector<8x8xf32>
    %704 = arith.truncf %702 : vector<16x8xf32> to vector<16x8xbf16>
    %705 = arith.truncf %703 : vector<8x8xf32> to vector<8x8xbf16>
    %cst_200 = arith.constant dense<0.000000e+00> : vector<16x8xf32>
    %706 = tpu.matmul %704, %705, %cst_200 {dimension_numbers = #tpu.dot_dimension_numbers<[1], [1], [0], [0], [0, 0, 1, 0], [], []>} : vector<16x8xbf16>, vector<8x8xbf16>, vector<16x8xf32> -> vector<16x8xf32>
    %707 = vector.broadcast %13 : vector<1x8xf32> to vector<16x8xf32>
    %708 = arith.addf %706, %707 : vector<16x8xf32>
    %cst_201 = arith.constant 0.353553385 : f32
    %709 = vector.broadcast %cst_201 : f32 to vector<16x8xf32>
    %710 = arith.mulf %708, %709 : vector<16x8xf32>
    %cst_202 = arith.constant dense<0xFF800000> : vector<16xf32>
    %711 = vector.multi_reduction <maximumf>, %710, %cst_202 [1] : vector<16x8xf32> to vector<16xf32>
    %712 = vector.shape_cast %711 : vector<16xf32> to vector<16x1xf32>
    %713 = vector.broadcast %712 : vector<16x1xf32> to vector<16x8xf32>
    %714 = arith.subf %710, %713 : vector<16x8xf32>
    %715 = math.exp %714 : vector<16x8xf32>
    %cst_203 = arith.constant dense<0.000000e+00> : vector<16xf32>
    %716 = vector.multi_reduction <add>, %715, %cst_203 [1] : vector<16x8xf32> to vector<16xf32>
    %717 = vector.shape_cast %716 : vector<16xf32> to vector<16x1xf32>
    %718 = tpu.reciprocal %717 {approx = true} : vector<16x1xf32> -> vector<16x1xf32>
    %719 = vector.broadcast %718 : vector<16x1xf32> to vector<16x8xf32>
    %720 = arith.mulf %715, %719 : vector<16x8xf32>
    %721 = vector.extract_strided_slice %673 {offsets = [0, 8], sizes = [8, 8], strides = [1, 1]} : vector<8x32xf32> to vector<8x8xf32>
    %722 = arith.truncf %720 : vector<16x8xf32> to vector<16x8xbf16>
    %723 = arith.truncf %721 : vector<8x8xf32> to vector<8x8xbf16>
    %cst_204 = arith.constant dense<0.000000e+00> : vector<16x8xf32>
    %724 = tpu.matmul %722, %723, %cst_204 {dimension_numbers = #tpu.dot_dimension_numbers<[1], [0], [0], [1], [0, 0, 1, 1], [], []>} : vector<16x8xbf16>, vector<8x8xbf16>, vector<16x8xf32> -> vector<16x8xf32>
    %725 = vector.extract_strided_slice %674 {offsets = [8, 0], sizes = [8, 32], strides = [1, 1]} : vector<32x32xf32> to vector<8x32xf32>
    %726 = arith.truncf %724 : vector<16x8xf32> to vector<16x8xbf16>
    %727 = arith.truncf %725 : vector<8x32xf32> to vector<8x32xbf16>
    %cst_205 = arith.constant dense<0.000000e+00> : vector<16x32xf32>
    %728 = tpu.matmul %726, %727, %cst_205 {dimension_numbers = #tpu.dot_dimension_numbers<[1], [0], [0], [1], [0, 0, 1, 1], [], []>} : vector<16x8xbf16>, vector<8x32xbf16>, vector<16x32xf32> -> vector<16x32xf32>
    %729 = arith.addf %701, %728 : vector<16x32xf32>
    %730 = vector.extract_strided_slice %669 {offsets = [0, 16], sizes = [16, 8], strides = [1, 1]} : vector<16x32xf32> to vector<16x8xf32>
    %731 = vector.extract_strided_slice %671 {offsets = [0, 16], sizes = [8, 8], strides = [1, 1]} : vector<8x32xf32> to vector<8x8xf32>
    %732 = arith.truncf %730 : vector<16x8xf32> to vector<16x8xbf16>
    %733 = arith.truncf %731 : vector<8x8xf32> to vector<8x8xbf16>
    %cst_206 = arith.constant dense<0.000000e+00> : vector<16x8xf32>
    %734 = tpu.matmul %732, %733, %cst_206 {dimension_numbers = #tpu.dot_dimension_numbers<[1], [1], [0], [0], [0, 0, 1, 0], [], []>} : vector<16x8xbf16>, vector<8x8xbf16>, vector<16x8xf32> -> vector<16x8xf32>
    %735 = vector.broadcast %13 : vector<1x8xf32> to vector<16x8xf32>
    %736 = arith.addf %734, %735 : vector<16x8xf32>
    %cst_207 = arith.constant 0.353553385 : f32
    %737 = vector.broadcast %cst_207 : f32 to vector<16x8xf32>
    %738 = arith.mulf %736, %737 : vector<16x8xf32>
    %cst_208 = arith.constant dense<0xFF800000> : vector<16xf32>
    %739 = vector.multi_reduction <maximumf>, %738, %cst_208 [1] : vector<16x8xf32> to vector<16xf32>
    %740 = vector.shape_cast %739 : vector<16xf32> to vector<16x1xf32>
    %741 = vector.broadcast %740 : vector<16x1xf32> to vector<16x8xf32>
    %742 = arith.subf %738, %741 : vector<16x8xf32>
    %743 = math.exp %742 : vector<16x8xf32>
    %cst_209 = arith.constant dense<0.000000e+00> : vector<16xf32>
    %744 = vector.multi_reduction <add>, %743, %cst_209 [1] : vector<16x8xf32> to vector<16xf32>
    %745 = vector.shape_cast %744 : vector<16xf32> to vector<16x1xf32>
    %746 = tpu.reciprocal %745 {approx = true} : vector<16x1xf32> -> vector<16x1xf32>
    %747 = vector.broadcast %746 : vector<16x1xf32> to vector<16x8xf32>
    %748 = arith.mulf %743, %747 : vector<16x8xf32>
    %749 = vector.extract_strided_slice %673 {offsets = [0, 16], sizes = [8, 8], strides = [1, 1]} : vector<8x32xf32> to vector<8x8xf32>
    %750 = arith.truncf %748 : vector<16x8xf32> to vector<16x8xbf16>
    %751 = arith.truncf %749 : vector<8x8xf32> to vector<8x8xbf16>
    %cst_210 = arith.constant dense<0.000000e+00> : vector<16x8xf32>
    %752 = tpu.matmul %750, %751, %cst_210 {dimension_numbers = #tpu.dot_dimension_numbers<[1], [0], [0], [1], [0, 0, 1, 1], [], []>} : vector<16x8xbf16>, vector<8x8xbf16>, vector<16x8xf32> -> vector<16x8xf32>
    %753 = vector.extract_strided_slice %674 {offsets = [16, 0], sizes = [8, 32], strides = [1, 1]} : vector<32x32xf32> to vector<8x32xf32>
    %754 = arith.truncf %752 : vector<16x8xf32> to vector<16x8xbf16>
    %755 = arith.truncf %753 : vector<8x32xf32> to vector<8x32xbf16>
    %cst_211 = arith.constant dense<0.000000e+00> : vector<16x32xf32>
    %756 = tpu.matmul %754, %755, %cst_211 {dimension_numbers = #tpu.dot_dimension_numbers<[1], [0], [0], [1], [0, 0, 1, 1], [], []>} : vector<16x8xbf16>, vector<8x32xbf16>, vector<16x32xf32> -> vector<16x32xf32>
    %757 = arith.addf %729, %756 : vector<16x32xf32>
    %758 = vector.extract_strided_slice %669 {offsets = [0, 24], sizes = [16, 8], strides = [1, 1]} : vector<16x32xf32> to vector<16x8xf32>
    %759 = vector.extract_strided_slice %671 {offsets = [0, 24], sizes = [8, 8], strides = [1, 1]} : vector<8x32xf32> to vector<8x8xf32>
    %760 = arith.truncf %758 : vector<16x8xf32> to vector<16x8xbf16>
    %761 = arith.truncf %759 : vector<8x8xf32> to vector<8x8xbf16>
    %cst_212 = arith.constant dense<0.000000e+00> : vector<16x8xf32>
    %762 = tpu.matmul %760, %761, %cst_212 {dimension_numbers = #tpu.dot_dimension_numbers<[1], [1], [0], [0], [0, 0, 1, 0], [], []>} : vector<16x8xbf16>, vector<8x8xbf16>, vector<16x8xf32> -> vector<16x8xf32>
    %763 = vector.broadcast %13 : vector<1x8xf32> to vector<16x8xf32>
    %764 = arith.addf %762, %763 : vector<16x8xf32>
    %cst_213 = arith.constant 0.353553385 : f32
    %765 = vector.broadcast %cst_213 : f32 to vector<16x8xf32>
    %766 = arith.mulf %764, %765 : vector<16x8xf32>
    %cst_214 = arith.constant dense<0xFF800000> : vector<16xf32>
    %767 = vector.multi_reduction <maximumf>, %766, %cst_214 [1] : vector<16x8xf32> to vector<16xf32>
    %768 = vector.shape_cast %767 : vector<16xf32> to vector<16x1xf32>
    %769 = vector.broadcast %768 : vector<16x1xf32> to vector<16x8xf32>
    %770 = arith.subf %766, %769 : vector<16x8xf32>
    %771 = math.exp %770 : vector<16x8xf32>
    %cst_215 = arith.constant dense<0.000000e+00> : vector<16xf32>
    %772 = vector.multi_reduction <add>, %771, %cst_215 [1] : vector<16x8xf32> to vector<16xf32>
    %773 = vector.shape_cast %772 : vector<16xf32> to vector<16x1xf32>
    %774 = tpu.reciprocal %773 {approx = true} : vector<16x1xf32> -> vector<16x1xf32>
    %775 = vector.broadcast %774 : vector<16x1xf32> to vector<16x8xf32>
    %776 = arith.mulf %771, %775 : vector<16x8xf32>
    %777 = vector.extract_strided_slice %673 {offsets = [0, 24], sizes = [8, 8], strides = [1, 1]} : vector<8x32xf32> to vector<8x8xf32>
    %778 = arith.truncf %776 : vector<16x8xf32> to vector<16x8xbf16>
    %779 = arith.truncf %777 : vector<8x8xf32> to vector<8x8xbf16>
    %cst_216 = arith.constant dense<0.000000e+00> : vector<16x8xf32>
    %780 = tpu.matmul %778, %779, %cst_216 {dimension_numbers = #tpu.dot_dimension_numbers<[1], [0], [0], [1], [0, 0, 1, 1], [], []>} : vector<16x8xbf16>, vector<8x8xbf16>, vector<16x8xf32> -> vector<16x8xf32>
    %781 = vector.extract_strided_slice %674 {offsets = [24, 0], sizes = [8, 32], strides = [1, 1]} : vector<32x32xf32> to vector<8x32xf32>
    %782 = arith.truncf %780 : vector<16x8xf32> to vector<16x8xbf16>
    %783 = arith.truncf %781 : vector<8x32xf32> to vector<8x32xbf16>
    %cst_217 = arith.constant dense<0.000000e+00> : vector<16x32xf32>
    %784 = tpu.matmul %782, %783, %cst_217 {dimension_numbers = #tpu.dot_dimension_numbers<[1], [0], [0], [1], [0, 0, 1, 1], [], []>} : vector<16x8xbf16>, vector<8x32xbf16>, vector<16x32xf32> -> vector<16x32xf32>
    %785 = arith.addf %757, %784 : vector<16x32xf32>
    %786 = vector.extract_strided_slice %42 {offsets = [32, 0], sizes = [32, 32], strides = [1, 1]} : vector<64x32xf32> to vector<32x32xf32>
    %787 = vector.extract_strided_slice %672 {offsets = [0, 0], sizes = [8, 8], strides = [1, 1]} : vector<8x32xf32> to vector<8x8xf32>
    %788 = vector.extract_strided_slice %668 {offsets = [0, 0], sizes = [16, 8], strides = [1, 1]} : vector<16x32xf32> to vector<16x8xf32>
    %789 = arith.truncf %787 : vector<8x8xf32> to vector<8x8xbf16>
    %790 = arith.truncf %788 : vector<16x8xf32> to vector<16x8xbf16>
    %cst_218 = arith.constant dense<0.000000e+00> : vector<8x16xf32>
    %791 = tpu.matmul %789, %790, %cst_218 {dimension_numbers = #tpu.dot_dimension_numbers<[1], [1], [0], [0], [0, 0, 1, 0], [], []>} : vector<8x8xbf16>, vector<16x8xbf16>, vector<8x16xf32> -> vector<8x16xf32>
    %792 = vector.broadcast %8 : vector<1x16xf32> to vector<8x16xf32>
    %793 = arith.addf %791, %792 : vector<8x16xf32>
    %cst_219 = arith.constant 0.353553385 : f32
    %794 = vector.broadcast %cst_219 : f32 to vector<8x16xf32>
    %795 = arith.mulf %793, %794 : vector<8x16xf32>
    %cst_220 = arith.constant dense<0xFF800000> : vector<8xf32>
    %796 = vector.multi_reduction <maximumf>, %795, %cst_220 [1] : vector<8x16xf32> to vector<8xf32>
    %797 = vector.shape_cast %796 : vector<8xf32> to vector<8x1xf32>
    %798 = vector.broadcast %797 : vector<8x1xf32> to vector<8x16xf32>
    %799 = arith.subf %795, %798 : vector<8x16xf32>
    %800 = math.exp %799 : vector<8x16xf32>
    %cst_221 = arith.constant dense<0.000000e+00> : vector<8xf32>
    %801 = vector.multi_reduction <add>, %800, %cst_221 [1] : vector<8x16xf32> to vector<8xf32>
    %802 = vector.shape_cast %801 : vector<8xf32> to vector<8x1xf32>
    %803 = tpu.reciprocal %802 {approx = true} : vector<8x1xf32> -> vector<8x1xf32>
    %804 = vector.broadcast %803 : vector<8x1xf32> to vector<8x16xf32>
    %805 = arith.mulf %800, %804 : vector<8x16xf32>
    %806 = vector.extract_strided_slice %670 {offsets = [0, 0], sizes = [16, 8], strides = [1, 1]} : vector<16x32xf32> to vector<16x8xf32>
    %807 = arith.truncf %805 : vector<8x16xf32> to vector<8x16xbf16>
    %808 = arith.truncf %806 : vector<16x8xf32> to vector<16x8xbf16>
    %cst_222 = arith.constant dense<0.000000e+00> : vector<8x8xf32>
    %809 = tpu.matmul %807, %808, %cst_222 {dimension_numbers = #tpu.dot_dimension_numbers<[1], [0], [0], [1], [0, 0, 1, 1], [], []>} : vector<8x16xbf16>, vector<16x8xbf16>, vector<8x8xf32> -> vector<8x8xf32>
    %810 = vector.extract_strided_slice %786 {offsets = [0, 0], sizes = [8, 32], strides = [1, 1]} : vector<32x32xf32> to vector<8x32xf32>
    %811 = arith.truncf %809 : vector<8x8xf32> to vector<8x8xbf16>
    %812 = arith.truncf %810 : vector<8x32xf32> to vector<8x32xbf16>
    %cst_223 = arith.constant dense<0.000000e+00> : vector<8x32xf32>
    %813 = tpu.matmul %811, %812, %cst_223 {dimension_numbers = #tpu.dot_dimension_numbers<[1], [0], [0], [1], [0, 0, 1, 1], [], []>} : vector<8x8xbf16>, vector<8x32xbf16>, vector<8x32xf32> -> vector<8x32xf32>
    %814 = vector.extract_strided_slice %672 {offsets = [0, 8], sizes = [8, 8], strides = [1, 1]} : vector<8x32xf32> to vector<8x8xf32>
    %815 = vector.extract_strided_slice %668 {offsets = [0, 8], sizes = [16, 8], strides = [1, 1]} : vector<16x32xf32> to vector<16x8xf32>
    %816 = arith.truncf %814 : vector<8x8xf32> to vector<8x8xbf16>
    %817 = arith.truncf %815 : vector<16x8xf32> to vector<16x8xbf16>
    %cst_224 = arith.constant dense<0.000000e+00> : vector<8x16xf32>
    %818 = tpu.matmul %816, %817, %cst_224 {dimension_numbers = #tpu.dot_dimension_numbers<[1], [1], [0], [0], [0, 0, 1, 0], [], []>} : vector<8x8xbf16>, vector<16x8xbf16>, vector<8x16xf32> -> vector<8x16xf32>
    %819 = vector.broadcast %8 : vector<1x16xf32> to vector<8x16xf32>
    %820 = arith.addf %818, %819 : vector<8x16xf32>
    %cst_225 = arith.constant 0.353553385 : f32
    %821 = vector.broadcast %cst_225 : f32 to vector<8x16xf32>
    %822 = arith.mulf %820, %821 : vector<8x16xf32>
    %cst_226 = arith.constant dense<0xFF800000> : vector<8xf32>
    %823 = vector.multi_reduction <maximumf>, %822, %cst_226 [1] : vector<8x16xf32> to vector<8xf32>
    %824 = vector.shape_cast %823 : vector<8xf32> to vector<8x1xf32>
    %825 = vector.broadcast %824 : vector<8x1xf32> to vector<8x16xf32>
    %826 = arith.subf %822, %825 : vector<8x16xf32>
    %827 = math.exp %826 : vector<8x16xf32>
    %cst_227 = arith.constant dense<0.000000e+00> : vector<8xf32>
    %828 = vector.multi_reduction <add>, %827, %cst_227 [1] : vector<8x16xf32> to vector<8xf32>
    %829 = vector.shape_cast %828 : vector<8xf32> to vector<8x1xf32>
    %830 = tpu.reciprocal %829 {approx = true} : vector<8x1xf32> -> vector<8x1xf32>
    %831 = vector.broadcast %830 : vector<8x1xf32> to vector<8x16xf32>
    %832 = arith.mulf %827, %831 : vector<8x16xf32>
    %833 = vector.extract_strided_slice %670 {offsets = [0, 8], sizes = [16, 8], strides = [1, 1]} : vector<16x32xf32> to vector<16x8xf32>
    %834 = arith.truncf %832 : vector<8x16xf32> to vector<8x16xbf16>
    %835 = arith.truncf %833 : vector<16x8xf32> to vector<16x8xbf16>
    %cst_228 = arith.constant dense<0.000000e+00> : vector<8x8xf32>
    %836 = tpu.matmul %834, %835, %cst_228 {dimension_numbers = #tpu.dot_dimension_numbers<[1], [0], [0], [1], [0, 0, 1, 1], [], []>} : vector<8x16xbf16>, vector<16x8xbf16>, vector<8x8xf32> -> vector<8x8xf32>
    %837 = vector.extract_strided_slice %786 {offsets = [8, 0], sizes = [8, 32], strides = [1, 1]} : vector<32x32xf32> to vector<8x32xf32>
    %838 = arith.truncf %836 : vector<8x8xf32> to vector<8x8xbf16>
    %839 = arith.truncf %837 : vector<8x32xf32> to vector<8x32xbf16>
    %cst_229 = arith.constant dense<0.000000e+00> : vector<8x32xf32>
    %840 = tpu.matmul %838, %839, %cst_229 {dimension_numbers = #tpu.dot_dimension_numbers<[1], [0], [0], [1], [0, 0, 1, 1], [], []>} : vector<8x8xbf16>, vector<8x32xbf16>, vector<8x32xf32> -> vector<8x32xf32>
    %841 = arith.addf %813, %840 : vector<8x32xf32>
    %842 = vector.extract_strided_slice %672 {offsets = [0, 16], sizes = [8, 8], strides = [1, 1]} : vector<8x32xf32> to vector<8x8xf32>
    %843 = vector.extract_strided_slice %668 {offsets = [0, 16], sizes = [16, 8], strides = [1, 1]} : vector<16x32xf32> to vector<16x8xf32>
    %844 = arith.truncf %842 : vector<8x8xf32> to vector<8x8xbf16>
    %845 = arith.truncf %843 : vector<16x8xf32> to vector<16x8xbf16>
    %cst_230 = arith.constant dense<0.000000e+00> : vector<8x16xf32>
    %846 = tpu.matmul %844, %845, %cst_230 {dimension_numbers = #tpu.dot_dimension_numbers<[1], [1], [0], [0], [0, 0, 1, 0], [], []>} : vector<8x8xbf16>, vector<16x8xbf16>, vector<8x16xf32> -> vector<8x16xf32>
    %847 = vector.broadcast %8 : vector<1x16xf32> to vector<8x16xf32>
    %848 = arith.addf %846, %847 : vector<8x16xf32>
    %cst_231 = arith.constant 0.353553385 : f32
    %849 = vector.broadcast %cst_231 : f32 to vector<8x16xf32>
    %850 = arith.mulf %848, %849 : vector<8x16xf32>
    %cst_232 = arith.constant dense<0xFF800000> : vector<8xf32>
    %851 = vector.multi_reduction <maximumf>, %850, %cst_232 [1] : vector<8x16xf32> to vector<8xf32>
    %852 = vector.shape_cast %851 : vector<8xf32> to vector<8x1xf32>
    %853 = vector.broadcast %852 : vector<8x1xf32> to vector<8x16xf32>
    %854 = arith.subf %850, %853 : vector<8x16xf32>
    %855 = math.exp %854 : vector<8x16xf32>
    %cst_233 = arith.constant dense<0.000000e+00> : vector<8xf32>
    %856 = vector.multi_reduction <add>, %855, %cst_233 [1] : vector<8x16xf32> to vector<8xf32>
    %857 = vector.shape_cast %856 : vector<8xf32> to vector<8x1xf32>
    %858 = tpu.reciprocal %857 {approx = true} : vector<8x1xf32> -> vector<8x1xf32>
    %859 = vector.broadcast %858 : vector<8x1xf32> to vector<8x16xf32>
    %860 = arith.mulf %855, %859 : vector<8x16xf32>
    %861 = vector.extract_strided_slice %670 {offsets = [0, 16], sizes = [16, 8], strides = [1, 1]} : vector<16x32xf32> to vector<16x8xf32>
    %862 = arith.truncf %860 : vector<8x16xf32> to vector<8x16xbf16>
    %863 = arith.truncf %861 : vector<16x8xf32> to vector<16x8xbf16>
    %cst_234 = arith.constant dense<0.000000e+00> : vector<8x8xf32>
    %864 = tpu.matmul %862, %863, %cst_234 {dimension_numbers = #tpu.dot_dimension_numbers<[1], [0], [0], [1], [0, 0, 1, 1], [], []>} : vector<8x16xbf16>, vector<16x8xbf16>, vector<8x8xf32> -> vector<8x8xf32>
    %865 = vector.extract_strided_slice %786 {offsets = [16, 0], sizes = [8, 32], strides = [1, 1]} : vector<32x32xf32> to vector<8x32xf32>
    %866 = arith.truncf %864 : vector<8x8xf32> to vector<8x8xbf16>
    %867 = arith.truncf %865 : vector<8x32xf32> to vector<8x32xbf16>
    %cst_235 = arith.constant dense<0.000000e+00> : vector<8x32xf32>
    %868 = tpu.matmul %866, %867, %cst_235 {dimension_numbers = #tpu.dot_dimension_numbers<[1], [0], [0], [1], [0, 0, 1, 1], [], []>} : vector<8x8xbf16>, vector<8x32xbf16>, vector<8x32xf32> -> vector<8x32xf32>
    %869 = arith.addf %841, %868 : vector<8x32xf32>
    %870 = vector.extract_strided_slice %672 {offsets = [0, 24], sizes = [8, 8], strides = [1, 1]} : vector<8x32xf32> to vector<8x8xf32>
    %871 = vector.extract_strided_slice %668 {offsets = [0, 24], sizes = [16, 8], strides = [1, 1]} : vector<16x32xf32> to vector<16x8xf32>
    %872 = arith.truncf %870 : vector<8x8xf32> to vector<8x8xbf16>
    %873 = arith.truncf %871 : vector<16x8xf32> to vector<16x8xbf16>
    %cst_236 = arith.constant dense<0.000000e+00> : vector<8x16xf32>
    %874 = tpu.matmul %872, %873, %cst_236 {dimension_numbers = #tpu.dot_dimension_numbers<[1], [1], [0], [0], [0, 0, 1, 0], [], []>} : vector<8x8xbf16>, vector<16x8xbf16>, vector<8x16xf32> -> vector<8x16xf32>
    %875 = vector.broadcast %8 : vector<1x16xf32> to vector<8x16xf32>
    %876 = arith.addf %874, %875 : vector<8x16xf32>
    %cst_237 = arith.constant 0.353553385 : f32
    %877 = vector.broadcast %cst_237 : f32 to vector<8x16xf32>
    %878 = arith.mulf %876, %877 : vector<8x16xf32>
    %cst_238 = arith.constant dense<0xFF800000> : vector<8xf32>
    %879 = vector.multi_reduction <maximumf>, %878, %cst_238 [1] : vector<8x16xf32> to vector<8xf32>
    %880 = vector.shape_cast %879 : vector<8xf32> to vector<8x1xf32>
    %881 = vector.broadcast %880 : vector<8x1xf32> to vector<8x16xf32>
    %882 = arith.subf %878, %881 : vector<8x16xf32>
    %883 = math.exp %882 : vector<8x16xf32>
    %cst_239 = arith.constant dense<0.000000e+00> : vector<8xf32>
    %884 = vector.multi_reduction <add>, %883, %cst_239 [1] : vector<8x16xf32> to vector<8xf32>
    %885 = vector.shape_cast %884 : vector<8xf32> to vector<8x1xf32>
    %886 = tpu.reciprocal %885 {approx = true} : vector<8x1xf32> -> vector<8x1xf32>
    %887 = vector.broadcast %886 : vector<8x1xf32> to vector<8x16xf32>
    %888 = arith.mulf %883, %887 : vector<8x16xf32>
    %889 = vector.extract_strided_slice %670 {offsets = [0, 24], sizes = [16, 8], strides = [1, 1]} : vector<16x32xf32> to vector<16x8xf32>
    %890 = arith.truncf %888 : vector<8x16xf32> to vector<8x16xbf16>
    %891 = arith.truncf %889 : vector<16x8xf32> to vector<16x8xbf16>
    %cst_240 = arith.constant dense<0.000000e+00> : vector<8x8xf32>
    %892 = tpu.matmul %890, %891, %cst_240 {dimension_numbers = #tpu.dot_dimension_numbers<[1], [0], [0], [1], [0, 0, 1, 1], [], []>} : vector<8x16xbf16>, vector<16x8xbf16>, vector<8x8xf32> -> vector<8x8xf32>
    %893 = vector.extract_strided_slice %786 {offsets = [24, 0], sizes = [8, 32], strides = [1, 1]} : vector<32x32xf32> to vector<8x32xf32>
    %894 = arith.truncf %892 : vector<8x8xf32> to vector<8x8xbf16>
    %895 = arith.truncf %893 : vector<8x32xf32> to vector<8x32xbf16>
    %cst_241 = arith.constant dense<0.000000e+00> : vector<8x32xf32>
    %896 = tpu.matmul %894, %895, %cst_241 {dimension_numbers = #tpu.dot_dimension_numbers<[1], [0], [0], [1], [0, 0, 1, 1], [], []>} : vector<8x8xbf16>, vector<8x32xbf16>, vector<8x32xf32> -> vector<8x32xf32>
    %897 = arith.addf %869, %896 : vector<8x32xf32>
    %898 = arith.addf %661, %785 : vector<16x32xf32>
    %899 = arith.addf %667, %897 : vector<8x32xf32>
    %cst_242 = arith.constant 0.000000e+00 : f32
    %900 = vector.broadcast %cst_242 : f32 to vector<16x32xf32>
    %901 = arith.maximumf %898, %900 : vector<16x32xf32>
    %902 = arith.truncf %901 : vector<16x32xf32> to vector<16x32xbf16>
    %903 = arith.truncf %48 : vector<32x96xf32> to vector<32x96xbf16>
    %cst_243 = arith.constant dense<0.000000e+00> : vector<16x96xf32>
    %904 = tpu.matmul %902, %903, %cst_243 {dimension_numbers = #tpu.dot_dimension_numbers<[1], [0], [0], [1], [0, 0, 1, 1], [], []>} : vector<16x32xbf16>, vector<32x96xbf16>, vector<16x96xf32> -> vector<16x96xf32>
    %905 = vector.broadcast %49 : vector<1x96xf32> to vector<16x96xf32>
    %906 = arith.addf %904, %905 : vector<16x96xf32>
    %907 = vector.broadcast %22 : vector<16x1xf32> to vector<16x96xf32>
    %908 = arith.mulf %906, %907 : vector<16x96xf32>
    %cst_244 = arith.constant 0.000000e+00 : f32
    %909 = vector.broadcast %cst_244 : f32 to vector<8x32xf32>
    %910 = arith.maximumf %899, %909 : vector<8x32xf32>
    %911 = arith.truncf %910 : vector<8x32xf32> to vector<8x32xbf16>
    %912 = arith.truncf %50 : vector<32x96xf32> to vector<32x96xbf16>
    %cst_245 = arith.constant dense<0.000000e+00> : vector<8x96xf32>
    %913 = tpu.matmul %911, %912, %cst_245 {dimension_numbers = #tpu.dot_dimension_numbers<[1], [0], [0], [1], [0, 0, 1, 1], [], []>} : vector<8x32xbf16>, vector<32x96xbf16>, vector<8x96xf32> -> vector<8x96xf32>
    %914 = vector.broadcast %51 : vector<1x96xf32> to vector<8x96xf32>
    %915 = arith.addf %913, %914 : vector<8x96xf32>
    %916 = vector.broadcast %31 : vector<8x1xf32> to vector<8x96xf32>
    %917 = arith.mulf %915, %916 : vector<8x96xf32>
    %918 = arith.truncf %898 : vector<16x32xf32> to vector<16x32xbf16>
    %919 = arith.truncf %52 : vector<32x32xf32> to vector<32x32xbf16>
    %cst_246 = arith.constant dense<0.000000e+00> : vector<16x32xf32>
    %920 = tpu.matmul %918, %919, %cst_246 {dimension_numbers = #tpu.dot_dimension_numbers<[1], [0], [0], [1], [0, 0, 1, 1], [], []>} : vector<16x32xbf16>, vector<32x32xbf16>, vector<16x32xf32> -> vector<16x32xf32>
    %921 = vector.broadcast %53 : vector<1x32xf32> to vector<16x32xf32>
    %922 = arith.addf %920, %921 : vector<16x32xf32>
    %923 = arith.truncf %899 : vector<8x32xf32> to vector<8x32xbf16>
    %924 = arith.truncf %54 : vector<32x32xf32> to vector<32x32xbf16>
    %cst_247 = arith.constant dense<0.000000e+00> : vector<8x32xf32>
    %925 = tpu.matmul %923, %924, %cst_247 {dimension_numbers = #tpu.dot_dimension_numbers<[1], [0], [0], [1], [0, 0, 1, 1], [], []>} : vector<8x32xbf16>, vector<32x32xbf16>, vector<8x32xf32> -> vector<8x32xf32>
    %926 = vector.broadcast %55 : vector<1x32xf32> to vector<8x32xf32>
    %927 = arith.addf %925, %926 : vector<8x32xf32>
    %cst_248 = arith.constant dense<0.000000e+00> : vector<1xf32>
    %928 = vector.multi_reduction <add>, %2, %cst_248 [1] : vector<1x16xf32> to vector<1xf32>
    %929 = vector.shape_cast %928 : vector<1xf32> to vector<1x1xf32>
    %cst_249 = arith.constant dense<0.000000e+00> : vector<1xf32>
    %930 = vector.multi_reduction <add>, %3, %cst_249 [1] : vector<1x8xf32> to vector<1xf32>
    %931 = vector.shape_cast %930 : vector<1xf32> to vector<1x1xf32>
    %932 = vector.broadcast %22 : vector<16x1xf32> to vector<16x32xf32>
    %933 = arith.mulf %898, %932 : vector<16x32xf32>
    %cst_250 = arith.constant dense<0.000000e+00> : vector<32xf32>
    %934 = vector.multi_reduction <add>, %933, %cst_250 [0] : vector<16x32xf32> to vector<32xf32>
    %935 = vector.shape_cast %934 : vector<32xf32> to vector<1x32xf32>
    %936 = vector.broadcast %929 : vector<1x1xf32> to vector<1x32xf32>
    %937 = arith.divf %935, %936 : vector<1x32xf32>
    %938 = vector.broadcast %31 : vector<8x1xf32> to vector<8x32xf32>
    %939 = arith.mulf %899, %938 : vector<8x32xf32>
    %cst_251 = arith.constant dense<0.000000e+00> : vector<32xf32>
    %940 = vector.multi_reduction <add>, %939, %cst_251 [0] : vector<8x32xf32> to vector<32xf32>
    %941 = vector.shape_cast %940 : vector<32xf32> to vector<1x32xf32>
    %942 = vector.broadcast %931 : vector<1x1xf32> to vector<1x32xf32>
    %943 = arith.divf %941, %942 : vector<1x32xf32>
    %cst_252 = arith.constant 0.000000e+00 : f32
    %944 = vector.broadcast %cst_252 : f32 to vector<1x32xf32>
    %945 = arith.maximumf %937, %944 : vector<1x32xf32>
    %946 = arith.truncf %945 : vector<1x32xf32> to vector<1x32xbf16>
    %947 = arith.truncf %44 : vector<32x32xf32> to vector<32x32xbf16>
    %cst_253 = arith.constant dense<0.000000e+00> : vector<1x32xf32>
    %948 = tpu.matmul %946, %947, %cst_253 {dimension_numbers = #tpu.dot_dimension_numbers<[1], [0], [0], [1], [0, 0, 1, 1], [], []>} : vector<1x32xbf16>, vector<32x32xbf16>, vector<1x32xf32> -> vector<1x32xf32>
    %949 = arith.addf %948, %45 : vector<1x32xf32>
    %950 = arith.negf %949 : vector<1x32xf32>
    %951 = math.exp %950 : vector<1x32xf32>
    %cst_254 = arith.constant 1.000000e+00 : f32
    %952 = vector.broadcast %cst_254 : f32 to vector<1x32xf32>
    %953 = arith.addf %952, %951 : vector<1x32xf32>
    %954 = arith.divf %952, %953 : vector<1x32xf32>
    %cst_255 = arith.constant 0.000000e+00 : f32
    %955 = vector.broadcast %cst_255 : f32 to vector<1x32xf32>
    %956 = arith.maximumf %943, %955 : vector<1x32xf32>
    %957 = arith.truncf %956 : vector<1x32xf32> to vector<1x32xbf16>
    %958 = arith.truncf %46 : vector<32x32xf32> to vector<32x32xbf16>
    %cst_256 = arith.constant dense<0.000000e+00> : vector<1x32xf32>
    %959 = tpu.matmul %957, %958, %cst_256 {dimension_numbers = #tpu.dot_dimension_numbers<[1], [0], [0], [1], [0, 0, 1, 1], [], []>} : vector<1x32xbf16>, vector<32x32xbf16>, vector<1x32xf32> -> vector<1x32xf32>
    %960 = arith.addf %959, %47 : vector<1x32xf32>
    %961 = arith.negf %960 : vector<1x32xf32>
    %962 = math.exp %961 : vector<1x32xf32>
    %cst_257 = arith.constant 1.000000e+00 : f32
    %963 = vector.broadcast %cst_257 : f32 to vector<1x32xf32>
    %964 = arith.addf %963, %962 : vector<1x32xf32>
    %965 = arith.divf %963, %964 : vector<1x32xf32>
    %cst_258 = arith.constant 1.000000e+00 : f32
    %966 = vector.broadcast %cst_258 : f32 to vector<1x32xf32>
    %967 = arith.addf %966, %965 : vector<1x32xf32>
    %cst_259 = arith.constant 1.000000e+00 : f32
    %968 = vector.broadcast %cst_259 : f32 to vector<1x32xf32>
    %969 = arith.addf %968, %954 : vector<1x32xf32>
    %970 = vector.extract_strided_slice %908 {offsets = [0, 0], sizes = [16, 32], strides = [1, 1]} : vector<16x96xf32> to vector<16x32xf32>
    %971 = vector.extract_strided_slice %908 {offsets = [0, 32], sizes = [16, 32], strides = [1, 1]} : vector<16x96xf32> to vector<16x32xf32>
    %972 = vector.extract_strided_slice %908 {offsets = [0, 64], sizes = [16, 32], strides = [1, 1]} : vector<16x96xf32> to vector<16x32xf32>
    %973 = vector.extract_strided_slice %917 {offsets = [0, 0], sizes = [8, 32], strides = [1, 1]} : vector<8x96xf32> to vector<8x32xf32>
    %974 = vector.extract_strided_slice %917 {offsets = [0, 32], sizes = [8, 32], strides = [1, 1]} : vector<8x96xf32> to vector<8x32xf32>
    %975 = vector.extract_strided_slice %917 {offsets = [0, 64], sizes = [8, 32], strides = [1, 1]} : vector<8x96xf32> to vector<8x32xf32>
    %976 = vector.broadcast %967 : vector<1x32xf32> to vector<16x32xf32>
    %977 = arith.mulf %976, %971 : vector<16x32xf32>
    %978 = vector.broadcast %967 : vector<1x32xf32> to vector<16x32xf32>
    %979 = arith.mulf %978, %970 : vector<16x32xf32>
    %980 = vector.extract_strided_slice %977 {offsets = [0, 0], sizes = [16, 8], strides = [1, 1]} : vector<16x32xf32> to vector<16x8xf32>
    %981 = vector.extract_strided_slice %979 {offsets = [0, 0], sizes = [16, 8], strides = [1, 1]} : vector<16x32xf32> to vector<16x8xf32>
    %982 = arith.truncf %980 : vector<16x8xf32> to vector<16x8xbf16>
    %983 = arith.truncf %981 : vector<16x8xf32> to vector<16x8xbf16>
    %cst_260 = arith.constant dense<0.000000e+00> : vector<16x16xf32>
    %984 = tpu.matmul %982, %983, %cst_260 {dimension_numbers = #tpu.dot_dimension_numbers<[1], [1], [0], [0], [0, 0, 1, 0], [], []>} : vector<16x8xbf16>, vector<16x8xbf16>, vector<16x16xf32> -> vector<16x16xf32>
    %985 = vector.broadcast %8 : vector<1x16xf32> to vector<16x16xf32>
    %986 = arith.addf %984, %985 : vector<16x16xf32>
    %cst_261 = arith.constant 0.353553385 : f32
    %987 = vector.broadcast %cst_261 : f32 to vector<16x16xf32>
    %988 = arith.mulf %986, %987 : vector<16x16xf32>
    %cst_262 = arith.constant dense<0xFF800000> : vector<16xf32>
    %989 = vector.multi_reduction <maximumf>, %988, %cst_262 [1] : vector<16x16xf32> to vector<16xf32>
    %990 = vector.shape_cast %989 : vector<16xf32> to vector<16x1xf32>
    %991 = vector.broadcast %990 : vector<16x1xf32> to vector<16x16xf32>
    %992 = arith.subf %988, %991 : vector<16x16xf32>
    %993 = math.exp %992 : vector<16x16xf32>
    %cst_263 = arith.constant dense<0.000000e+00> : vector<16xf32>
    %994 = vector.multi_reduction <add>, %993, %cst_263 [1] : vector<16x16xf32> to vector<16xf32>
    %995 = vector.shape_cast %994 : vector<16xf32> to vector<16x1xf32>
    %996 = tpu.reciprocal %995 {approx = true} : vector<16x1xf32> -> vector<16x1xf32>
    %997 = vector.broadcast %996 : vector<16x1xf32> to vector<16x16xf32>
    %998 = arith.mulf %993, %997 : vector<16x16xf32>
    %999 = vector.extract_strided_slice %972 {offsets = [0, 0], sizes = [16, 8], strides = [1, 1]} : vector<16x32xf32> to vector<16x8xf32>
    %1000 = arith.truncf %998 : vector<16x16xf32> to vector<16x16xbf16>
    %1001 = arith.truncf %999 : vector<16x8xf32> to vector<16x8xbf16>
    %cst_264 = arith.constant dense<0.000000e+00> : vector<16x8xf32>
    %1002 = tpu.matmul %1000, %1001, %cst_264 {dimension_numbers = #tpu.dot_dimension_numbers<[1], [0], [0], [1], [0, 0, 1, 1], [], []>} : vector<16x16xbf16>, vector<16x8xbf16>, vector<16x8xf32> -> vector<16x8xf32>
    %1003 = vector.extract_strided_slice %52 {offsets = [0, 0], sizes = [8, 32], strides = [1, 1]} : vector<32x32xf32> to vector<8x32xf32>
    %1004 = arith.truncf %1002 : vector<16x8xf32> to vector<16x8xbf16>
    %1005 = arith.truncf %1003 : vector<8x32xf32> to vector<8x32xbf16>
    %cst_265 = arith.constant dense<0.000000e+00> : vector<16x32xf32>
    %1006 = tpu.matmul %1004, %1005, %cst_265 {dimension_numbers = #tpu.dot_dimension_numbers<[1], [0], [0], [1], [0, 0, 1, 1], [], []>} : vector<16x8xbf16>, vector<8x32xbf16>, vector<16x32xf32> -> vector<16x32xf32>
    %1007 = vector.extract_strided_slice %977 {offsets = [0, 8], sizes = [16, 8], strides = [1, 1]} : vector<16x32xf32> to vector<16x8xf32>
    %1008 = vector.extract_strided_slice %979 {offsets = [0, 8], sizes = [16, 8], strides = [1, 1]} : vector<16x32xf32> to vector<16x8xf32>
    %1009 = arith.truncf %1007 : vector<16x8xf32> to vector<16x8xbf16>
    %1010 = arith.truncf %1008 : vector<16x8xf32> to vector<16x8xbf16>
    %cst_266 = arith.constant dense<0.000000e+00> : vector<16x16xf32>
    %1011 = tpu.matmul %1009, %1010, %cst_266 {dimension_numbers = #tpu.dot_dimension_numbers<[1], [1], [0], [0], [0, 0, 1, 0], [], []>} : vector<16x8xbf16>, vector<16x8xbf16>, vector<16x16xf32> -> vector<16x16xf32>
    %1012 = vector.broadcast %8 : vector<1x16xf32> to vector<16x16xf32>
    %1013 = arith.addf %1011, %1012 : vector<16x16xf32>
    %cst_267 = arith.constant 0.353553385 : f32
    %1014 = vector.broadcast %cst_267 : f32 to vector<16x16xf32>
    %1015 = arith.mulf %1013, %1014 : vector<16x16xf32>
    %cst_268 = arith.constant dense<0xFF800000> : vector<16xf32>
    %1016 = vector.multi_reduction <maximumf>, %1015, %cst_268 [1] : vector<16x16xf32> to vector<16xf32>
    %1017 = vector.shape_cast %1016 : vector<16xf32> to vector<16x1xf32>
    %1018 = vector.broadcast %1017 : vector<16x1xf32> to vector<16x16xf32>
    %1019 = arith.subf %1015, %1018 : vector<16x16xf32>
    %1020 = math.exp %1019 : vector<16x16xf32>
    %cst_269 = arith.constant dense<0.000000e+00> : vector<16xf32>
    %1021 = vector.multi_reduction <add>, %1020, %cst_269 [1] : vector<16x16xf32> to vector<16xf32>
    %1022 = vector.shape_cast %1021 : vector<16xf32> to vector<16x1xf32>
    %1023 = tpu.reciprocal %1022 {approx = true} : vector<16x1xf32> -> vector<16x1xf32>
    %1024 = vector.broadcast %1023 : vector<16x1xf32> to vector<16x16xf32>
    %1025 = arith.mulf %1020, %1024 : vector<16x16xf32>
    %1026 = vector.extract_strided_slice %972 {offsets = [0, 8], sizes = [16, 8], strides = [1, 1]} : vector<16x32xf32> to vector<16x8xf32>
    %1027 = arith.truncf %1025 : vector<16x16xf32> to vector<16x16xbf16>
    %1028 = arith.truncf %1026 : vector<16x8xf32> to vector<16x8xbf16>
    %cst_270 = arith.constant dense<0.000000e+00> : vector<16x8xf32>
    %1029 = tpu.matmul %1027, %1028, %cst_270 {dimension_numbers = #tpu.dot_dimension_numbers<[1], [0], [0], [1], [0, 0, 1, 1], [], []>} : vector<16x16xbf16>, vector<16x8xbf16>, vector<16x8xf32> -> vector<16x8xf32>
    %1030 = vector.extract_strided_slice %52 {offsets = [8, 0], sizes = [8, 32], strides = [1, 1]} : vector<32x32xf32> to vector<8x32xf32>
    %1031 = arith.truncf %1029 : vector<16x8xf32> to vector<16x8xbf16>
    %1032 = arith.truncf %1030 : vector<8x32xf32> to vector<8x32xbf16>
    %cst_271 = arith.constant dense<0.000000e+00> : vector<16x32xf32>
    %1033 = tpu.matmul %1031, %1032, %cst_271 {dimension_numbers = #tpu.dot_dimension_numbers<[1], [0], [0], [1], [0, 0, 1, 1], [], []>} : vector<16x8xbf16>, vector<8x32xbf16>, vector<16x32xf32> -> vector<16x32xf32>
    %1034 = arith.addf %1006, %1033 : vector<16x32xf32>
    %1035 = vector.extract_strided_slice %977 {offsets = [0, 16], sizes = [16, 8], strides = [1, 1]} : vector<16x32xf32> to vector<16x8xf32>
    %1036 = vector.extract_strided_slice %979 {offsets = [0, 16], sizes = [16, 8], strides = [1, 1]} : vector<16x32xf32> to vector<16x8xf32>
    %1037 = arith.truncf %1035 : vector<16x8xf32> to vector<16x8xbf16>
    %1038 = arith.truncf %1036 : vector<16x8xf32> to vector<16x8xbf16>
    %cst_272 = arith.constant dense<0.000000e+00> : vector<16x16xf32>
    %1039 = tpu.matmul %1037, %1038, %cst_272 {dimension_numbers = #tpu.dot_dimension_numbers<[1], [1], [0], [0], [0, 0, 1, 0], [], []>} : vector<16x8xbf16>, vector<16x8xbf16>, vector<16x16xf32> -> vector<16x16xf32>
    %1040 = vector.broadcast %8 : vector<1x16xf32> to vector<16x16xf32>
    %1041 = arith.addf %1039, %1040 : vector<16x16xf32>
    %cst_273 = arith.constant 0.353553385 : f32
    %1042 = vector.broadcast %cst_273 : f32 to vector<16x16xf32>
    %1043 = arith.mulf %1041, %1042 : vector<16x16xf32>
    %cst_274 = arith.constant dense<0xFF800000> : vector<16xf32>
    %1044 = vector.multi_reduction <maximumf>, %1043, %cst_274 [1] : vector<16x16xf32> to vector<16xf32>
    %1045 = vector.shape_cast %1044 : vector<16xf32> to vector<16x1xf32>
    %1046 = vector.broadcast %1045 : vector<16x1xf32> to vector<16x16xf32>
    %1047 = arith.subf %1043, %1046 : vector<16x16xf32>
    %1048 = math.exp %1047 : vector<16x16xf32>
    %cst_275 = arith.constant dense<0.000000e+00> : vector<16xf32>
    %1049 = vector.multi_reduction <add>, %1048, %cst_275 [1] : vector<16x16xf32> to vector<16xf32>
    %1050 = vector.shape_cast %1049 : vector<16xf32> to vector<16x1xf32>
    %1051 = tpu.reciprocal %1050 {approx = true} : vector<16x1xf32> -> vector<16x1xf32>
    %1052 = vector.broadcast %1051 : vector<16x1xf32> to vector<16x16xf32>
    %1053 = arith.mulf %1048, %1052 : vector<16x16xf32>
    %1054 = vector.extract_strided_slice %972 {offsets = [0, 16], sizes = [16, 8], strides = [1, 1]} : vector<16x32xf32> to vector<16x8xf32>
    %1055 = arith.truncf %1053 : vector<16x16xf32> to vector<16x16xbf16>
    %1056 = arith.truncf %1054 : vector<16x8xf32> to vector<16x8xbf16>
    %cst_276 = arith.constant dense<0.000000e+00> : vector<16x8xf32>
    %1057 = tpu.matmul %1055, %1056, %cst_276 {dimension_numbers = #tpu.dot_dimension_numbers<[1], [0], [0], [1], [0, 0, 1, 1], [], []>} : vector<16x16xbf16>, vector<16x8xbf16>, vector<16x8xf32> -> vector<16x8xf32>
    %1058 = vector.extract_strided_slice %52 {offsets = [16, 0], sizes = [8, 32], strides = [1, 1]} : vector<32x32xf32> to vector<8x32xf32>
    %1059 = arith.truncf %1057 : vector<16x8xf32> to vector<16x8xbf16>
    %1060 = arith.truncf %1058 : vector<8x32xf32> to vector<8x32xbf16>
    %cst_277 = arith.constant dense<0.000000e+00> : vector<16x32xf32>
    %1061 = tpu.matmul %1059, %1060, %cst_277 {dimension_numbers = #tpu.dot_dimension_numbers<[1], [0], [0], [1], [0, 0, 1, 1], [], []>} : vector<16x8xbf16>, vector<8x32xbf16>, vector<16x32xf32> -> vector<16x32xf32>
    %1062 = arith.addf %1034, %1061 : vector<16x32xf32>
    %1063 = vector.extract_strided_slice %977 {offsets = [0, 24], sizes = [16, 8], strides = [1, 1]} : vector<16x32xf32> to vector<16x8xf32>
    %1064 = vector.extract_strided_slice %979 {offsets = [0, 24], sizes = [16, 8], strides = [1, 1]} : vector<16x32xf32> to vector<16x8xf32>
    %1065 = arith.truncf %1063 : vector<16x8xf32> to vector<16x8xbf16>
    %1066 = arith.truncf %1064 : vector<16x8xf32> to vector<16x8xbf16>
    %cst_278 = arith.constant dense<0.000000e+00> : vector<16x16xf32>
    %1067 = tpu.matmul %1065, %1066, %cst_278 {dimension_numbers = #tpu.dot_dimension_numbers<[1], [1], [0], [0], [0, 0, 1, 0], [], []>} : vector<16x8xbf16>, vector<16x8xbf16>, vector<16x16xf32> -> vector<16x16xf32>
    %1068 = vector.broadcast %8 : vector<1x16xf32> to vector<16x16xf32>
    %1069 = arith.addf %1067, %1068 : vector<16x16xf32>
    %cst_279 = arith.constant 0.353553385 : f32
    %1070 = vector.broadcast %cst_279 : f32 to vector<16x16xf32>
    %1071 = arith.mulf %1069, %1070 : vector<16x16xf32>
    %cst_280 = arith.constant dense<0xFF800000> : vector<16xf32>
    %1072 = vector.multi_reduction <maximumf>, %1071, %cst_280 [1] : vector<16x16xf32> to vector<16xf32>
    %1073 = vector.shape_cast %1072 : vector<16xf32> to vector<16x1xf32>
    %1074 = vector.broadcast %1073 : vector<16x1xf32> to vector<16x16xf32>
    %1075 = arith.subf %1071, %1074 : vector<16x16xf32>
    %1076 = math.exp %1075 : vector<16x16xf32>
    %cst_281 = arith.constant dense<0.000000e+00> : vector<16xf32>
    %1077 = vector.multi_reduction <add>, %1076, %cst_281 [1] : vector<16x16xf32> to vector<16xf32>
    %1078 = vector.shape_cast %1077 : vector<16xf32> to vector<16x1xf32>
    %1079 = tpu.reciprocal %1078 {approx = true} : vector<16x1xf32> -> vector<16x1xf32>
    %1080 = vector.broadcast %1079 : vector<16x1xf32> to vector<16x16xf32>
    %1081 = arith.mulf %1076, %1080 : vector<16x16xf32>
    %1082 = vector.extract_strided_slice %972 {offsets = [0, 24], sizes = [16, 8], strides = [1, 1]} : vector<16x32xf32> to vector<16x8xf32>
    %1083 = arith.truncf %1081 : vector<16x16xf32> to vector<16x16xbf16>
    %1084 = arith.truncf %1082 : vector<16x8xf32> to vector<16x8xbf16>
    %cst_282 = arith.constant dense<0.000000e+00> : vector<16x8xf32>
    %1085 = tpu.matmul %1083, %1084, %cst_282 {dimension_numbers = #tpu.dot_dimension_numbers<[1], [0], [0], [1], [0, 0, 1, 1], [], []>} : vector<16x16xbf16>, vector<16x8xbf16>, vector<16x8xf32> -> vector<16x8xf32>
    %1086 = vector.extract_strided_slice %52 {offsets = [24, 0], sizes = [8, 32], strides = [1, 1]} : vector<32x32xf32> to vector<8x32xf32>
    %1087 = arith.truncf %1085 : vector<16x8xf32> to vector<16x8xbf16>
    %1088 = arith.truncf %1086 : vector<8x32xf32> to vector<8x32xbf16>
    %cst_283 = arith.constant dense<0.000000e+00> : vector<16x32xf32>
    %1089 = tpu.matmul %1087, %1088, %cst_283 {dimension_numbers = #tpu.dot_dimension_numbers<[1], [0], [0], [1], [0, 0, 1, 1], [], []>} : vector<16x8xbf16>, vector<8x32xbf16>, vector<16x32xf32> -> vector<16x32xf32>
    %1090 = arith.addf %1062, %1089 : vector<16x32xf32>
    %1091 = vector.broadcast %969 : vector<1x32xf32> to vector<8x32xf32>
    %1092 = arith.mulf %1091, %974 : vector<8x32xf32>
    %1093 = vector.broadcast %969 : vector<1x32xf32> to vector<8x32xf32>
    %1094 = arith.mulf %1093, %973 : vector<8x32xf32>
    %1095 = vector.extract_strided_slice %1092 {offsets = [0, 0], sizes = [8, 8], strides = [1, 1]} : vector<8x32xf32> to vector<8x8xf32>
    %1096 = vector.extract_strided_slice %1094 {offsets = [0, 0], sizes = [8, 8], strides = [1, 1]} : vector<8x32xf32> to vector<8x8xf32>
    %1097 = arith.truncf %1095 : vector<8x8xf32> to vector<8x8xbf16>
    %1098 = arith.truncf %1096 : vector<8x8xf32> to vector<8x8xbf16>
    %cst_284 = arith.constant dense<0.000000e+00> : vector<8x8xf32>
    %1099 = tpu.matmul %1097, %1098, %cst_284 {dimension_numbers = #tpu.dot_dimension_numbers<[1], [1], [0], [0], [0, 0, 1, 0], [], []>} : vector<8x8xbf16>, vector<8x8xbf16>, vector<8x8xf32> -> vector<8x8xf32>
    %1100 = vector.broadcast %13 : vector<1x8xf32> to vector<8x8xf32>
    %1101 = arith.addf %1099, %1100 : vector<8x8xf32>
    %cst_285 = arith.constant 0.353553385 : f32
    %1102 = vector.broadcast %cst_285 : f32 to vector<8x8xf32>
    %1103 = arith.mulf %1101, %1102 : vector<8x8xf32>
    %cst_286 = arith.constant dense<0xFF800000> : vector<8xf32>
    %1104 = vector.multi_reduction <maximumf>, %1103, %cst_286 [1] : vector<8x8xf32> to vector<8xf32>
    %1105 = vector.shape_cast %1104 : vector<8xf32> to vector<8x1xf32>
    %1106 = vector.broadcast %1105 : vector<8x1xf32> to vector<8x8xf32>
    %1107 = arith.subf %1103, %1106 : vector<8x8xf32>
    %1108 = math.exp %1107 : vector<8x8xf32>
    %cst_287 = arith.constant dense<0.000000e+00> : vector<8xf32>
    %1109 = vector.multi_reduction <add>, %1108, %cst_287 [1] : vector<8x8xf32> to vector<8xf32>
    %1110 = vector.shape_cast %1109 : vector<8xf32> to vector<8x1xf32>
    %1111 = tpu.reciprocal %1110 {approx = true} : vector<8x1xf32> -> vector<8x1xf32>
    %1112 = vector.broadcast %1111 : vector<8x1xf32> to vector<8x8xf32>
    %1113 = arith.mulf %1108, %1112 : vector<8x8xf32>
    %1114 = vector.extract_strided_slice %975 {offsets = [0, 0], sizes = [8, 8], strides = [1, 1]} : vector<8x32xf32> to vector<8x8xf32>
    %1115 = arith.truncf %1113 : vector<8x8xf32> to vector<8x8xbf16>
    %1116 = arith.truncf %1114 : vector<8x8xf32> to vector<8x8xbf16>
    %cst_288 = arith.constant dense<0.000000e+00> : vector<8x8xf32>
    %1117 = tpu.matmul %1115, %1116, %cst_288 {dimension_numbers = #tpu.dot_dimension_numbers<[1], [0], [0], [1], [0, 0, 1, 1], [], []>} : vector<8x8xbf16>, vector<8x8xbf16>, vector<8x8xf32> -> vector<8x8xf32>
    %1118 = vector.extract_strided_slice %54 {offsets = [0, 0], sizes = [8, 32], strides = [1, 1]} : vector<32x32xf32> to vector<8x32xf32>
    %1119 = arith.truncf %1117 : vector<8x8xf32> to vector<8x8xbf16>
    %1120 = arith.truncf %1118 : vector<8x32xf32> to vector<8x32xbf16>
    %cst_289 = arith.constant dense<0.000000e+00> : vector<8x32xf32>
    %1121 = tpu.matmul %1119, %1120, %cst_289 {dimension_numbers = #tpu.dot_dimension_numbers<[1], [0], [0], [1], [0, 0, 1, 1], [], []>} : vector<8x8xbf16>, vector<8x32xbf16>, vector<8x32xf32> -> vector<8x32xf32>
    %1122 = vector.extract_strided_slice %1092 {offsets = [0, 8], sizes = [8, 8], strides = [1, 1]} : vector<8x32xf32> to vector<8x8xf32>
    %1123 = vector.extract_strided_slice %1094 {offsets = [0, 8], sizes = [8, 8], strides = [1, 1]} : vector<8x32xf32> to vector<8x8xf32>
    %1124 = arith.truncf %1122 : vector<8x8xf32> to vector<8x8xbf16>
    %1125 = arith.truncf %1123 : vector<8x8xf32> to vector<8x8xbf16>
    %cst_290 = arith.constant dense<0.000000e+00> : vector<8x8xf32>
    %1126 = tpu.matmul %1124, %1125, %cst_290 {dimension_numbers = #tpu.dot_dimension_numbers<[1], [1], [0], [0], [0, 0, 1, 0], [], []>} : vector<8x8xbf16>, vector<8x8xbf16>, vector<8x8xf32> -> vector<8x8xf32>
    %1127 = vector.broadcast %13 : vector<1x8xf32> to vector<8x8xf32>
    %1128 = arith.addf %1126, %1127 : vector<8x8xf32>
    %cst_291 = arith.constant 0.353553385 : f32
    %1129 = vector.broadcast %cst_291 : f32 to vector<8x8xf32>
    %1130 = arith.mulf %1128, %1129 : vector<8x8xf32>
    %cst_292 = arith.constant dense<0xFF800000> : vector<8xf32>
    %1131 = vector.multi_reduction <maximumf>, %1130, %cst_292 [1] : vector<8x8xf32> to vector<8xf32>
    %1132 = vector.shape_cast %1131 : vector<8xf32> to vector<8x1xf32>
    %1133 = vector.broadcast %1132 : vector<8x1xf32> to vector<8x8xf32>
    %1134 = arith.subf %1130, %1133 : vector<8x8xf32>
    %1135 = math.exp %1134 : vector<8x8xf32>
    %cst_293 = arith.constant dense<0.000000e+00> : vector<8xf32>
    %1136 = vector.multi_reduction <add>, %1135, %cst_293 [1] : vector<8x8xf32> to vector<8xf32>
    %1137 = vector.shape_cast %1136 : vector<8xf32> to vector<8x1xf32>
    %1138 = tpu.reciprocal %1137 {approx = true} : vector<8x1xf32> -> vector<8x1xf32>
    %1139 = vector.broadcast %1138 : vector<8x1xf32> to vector<8x8xf32>
    %1140 = arith.mulf %1135, %1139 : vector<8x8xf32>
    %1141 = vector.extract_strided_slice %975 {offsets = [0, 8], sizes = [8, 8], strides = [1, 1]} : vector<8x32xf32> to vector<8x8xf32>
    %1142 = arith.truncf %1140 : vector<8x8xf32> to vector<8x8xbf16>
    %1143 = arith.truncf %1141 : vector<8x8xf32> to vector<8x8xbf16>
    %cst_294 = arith.constant dense<0.000000e+00> : vector<8x8xf32>
    %1144 = tpu.matmul %1142, %1143, %cst_294 {dimension_numbers = #tpu.dot_dimension_numbers<[1], [0], [0], [1], [0, 0, 1, 1], [], []>} : vector<8x8xbf16>, vector<8x8xbf16>, vector<8x8xf32> -> vector<8x8xf32>
    %1145 = vector.extract_strided_slice %54 {offsets = [8, 0], sizes = [8, 32], strides = [1, 1]} : vector<32x32xf32> to vector<8x32xf32>
    %1146 = arith.truncf %1144 : vector<8x8xf32> to vector<8x8xbf16>
    %1147 = arith.truncf %1145 : vector<8x32xf32> to vector<8x32xbf16>
    %cst_295 = arith.constant dense<0.000000e+00> : vector<8x32xf32>
    %1148 = tpu.matmul %1146, %1147, %cst_295 {dimension_numbers = #tpu.dot_dimension_numbers<[1], [0], [0], [1], [0, 0, 1, 1], [], []>} : vector<8x8xbf16>, vector<8x32xbf16>, vector<8x32xf32> -> vector<8x32xf32>
    %1149 = arith.addf %1121, %1148 : vector<8x32xf32>
    %1150 = vector.extract_strided_slice %1092 {offsets = [0, 16], sizes = [8, 8], strides = [1, 1]} : vector<8x32xf32> to vector<8x8xf32>
    %1151 = vector.extract_strided_slice %1094 {offsets = [0, 16], sizes = [8, 8], strides = [1, 1]} : vector<8x32xf32> to vector<8x8xf32>
    %1152 = arith.truncf %1150 : vector<8x8xf32> to vector<8x8xbf16>
    %1153 = arith.truncf %1151 : vector<8x8xf32> to vector<8x8xbf16>
    %cst_296 = arith.constant dense<0.000000e+00> : vector<8x8xf32>
    %1154 = tpu.matmul %1152, %1153, %cst_296 {dimension_numbers = #tpu.dot_dimension_numbers<[1], [1], [0], [0], [0, 0, 1, 0], [], []>} : vector<8x8xbf16>, vector<8x8xbf16>, vector<8x8xf32> -> vector<8x8xf32>
    %1155 = vector.broadcast %13 : vector<1x8xf32> to vector<8x8xf32>
    %1156 = arith.addf %1154, %1155 : vector<8x8xf32>
    %cst_297 = arith.constant 0.353553385 : f32
    %1157 = vector.broadcast %cst_297 : f32 to vector<8x8xf32>
    %1158 = arith.mulf %1156, %1157 : vector<8x8xf32>
    %cst_298 = arith.constant dense<0xFF800000> : vector<8xf32>
    %1159 = vector.multi_reduction <maximumf>, %1158, %cst_298 [1] : vector<8x8xf32> to vector<8xf32>
    %1160 = vector.shape_cast %1159 : vector<8xf32> to vector<8x1xf32>
    %1161 = vector.broadcast %1160 : vector<8x1xf32> to vector<8x8xf32>
    %1162 = arith.subf %1158, %1161 : vector<8x8xf32>
    %1163 = math.exp %1162 : vector<8x8xf32>
    %cst_299 = arith.constant dense<0.000000e+00> : vector<8xf32>
    %1164 = vector.multi_reduction <add>, %1163, %cst_299 [1] : vector<8x8xf32> to vector<8xf32>
    %1165 = vector.shape_cast %1164 : vector<8xf32> to vector<8x1xf32>
    %1166 = tpu.reciprocal %1165 {approx = true} : vector<8x1xf32> -> vector<8x1xf32>
    %1167 = vector.broadcast %1166 : vector<8x1xf32> to vector<8x8xf32>
    %1168 = arith.mulf %1163, %1167 : vector<8x8xf32>
    %1169 = vector.extract_strided_slice %975 {offsets = [0, 16], sizes = [8, 8], strides = [1, 1]} : vector<8x32xf32> to vector<8x8xf32>
    %1170 = arith.truncf %1168 : vector<8x8xf32> to vector<8x8xbf16>
    %1171 = arith.truncf %1169 : vector<8x8xf32> to vector<8x8xbf16>
    %cst_300 = arith.constant dense<0.000000e+00> : vector<8x8xf32>
    %1172 = tpu.matmul %1170, %1171, %cst_300 {dimension_numbers = #tpu.dot_dimension_numbers<[1], [0], [0], [1], [0, 0, 1, 1], [], []>} : vector<8x8xbf16>, vector<8x8xbf16>, vector<8x8xf32> -> vector<8x8xf32>
    %1173 = vector.extract_strided_slice %54 {offsets = [16, 0], sizes = [8, 32], strides = [1, 1]} : vector<32x32xf32> to vector<8x32xf32>
    %1174 = arith.truncf %1172 : vector<8x8xf32> to vector<8x8xbf16>
    %1175 = arith.truncf %1173 : vector<8x32xf32> to vector<8x32xbf16>
    %cst_301 = arith.constant dense<0.000000e+00> : vector<8x32xf32>
    %1176 = tpu.matmul %1174, %1175, %cst_301 {dimension_numbers = #tpu.dot_dimension_numbers<[1], [0], [0], [1], [0, 0, 1, 1], [], []>} : vector<8x8xbf16>, vector<8x32xbf16>, vector<8x32xf32> -> vector<8x32xf32>
    %1177 = arith.addf %1149, %1176 : vector<8x32xf32>
    %1178 = vector.extract_strided_slice %1092 {offsets = [0, 24], sizes = [8, 8], strides = [1, 1]} : vector<8x32xf32> to vector<8x8xf32>
    %1179 = vector.extract_strided_slice %1094 {offsets = [0, 24], sizes = [8, 8], strides = [1, 1]} : vector<8x32xf32> to vector<8x8xf32>
    %1180 = arith.truncf %1178 : vector<8x8xf32> to vector<8x8xbf16>
    %1181 = arith.truncf %1179 : vector<8x8xf32> to vector<8x8xbf16>
    %cst_302 = arith.constant dense<0.000000e+00> : vector<8x8xf32>
    %1182 = tpu.matmul %1180, %1181, %cst_302 {dimension_numbers = #tpu.dot_dimension_numbers<[1], [1], [0], [0], [0, 0, 1, 0], [], []>} : vector<8x8xbf16>, vector<8x8xbf16>, vector<8x8xf32> -> vector<8x8xf32>
    %1183 = vector.broadcast %13 : vector<1x8xf32> to vector<8x8xf32>
    %1184 = arith.addf %1182, %1183 : vector<8x8xf32>
    %cst_303 = arith.constant 0.353553385 : f32
    %1185 = vector.broadcast %cst_303 : f32 to vector<8x8xf32>
    %1186 = arith.mulf %1184, %1185 : vector<8x8xf32>
    %cst_304 = arith.constant dense<0xFF800000> : vector<8xf32>
    %1187 = vector.multi_reduction <maximumf>, %1186, %cst_304 [1] : vector<8x8xf32> to vector<8xf32>
    %1188 = vector.shape_cast %1187 : vector<8xf32> to vector<8x1xf32>
    %1189 = vector.broadcast %1188 : vector<8x1xf32> to vector<8x8xf32>
    %1190 = arith.subf %1186, %1189 : vector<8x8xf32>
    %1191 = math.exp %1190 : vector<8x8xf32>
    %cst_305 = arith.constant dense<0.000000e+00> : vector<8xf32>
    %1192 = vector.multi_reduction <add>, %1191, %cst_305 [1] : vector<8x8xf32> to vector<8xf32>
    %1193 = vector.shape_cast %1192 : vector<8xf32> to vector<8x1xf32>
    %1194 = tpu.reciprocal %1193 {approx = true} : vector<8x1xf32> -> vector<8x1xf32>
    %1195 = vector.broadcast %1194 : vector<8x1xf32> to vector<8x8xf32>
    %1196 = arith.mulf %1191, %1195 : vector<8x8xf32>
    %1197 = vector.extract_strided_slice %975 {offsets = [0, 24], sizes = [8, 8], strides = [1, 1]} : vector<8x32xf32> to vector<8x8xf32>
    %1198 = arith.truncf %1196 : vector<8x8xf32> to vector<8x8xbf16>
    %1199 = arith.truncf %1197 : vector<8x8xf32> to vector<8x8xbf16>
    %cst_306 = arith.constant dense<0.000000e+00> : vector<8x8xf32>
    %1200 = tpu.matmul %1198, %1199, %cst_306 {dimension_numbers = #tpu.dot_dimension_numbers<[1], [0], [0], [1], [0, 0, 1, 1], [], []>} : vector<8x8xbf16>, vector<8x8xbf16>, vector<8x8xf32> -> vector<8x8xf32>
    %1201 = vector.extract_strided_slice %54 {offsets = [24, 0], sizes = [8, 32], strides = [1, 1]} : vector<32x32xf32> to vector<8x32xf32>
    %1202 = arith.truncf %1200 : vector<8x8xf32> to vector<8x8xbf16>
    %1203 = arith.truncf %1201 : vector<8x32xf32> to vector<8x32xbf16>
    %cst_307 = arith.constant dense<0.000000e+00> : vector<8x32xf32>
    %1204 = tpu.matmul %1202, %1203, %cst_307 {dimension_numbers = #tpu.dot_dimension_numbers<[1], [0], [0], [1], [0, 0, 1, 1], [], []>} : vector<8x8xbf16>, vector<8x32xbf16>, vector<8x32xf32> -> vector<8x32xf32>
    %1205 = arith.addf %1177, %1204 : vector<8x32xf32>
    %1206 = arith.addf %922, %1090 : vector<16x32xf32>
    %1207 = arith.addf %927, %1205 : vector<8x32xf32>
    %c0_308 = arith.constant 0 : index
    %c0_309 = arith.constant 0 : index
    %1208 = vector.load %arg29[%c0_308, %c0_309] : memref<16x32xf32, #tpu.memory_space<vmem>>, vector<16x32xf32>
    tpu.vector_store %arg29[%c0_308, %c0_309], %1206 {strides = array<i32>} : memref<16x32xf32, #tpu.memory_space<vmem>>, vector<16x32xf32>,
    %c0_310 = arith.constant 0 : index
    %c0_311 = arith.constant 0 : index
    %1209 = vector.load %arg30[%c0_310, %c0_311] : memref<8x32xf32, #tpu.memory_space<vmem>>, vector<8x32xf32>
    tpu.vector_store %arg30[%c0_310, %c0_311], %1207 {strides = array<i32>} : memref<8x32xf32, #tpu.memory_space<vmem>>, vector<8x32xf32>,
    return
  }
  func.func @transform_0(%arg0: i32) -> (i32, i32) {
    %c0_i32 = arith.constant 0 : i32
    %c0_i32_0 = arith.constant 0 : i32
    return %arg0, %c0_i32 : i32, i32
  }
  func.func @transform_1(%arg0: i32) -> (i32, i32) {
    %c0_i32 = arith.constant 0 : i32
    %c0_i32_0 = arith.constant 0 : i32
    return %arg0, %c0_i32 : i32, i32
  }
  func.func @transform_2(%arg0: i32) -> (i32, i32, i32) {
    %c0_i32 = arith.constant 0 : i32
    %c0_i32_0 = arith.constant 0 : i32
    %c0_i32_1 = arith.constant 0 : i32
    return %arg0, %c0_i32, %c0_i32_0 : i32, i32, i32
  }
  func.func @transform_3(%arg0: i32) -> (i32, i32, i32) {
    %c0_i32 = arith.constant 0 : i32
    %c0_i32_0 = arith.constant 0 : i32
    %c0_i32_1 = arith.constant 0 : i32
    return %arg0, %c0_i32, %c0_i32_0 : i32, i32, i32
  }
  func.func @transform_4(%arg0: i32) -> (i32, i32) {
    %c0_i32 = arith.constant 0 : i32
    %c0_i32_0 = arith.constant 0 : i32
    %c0_i32_1 = arith.constant 0 : i32
    return %c0_i32, %c0_i32_0 : i32, i32
  }
  func.func @transform_5(%arg0: i32) -> (i32, i32) {
    %c0_i32 = arith.constant 0 : i32
    %c0_i32_0 = arith.constant 0 : i32
    %c0_i32_1 = arith.constant 0 : i32
    return %c0_i32, %c0_i32_0 : i32, i32
  }
  func.func @transform_6(%arg0: i32) -> (i32, i32) {
    %c0_i32 = arith.constant 0 : i32
    %c0_i32_0 = arith.constant 0 : i32
    %c0_i32_1 = arith.constant 0 : i32
    return %c0_i32, %c0_i32_0 : i32, i32
  }
  func.func @transform_7(%arg0: i32) -> (i32, i32) {
    %c0_i32 = arith.constant 0 : i32
    %c0_i32_0 = arith.constant 0 : i32
    %c0_i32_1 = arith.constant 0 : i32
    return %c0_i32, %c0_i32_0 : i32, i32
  }
  func.func @transform_8(%arg0: i32) -> (i32, i32) {
    %c0_i32 = arith.constant 0 : i32
    %c0_i32_0 = arith.constant 0 : i32
    %c0_i32_1 = arith.constant 0 : i32
    return %c0_i32, %c0_i32_0 : i32, i32
  }
  func.func @transform_9(%arg0: i32) -> (i32, i32) {
    %c0_i32 = arith.constant 0 : i32
    %c0_i32_0 = arith.constant 0 : i32
    %c0_i32_1 = arith.constant 0 : i32
    return %c0_i32, %c0_i32_0 : i32, i32
  }
  func.func @transform_10(%arg0: i32) -> (i32, i32) {
    %c0_i32 = arith.constant 0 : i32
    %c0_i32_0 = arith.constant 0 : i32
    %c0_i32_1 = arith.constant 0 : i32
    return %c0_i32, %c0_i32_0 : i32, i32
  }
  func.func @transform_11(%arg0: i32) -> (i32, i32) {
    %c0_i32 = arith.constant 0 : i32
    %c0_i32_0 = arith.constant 0 : i32
    %c0_i32_1 = arith.constant 0 : i32
    return %c0_i32, %c0_i32_0 : i32, i32
  }
  func.func @transform_12(%arg0: i32) -> (i32, i32) {
    %c0_i32 = arith.constant 0 : i32
    %c0_i32_0 = arith.constant 0 : i32
    %c0_i32_1 = arith.constant 0 : i32
    return %c0_i32, %c0_i32_0 : i32, i32
  }
  func.func @transform_13(%arg0: i32) -> (i32, i32) {
    %c0_i32 = arith.constant 0 : i32
    %c0_i32_0 = arith.constant 0 : i32
    %c0_i32_1 = arith.constant 0 : i32
    return %c0_i32, %c0_i32_0 : i32, i32
  }
  func.func @transform_14(%arg0: i32) -> (i32, i32) {
    %c0_i32 = arith.constant 0 : i32
    %c0_i32_0 = arith.constant 0 : i32
    %c0_i32_1 = arith.constant 0 : i32
    return %c0_i32, %c0_i32_0 : i32, i32
  }
  func.func @transform_15(%arg0: i32) -> (i32, i32) {
    %c0_i32 = arith.constant 0 : i32
    %c0_i32_0 = arith.constant 0 : i32
    %c0_i32_1 = arith.constant 0 : i32
    return %c0_i32, %c0_i32_0 : i32, i32
  }
  func.func @transform_16(%arg0: i32) -> (i32, i32) {
    %c0_i32 = arith.constant 0 : i32
    %c0_i32_0 = arith.constant 0 : i32
    %c0_i32_1 = arith.constant 0 : i32
    return %c0_i32, %c0_i32_0 : i32, i32
  }
  func.func @transform_17(%arg0: i32) -> (i32, i32) {
    %c0_i32 = arith.constant 0 : i32
    %c0_i32_0 = arith.constant 0 : i32
    %c0_i32_1 = arith.constant 0 : i32
    return %c0_i32, %c0_i32_0 : i32, i32
  }
  func.func @transform_18(%arg0: i32) -> (i32, i32) {
    %c0_i32 = arith.constant 0 : i32
    %c0_i32_0 = arith.constant 0 : i32
    %c0_i32_1 = arith.constant 0 : i32
    return %c0_i32, %c0_i32_0 : i32, i32
  }
  func.func @transform_19(%arg0: i32) -> (i32, i32) {
    %c0_i32 = arith.constant 0 : i32
    %c0_i32_0 = arith.constant 0 : i32
    %c0_i32_1 = arith.constant 0 : i32
    return %c0_i32, %c0_i32_0 : i32, i32
  }
  func.func @transform_20(%arg0: i32) -> (i32, i32) {
    %c0_i32 = arith.constant 0 : i32
    %c0_i32_0 = arith.constant 0 : i32
    %c0_i32_1 = arith.constant 0 : i32
    return %c0_i32, %c0_i32_0 : i32, i32
  }
  func.func @transform_21(%arg0: i32) -> (i32, i32) {
    %c0_i32 = arith.constant 0 : i32
    %c0_i32_0 = arith.constant 0 : i32
    %c0_i32_1 = arith.constant 0 : i32
    return %c0_i32, %c0_i32_0 : i32, i32
  }
  func.func @transform_22(%arg0: i32) -> (i32, i32) {
    %c0_i32 = arith.constant 0 : i32
    %c0_i32_0 = arith.constant 0 : i32
    %c0_i32_1 = arith.constant 0 : i32
    return %c0_i32, %c0_i32_0 : i32, i32
  }
  func.func @transform_23(%arg0: i32) -> (i32, i32) {
    %c0_i32 = arith.constant 0 : i32
    %c0_i32_0 = arith.constant 0 : i32
    %c0_i32_1 = arith.constant 0 : i32
    return %c0_i32, %c0_i32_0 : i32, i32
  }
  func.func @transform_24(%arg0: i32) -> (i32, i32) {
    %c0_i32 = arith.constant 0 : i32
    %c0_i32_0 = arith.constant 0 : i32
    %c0_i32_1 = arith.constant 0 : i32
    return %c0_i32, %c0_i32_0 : i32, i32
  }
  func.func @transform_25(%arg0: i32) -> (i32, i32) {
    %c0_i32 = arith.constant 0 : i32
    %c0_i32_0 = arith.constant 0 : i32
    %c0_i32_1 = arith.constant 0 : i32
    return %c0_i32, %c0_i32_0 : i32, i32
  }
  func.func @transform_26(%arg0: i32) -> (i32, i32) {
    %c0_i32 = arith.constant 0 : i32
    %c0_i32_0 = arith.constant 0 : i32
    %c0_i32_1 = arith.constant 0 : i32
    return %c0_i32, %c0_i32_0 : i32, i32
  }
  func.func @transform_27(%arg0: i32) -> (i32, i32) {
    %c0_i32 = arith.constant 0 : i32
    %c0_i32_0 = arith.constant 0 : i32
    %c0_i32_1 = arith.constant 0 : i32
    return %c0_i32, %c0_i32_0 : i32, i32
  }
  func.func @transform_28(%arg0: i32) -> (i32, i32) {
    %c0_i32 = arith.constant 0 : i32
    %c0_i32_0 = arith.constant 0 : i32
    return %arg0, %c0_i32 : i32, i32
  }
  func.func @transform_29(%arg0: i32) -> (i32, i32) {
    %c0_i32 = arith.constant 0 : i32
    %c0_i32_0 = arith.constant 0 : i32
    return %arg0, %c0_i32 : i32, i32
  }
}

</mosaic_0001>

<bundles_post_ra>
// kernel: single_block_forward.1
= control target key start
LH: loop header
LB: loop body
LE: loop exit
PB: predicated region body
PF: predicated region fallthrough
CT: control target
= control target key end

     0   :  { %s10393_s6 = smov 1   ;;  %s10394_s10 = smov 2   ;;  %s12309_s0 = inlined_call_operand.smem [shape: u32[30], index: -1, kind: input, shape index: {}] }
   0x1   :  { %s10463_s5 = sld [smem:[%s12309_s0]]   ;;  %s10395_s14 = smov 3  }
   0x2   :  { %s10468_s9 = sld [smem:[%s12309_s0 + %s10393_s6]]   ;;  %s10396_s18 = smov 4  }
   0x3   :  { %s10473_s13 = sld [smem:[%s12309_s0 + %s10394_s10]]   ;;  %s10397_s22 = smov 5  }
   0x4   :  { %s10478_s17 = sld [smem:[%s12309_s0 + %s10395_s14]]   ;;  %s10398_s26 = smov 6  }
   0x5   :  { %s10483_s21 = sld [smem:[%s12309_s0 + %s10396_s18]]   ;;  %s10399_s30 = smov 7  }
   0x6   :  { %s10488_s25 = sld [smem:[%s12309_s0 + %s10397_s22]]   ;;  %s10400_s4 = smov 8  }
   0x7   :  { %12362 = sst [smem:[#allocation38_spill]] %s10463_s5  ;;  %s10401_s10 = smov 9  }
   0x8   :  { %12363 = sst [smem:[#allocation39_spill]] %s10468_s9  ;;  %s10402_s15 = smov 10  }
   0x9   :  { %12364 = sst [smem:[#allocation40_spill]] %s10473_s13  ;;  %s10403_s20 = smov 11  }
   0xa   :  { %12365 = sst [smem:[#allocation41_spill]] %s10478_s17  ;;  %s10405_s1 = smov 13  }
   0xb   :  { %s10493_s29 = sld [smem:[%s12309_s0 + %s10398_s26]]   ;;  %s10404_s26 = smov 12  }
   0xc   :  { %12366 = sst [smem:[#allocation42_spill]] %s10488_s25  ;;  %s10406_s7 = smov 14  }
   0xd   :  { %s10498_s3 = sld [smem:[%s12309_s0 + %s10399_s30]]   ;;  %s10408_s22 = smov 16  }
   0xe   :  { %s10503_s8 = sld [smem:[%s12309_s0 + %s10400_s4]]   ;;  %s10409_s28 = smov 17  }
   0xf   :  { %s10508_s14 = sld [smem:[%s12309_s0 + %s10401_s10]]  }
  0x10   :  { %s10513_s19 = sld [smem:[%s12309_s0 + %s10402_s15]]   ;;  %s10407_s15 = smov 15  }
  0x11   :  { %12367 = sst [smem:[#allocation43_spill]] %s10493_s29 }
  0x12   :  { %s10518_s24 = sld [smem:[%s12309_s0 + %s10403_s20]]  }
  0x13   :  { %12368 = sst [smem:[#allocation44_spill]] %s10498_s3 }
  0x14   :  { %12369 = sst [smem:[#allocation45_spill]] %s10503_s8 }
  0x15   :  { %s10523_s30 = sld [smem:[%s12309_s0 + %s10404_s26]]  }
  0x16   :  { %12370 = sst [smem:[#allocation46_spill]] %s10513_s19 }
  0x17   :  { %s10528_s6 = sld [smem:[%s12309_s0 + %s10405_s1]]  }
  0x18   :  { %12371 = sst [smem:[#allocation47_spill]] %s10518_s24 }
  0x19   :  { %s10533_s12 = sld [smem:[%s12309_s0 + %s10406_s7]]   ;;  %s10410_s7 = smov 18  }
  0x1a   :  { %s10538_s20 = sld [smem:[%s12309_s0 + %s10407_s15]]   ;;  %s10411_s15 = smov 19  }
  0x1b   :  { %12372 = sst [smem:[#allocation48_spill]] %s10523_s30 }
  0x1c   :  { %s10543_s27 = sld [smem:[%s12309_s0 + %s10408_s22]]   ;;  %s10412_s22 = smov 20  }
  0x1d   :  { %s10548_s4 = sld [smem:[%s12309_s0 + %s10409_s28]]   ;;  %s10413_s28 = smov 21  }
  0x1e   :  { %s10553_s30 = sld [smem:[%s12309_s0 + %s10410_s7]]   ;;  %s10414_s7 = smov 22  }
  0x1f   :  { %12373 = sst [smem:[#allocation49_spill]] %s10533_s12 }
  0x20   :  { %12374 = sst [smem:[#allocation50_spill]] %s10538_s20 }
  0x21   :  { %s10558_s12 = sld [smem:[%s12309_s0 + %s10411_s15]]   ;;  %s10415_s15 = smov 23  }
  0x22   :  { %12375 = sst [smem:[#allocation51_spill]] %s10543_s27 }
  0x23   :  { %12376 = sst [smem:[#allocation52_spill]] %s10548_s4 }
  0x24   :  { %s10563_s27 = sld [smem:[%s12309_s0 + %s10412_s22]]   ;;  %s10416_s22 = smov 24  }
  0x25   :  { %s10568_s3 = sld [smem:[%s12309_s0 + %s10413_s28]]   ;;  %s10417_s28 = smov 25  }
  0x26   :  { %s10573_s25 = sld [smem:[%s12309_s0 + %s10414_s7]]   ;;  %s10418_s7 = smov 26  }
  0x27   :  { %s10578_s17 = sld [smem:[%s12309_s0 + %s10415_s15]]   ;;  %s10419_s15 = smov 27  }
  0x28   :  { %s10588_s13 = sld [smem:[%s12309_s0 + %s10417_s28]]   ;;  %s10421_s28 = smov 29  }
  0x29   :  { %s10593_s19 = sld [smem:[%s12309_s0 + %s10418_s7]]  }
  0x2a   :  { %12377 = sst [smem:[#allocation53_spill]] %s10563_s27 }
  0x2b   :  { %12378 = sst [smem:[#allocation54_spill]] %s10568_s3 }
  0x2c   :  { %s10583_s27 = sld [smem:[%s12309_s0 + %s10416_s22]]   ;;  %s10420_s22 = smov 28  }
  0x2d   :  { %s10598_s8 = sld [smem:[%s12309_s0 + %s10419_s15]]  }
  0x2e   :  { %s10603_s9 = sld [smem:[%s12309_s0 + %s10420_s22]]  }
  0x2f   :  { %s10608_s29 = sld [smem:[%s12309_s0 + %s10421_s28]]  }
  0x30   :  { %65 = vsyncpa [#allocation3], 0 }
  0x31   :  { %66 = vsyncpa [#allocation6], 0 }
  0x32   :  { %67 = vsyncpa [#allocation9], 0 }
  0x33   :  { %68 = vsyncpa [#allocation12], 0 }
  0x34   :  { %69 = vsyncpa [#allocation15], 0 }
  0x35   :  { %70 = vsyncpa [#allocation18], 0 }
  0x36   :  { %71 = vsyncpa [#allocation21], 0 }
  0x37   :  { %72 = vsyncpa [#allocation24], 0 }
  0x38   :  { %73 = vsyncpa [#allocation4], 0 }
  0x39   :  { %75 = vsyncpa [#allocation4 + $0x1], 0 }
  0x3a   :  { %76 = vsyncpa [#allocation27], 0 }
  0x3b   :  { %78 = vsyncpa [#allocation27 + $0x1], 0  ;;  %s10610_s7 = smov 0   ;;  %s10612_s10 = smov 0  }
  0x3c   :  { %s10614_s11 = smov 0   ;;  %s10616_s0 = smov 0  }
  0x3d LB: > { %s12379_s4 = sld [smem:[#allocation52_spill]]  ;;  %s12380_s3 = sld [smem:[#allocation54_spill]]  ;;  %s10391_s0 = sphi %s10616_s0, %s12451_s0   ;;  %s10387_s11 = sphi %s10614_s11, %s12453_s11   ;;  %s10383_s10 = sphi %s10612_s10, %s12455_s10   ;;  %s10379_s7 = sphi %s10610_s7, %s12454_s7  }
  0x3e   : > { %s12381_s24 = sld [smem:[#allocation47_spill]]  ;;  %s12382_s20 = sld [smem:[#allocation50_spill]] }
  0x3f   : > { %12383 = sst [smem:[#allocation55_spill]] %s10379_s7  ;;  %s10631_s15 = sadd.s32 4294967295, %s10391_s0  }
  0x40   : > { %12384 = sst [smem:[#allocation56_spill]] %s10387_s11  ;;  %s8090_s16 = sadd.s32 4294967294, %s10391_s0  }
  0x41   : > { %12385 = sst [smem:[#allocation57_spill]] %s10391_s0  ;;  %s10635_s18 = sadd.s32 1, %s10391_s0  }
  0x42   : > { %12386 = sst [smem:[#allocation58_spill]] %s10635_s18  ;;  %s699_s22 = sadd.s32 1, %s10387_s11 }
  0x43   : > { %s696_s23 = ssub.s32 %s10391_s0, %s10635_s18  ;;  %p709_p0 = scmp.ne.s32.totalorder %s10387_s11, %s10383_s10 }
  0x44   : > { %p697_p1 = scmp.eq.s32.totalorder %s696_s23, 0  ;;  %p710_p2 = scmp.eq.s32.totalorder %s10631_s15, 1 }
  0x45   : > { %p715_p3 = scmp.ne.s32.totalorder %s10383_s10, %s10379_s7  ;;  %p716_p4 = scmp.eq.s32.totalorder %s8090_s16, 1 }
  0x46   : > { %s10646_s26 = scalar_select %p697_p1, %s10387_s11, %s699_s22  }
  0x47   : > { %p10648_p5 = por %p710_p2, %p709_p0  ;;  %p10652_p6 = por %p716_p4, %p715_p3 }
  0x48   : > { %12387 = sst [smem:[#allocation59_spill]] %s10646_s26  ;;  %p8091_p7 = scmp.ge.s32.totalorder %s10391_s0, 1 }
  0x49   : > { %s12388_s28 = scalar_select %p10648_p5, 1, 0 }
  0x4a   : > { %s12389_s1 = scalar_select %p10652_p6, 1, 0 }
  0x4b   : > { %p749_p8 = scmp.lt.s32.totalorder %s10391_s0, 3  ;;  %p12322_p9 = scmp.eq.s32.totalorder %s10631_s15, 0 }
  0x4c   : > { %12390 = sst [smem:[#allocation60_spill]] %s12389_s1  ;;  %s10422_s16 = smov [#allocation5]  }
  0x4d   : > { %p10659_p10 = pnand %p8091_p7, %p749_p8  ;;  %s791_s22 = sshll.u32 %s10422_s16, 4  ;;  %s792_s22 = int_to_ptr.vmem [resolvable:$true] %s791_s22 }
  0x4e   : > { %s10423_s23 = smov [#allocation8]   ;;  %s10424_s18 = smov [#allocation11]  }
  0x4f   : > { %s12391_s2 = scalar_select %p10659_p10, 1, 0 }
  0x50   : > { %p9477_p11 = pneg %p10659_p10  ;;  %s819_s26 = sshll.u32 %s10423_s23, 4  ;;  %s10671_s26 = int_to_ptr.vmem [resolvable:$true] %s819_s26 }
  0x51   : > { %s843_s1 = sshll.u32 %s10424_s18, 4  ;;  %s9873_s7 = scalar_lea.hbm %s12381_s24, 16  ;;  %s10673_s1 = int_to_ptr.vmem [resolvable:$true] %s843_s1 }
  0x52   : > { %p10667_p12 = pnand %p12322_p9, %p9477_p11  ;;  %p9874_p13 = scmp.ne.s32.totalorder %s12381_s24, %s9873_s7 }
  0x53   : > { %p9880_p3 = scmp.lt.u32.totalorder %s9873_s7, %s12381_s24 }
  0x54   : > { %p10679_p0 = pneg %p10667_p12 }
  0x56   : > { %p9876_p1 = pnand %p10679_p0, %p9874_p13 }
  0x58   : > { %p9877_p2 = pneg %p9876_p1 }
  0x5a   : > { %p9882_p4 = pnand %p9880_p3, %p9877_p2 }
  0x5c   : > { %9885 = shalt.err (!%p9882_p4)
}
  0x5d   : > { %s9886_s23 = scalar_lea.vmem %s792_s22, 16  ;;  %s9893_s18 = scalar_lea.vmem %s792_s22, 32 }
  0x5e   : > { %p9887_p7 = scmp.ne.s32.totalorder %s792_s22, %s9886_s23  ;;  %p9894_p9 = scmp.lt.s32.totalorder %s792_s22, %s792_s22 }
  0x5f   : > { %p9895_p6 = scmp.lt.s32.totalorder %s9893_s18, %s9886_s23 }
  0x60   : > { %p9889_p8 = pnand %p9887_p7, %p10679_p0 }
  0x61   : > { %p9896_p5 = por %p9895_p6, %p9894_p9 }
  0x62   : > { %p9890_p11 = pneg %p9889_p8 }
  0x64   : > { %p9897_p10 = pnand %p9896_p5, %p9890_p11 }
  0x66   : > { %9900 = shalt.err (!%p9897_p10)
}
  0x67   : > { %9483 = dma.hbm_to_vmem [thread:$0]  (!%p10667_p12), %s12381_s24, 16, %s792_s22, [#allocation6]  }
  0x68   : > { %s9901_s7 = scalar_lea.hbm %s12382_s20, 16 }
  0x69   : > { %p9902_p13 = scmp.ne.s32.totalorder %s12382_s20, %s9901_s7  ;;  %p9908_p3 = scmp.lt.u32.totalorder %s9901_s7, %s12382_s20 }
  0x6b   : > { %p9904_p1 = pnand %p9902_p13, %p10679_p0 }
  0x6d   : > { %p9905_p2 = pneg %p9904_p1 }
  0x6f   : > { %p9910_p4 = pnand %p9908_p3, %p9905_p2 }
  0x71   : > { %9913 = shalt.err (!%p9910_p4)
}
  0x72   : > { %s9914_s23 = scalar_lea.vmem %s10671_s26, 16  ;;  %s9921_s18 = scalar_lea.vmem %s10671_s26, 32 }
  0x73   : > { %p9915_p5 = scmp.ne.s32.totalorder %s10671_s26, %s9914_s23  ;;  %p9922_p10 = scmp.lt.s32.totalorder %s10671_s26, %s10671_s26 }
  0x74   : > { %p9923_p7 = scmp.lt.s32.totalorder %s9921_s18, %s9914_s23 }
  0x75   : > { %p9917_p6 = pnand %p9915_p5, %p10679_p0 }
  0x76   : > { %p9924_p8 = por %p9923_p7, %p9922_p10 }
  0x77   : > { %p9918_p9 = pneg %p9917_p6 }
  0x79   : > { %p9925_p11 = pnand %p9924_p8, %p9918_p9 }
  0x7b   : > { %9928 = shalt.err (!%p9925_p11)
}
  0x7c   : > { %9489 = dma.hbm_to_vmem [thread:$0]  (!%p10667_p12), %s12382_s20, 16, %s10671_s26, [#allocation9]  }
  0x7d   : > { %s9929_s22 = scalar_lea.hbm %s10553_s30, 512 }
  0x7e   : > { %p9930_p13 = scmp.ne.s32.totalorder %s10553_s30, %s9929_s22  ;;  %p9936_p3 = scmp.lt.u32.totalorder %s9929_s22, %s10553_s30 }
  0x80   : > { %p9932_p1 = pnand %p9930_p13, %p10679_p0 }
  0x82   : > { %p9933_p2 = pneg %p9932_p1 }
  0x84   : > { %p9938_p4 = pnand %p9936_p3, %p9933_p2 }
  0x86   : > { %9941 = shalt.err (!%p9938_p4)
}
  0x87   : > { %s9942_s7 = scalar_lea.vmem %s10673_s1, 512  ;;  %p9950_p10 = scmp.lt.s32.totalorder %s10673_s1, %s10673_s1 }
  0x88   : > { %p9943_p5 = scmp.ne.s32.totalorder %s10673_s1, %s9942_s7  ;;  %p9951_p7 = scmp.lt.s32.totalorder %s9942_s7, %s9942_s7 }
  0x8a   : > { %p9945_p6 = pnand %p9943_p5, %p10679_p0  ;;  %p9952_p8 = por %p9951_p7, %p9950_p10 }
  0x8c   : > { %p9946_p9 = pneg %p9945_p6 }
  0x8e   : > { %p9953_p11 = pnand %p9952_p8, %p9946_p9 }
  0x90   : > { %9956 = shalt.err (!%p9953_p11)
}
  0x91   : > { %s12328_s26 = smov 128   ;;  %s10426_s23 = smov 8  }
  0x92   : > { %9495 = dma.hbm_to_vmem [thread:$0]  (!%p10667_p12), %s10553_s30, 512, %s10673_s1, [#allocation12], %s12328_s26, %s12328_s26, %s10426_s23  }
  0x93   : > { %s10427_s18 = smov [#allocation14]   ;;  %s10428_s7 = smov [#allocation17]  }
  0x94   : > { %s871_s22 = sshll.u32 %s10427_s18, 4  ;;  %s895_s20 = sshll.u32 %s10428_s7, 4  ;;  %s872_s22 = int_to_ptr.vmem [resolvable:$true] %s871_s22  ;;  %s896_s20 = int_to_ptr.vmem [resolvable:$true] %s895_s20 }
  0x95   : > { %s9957_s24 = scalar_lea.hbm %s12380_s3, 16 }
  0x96   : > { %p9958_p13 = scmp.ne.s32.totalorder %s12380_s3, %s9957_s24  ;;  %p9964_p3 = scmp.lt.u32.totalorder %s9957_s24, %s12380_s3 }
  0x98   : > { %p9960_p1 = pnand %p9958_p13, %p10679_p0 }
  0x9a   : > { %p9961_p2 = pneg %p9960_p1 }
  0x9c   : > { %p9966_p4 = pnand %p9964_p3, %p9961_p2 }
  0x9e   : > { %9969 = shalt.err (!%p9966_p4)
}
  0x9f   : > { %s9970_s0 = scalar_lea.vmem %s872_s22, 16  ;;  %s9977_s1 = scalar_lea.vmem %s872_s22, 32 }
  0xa0   : > { %p9971_p5 = scmp.ne.s32.totalorder %s872_s22, %s9970_s0  ;;  %p9978_p10 = scmp.lt.s32.totalorder %s872_s22, %s872_s22 }
  0xa1   : > { %p9979_p7 = scmp.lt.s32.totalorder %s9977_s1, %s9970_s0 }
  0xa2   : > { %p9973_p6 = pnand %p9971_p5, %p10679_p0 }
  0xa3   : > { %p9980_p8 = por %p9979_p7, %p9978_p10 }
  0xa4   : > { %p9974_p9 = pneg %p9973_p6 }
  0xa6   : > { %p9981_p11 = pnand %p9980_p8, %p9974_p9 }
  0xa8   : > { %9984 = shalt.err (!%p9981_p11)
}
  0xa9   : > { %9501 = dma.hbm_to_vmem [thread:$0]  (!%p10667_p12), %s12380_s3, 16, %s872_s22, [#allocation15]  }
  0xaa   : > { %s9985_s24 = scalar_lea.hbm %s10578_s17, 16 }
  0xab   : > { %p9986_p13 = scmp.ne.s32.totalorder %s10578_s17, %s9985_s24  ;;  %p9992_p3 = scmp.lt.u32.totalorder %s9985_s24, %s10578_s17 }
  0xad   : > { %p9988_p1 = pnand %p9986_p13, %p10679_p0 }
  0xaf   : > { %p9989_p2 = pneg %p9988_p1 }
  0xb1   : > { %p9994_p4 = pnand %p9992_p3, %p9989_p2 }
  0xb3   : > { %9997 = shalt.err (!%p9994_p4)
}
  0xb4   : > { %s9998_s0 = scalar_lea.vmem %s896_s20, 16  ;;  %s10005_s18 = scalar_lea.vmem %s896_s20, 32 }
  0xb5   : > { %p9999_p5 = scmp.ne.s32.totalorder %s896_s20, %s9998_s0  ;;  %p10006_p10 = scmp.lt.s32.totalorder %s896_s20, %s896_s20 }
  0xb6   : > { %p10007_p7 = scmp.lt.s32.totalorder %s10005_s18, %s9998_s0 }
  0xb7   : > { %p10001_p6 = pnand %p9999_p5, %p10679_p0 }
  0xb8   : > { %p10008_p8 = por %p10007_p7, %p10006_p10 }
  0xb9   : > { %p10002_p9 = pneg %p10001_p6 }
  0xbb   : > { %p10009_p11 = pnand %p10008_p8, %p10002_p9 }
  0xbd   : > { %10012 = shalt.err (!%p10009_p11)
}
  0xbe   : > { %9507 = dma.hbm_to_vmem [thread:$0]  (!%p10667_p12), %s10578_s17, 16, %s896_s20, [#allocation18]  }
  0xbf   : > { %s10429_s22 = smov [#allocation20]   ;;  %s10430_s1 = smov [#allocation2]  }
  0xc0   : > { %s919_s7 = sshll.u32 %s10429_s22, 4  ;;  %s777_s24 = sshll.u32 %s10430_s1, 4  ;;  %s920_s7 = int_to_ptr.vmem [resolvable:$true] %s919_s7  ;;  %s778_s24 = int_to_ptr.vmem [resolvable:$true] %s777_s24 }
  0xc1   : > { %s10013_s26 = scalar_lea.hbm %s10588_s13, 16 }
  0xc2   : > { %p10014_p13 = scmp.ne.s32.totalorder %s10588_s13, %s10013_s26  ;;  %p10020_p3 = scmp.lt.u32.totalorder %s10013_s26, %s10588_s13 }
  0xc4   : > { %p10016_p1 = pnand %p10014_p13, %p10679_p0 }
  0xc6   : > { %p10017_p2 = pneg %p10016_p1 }
  0xc8   : > { %p10022_p4 = pnand %p10020_p3, %p10017_p2 }
  0xca   : > { %10025 = shalt.err (!%p10022_p4)
}
  0xcb   : > { %s10026_s0 = scalar_lea.vmem %s920_s7, 16  ;;  %s10033_s20 = scalar_lea.vmem %s920_s7, 32 }
  0xcc   : > { %p10027_p5 = scmp.ne.s32.totalorder %s920_s7, %s10026_s0  ;;  %p10034_p10 = scmp.lt.s32.totalorder %s920_s7, %s920_s7 }
  0xcd   : > { %p10035_p7 = scmp.lt.s32.totalorder %s10033_s20, %s10026_s0 }
  0xce   : > { %p10029_p6 = pnand %p10027_p5, %p10679_p0 }
  0xcf   : > { %p10036_p8 = por %p10035_p7, %p10034_p10 }
  0xd0   : > { %p10030_p9 = pneg %p10029_p6 }
  0xd2   : > { %p10037_p11 = pnand %p10036_p8, %p10030_p9 }
  0xd4   : > { %10040 = shalt.err (!%p10037_p11)
}
  0xd5   : > { %9513 = dma.hbm_to_vmem [thread:$0]  (!%p10667_p12), %s10588_s13, 16, %s920_s7, [#allocation21]  }
  0xd6   : > { %s10041_s26 = scalar_lea.hbm %s10508_s14, 16 }
  0xd7   : > { %p10042_p13 = scmp.ne.s32.totalorder %s10508_s14, %s10041_s26  ;;  %p10048_p3 = scmp.lt.u32.totalorder %s10041_s26, %s10508_s14 }
  0xd9   : > { %p10044_p1 = pnand %p10042_p13, %p10679_p0 }
  0xdb   : > { %p10045_p2 = pneg %p10044_p1 }
  0xdd   : > { %p10050_p4 = pnand %p10048_p3, %p10045_p2 }
  0xdf   : > { %10053 = shalt.err (!%p10050_p4)
}
  0xe0   : > { %s10054_s18 = scalar_lea.vmem %s778_s24, 16  ;;  %s10061_s22 = scalar_lea.vmem %s778_s24, 32 }
  0xe1   : > { %p10055_p5 = scmp.ne.s32.totalorder %s778_s24, %s10054_s18  ;;  %p10062_p10 = scmp.lt.s32.totalorder %s778_s24, %s778_s24 }
  0xe2   : > { %p10063_p7 = scmp.lt.s32.totalorder %s10061_s22, %s10054_s18 }
  0xe3   : > { %p10057_p6 = pnand %p10055_p5, %p10679_p0 }
  0xe4   : > { %p10064_p8 = por %p10063_p7, %p10062_p10 }
  0xe5   : > { %p10058_p9 = pneg %p10057_p6 }
  0xe7   : > { %p10065_p11 = pnand %p10064_p8, %p10058_p9 }
  0xe9   : > { %10068 = shalt.err (!%p10065_p11)
}
  0xea   : > { %9480 = dma.hbm_to_vmem [thread:$0]  (!%p10667_p12), %s10508_s14, 16, %s778_s24, [#allocation3]  }
  0xeb   : > { %s10431_s7 = smov [#allocation7]   ;;  %s10432_s0 = smov [#allocation10]  }
  0xec   : > { %s805_s1 = sshll.u32 %s10431_s7, 4  ;;  %s833_s20 = sshll.u32 %s10432_s0, 4  ;;  %s806_s1 = int_to_ptr.vmem [resolvable:$true] %s805_s1  ;;  %s834_s20 = int_to_ptr.vmem [resolvable:$true] %s833_s20 }
  0xed   : > { %s10069_s26 = scalar_lea.hbm %s10528_s6, 16 }
  0xee   : > { %p10070_p13 = scmp.ne.s32.totalorder %s10528_s6, %s10069_s26  ;;  %p10076_p3 = scmp.lt.u32.totalorder %s10069_s26, %s10528_s6 }
  0xf0   : > { %p10072_p1 = pnand %p10070_p13, %p10679_p0 }
  0xf2   : > { %p10073_p2 = pneg %p10072_p1 }
  0xf4   : > { %p10078_p4 = pnand %p10076_p3, %p10073_p2 }
  0xf6   : > { %10081 = shalt.err (!%p10078_p4)
}
  0xf7   : > { %s10082_s18 = scalar_lea.vmem %s806_s1, 16  ;;  %s10089_s24 = scalar_lea.vmem %s806_s1, 32 }
  0xf8   : > { %p10083_p5 = scmp.ne.s32.totalorder %s806_s1, %s10082_s18  ;;  %p10090_p10 = scmp.lt.s32.totalorder %s806_s1, %s806_s1 }
  0xf9   : > { %p10091_p7 = scmp.lt.s32.totalorder %s10089_s24, %s10082_s18 }
  0xfa   : > { %p10085_p6 = pnand %p10083_p5, %p10679_p0 }
  0xfb   : > { %p10092_p8 = por %p10091_p7, %p10090_p10 }
  0xfc   : > { %p10086_p9 = pneg %p10085_p6 }
  0xfe   : > { %p10093_p11 = pnand %p10092_p8, %p10086_p9 }
 0x100   : > { %10096 = shalt.err (!%p10093_p11)
}
 0x101   : > { %9486 = dma.hbm_to_vmem [thread:$0]  (!%p10667_p12), %s10528_s6, 16, %s806_s1, [#allocation6]  }
 0x102   : > { %s10097_s22 = scalar_lea.hbm %s12379_s4, 16 }
 0x103   : > { %p10098_p13 = scmp.ne.s32.totalorder %s12379_s4, %s10097_s22  ;;  %p10104_p3 = scmp.lt.u32.totalorder %s10097_s22, %s12379_s4 }
 0x105   : > { %p10100_p1 = pnand %p10098_p13, %p10679_p0 }
 0x107   : > { %p10101_p2 = pneg %p10100_p1 }
 0x109   : > { %p10106_p4 = pnand %p10104_p3, %p10101_p2 }
 0x10b   : > { %10109 = shalt.err (!%p10106_p4)
}
 0x10c   : > { %s10110_s7 = scalar_lea.vmem %s834_s20, 16  ;;  %s10117_s0 = scalar_lea.vmem %s834_s20, 32 }
 0x10d   : > { %p10111_p5 = scmp.ne.s32.totalorder %s834_s20, %s10110_s7  ;;  %p10118_p10 = scmp.lt.s32.totalorder %s834_s20, %s834_s20 }
 0x10e   : > { %p10119_p7 = scmp.lt.s32.totalorder %s10117_s0, %s10110_s7 }
 0x10f   : > { %p10113_p6 = pnand %p10111_p5, %p10679_p0 }
 0x110   : > { %p10120_p8 = por %p10119_p7, %p10118_p10 }
 0x111   : > { %p10114_p9 = pneg %p10113_p6 }
 0x113   : > { %p10121_p11 = pnand %p10120_p8, %p10114_p9 }
 0x115   : > { %10124 = shalt.err (!%p10121_p11)
}
 0x116   : > { %9492 = dma.hbm_to_vmem [thread:$0]  (!%p10667_p12), %s12379_s4, 16, %s834_s20, [#allocation9]  }
 0x117   : > { %s10433_s1 = smov [#allocation13]   ;;  %s10434_s18 = smov [#allocation16]  }
 0x118   : > { %s857_s26 = sshll.u32 %s10433_s1, 4  ;;  %s881_s24 = sshll.u32 %s10434_s18, 4  ;;  %s858_s26 = int_to_ptr.vmem [resolvable:$true] %s857_s26  ;;  %s882_s24 = int_to_ptr.vmem [resolvable:$true] %s881_s24 }
 0x119   : > { %s10125_s22 = scalar_lea.hbm %s10558_s12, 16 }
 0x11a   : > { %p10126_p13 = scmp.ne.s32.totalorder %s10558_s12, %s10125_s22  ;;  %p10132_p3 = scmp.lt.u32.totalorder %s10125_s22, %s10558_s12 }
 0x11c   : > { %p10128_p1 = pnand %p10126_p13, %p10679_p0 }
 0x11e   : > { %p10129_p2 = pneg %p10128_p1 }
 0x120   : > { %p10134_p4 = pnand %p10132_p3, %p10129_p2 }
 0x122   : > { %10137 = shalt.err (!%p10134_p4)
}
 0x123   : > { %s10138_s7 = scalar_lea.vmem %s858_s26, 16  ;;  %s10145_s20 = scalar_lea.vmem %s858_s26, 32 }
 0x124   : > { %p10139_p5 = scmp.ne.s32.totalorder %s858_s26, %s10138_s7  ;;  %p10146_p10 = scmp.lt.s32.totalorder %s858_s26, %s858_s26 }
 0x125   : > { %p10147_p7 = scmp.lt.s32.totalorder %s10145_s20, %s10138_s7 }
 0x126   : > { %p10141_p6 = pnand %p10139_p5, %p10679_p0 }
 0x127   : > { %p10148_p8 = por %p10147_p7, %p10146_p10 }
 0x128   : > { %p10142_p9 = pneg %p10141_p6 }
 0x12a   : > { %p10149_p11 = pnand %p10148_p8, %p10142_p9 }
 0x12c   : > { %10152 = shalt.err (!%p10149_p11)
}
 0x12d   : > { %9498 = dma.hbm_to_vmem [thread:$0]  (!%p10667_p12), %s10558_s12, 16, %s858_s26, [#allocation12]  }
 0x12e   : > { %s10153_s0 = scalar_lea.hbm %s10573_s25, 512 }
 0x12f   : > { %p10154_p13 = scmp.ne.s32.totalorder %s10573_s25, %s10153_s0  ;;  %p10160_p3 = scmp.lt.u32.totalorder %s10153_s0, %s10573_s25 }
 0x131   : > { %p10156_p1 = pnand %p10154_p13, %p10679_p0 }
 0x133   : > { %p10157_p2 = pneg %p10156_p1 }
 0x135   : > { %p10162_p4 = pnand %p10160_p3, %p10157_p2 }
 0x137   : > { %10165 = shalt.err (!%p10162_p4)
}
 0x138   : > { %s10166_s1 = scalar_lea.vmem %s882_s24, 512  ;;  %p10174_p10 = scmp.lt.s32.totalorder %s882_s24, %s882_s24 }
 0x139   : > { %p10167_p5 = scmp.ne.s32.totalorder %s882_s24, %s10166_s1  ;;  %p10175_p7 = scmp.lt.s32.totalorder %s10166_s1, %s10166_s1 }
 0x13b   : > { %p10169_p6 = pnand %p10167_p5, %p10679_p0  ;;  %p10176_p8 = por %p10175_p7, %p10174_p10 }
 0x13d   : > { %p10170_p9 = pneg %p10169_p6 }
 0x13f   : > { %p10177_p11 = pnand %p10176_p8, %p10170_p9 }
 0x141   : > { %10180 = shalt.err (!%p10177_p11)
}
 0x142   : > { %s12394_s26 = smov 128   ;;  %s10435_s18 = smov [#allocation19]  }
 0x143   : > { %9504 = dma.hbm_to_vmem [thread:$0]  (!%p10667_p12), %s10573_s25, 512, %s882_s24, [#allocation15], %s12394_s26, %s12394_s26, %s10426_s23  }
 0x144   : > { %s905_s22 = sshll.u32 %s10435_s18, 4  ;;  %s10436_s7 = smov [#allocation22]   ;;  %s906_s22 = int_to_ptr.vmem [resolvable:$true] %s905_s22 }
 0x145   : > { %s929_s20 = sshll.u32 %s10436_s7, 4  ;;  %s10181_s0 = scalar_lea.hbm %s10583_s27, 512  ;;  %s930_s20 = int_to_ptr.vmem [resolvable:$true] %s929_s20 }
 0x146   : > { %p10182_p13 = scmp.ne.s32.totalorder %s10583_s27, %s10181_s0  ;;  %p10188_p3 = scmp.lt.u32.totalorder %s10181_s0, %s10583_s27 }
 0x148   : > { %p10184_p1 = pnand %p10182_p13, %p10679_p0 }
 0x14a   : > { %p10185_p2 = pneg %p10184_p1 }
 0x14c   : > { %p10190_p4 = pnand %p10188_p3, %p10185_p2 }
 0x14e   : > { %10193 = shalt.err (!%p10190_p4)
}
 0x14f   : > { %s10194_s1 = scalar_lea.vmem %s906_s22, 512  ;;  %p10202_p10 = scmp.lt.s32.totalorder %s906_s22, %s906_s22 }
 0x150   : > { %p10195_p5 = scmp.ne.s32.totalorder %s906_s22, %s10194_s1  ;;  %p10203_p7 = scmp.lt.s32.totalorder %s10194_s1, %s10194_s1 }
 0x152   : > { %p10197_p6 = pnand %p10195_p5, %p10679_p0  ;;  %p10204_p8 = por %p10203_p7, %p10202_p10 }
 0x154   : > { %p10198_p9 = pneg %p10197_p6 }
 0x156   : > { %p10205_p11 = pnand %p10204_p8, %p10198_p9 }
 0x158   : > { %10208 = shalt.err (!%p10205_p11)
}
 0x159   : > { %9510 = dma.hbm_to_vmem [thread:$0]  (!%p10667_p12), %s10583_s27, 512, %s906_s22, [#allocation18], %s12394_s26, %s12394_s26, %s10426_s23  }
 0x15a   : > { %s10209_s24 = scalar_lea.hbm %s10593_s19, 512 }
 0x15b   : > { %p10210_p13 = scmp.ne.s32.totalorder %s10593_s19, %s10209_s24  ;;  %p10216_p3 = scmp.lt.u32.totalorder %s10209_s24, %s10593_s19 }
 0x15d   : > { %p10212_p1 = pnand %p10210_p13, %p10679_p0 }
 0x15f   : > { %p10213_p2 = pneg %p10212_p1 }
 0x161   : > { %p10218_p4 = pnand %p10216_p3, %p10213_p2 }
 0x163   : > { %10221 = shalt.err (!%p10218_p4)
}
 0x164   : > { %s10222_s18 = scalar_lea.vmem %s930_s20, 512  ;;  %p10230_p10 = scmp.lt.s32.totalorder %s930_s20, %s930_s20 }
 0x165   : > { %p10223_p5 = scmp.ne.s32.totalorder %s930_s20, %s10222_s18  ;;  %p10231_p7 = scmp.lt.s32.totalorder %s10222_s18, %s10222_s18 }
 0x167   : > { %p10225_p6 = pnand %p10223_p5, %p10679_p0  ;;  %p10232_p8 = por %p10231_p7, %p10230_p10 }
 0x169   : > { %p10226_p9 = pneg %p10225_p6 }
 0x16b   : > { %p10233_p11 = pnand %p10232_p8, %p10226_p9 }
 0x16d   : > { %10236 = shalt.err (!%p10233_p11)
}
 0x16e   : > { %9516 = dma.hbm_to_vmem [thread:$0]  (!%p10667_p12), %s10593_s19, 512, %s930_s20, [#allocation21], %s12394_s26, %s12394_s26, %s10426_s23  }
 0x16f   : > { %s10437_s22 = smov [#allocation23]   ;;  %s10237_s0 = scalar_lea.hbm %s10598_s8, 16 }
 0x170   : > { %s943_s7 = sshll.u32 %s10437_s22, 4  ;;  %p10238_p13 = scmp.ne.s32.totalorder %s10598_s8, %s10237_s0  ;;  %s944_s7 = int_to_ptr.vmem [resolvable:$true] %s943_s7 }
 0x171   : > { %p10244_p3 = scmp.lt.u32.totalorder %s10237_s0, %s10598_s8 }
 0x172   : > { %p10240_p1 = pnand %p10238_p13, %p10679_p0 }
 0x174   : > { %p10241_p2 = pneg %p10240_p1 }
 0x176   : > { %p10246_p4 = pnand %p10244_p3, %p10241_p2 }
 0x178   : > { %10249 = shalt.err (!%p10246_p4)
}
 0x179   : > { %s10250_s1 = scalar_lea.vmem %s944_s7, 16  ;;  %s10257_s24 = scalar_lea.vmem %s944_s7, 32 }
 0x17a   : > { %p10251_p5 = scmp.ne.s32.totalorder %s944_s7, %s10250_s1  ;;  %p10258_p10 = scmp.lt.s32.totalorder %s944_s7, %s944_s7 }
 0x17b   : > { %p10259_p7 = scmp.lt.s32.totalorder %s10257_s24, %s10250_s1 }
 0x17c   : > { %p10253_p6 = pnand %p10251_p5, %p10679_p0 }
 0x17d   : > { %p10260_p8 = por %p10259_p7, %p10258_p10 }
 0x17e   : > { %p10254_p9 = pneg %p10253_p6 }
 0x180   : > { %p10261_p11 = pnand %p10260_p8, %p10254_p9 }
 0x182   : > { %10264 = shalt.err (!%p10261_p11)
}
 0x183   : > { %9519 = dma.hbm_to_vmem [thread:$0]  (!%p10667_p12), %s10598_s8, 16, %s944_s7, [#allocation24]  }
 0x184   : > { %p12395_p13 = scmp.ne.s32.totalorder %s12391_s2, 0 }
 0x186   : > { %984 = sbr.rel (%p12395_p13) target bundleno = 15601 (0x3cf1), region = 132 }
 0x18d   : > { %p12396_p1 = scmp.eq.s32.totalorder %s10631_s15, 0 }
 0x18f   : > { %10338 = dma.done.wait (%p12396_p1), [#allocation3], 16   ;;  %p12397_p2 = pmov %p12396_p1 }
 0x190   : > { %p12398_p0 = pmov %p12396_p1 }
 0x191   : > { %10340 = vsyncadd (%p12397_p2), [#allocation3], 4294967280 }
 0x192   : > { %10342 = dma.done.wait (%p12398_p0), [#allocation6], 32   ;;  %p12399_p3 = pmov %p12398_p0 }
 0x193   : > { %p12400_p4 = pmov %p12398_p0 }
 0x194   : > { %10344 = vsyncadd (%p12399_p3), [#allocation6], 4294967264 }
 0x195   : > { %10346 = dma.done.wait (%p12400_p4), [#allocation9], 32   ;;  %p12401_p12 = pmov %p12398_p0 }
 0x196   : > { %p12402_p5 = pmov %p12398_p0 }
 0x197   : > { %10348 = vsyncadd (%p12401_p12), [#allocation9], 4294967264 }
 0x198   : > { %10350 = dma.done.wait (%p12402_p5), [#allocation12], 528   ;;  %p12403_p6 = pmov %p12398_p0 }
 0x199   : > { %p12404_p9 = pmov %p12398_p0 }
 0x19a   : > { %10352 = vsyncadd (%p12403_p6), [#allocation12], 4294966768 }
 0x19b   : > { %10354 = dma.done.wait (%p12404_p9), [#allocation15], 528   ;;  %p12405_p10 = pmov %p12398_p0 }
 0x19c   : > { %p12406_p7 = pmov %p12398_p0 }
 0x19d   : > { %10356 = vsyncadd (%p12405_p10), [#allocation15], 4294966768 }
 0x19e   : > { %10358 = dma.done.wait (%p12406_p7), [#allocation18], 528   ;;  %p12407_p8 = pmov %p12398_p0 }
 0x19f   : > { %p12408_p11 = pmov %p12398_p0 }
 0x1a0   : > { %10360 = vsyncadd (%p12407_p8), [#allocation18], 4294966768 }
 0x1a1   : > { %10362 = dma.done.wait (%p12408_p11), [#allocation21], 528   ;;  %p12409_p13 = pmov %p12398_p0 }
 0x1a2   : > { %p12410_p1 = pmov %p12398_p0 }
 0x1a3   : > { %10364 = vsyncadd (%p12409_p13), [#allocation21], 4294966768 }
 0x1a4   : > { %10366 = dma.done.wait (%p12410_p1), [#allocation24], 16   ;;  %p12411_p2 = pmov %p12398_p0 }
 0x1a5   : > { %s8124_s11 = sshll.u32 %s10631_s15, 1  ;;  %s12412_s5 = sld [smem:[#allocation38_spill]]  ;;  %v12356_v0 = vmov 0.0   ;;  %vm10439_vm0 = vmmov 0   ;;  %v1184_v1 = vld [vmem:[%s10483_s21] sm:$0xff]  ;;  %v1185_v2 = vld [vmem:[%s10483_s21 + $0x8] sm:$0xff]  ;;  %v1152_v30 = vlaneseq }
 0x1a6   : > { %10368 = vsyncadd (%p12411_p2), [#allocation24], 4294967280  ;;  %8525 = vmatprep.subr.bf16.mxu0 %v12356_v0  ;;  %8533 = vmatprep.subr.bf16.mxu1 %v12356_v0  ;;  %s12413_s2 = sld [smem:[#allocation43_spill]]  ;;  %p1128_p0 = scmp.lt.s32.totalorder %s8124_s11, 3  ;;  %v1186_v3 = vld [vmem:[%s10483_s21 + $0x10] sm:$0xff]  ;;  %v1255_v4 = vpack.c.bf16 %v1185_v2, %v1184_v1  ;;  %v1187_v5 = vld [vmem:[%s10483_s21 + $0x18] sm:$0xff] }
 0x1a7   : > { %p1133_p3 = scmp.lt.s32.totalorder %s10631_s15, 1  ;;  %s12414_s16 = sld [smem:[#allocation39_spill]]  ;;  %8529 = vmatprep.mubr.msk.bf16.mxu0 %vm10439_vm0, %v12356_v0  ;;  %8537 = vmatprep.mubr.msk.bf16.mxu1 %vm10439_vm0, %v12356_v0  ;;  %v1256_v10 = vpack.c.bf16 %v1187_v5, %v1186_v3  ;;  %vm1263_vm1 = vcmask 261120   ;;  %v1153_v31 = vshrl.u32 %v1152_v30, 7  ;;  %v1161_v32 = vand.u32 127, %v1152_v30 }
 0x1a8   : > { %s12457_s11 = smov (!%p1128_p0, %s8124_s11), 3  ;;  %8526 = vmatpush3.bf16.msra.mxu0 %v1255_v4  ;;  %s12415_s7 = sld [smem:[#allocation45_spill]]  ;;  %vm1166_vm3 = vcmask 130048   ;;  %vm1180_vm4 = vcmask 64512   ;;  %vm1666_vm7 = vcmask 1043456   ;;  %vm3143_vm9 = vcmask 57344  }
 0x1a9   : > { %s10887_s23 = scalar_select %p1133_p3, %s10631_s15, 1  ;;  %8527 = vmatprep.subr.bf16.mxu0 %v12356_v0  ;;  %v10948_v35 = vsub.s32 0, %v1153_v31  ;;  %v1159_v36 = vadd.s32 8, %v1153_v31  ;;  %vm1162_vm2 = vcmp.eq.s32.totalorder %v1153_v31, %v1161_v32  ;;  %vm3139_vm10 = vcmask 122880  }
 0x1aa   : > { %s8125_s26 = sshll.u32 %s12457_s11, 3  ;;  %s12417_s0 = sld [smem:[#allocation46_spill]] }
 0x1ab   : > { %s8126_s20 = sshll.u32 %s10887_s23, 3  ;;  %s1131_s18 = scalar_lea.vmem %s12412_s5, %s8125_s26  ;;  %vm1163_vm5 = vcmp.eq.s32.totalorder %v1159_v36, %v1161_v32 }
 0x1ac   : > { %v1189_v6 = vld [vmem:[%s12413_s2] sm:$0xff]  ;;  %v1190_v7 = vld [vmem:[%s12413_s2 + $0x8] sm:$0xff]  ;;  %v1191_v9 = vld [vmem:[%s12413_s2 + $0x10] sm:$0xff]  ;;  %8528 = vmatpush3.bf16.msra.mxu0 %v1256_v10  ;;  %s12419_s11 = sld [smem:[#allocation40_spill]]  ;;  %s12433_s3 = smov 40  }
 0x1ad   : > { %s1136_s22 = scalar_lea.vmem %s12414_s16, %s8126_s20  ;;  %v1310_v8 = vpack.c.bf16 %v1190_v7, %v1189_v6  ;;  %v1252_v11 = vld [vmem:[%s1131_s18] sm:$0xff]  ;;  %v1253_v12 = vld [vmem:[%s1131_s18 + $0x8] sm:$0xff]  ;;  %v1192_v13 = vld [vmem:[%s12413_s2 + $0x18] sm:$0xff]  ;;  %8541 = vmatprep.subr.bf16.mxu0 %v12356_v0  ;;  %s12420_s16 = sld [smem:[#allocation41_spill]] }
 0x1ae   : > { %s12416_s1 = smov %s12415_s7  ;;  %v1311_v14 = vpack.c.bf16 %v1192_v13, %v1191_v9  ;;  %v1308_v15 = vld [vmem:[%s1136_s22] sm:$0xff]  ;;  %v1254_v16 = vpack.c.bf16 %v1253_v12, %v1252_v11  ;;  %s12421_s18 = sld [smem:[#allocation42_spill]] }
 0x1af   : > { %8534 = vmatpush3.bf16.msra.mxu1 %v1310_v8  ;;  %v1309_v17 = vpack.c.bf16 %v1308_v15, %v1308_v15  ;;  %v1194_v18 = vld [vmem:[%s12415_s7] sm:$0xff]  ;;  %v1195_v19 = vld [vmem:[%s12416_s1 + $0x8] sm:$0xff]  ;;  %v1196_v24 = vld [vmem:[%s12416_s1 + $0x10] sm:$0xff]  ;;  %s12422_s22 = sld [smem:[#allocation44_spill]]  ;;  %s12424_s7 = sld [smem:[#allocation48_spill]] }
 0x1b0   : > { %s12418_s24 = smov %s12417_s0  ;;  %8535 = vmatprep.subr.bf16.mxu1 %v12356_v0  ;;  %8530 = vmatmul.mubr.msk.bf16.vlgmr.msra.gmra.mrb[0].mxu0 %vm1263_vm1, %v1254_v16  ;;  %v10912_v20 = vpack.c.bf16 %v1195_v19, %v1194_v18  ;;  %v1199_v21 = vld [vmem:[%s12417_s0] sm:$0xff]  ;;  %v1197_v25 = vld [vmem:[%s12416_s1 + $0x18] sm:$0xff]  ;;  %s12330_s0 = smov 120  }
 0x1b1   : > { %8545 = vmatprep.mubr.msk.bf16.mxu0 %vm10439_vm0, %v12356_v0  ;;  %v1200_v22 = vld [vmem:[%s12418_s24 + $0x8] sm:$0xff]  ;;  %v10923_v26 = vpack.c.bf16 %v1197_v25, %v1196_v24  ;;  %v1201_v27 = vld [vmem:[%s12418_s24 + $0x10] sm:$0xff]  ;;  %v1202_v28 = vld [vmem:[%s12418_s24 + $0x18] sm:$0xff]  ;;  %s12431_s1 = smov 64   ;;  %s12432_s2 = smov 56  }
 0x1b2   : > { %8542 = vmatpush3.bf16.msra.mxu0 %v10912_v20  ;;  %v10917_v23 = vpack.c.bf16 %v1200_v22, %v1199_v21  ;;  %v10929_v29 = vpack.c.bf16 %v1202_v28, %v1201_v27  ;;  %s10936_s26 = scalar_lea.vmem %s12419_s11, %s10887_s23  ;;  %v8133_v15 = vld [vmem:[#allocation5] ss:$0 sm:$0xff]  ;;  %v8131_v16 = vld [vmem:[#allocation2] ss:$0 sm:$0xff]  ;;  %s12332_s11 = smov 96  }
 0x1b3   : > { %8536 = vmatpush3.bf16.msra.mxu1 %v1311_v14  ;;  %8543 = vmatprep.subr.bf16.mxu0 %v12356_v0  ;;  %s10940_s20 = scalar_lea.vmem %s12420_s16, %s10887_s23  ;;  %v10943_v33 = vld [vmem:[%s10936_s26] sm:$0x1]  ;;  %s12423_s23 = sld [smem:[#allocation49_spill]] }
 0x1b4   : > { %8549 = vmatprep.subr.bf16.mxu1 %v12356_v0  ;;  %v10946_v34 = vld [vmem:[%s10940_s20] sm:$0x1]  ;;  %v1155_v37 = vrot.slane %v10943_v33, %v10948_v35  ;;  %vm1147_vm8 = vcmp.eq.f32.partialorder %v10943_v33, 0.0  ;;  %s12434_s4 = sld [smem:[#allocation53_spill]]  ;;  %s12442_s5 = smov 80  }
 0x1b5   : > { %v1177_v38 = vrot.slane %v10946_v34, %v10948_v35  ;;  %s12425_s16 = smov %s12424_s7  ;;  %v8127_v45 = vld [vmem:[%s12421_s18] ss:$0 sm:$0xff]  ;;  %s12346_s18 = smov 88   ;;  %vm1149_vm6 = vcmp.eq.f32.partialorder %v10946_v34, 0.0 }
 0x1b6   : > { %8538 = vmatmul.mubr.msk.bf16.vlgmr.msra.gmra.mrb[0].mxu1 %vm1263_vm1, %v1309_v17  ;;  %8544 = vmatpush3.bf16.msra.mxu0 %v10923_v26  ;;  %v1164_v39 = vsel %vm1162_vm2, %v1155_v37, 0.0  ;;  %v1165_v41 = vsel %vm1163_vm5, %v1155_v37, 0.0  ;;  %v8129_v46 = vld [vmem:[%s12422_s22] ss:$0 sm:$0xff]  ;;  %v1205_v59 = vld [vmem:[%s12425_s16 + $0x8] sm:$0xff]  ;;  %v1206_v9 = vld [vmem:[%s12425_s16 + $0x10] sm:$0xff] }
 0x1b7   : > { %8553 = vmatprep.mubr.msk.bf16.mxu1 %vm10439_vm0, %v12356_v0  ;;  %8550 = vmatpush3.bf16.msra.mxu1 %v10917_v23  ;;  %v1179_v40 = vsel %vm1162_vm2, %v1177_v38, 0.0  ;;  %v1167_v42 = vsel %vm1166_vm3, %v1164_v39, 0.0  ;;  %v1170_v44 = vsel %vm1166_vm3, %v1165_v41, 0.0  ;;  %v1204_v58 = vld [vmem:[%s12424_s7] sm:$0xff]  ;;  %v1207_v10 = vld [vmem:[%s12425_s16 + $0x18] sm:$0xff]  ;;  %s12334_s22 = smov 56  }
 0x1b8   : > { %8551 = vmatprep.subr.bf16.mxu1 %v12356_v0  ;;  %8557 = vmatprep.subr.bf16.mxu0 %v12356_v0  ;;  %v1181_v43 = vsel %vm1180_vm4, %v1179_v40, 0.0  ;;  %v10965_v5 = vpack.c.bf16 %v1205_v59, %v1204_v58  ;;  %v10977_v12 = vpack.c.bf16 %v1207_v10, %v1206_v9  ;;  %s12336_s7 = smov 64   ;;  %p12446_p12 = scmp.ne.s32.totalorder %s12388_s28, 0 }
 0x1b9   : > { %1168 = vadd.xlane.f32.xlu0 %v1167_v42  ;;  %1182 = vadd.xlane.f32.xlu1 %v1181_v43  ;;  %v1213_v54 = vld [vmem:[%s12423_s23] sm:$0xff]  ;;  %v1214_v55 = vld [vmem:[%s12423_s23 + $0x8] sm:$0xff]  ;;  %v1215_v6 = vld [vmem:[%s12423_s23 + $0x10] sm:$0xff] }
 0x1ba   : > { %v10963_v3 = vpack.c.bf16 %v1214_v55, %v1213_v54  ;;  %v1216_v7 = vld [vmem:[%s12423_s23 + $0x18] sm:$0xff] }
 0x1bb   : > { %8552 = vmatpush3.bf16.msra.mxu1 %v10929_v29  ;;  %v10974_v11 = vpack.c.bf16 %v1216_v7, %v1215_v6 }
 0x1bc   : > { %8565 = vmatprep.subr.bf16.mxu1 %v12356_v0 }
 0x1bd   : > { %1171 = vadd.xlane.f32.xlu0 %v1170_v44 }
 0x246   : > { %v10995_v14 = vpop.xlane.xlu0 %1168  ;;  %v10997_v17 = vpop.xlane.xlu1 %1182 }
 0x24a   : > { %v10999_v19 = vpop.xlane.xlu0 %1171 }
 0x283   : > { %v1301_v47 = vpop.f32.mrb[0].mxu0 }
 0x284   : > { %v1302_v48 = vadd.f32 %v8127_v45, %v1301_v47  ;;  %v8531_v49 = vpop.f32.mrb[1].mxu0  ;;  %v1150_v47 = vsel %vm1149_vm6, -1e+09, %v12356_v0 }
 0x285   : > { %v1304_v51 = vpop.f32.mrb[2].mxu0 }
 0x286   : > { %v1305_v56 = vadd.f32 %v8127_v45, %v1304_v51  ;;  %v8532_v57 = vpop.f32.mrb[3].mxu0  ;;  %v1361_v63 = vmax.f32 %v1302_v48, 0.0 }
 0x288   : > { %v1362_v1 = vmax.f32 %v1305_v56, 0.0  ;;  %v1472_v2 = vpack.c.bf16 %v1305_v56, %v1302_v48  ;;  %v11028_v48 = vrot.slane %v1150_v47, %v10948_v35 }
 0x289   : > { %v1355_v50 = vpop.f32.mrb[0].mxu1 }
 0x28a   : > { %v1356_v52 = vadd.f32 %v8129_v46, %v1355_v50  ;;  %v8539_v53 = vpop.f32.mrb[1].mxu1  ;;  %v1363_v8 = vpack.c.bf16 %v1362_v1, %v1361_v63 }
 0x28b   : > { %v1358_v60 = vpop.f32.mrb[2].mxu1 }
 0x28c   : > { %v1418_v61 = vmax.f32 %v1356_v52, 0.0  ;;  %v8540_v62 = vpop.f32.mrb[3].mxu1  ;;  %8546 = vmatmul.mubr.msk.bf16.vlgmr.msra.gmra.mrb[4].mxu0 %vm1263_vm1, %v1363_v8  ;;  %v1525_v13 = vpack.c.bf16 %v1356_v52, %v1356_v52 }
 0x28d   : > { %8558 = vmatpush3.bf16.msra.mxu0 %v10965_v5  ;;  %8561 = vmatprep.mubr.msk.bf16.mxu0 %vm10439_vm0, %v12356_v0 }
 0x28e   : > { %v1419_v4 = vpack.c.bf16 %v1418_v61, %v1418_v61  ;;  %8559 = vmatprep.subr.bf16.mxu0 %v12356_v0 }
 0x290   : > { %8554 = vmatmul.mubr.msk.bf16.vlgmr.msra.gmra.mrb[4].mxu1 %vm1263_vm1, %v1419_v4 }
 0x291   : > { %8566 = vmatpush3.bf16.msra.mxu1 %v10963_v3  ;;  %8569 = vmatprep.mubr.msk.bf16.mxu1 %vm10439_vm0, %v12356_v0 }
 0x292   : > { %8567 = vmatprep.subr.bf16.mxu1 %v12356_v0  ;;  %8560 = vmatpush3.bf16.msra.mxu0 %v10977_v12 }
 0x293   : > { %8573 = vmatprep.subr.bf16.mxu0 %v12356_v0 }
 0x295   : > { %8568 = vmatpush3.bf16.msra.mxu1 %v10974_v11  ;;  %8562 = vmatmul.mubr.msk.bf16.vlgmr.msra.gmra.mrb[8].mxu0 %vm1263_vm1, %v1472_v2 }
 0x296   : > { %8579 = vmatprep.subr.bf16.mxu1 %v12356_v0  ;;  %8575 = vmatprep.mubr.msk.bf16.mxu0 %vm10439_vm0, %v12356_v0 }
 0x298   : > { %8570 = vmatmul.mubr.msk.bf16.vlgmr.msra.gmra.mrb[8].mxu1 %vm1263_vm1, %v1525_v13 }
 0x299   : > { %8581 = vmatprep.mubr.msk.bf16.mxu1 %vm10439_vm0, %v12356_v0 }
 0x35f   : > { %v1409_v21 = vpop.f32.mrb[4].mxu0 }
 0x360   : > { %v1410_v25 = vadd.f32 %v8131_v16, %v1409_v21  ;;  %v8547_v27 = vpop.f32.mrb[5].mxu0 }
 0x361   : > { %v1412_v30 = vpop.f32.mrb[6].mxu0 }
 0x362   : > { %v1413_v36 = vadd.f32 %v8131_v16, %v1412_v30  ;;  %v8548_v37 = vpop.f32.mrb[7].mxu0  ;;  %v1416_v39 = vmul.f32 %v1410_v25, %v10995_v14 }
 0x363   : > { %v1465_v18 = vpop.f32.mrb[4].mxu1 }
 0x364   : > { %v1466_v22 = vadd.f32 %v8133_v15, %v1465_v18  ;;  %v8555_v24 = vpop.f32.mrb[5].mxu1  ;;  %v1417_v40 = vmul.f32 %v1413_v36, %v10999_v19 }
 0x365   : > { %v1468_v28 = vpop.f32.mrb[6].mxu1 }
 0x366   : > { %v1471_v31 = vmul.f32 %v1466_v22, %v10997_v17  ;;  %v8556_v32 = vpop.f32.mrb[7].mxu1  ;;  %v11010_v42 = vpack.c.bf16 %v1417_v40, %v1416_v39 }
 0x368   : > { %v11002_v38 = vpack.c.bf16 %v1471_v31, %v1471_v31  ;;  %1586 = vrot.lane.b32.xlu1 %v11010_v42, %s12332_s11  ;;  %s12344_s11 = smov 80  }
 0x36a   : > { %1715 = vrot.lane.b32.xlu0 %v11002_v38, %s12330_s0  ;;  %v1592_v41 = vsel %vm1180_vm4, %v11002_v38, 0  ;;  %s12348_s0 = smov 112  }
 0x36b   : > { %8574 = vmatpush3.bf16.xpose.msra.mxu0 %v1592_v41 }
 0x36c   : > { %8585 = vmatprep.subr.bf16.mxu0 %v12356_v0  ;;  %1713 = vrot.lane.b32.xlu1 %v11010_v42, %s12346_s18 }
 0x3da   : > { %v1587_v45 = vpop.permute.xlu1 %1586 }
 0x3db   : > { %8576 = vmatmul.mubr.msk.bf16.vlgmr.msra.gmra.mrb[12].mxu0 %vm1180_vm4, %v1587_v45 }
 0x3dc   : > { %v1716_v43 = vpop.permute.xlu0 %1715  ;;  %8587 = vmatprep.mubr.msk.bf16.mxu0 %vm10439_vm0, %v12356_v0 }
 0x3dd   : > { %v1721_v44 = vsel %vm1180_vm4, %v1716_v43, 0 }
 0x3de   : > { %8586 = vmatpush3.bf16.xpose.msra.mxu0 %v1721_v44  ;;  %v1714_v46 = vpop.permute.xlu1 %1713 }
 0x3df   : > { %8597 = vmatprep.subr.bf16.mxu0 %v12356_v0 }
 0x3e5   : > { %8588 = vmatmul.mubr.msk.bf16.vlgmr.msra.gmra.mrb[16].mxu0 %vm1180_vm4, %v1714_v46 }
 0x3e6   : > { %8599 = vmatprep.mubr.msk.bf16.mxu0 %vm10439_vm0, %v12356_v0 }
 0x4ae   : > { %v1628_v49 = vpop.f32.mrb[12].mxu0 }
 0x4af   : > { %v1629_v50 = vadd.f32 %v1628_v49, %v11028_v48  ;;  %v8577_v51 = vpop.f32.mrb[13].mxu0 }
 0x4b0   : > { %v1631_v52 = vpop.f32.mrb[14].mxu0 }
 0x4b1   : > { %v1635_v53 = vmul.f32 0.35355338, %v1629_v50  ;;  %v1632_v54 = vadd.f32 %v1631_v52, %v11028_v48  ;;  %v8578_v55 = vpop.f32.mrb[15].mxu0 }
 0x4b3   : > { %v1636_v56 = vmul.f32 0.35355338, %v1632_v54  ;;  %v1637_v57 = vsel %vm1180_vm4, %v1635_v53, -inf }
 0x4b4   : > { %1638 = vmax.xlane.f32.xlu1 %v1637_v57 }
 0x4b5   : > { %v1640_v34 = vsel %vm1180_vm4, %v1636_v56, -inf }
 0x4b6   : > { %1641 = vmax.xlane.f32.xlu0 %v1640_v34 }
 0x4b8   : > { %v1757_v58 = vpop.f32.mrb[16].mxu0 }
 0x4b9   : > { %v1758_v59 = vadd.f32 %v1757_v58, %v11028_v48  ;;  %v8589_v60 = vpop.f32.mrb[17].mxu0 }
 0x4ba   : > { %v1760_v61 = vpop.f32.mrb[18].mxu0 }
 0x4bb   : > { %v1764_v62 = vmul.f32 0.35355338, %v1758_v59  ;;  %v1761_v63 = vadd.f32 %v1760_v61, %v11028_v48  ;;  %v8590_v1 = vpop.f32.mrb[19].mxu0 }
 0x4bd   : > { %v1765_v2 = vmul.f32 0.35355338, %v1761_v63  ;;  %v1766_v4 = vsel %vm1180_vm4, %v1764_v62, -inf }
 0x4be   : > { %1767 = vmax.xlane.f32.xlu0 %v1766_v4 }
 0x4bf   : > { %v1769_v6 = vsel %vm1180_vm4, %v1765_v2, -inf }
 0x4c0   : > { %1770 = vmax.xlane.f32.xlu1 %v1769_v6 }
 0x541   : > { %v1639_v7 = vpop.xlane.xlu1 %1638 }
 0x542   : > { %v1643_v8 = vsub.f32 %v1635_v53, %v1639_v7 }
 0x543   : > { %v1642_v9 = vpop.xlane.xlu0 %1641 }
 0x544   : > { %v1645_v10 = vmul.f32 1.442695, %v1643_v8  ;;  %v1644_v13 = vsub.f32 %v1636_v56, %v1642_v9  ;;  %v1208_v9 = vld [vmem:[%s12425_s16 + $0x20] sm:$0xff] }
 0x546   : > { %9648 = vpow2.f32 %v1645_v10  ;;  %v1647_v15 = vmul.f32 1.442695, %v1644_v13  ;;  %v1712_v10 = vpack.c.bf16 %v1208_v9, %v1208_v9 }
 0x548   : > { %9650 = vpow2.f32 %v1647_v15 }
 0x54b   : > { %v1768_v16 = vpop.xlane.xlu0 %1767 }
 0x54c   : > { %v1772_v18 = vsub.f32 %v1764_v62, %v1768_v16  ;;  %v1209_v62 = vld [vmem:[%s12425_s16 + $0x28] sm:$0xff] }
 0x54d   : > { %v1771_v31 = vpop.xlane.xlu1 %1770  ;;  %v1839_v63 = vpack.c.bf16 %v1209_v62, %v1209_v62 }
 0x54e   : > { %v1774_v21 = vmul.f32 1.442695, %v1772_v18  ;;  %v1773_v32 = vsub.f32 %v1765_v2, %v1771_v31 }
 0x54f   : > { %v11067_v1 = vsel %vm1666_vm7, %v1839_v63, 0  ;;  %v2298_v63 = vsel %vm1180_vm4, %v11010_v42, 0 }
 0x550   : > { %9652 = vpow2.f32 %v1774_v21  ;;  %v9649_v22 = vpop.eup %9648  ;;  %v1776_v36 = vmul.f32 1.442695, %v1773_v32  ;;  %8598 = vmatpush3.bf16.msra.mxu0 %v11067_v1 }
 0x551   : > { %v1649_v24 = vsel %vm1180_vm4, %v9649_v22, 0.0  ;;  %8603 = vmatprep.subr.bf16.mxu0 %v12356_v0 }
 0x552   : > { %v9651_v25 = vpop.eup %9650  ;;  %1650 = vadd.xlane.f32.xlu0 %v1649_v24  ;;  %9654 = vpow2.f32 %v1776_v36 }
 0x553   : > { %v1652_v27 = vsel %vm1180_vm4, %v9651_v25, 0.0 }
 0x554   : > { %1653 = vadd.xlane.f32.xlu1 %v1652_v27 }
 0x55a   : > { %v9653_v28 = vpop.eup %9652 }
 0x55b   : > { %v1778_v30 = vsel %vm1180_vm4, %v9653_v28, 0.0 }
 0x55c   : > { %1779 = vadd.xlane.f32.xlu0 %v1778_v30  ;;  %v9655_v37 = vpop.eup %9654 }
 0x55d   : > { %v1781_v39 = vsel %vm1180_vm4, %v9655_v37, 0.0 }
 0x565   : > { %1789 = vrot.lane.b32.xlu1 %v11002_v38, %s12334_s22  ;;  %s12338_s22 = smov 104  }
 0x572   : > { %1661 = vrot.lane.b32.xlu0 %v11002_v38, %s12336_s7  ;;  %s12340_s7 = smov 72  }
 0x589   : > { %1782 = vadd.xlane.f32.xlu1 %v1781_v39 }
 0x59a   : > { %1936 = vrot.lane.b32.xlu1 %v11002_v38, %s12348_s0 }
 0x59e   : > { %1934 = vrot.lane.b32.xlu1 %v11010_v42, %s12344_s11 }
 0x5df   : > { %v1651_v40 = vpop.xlane.xlu0 %1650 }
 0x5e0   : > { %9656 = vrcp.f32 %v1651_v40 }
 0x5e1   : > { %v1654_v41 = vpop.xlane.xlu1 %1653 }
 0x5e2   : > { %9658 = vrcp.f32 %v1654_v41 }
 0x5e5   : > { %v1790_v51 = vpop.permute.xlu1 %1789 }
 0x5e6   : > { %v1795_v53 = vsel %vm1666_vm7, %v1790_v51, 0 }
 0x5e9   : > { %v1780_v43 = vpop.xlane.xlu0 %1779 }
 0x5ea   : > { %v9657_v44 = vpop.eup %9656  ;;  %9660 = vrcp.f32 %v1780_v43 }
 0x5eb   : > { %v1657_v49 = vmul.f32 %v9657_v44, %v9649_v22  ;;  %v11073_v22 = vsel %vm1666_vm7, %v1712_v10, 0 }
 0x5ec   : > { %v9659_v46 = vpop.eup %9658 }
 0x5ed   : > { %v1662_v45 = vpop.permute.xlu0 %1661  ;;  %v1658_v50 = vmul.f32 %v9659_v46, %v9651_v25 }
 0x5ee   : > { %v1668_v47 = vsel %vm1666_vm7, %v1662_v45, 0 }
 0x5ef   : > { %8580 = vmatpush3.bf16.msra.mxu1 %v1668_v47  ;;  %v1659_v52 = vpack.c.bf16 %v1658_v50, %v1657_v49 }
 0x5f0   : > { %8591 = vmatprep.subr.bf16.mxu1 %v12356_v0 }
 0x5f2   : > { %8582 = vmatmul.mubr.msk.bf16.vlgmr.msra.gmra.mrb[12].mxu1 %vm1180_vm4, %v1659_v52 }
 0x5f3   : > { %8592 = vmatpush3.bf16.msra.mxu1 %v1795_v53  ;;  %8593 = vmatprep.mubr.msk.bf16.mxu1 %vm10439_vm0, %v12356_v0 }
 0x5f4   : > { %8609 = vmatprep.subr.bf16.mxu1 %v12356_v0  ;;  %v9661_v55 = vpop.eup %9660 }
 0x5f5   : > { %v1786_v57 = vmul.f32 %v9661_v55, %v9653_v28 }
 0x616   : > { %v1783_v54 = vpop.xlane.xlu1 %1782 }
 0x617   : > { %9662 = vrcp.f32 %v1783_v54 }
 0x61a   : > { %v1937_v58 = vpop.permute.xlu1 %1936 }
 0x61b   : > { %v1942_v60 = vsel %vm1180_vm4, %v1937_v58, 0 }
 0x61e   : > { %v1935_v61 = vpop.permute.xlu1 %1934 }
 0x621   : > { %v9663_v56 = vpop.eup %9662 }
 0x622   : > { %v1787_v34 = vmul.f32 %v9663_v56, %v9655_v37 }
 0x624   : > { %v1788_v59 = vpack.c.bf16 %v1787_v34, %v1786_v57 }
 0x626   : > { %8594 = vmatmul.mubr.msk.bf16.vlgmr.msra.gmra.mrb[16].mxu1 %vm1180_vm4, %v1788_v59 }
 0x627   : > { %8610 = vmatpush3.bf16.xpose.msra.mxu1 %v1942_v60  ;;  %8611 = vmatprep.mubr.msk.bf16.mxu1 %vm10439_vm0, %v12356_v0 }
 0x628   : > { %8615 = vmatprep.subr.bf16.mxu1 %v12356_v0 }
 0x62e   : > { %8612 = vmatmul.mubr.msk.bf16.vlgmr.msra.gmra.mrb[20].mxu1 %vm1180_vm4, %v1935_v61 }
 0x62f   : > { %8617 = vmatprep.mubr.msk.bf16.mxu1 %vm10439_vm0, %v12356_v0 }
 0x6c5   : > { %v1704_v2 = vpop.f32.mrb[12].mxu1 }
 0x6c6   : > { %v8583_v4 = vpop.f32.mrb[13].mxu1 }
 0x6c7   : > { %v1707_v6 = vpop.f32.mrb[14].mxu1 }
 0x6c8   : > { %v1711_v7 = vpack.c.bf16 %v1707_v6, %v1704_v2  ;;  %v8584_v8 = vpop.f32.mrb[15].mxu1  ;;  %v1210_v2 = vld [vmem:[%s12425_s16 + $0x30] sm:$0xff] }
 0x6c9   : > { %v2060_v4 = vpack.c.bf16 %v1210_v2, %v1210_v2 }
 0x6cb   : > { %v11110_v6 = vsel %vm1666_vm7, %v2060_v4, 0 }
 0x6f9   : > { %v1831_v13 = vpop.f32.mrb[16].mxu1 }
 0x6fa   : > { %v8595_v15 = vpop.f32.mrb[17].mxu1 }
 0x6fb   : > { %v1834_v16 = vpop.f32.mrb[18].mxu1 }
 0x6fc   : > { %v1838_v18 = vpack.c.bf16 %v1834_v16, %v1831_v13  ;;  %v8596_v21 = vpop.f32.mrb[19].mxu1 }
 0x6fe   : > { %8600 = vmatmul.mubr.msk.bf16.vlgmr.msra.gmra.mrb[8].mxu0 %vm1180_vm4, %v1838_v18 }
 0x6ff   : > { %8604 = vmatpush3.bf16.msra.mxu0 %v11073_v22  ;;  %8605 = vmatprep.mubr.msk.bf16.mxu0 %vm10439_vm0, %v12356_v0 }
 0x700   : > { %8621 = vmatprep.subr.bf16.mxu0 %v12356_v0 }
 0x701   : > { %v1978_v24 = vpop.f32.mrb[20].mxu1 }
 0x702   : > { %v1979_v25 = vadd.f32 %v1978_v24, %v11028_v48  ;;  %v8613_v27 = vpop.f32.mrb[21].mxu1 }
 0x703   : > { %v1981_v28 = vpop.f32.mrb[22].mxu1 }
 0x704   : > { %v1985_v30 = vmul.f32 0.35355338, %v1979_v25  ;;  %v1982_v31 = vadd.f32 %v1981_v28, %v11028_v48  ;;  %v8614_v32 = vpop.f32.mrb[23].mxu1 }
 0x706   : > { %v1986_v36 = vmul.f32 0.35355338, %v1982_v31  ;;  %v1987_v37 = vsel %vm1180_vm4, %v1985_v30, -inf }
 0x707   : > { %1988 = vmax.xlane.f32.xlu0 %v1987_v37 }
 0x708   : > { %v1990_v39 = vsel %vm1180_vm4, %v1986_v36, -inf }
 0x709   : > { %1991 = vmax.xlane.f32.xlu1 %v1990_v39 }
 0x70a   : > { %8606 = vmatmul.mubr.msk.bf16.vlgmr.msra.gmra.mrb[8].mxu0 %vm1180_vm4, %v1711_v7 }
 0x70b   : > { %8623 = vmatprep.mubr.msk.bf16.mxu0 %vm10439_vm0, %v12356_v0  ;;  %8622 = vmatpush3.bf16.msra.mxu0 %v11110_v6 }
 0x70c   : > { %8633 = vmatprep.subr.bf16.mxu0 %v12356_v0 }
 0x71a   : > { %2112 = vrot.lane.b32.xlu1 %v11002_v38, %s12338_s22  ;;  %s12342_s22 = smov 48  }
 0x71e   : > { %2110 = vrot.lane.b32.xlu1 %v11010_v42, %s12340_s7  ;;  %s12350_s7 = smov 40  }
 0x794   : > { %v1989_v40 = vpop.xlane.xlu0 %1988 }
 0x795   : > { %v1993_v41 = vsub.f32 %v1985_v30, %v1989_v40 }
 0x796   : > { %v1992_v43 = vpop.xlane.xlu1 %1991 }
 0x797   : > { %v1995_v44 = vmul.f32 1.442695, %v1993_v41  ;;  %v1994_v45 = vsub.f32 %v1986_v36, %v1992_v43 }
 0x799   : > { %9664 = vpow2.f32 %v1995_v44  ;;  %v1997_v46 = vmul.f32 1.442695, %v1994_v45 }
 0x79a   : > { %v2113_v59 = vpop.permute.xlu1 %2112 }
 0x79b   : > { %9666 = vpow2.f32 %v1997_v46  ;;  %v2118_v61 = vsel %vm1180_vm4, %v2113_v59, 0 }
 0x79e   : > { %v2111_v62 = vpop.permute.xlu1 %2110 }
 0x7a3   : > { %v9665_v47 = vpop.eup %9664 }
 0x7a4   : > { %v1999_v49 = vsel %vm1180_vm4, %v9665_v47, 0.0 }
 0x7a5   : > { %v9667_v50 = vpop.eup %9666  ;;  %2000 = vadd.xlane.f32.xlu0 %v1999_v49 }
 0x7a6   : > { %v2002_v51 = vsel %vm1180_vm4, %v9667_v50, 0.0 }
 0x7a9   : > { %2003 = vadd.xlane.f32.xlu0 %v2002_v51 }
 0x7bf   : > { %2010 = vrot.lane.b32.xlu0 %v11002_v38, %s12342_s22  ;;  %s12426_s22 = smov 96  }
 0x832   : > { %v2001_v52 = vpop.xlane.xlu0 %2000 }
 0x833   : > { %9668 = vrcp.f32 %v2001_v52 }
 0x836   : > { %v2004_v53 = vpop.xlane.xlu0 %2003 }
 0x837   : > { %9670 = vrcp.f32 %v2004_v53 }
 0x83a   : > { %v2011_v54 = vpop.permute.xlu0 %2010 }
 0x83b   : > { %v2016_v55 = vsel %vm1666_vm7, %v2011_v54, 0 }
 0x83c   : > { %8616 = vmatpush3.bf16.msra.mxu1 %v2016_v55 }
 0x83d   : > { %8627 = vmatprep.subr.bf16.mxu1 %v12356_v0  ;;  %v9669_v56 = vpop.eup %9668 }
 0x83e   : > { %v2007_v34 = vmul.f32 %v9669_v56, %v9665_v47  ;;  %v1211_v56 = vld [vmem:[%s12425_s16 + $0x38] sm:$0xff] }
 0x841   : > { %v9671_v57 = vpop.eup %9670 }
 0x842   : > { %v2008_v58 = vmul.f32 %v9671_v57, %v9667_v50 }
 0x844   : > { %v2009_v60 = vpack.c.bf16 %v2008_v58, %v2007_v34  ;;  %v2236_v34 = vpack.c.bf16 %v1211_v56, %v1211_v56 }
 0x846   : > { %8618 = vmatmul.mubr.msk.bf16.vlgmr.msra.gmra.mrb[24].mxu1 %vm1180_vm4, %v2009_v60 }
 0x847   : > { %8628 = vmatpush3.bf16.xpose.msra.mxu1 %v2118_v61  ;;  %8629 = vmatprep.mubr.msk.bf16.mxu1 %vm10439_vm0, %v12356_v0 }
 0x848   : > { %8645 = vmatprep.subr.bf16.mxu1 %v12356_v0 }
 0x84e   : > { %8630 = vmatmul.mubr.msk.bf16.vlgmr.msra.gmra.mrb[28].mxu1 %vm1180_vm4, %v2111_v62  ;;  %v11142_v62 = vsel %vm1666_vm7, %v2236_v34, 0 }
 0x84f   : > { %8646 = vmatpush3.bf16.xpose.msra.mxu1 %v2298_v63  ;;  %8647 = vmatprep.mubr.msk.bf16.mxu1 %vm10439_vm0, %v12356_v0 }
 0x850   : > { %8651 = vmatprep.subr.bf16.mxu1 %v12356_v0 }
 0x919   : > { %v2052_v7 = vpop.f32.mrb[24].mxu1 }
 0x91a   : > { %v8619_v8 = vpop.f32.mrb[25].mxu1 }
 0x91b   : > { %v2055_v9 = vpop.f32.mrb[26].mxu1 }
 0x91c   : > { %v2059_v10 = vpack.c.bf16 %v2055_v9, %v2052_v7  ;;  %v8620_v13 = vpop.f32.mrb[27].mxu1 }
 0x91e   : > { %8624 = vmatmul.mubr.msk.bf16.vlgmr.msra.gmra.mrb[8].mxu0 %vm1180_vm4, %v2059_v10 }
 0x91f   : > { %8635 = vmatprep.mubr.msk.bf16.mxu0 %vm10439_vm0, %v12356_v0 }
 0x921   : > { %v2154_v15 = vpop.f32.mrb[28].mxu1 }
 0x922   : > { %v2155_v16 = vadd.f32 %v2154_v15, %v11028_v48  ;;  %v8631_v18 = vpop.f32.mrb[29].mxu1 }
 0x923   : > { %v2157_v21 = vpop.f32.mrb[30].mxu1 }
 0x924   : > { %v2161_v24 = vmul.f32 0.35355338, %v2155_v16  ;;  %v2158_v25 = vadd.f32 %v2157_v21, %v11028_v48  ;;  %v8632_v27 = vpop.f32.mrb[31].mxu1 }
 0x926   : > { %v2162_v28 = vmul.f32 0.35355338, %v2158_v25  ;;  %v2163_v30 = vsel %vm1180_vm4, %v2161_v24, -inf }
 0x927   : > { %2164 = vmax.xlane.f32.xlu1 %v2163_v30 }
 0x928   : > { %v2166_v31 = vsel %vm1180_vm4, %v2162_v28, -inf }
 0x929   : > { %2167 = vmax.xlane.f32.xlu0 %v2166_v31 }
 0x938   : > { %2186 = vrot.lane.b32.xlu1 %v11002_v38, %s12350_s7  ;;  %s12430_s7 = smov 104  }
 0x93c   : > { %2401 = vrot.lane.b32.xlu1 %v11002_v38, %s12346_s18  ;;  %s12428_s18 = smov 48  }
 0x940   : > { %2606 = vrot.lane.b32.xlu1 %v11010_v42, %s12348_s0  ;;  %s12429_s0 = smov 72  }
 0x944   : > { %2604 = vrot.lane.b32.xlu1 %v11002_v38, %s12344_s11  ;;  %s12427_s11 = smov 120  }
 0x948   : > { %2292 = vrot.lane.b32.xlu1 %v11002_v38, %s12426_s22 }
 0x9b4   : > { %v2165_v32 = vpop.xlane.xlu1 %2164 }
 0x9b5   : > { %v2169_v36 = vsub.f32 %v2161_v24, %v2165_v32  ;;  %v8135_v24 = vld [vmem:[#allocation7] ss:$0 sm:$0xff] }
 0x9b6   : > { %v2168_v37 = vpop.xlane.xlu0 %2167 }
 0x9b7   : > { %v2171_v39 = vmul.f32 1.442695, %v2169_v36  ;;  %v2170_v40 = vsub.f32 %v2162_v28, %v2168_v37 }
 0x9b8   : > { %v2187_v41 = vpop.permute.xlu1 %2186 }
 0x9b9   : > { %9672 = vpow2.f32 %v2171_v39  ;;  %v2173_v43 = vmul.f32 1.442695, %v2170_v40  ;;  %v2192_v44 = vsel %vm1666_vm7, %v2187_v41, 0 }
 0x9ba   : > { %8634 = vmatpush3.bf16.msra.mxu0 %v2192_v44 }
 0x9bb   : > { %9674 = vpow2.f32 %v2173_v43  ;;  %8639 = vmatprep.subr.bf16.mxu0 %v12356_v0 }
 0x9bc   : > { %v2402_v45 = vpop.permute.xlu1 %2401 }
 0x9c0   : > { %v2607_v46 = vpop.permute.xlu1 %2606 }
 0x9c1   : > { %v2612_v21 = vsel %vm1180_vm4, %v2607_v46, 0 }
 0x9c3   : > { %v9673_v47 = vpop.eup %9672 }
 0x9c4   : > { %v2605_v49 = vpop.permute.xlu1 %2604  ;;  %v2175_v50 = vsel %vm1180_vm4, %v9673_v47, 0.0 }
 0x9c5   : > { %v9675_v51 = vpop.eup %9674  ;;  %2176 = vadd.xlane.f32.xlu0 %v2175_v50 }
 0x9c6   : > { %v2178_v53 = vsel %vm1180_vm4, %v9675_v51, 0.0 }
 0x9c8   : > { %v2293_v52 = vpop.permute.xlu1 %2292 }
 0x9c9   : > { %8648 = vmatmul.mubr.msk.bf16.vlgmr.msra.gmra.mrb[32].mxu1 %vm1180_vm4, %v2293_v52  ;;  %2179 = vadd.xlane.f32.xlu0 %v2178_v53  ;;  %v1148_v52 = vsel %vm1147_vm8, -1e+09, %v12356_v0 }
 0x9ca   : > { %8653 = vmatprep.mubr.msk.bf16.mxu1 %vm10439_vm0, %v12356_v0  ;;  %v11183_v53 = vrot.slane %v1148_v52, %v10948_v35 }
 0x9df   : > { %2403 = vrot.lane.b32.xlu0 %v11010_v42, %s12427_s11 }
 0xa52   : > { %v2177_v54 = vpop.xlane.xlu0 %2176 }
 0xa53   : > { %9676 = vrcp.f32 %v2177_v54 }
 0xa56   : > { %v2180_v55 = vpop.xlane.xlu0 %2179 }
 0xa57   : > { %9678 = vrcp.f32 %v2180_v55 }
 0xa5a   : > { %v2404_v10 = vpop.permute.xlu0 %2403 }
 0xa5b   : > { %v2409_v18 = vsel %vm1180_vm4, %v2404_v10, 0 }
 0xa5d   : > { %v9677_v57 = vpop.eup %9676 }
 0xa5e   : > { %v2183_v59 = vmul.f32 %v9677_v57, %v9673_v47 }
 0xa61   : > { %v9679_v58 = vpop.eup %9678 }
 0xa62   : > { %v2184_v60 = vmul.f32 %v9679_v58, %v9675_v51 }
 0xa64   : > { %v2185_v61 = vpack.c.bf16 %v2184_v60, %v2183_v59 }
 0xa66   : > { %8636 = vmatmul.mubr.msk.bf16.vlgmr.msra.gmra.mrb[20].mxu0 %vm1180_vm4, %v2185_v61 }
 0xa67   : > { %8640 = vmatpush3.bf16.msra.mxu0 %v11142_v62  ;;  %8641 = vmatprep.mubr.msk.bf16.mxu0 %vm10439_vm0, %v12356_v0 }
 0xa68   : > { %8657 = vmatprep.subr.bf16.mxu0 %v12356_v0 }
 0xa9c   : > { %v2334_v63 = vpop.f32.mrb[32].mxu1 }
 0xa9d   : > { %v8649_v2 = vpop.f32.mrb[33].mxu1  ;;  %v2335_v33 = vadd.f32 %v2334_v63, %v11183_v53 }
 0xa9e   : > { %v2337_v4 = vpop.f32.mrb[34].mxu1 }
 0xa9f   : > { %v8650_v7 = vpop.f32.mrb[35].mxu1  ;;  %v2340_v60 = vmul.f32 0.35355338, %v2335_v33 }
 0xaa1   : > { %v2341_v61 = vsel %vm1166_vm3, %v2340_v60, -inf }
 0xb39   : > { %v2228_v8 = vpop.f32.mrb[20].mxu0 }
 0xb3a   : > { %v8637_v9 = vpop.f32.mrb[21].mxu0 }
 0xb3b   : > { %v2231_v13 = vpop.f32.mrb[22].mxu0 }
 0xb3c   : > { %v2235_v15 = vpack.c.bf16 %v2231_v13, %v2228_v8  ;;  %v8638_v16 = vpop.f32.mrb[23].mxu0 }
 0xb3e   : > { %8642 = vmatmul.mubr.msk.bf16.vlgmr.msra.gmra.mrb[8].mxu0 %vm1180_vm4, %v2235_v15 }
 0xb3f   : > { %8658 = vmatpush3.bf16.xpose.msra.mxu0 %v2409_v18  ;;  %8659 = vmatprep.mubr.msk.bf16.mxu0 %vm10439_vm0, %v12356_v0 }
 0xb40   : > { %8681 = vmatprep.subr.bf16.mxu0 %v12356_v0 }
 0xb46   : > { %8660 = vmatmul.mubr.msk.bf16.vlgmr.msra.gmra.mrb[24].mxu0 %vm1180_vm4, %v2402_v45 }
 0xb47   : > { %8682 = vmatpush3.bf16.xpose.msra.mxu0 %v2612_v21  ;;  %8683 = vmatprep.mubr.msk.bf16.mxu0 %vm10439_vm0, %v12356_v0 }
 0xb48   : > { %8687 = vmatprep.subr.bf16.mxu0 %v12356_v0 }
 0xb4e   : > { %8684 = vmatmul.mubr.msk.bf16.vlgmr.msra.gmra.mrb[28].mxu0 %vm1180_vm4, %v2605_v49 }
 0xb4f   : > { %8689 = vmatprep.mubr.msk.bf16.mxu0 %vm10439_vm0, %v12356_v0 }
 0xc11   : > { %v2277_v25 = vpop.f32.mrb[8].mxu0 }
 0xc12   : > { %v11162_v27 = vadd.f32 %v8135_v24, %v2277_v25  ;;  %v8643_v28 = vpop.f32.mrb[9].mxu0 }
 0xc13   : > { %v2280_v30 = vpop.f32.mrb[10].mxu0 }
 0xc14   : > { %v3147_v31 = vmul.f32 %v11162_v27, %v10995_v14  ;;  %v11166_v32 = vadd.f32 %v8135_v24, %v2280_v30  ;;  %v8644_v36 = vpop.f32.mrb[11].mxu0  ;;  %v2923_v37 = vmax.f32 %v11162_v27, 0.0 }
 0xc16   : > { %v2924_v39 = vmax.f32 %v11166_v32, 0.0  ;;  %v3034_v40 = vpack.c.bf16 %v11166_v32, %v11162_v27  ;;  %v3148_v41 = vmul.f32 %v11166_v32, %v10999_v19  ;;  %v3149_v43 = vsel %vm1263_vm1, %v3147_v31, 0.0 }
 0xc18   : > { %v11175_v44 = vpack.c.bf16 %v2924_v39, %v2923_v37  ;;  %v3150_v45 = vsel %vm1263_vm1, %v3148_v41, 0.0 }
 0xc19   : > { %v11178_v46 = vadd.f32 %v3150_v45, %v3149_v43  ;;  %v2445_v47 = vpop.f32.mrb[24].mxu0 }
 0xc1a   : > { %v8661_v49 = vpop.f32.mrb[25].mxu0 }
 0xc1b   : > { %v2448_v50 = vpop.f32.mrb[26].mxu0 }
 0xc1c   : > { %v8662_v51 = vpop.f32.mrb[27].mxu0 }
 0xc21   : > { %v2648_v54 = vpop.f32.mrb[28].mxu0 }
 0xc22   : > { %v2649_v55 = vadd.f32 %v2648_v54, %v11183_v53  ;;  %v8685_v56 = vpop.f32.mrb[29].mxu0 }
 0xc23   : > { %v2651_v57 = vpop.f32.mrb[30].mxu0 }
 0xc24   : > { %v2654_v34 = vmul.f32 0.35355338, %v2649_v55  ;;  %v8686_v58 = vpop.f32.mrb[31].mxu0 }
 0xc26   : > { %v2655_v59 = vsel %vm1166_vm3, %v2654_v34, -inf }
 0xc27   : > { %2656 = vmax.xlane.f32.xlu0 %v2655_v59 }
 0xc3d   : > { %2667 = vrot.lane.b32.xlu0 %v11010_v42, %s12428_s18 }
 0xc41   : > { %2762 = vrot.lane.b32.xlu0 %v11002_v38, %s12429_s0  ;;  %v2446_v38 = vadd.f32 %v2445_v47, %v11183_v53 }
 0xc43   : > { %v2451_v63 = vmul.f32 0.35355338, %v2446_v38 }
 0xc45   : > { %v2452_v13 = vsel %vm1166_vm3, %v2451_v63, -inf }
 0xc60   : > { %2342 = vmax.xlane.f32.xlu0 %v2341_v61 }
 0xcb4   : > { %v2657_v2 = vpop.xlane.xlu0 %2656 }
 0xcb5   : > { %v2658_v4 = vsub.f32 %v2654_v34, %v2657_v2 }
 0xcb7   : > { %v2659_v7 = vmul.f32 1.442695, %v2658_v4 }
 0xcb8   : > { %v2668_v8 = vpop.permute.xlu0 %2667 }
 0xcb9   : > { %9680 = vpow2.f32 %v2659_v7  ;;  %8688 = vmatpush3.bf16.msra.mxu0 %v2668_v8 }
 0xcba   : > { %8699 = vmatprep.subr.bf16.mxu0 %v12356_v0 }
 0xcbc   : > { %v2763_v28 = vpop.permute.xlu0 %2762 }
 0xcc3   : > { %v9681_v9 = vpop.eup %9680 }
 0xcc4   : > { %v2661_v10 = vsel %vm1166_vm3, %v9681_v9, 0.0 }
 0xcc5   : > { %2662 = vadd.xlane.f32.xlu1 %v2661_v10 }
 0xcd6   : > { %2764 = vrot.lane.b32.xlu1 %v11010_v42, %s12430_s7 }
 0xced   : > { %v2343_v36 = vpop.xlane.xlu0 %2342 }
 0xcee   : > { %v2344_v37 = vsub.f32 %v2340_v60, %v2343_v36 }
 0xcf0   : > { %v2345_v39 = vmul.f32 1.442695, %v2344_v37  ;;  %v1232_v37 = vld [vmem:[%s12434_s4] sm:$0xff] }
 0xcfa   : > { %2453 = vmax.xlane.f32.xlu1 %v2452_v13 }
 0xd0b   : > { %2353 = vrot.lane.b32.xlu1 %v11010_v42, %s12431_s1 }
 0xd52   : > { %v2663_v15 = vpop.xlane.xlu1 %2662 }
 0xd53   : > { %9682 = vrcp.f32 %v2663_v15 }
 0xd54   : > { %9684 = vpow2.f32 %v2345_v39  ;;  %v1233_v39 = vld [vmem:[%s12434_s4 + $0x8] sm:$0xff] }
 0xd56   : > { %v2765_v21 = vpop.permute.xlu1 %2764 }
 0xd57   : > { %v2770_v25 = vsel %vm1180_vm4, %v2765_v21, 0 }
 0xd5d   : > { %v9683_v16 = vpop.eup %9682 }
 0xd5e   : > { %v2665_v18 = vmul.f32 %v9683_v16, %v9681_v9  ;;  %v9685_v58 = vpop.eup %9684 }
 0xd5f   : > { %v2347_v59 = vsel %vm1166_vm3, %v9685_v58, 0.0 }
 0xd60   : > { %v2666_v24 = vpack.c.bf16 %v2665_v18, %v2665_v18 }
 0xd62   : > { %8690 = vmatmul.mubr.msk.bf16.vlgmr.msra.gmra.mrb[32].mxu0 %vm1166_vm3, %v2666_v24  ;;  %v1218_v24 = vld [vmem:[%s12423_s23 + $0x28] sm:$0xff] }
 0xd63   : > { %8700 = vmatpush3.bf16.xpose.msra.mxu0 %v2770_v25  ;;  %8701 = vmatprep.mubr.msk.bf16.mxu0 %vm10439_vm0, %v12356_v0  ;;  %v2511_v25 = vpack.c.bf16 %v1218_v24, %v1218_v24 }
 0xd64   : > { %8705 = vmatprep.subr.bf16.mxu0 %v12356_v0 }
 0xd6a   : > { %8702 = vmatmul.mubr.msk.bf16.vlgmr.msra.gmra.mrb[36].mxu0 %vm1180_vm4, %v2763_v28  ;;  %v11231_v28 = vsel %vm1666_vm7, %v2511_v25, 0 }
 0xd6b   : > { %8707 = vmatprep.mubr.msk.bf16.mxu0 %vm10439_vm0, %v12356_v0 }
 0xd87   : > { %v2454_v30 = vpop.xlane.xlu1 %2453 }
 0xd88   : > { %v2455_v41 = vsub.f32 %v2451_v63, %v2454_v30  ;;  %v9860_v30 = vld [vmem:[%s10940_s20] sm:$0x1]  ;;  %s12435_s20 = sld [smem:[#allocation51_spill]] }
 0xd8a   : > { %v2456_v50 = vmul.f32 1.442695, %v2455_v41 }
 0xd8b   : > { %v2354_v31 = vpop.permute.xlu1 %2353 }
 0xd8c   : > { %8652 = vmatpush3.bf16.msra.mxu1 %v2354_v31  ;;  %9686 = vpow2.f32 %v2456_v50  ;;  %v3144_v31 = vsel %vm3143_vm9, %v9860_v30, 0.0  ;;  %v1234_v50 = vld [vmem:[%s12434_s4 + $0x10] sm:$0xff] }
 0xd8d   : > { %8663 = vmatprep.subr.bf16.mxu1 %v12356_v0 }
 0xd96   : > { %v9687_v33 = vpop.eup %9686 }
 0xd97   : > { %v2458_v60 = vsel %vm1166_vm3, %v9687_v33, 0.0 }
 0xe35   : > { %v11210_v43 = vpop.f32.mrb[32].mxu0 }
 0xe36   : > { %v8691_v45 = vpop.f32.mrb[33].mxu0 }
 0xe37   : > { %v2710_v47 = vpop.f32.mrb[34].mxu0 }
 0xe38   : > { %v8692_v49 = vpop.f32.mrb[35].mxu0  ;;  %v11238_v47 = vpack.c.bf16 %v1233_v39, %v1232_v37 }
 0xe3d   : > { %v2806_v51 = vpop.f32.mrb[36].mxu0 }
 0xe3e   : > { %v2807_v52 = vadd.f32 %v2806_v51, %v11183_v53  ;;  %v8703_v54 = vpop.f32.mrb[37].mxu0  ;;  %v1235_v51 = vld [vmem:[%s12434_s4 + $0x18] sm:$0xff]  ;;  %s12441_s4 = smov 88  }
 0xe3f   : > { %v2809_v55 = vpop.f32.mrb[38].mxu0  ;;  %v11249_v54 = vld [vmem:[#allocation19] sm:$0xff] }
 0xe40   : > { %v2812_v56 = vmul.f32 0.35355338, %v2807_v52  ;;  %v8704_v57 = vpop.f32.mrb[39].mxu0  ;;  %v11244_v52 = vpack.c.bf16 %v1235_v51, %v1234_v50  ;;  %v11251_v55 = vld [vmem:[#allocation19 + $0x8] sm:$0xff]  ;;  %v9861_v51 = vld [vmem:[%s10936_s26] sm:$0x1] }
 0xe41   : > { %v11259_v57 = vld [vmem:[#allocation19 + $0x10] sm:$0xff]  ;;  %s12440_s26 = smov 112  }
 0xe42   : > { %v2813_v34 = vsel %vm1166_vm3, %v2812_v56, -inf }
 0xe43   : > { %2814 = vmax.xlane.f32.xlu0 %v2813_v34  ;;  %v11261_v34 = vld [vmem:[#allocation19 + $0x18] sm:$0xff] }
 0xe47   : > { %2348 = vadd.xlane.f32.xlu0 %v2347_v59 }
 0xe4b   : > { %2459 = vadd.xlane.f32.xlu0 %v2458_v60  ;;  %v1217_v60 = vld [vmem:[%s12423_s23 + $0x20] sm:$0xff] }
 0xe61   : > { %2464 = vrot.lane.b32.xlu0 %v11010_v42, %s12432_s2 }
 0xe65   : > { %2825 = vrot.lane.b32.xlu0 %v11010_v42, %s12433_s3 }
 0xe84   : > { %3145 = vadd.xlane.f32.xlu0 %v3144_v31 }
 0xed0   : > { %v2815_v61 = vpop.xlane.xlu0 %2814 }
 0xed1   : > { %v2816_v2 = vsub.f32 %v2812_v56, %v2815_v61  ;;  %v11256_v56 = vpack.c.bf16 %v11251_v55, %v11249_v54 }
 0xed3   : > { %v2817_v4 = vmul.f32 1.442695, %v2816_v2  ;;  %v2400_v2 = vpack.c.bf16 %v1217_v60, %v1217_v60 }
 0xed4   : > { %v2349_v7 = vpop.xlane.xlu0 %2348 }
 0xed5   : > { %9688 = vpow2.f32 %v2817_v4 }
 0xed6   : > { %9690 = vrcp.f32 %v2349_v7 }
 0xed8   : > { %v2460_v8 = vpop.xlane.xlu0 %2459 }
 0xed9   : > { %9692 = vrcp.f32 %v2460_v8 }
 0xedc   : > { %v2465_v9 = vpop.permute.xlu0 %2464 }
 0xedf   : > { %v9689_v10 = vpop.eup %9688 }
 0xee0   : > { %v9691_v38 = vpop.eup %9690  ;;  %v2826_v63 = vpop.permute.xlu0 %2825  ;;  %v2819_v13 = vsel %vm1166_vm3, %v9689_v10, 0.0 }
 0xee1   : > { %2820 = vadd.xlane.f32.xlu1 %v2819_v13  ;;  %8706 = vmatpush3.bf16.msra.mxu0 %v2826_v63  ;;  %v2351_v15 = vmul.f32 %v9691_v38, %v9685_v58  ;;  %v11268_v58 = vpack.c.bf16 %v11261_v34, %v11259_v57  ;;  %v1220_v13 = vld [vmem:[%s12423_s23 + $0x38] sm:$0xff] }
 0xee2   : > { %8717 = vmatprep.subr.bf16.mxu0 %v12356_v0 }
 0xee3   : > { %v2352_v42 = vpack.c.bf16 %v2351_v15, %v2351_v15  ;;  %v9693_v16 = vpop.eup %9692  ;;  %v2872_v15 = vpack.c.bf16 %v1220_v13, %v1220_v13 }
 0xee4   : > { %v2462_v18 = vmul.f32 %v9693_v16, %v9687_v33 }
 0xee5   : > { %8654 = vmatmul.mubr.msk.bf16.vlgmr.msra.gmra.mrb[36].mxu1 %vm1166_vm3, %v2352_v42  ;;  %v2713_v42 = vpack.c.bf16 %v11210_v43, %v11210_v43  ;;  %v11303_v16 = vsel %vm1666_vm7, %v2872_v15, 0  ;;  %v8163_v43 = vld [vmem:[#allocation14] ss:$0 sm:$0xff] }
 0xee6   : > { %8664 = vmatpush3.bf16.msra.mxu1 %v2465_v9  ;;  %8665 = vmatprep.mubr.msk.bf16.mxu1 %vm10439_vm0, %v12356_v0  ;;  %v2463_v21 = vpack.c.bf16 %v2462_v18, %v2462_v18  ;;  %v11283_v9 = vsel %vm1666_vm7, %v2400_v2, 0  ;;  %v1225_v2 = vld [vmem:[%s12435_s20 + $0x18] sm:$0xff] }
 0xee7   : > { %8669 = vmatprep.subr.bf16.mxu1 %v12356_v0 }
 0xeed   : > { %8666 = vmatmul.mubr.msk.bf16.vlgmr.msra.gmra.mrb[40].mxu1 %vm1166_vm3, %v2463_v21 }
 0xeee   : > { %8671 = vmatprep.mubr.msk.bf16.mxu1 %vm10439_vm0, %v12356_v0  ;;  %8670 = vmatpush3.bf16.msra.mxu1 %v11231_v28 }
 0xeef   : > { %8675 = vmatprep.subr.bf16.mxu1 %v12356_v0 }
 0xf6e   : > { %v2821_v36 = vpop.xlane.xlu1 %2820 }
 0xf6f   : > { %9694 = vrcp.f32 %v2821_v36 }
 0xf79   : > { %v9695_v41 = vpop.eup %9694 }
 0xf7a   : > { %v2823_v45 = vmul.f32 %v9695_v41, %v9689_v10 }
 0xf7c   : > { %v2824_v49 = vpack.c.bf16 %v2823_v45, %v2823_v45 }
 0xf7e   : > { %8708 = vmatmul.mubr.msk.bf16.vlgmr.msra.gmra.mrb[40].mxu0 %vm1166_vm3, %v2824_v49 }
 0xf7f   : > { %8718 = vmatpush3.bf16.msra.mxu0 %v11238_v47  ;;  %8721 = vmatprep.mubr.msk.bf16.mxu0 %vm10439_vm0, %v12356_v0 }
 0xf80   : > { %8719 = vmatprep.subr.bf16.mxu0 %v12356_v0 }
 0xf83   : > { %8720 = vmatpush3.bf16.msra.mxu0 %v11244_v52 }
 0xf84   : > { %8733 = vmatprep.subr.bf16.mxu0 %v12356_v0 }
 0xf86   : > { %8722 = vmatmul.mubr.msk.bf16.vlgmr.msra.gmra.mrb[44].mxu0 %vm1263_vm1, %v11175_v44 }
 0xf87   : > { %8734 = vmatpush3.bf16.msra.mxu0 %v11256_v56  ;;  %8737 = vmatprep.mubr.msk.bf16.mxu0 %vm10439_vm0, %v12356_v0 }
 0xf88   : > { %8735 = vmatprep.subr.bf16.mxu0 %v12356_v0 }
 0xf8b   : > { %8736 = vmatpush3.bf16.msra.mxu0 %v11268_v58 }
 0xf8c   : > { %8749 = vmatprep.subr.bf16.mxu0 %v12356_v0 }
 0xf8e   : > { %8738 = vmatmul.mubr.msk.bf16.vlgmr.msra.gmra.mrb[48].mxu0 %vm1263_vm1, %v3034_v40  ;;  %v1219_v40 = vld [vmem:[%s12423_s23 + $0x30] sm:$0xff] }
 0xf8f   : > { %8753 = vmatprep.mubr.msk.bf16.mxu0 %vm10439_vm0, %v12356_v0  ;;  %v2714_v10 = vpack.c.bf16 %v1219_v40, %v1219_v40  ;;  %v1240_v40 = vld [vmem:[#allocation16 + $0x18] sm:$0xff] }
 0xf91   : > { %v11292_v63 = vsel %vm1666_vm7, %v2714_v10, 0 }
 0xfb8   : > { %v2393_v44 = vpop.f32.mrb[36].mxu1 }
 0xfb9   : > { %v8655_v59 = vpop.f32.mrb[37].mxu1  ;;  %v2399_v38 = vpack.c.bf16 %v2393_v44, %v2393_v44  ;;  %v3140_v44 = vsel %vm3139_vm10, %v9861_v51, 0.0  ;;  %v11356_v51 = vld [vmem:[#allocation22 + $0x8] sm:$0xff] }
 0xfba   : > { %v2396_v33 = vpop.f32.mrb[38].mxu1  ;;  %v1222_v59 = vld [vmem:[%s12435_s20] sm:$0xff] }
 0xfbb   : > { %v8656_v61 = vpop.f32.mrb[39].mxu1  ;;  %v1223_v33 = vld [vmem:[%s12435_s20 + $0x8] sm:$0xff] }
 0xfbc   : > { %v11326_v60 = vpack.c.bf16 %v1223_v33, %v1222_v59  ;;  %v1224_v61 = vld [vmem:[%s12435_s20 + $0x10] sm:$0xff] }
 0xfbe   : > { %8750 = vmatpush3.bf16.msra.mxu0 %v11326_v60 }
 0xfbf   : > { %8751 = vmatprep.subr.bf16.mxu0 %v12356_v0 }
 0xfc0   : > { %v2504_v4 = vpop.f32.mrb[40].mxu1 }
 0xfc1   : > { %v2510_v7 = vpack.c.bf16 %v2504_v4, %v2504_v4  ;;  %v8667_v8 = vpop.f32.mrb[41].mxu1  ;;  %v11331_v4 = vpack.c.bf16 %v1225_v2, %v1224_v61  ;;  %v3146_v2 = vpop.xlane.xlu0 %3145 }
 0xfc2   : > { %v2507_v27 = vpop.f32.mrb[42].mxu1  ;;  %v1238_v8 = vld [vmem:[#allocation16 + $0x8] sm:$0xff] }
 0xfc3   : > { %v8668_v32 = vpop.f32.mrb[43].mxu1  ;;  %8672 = vmatmul.mubr.msk.bf16.vlgmr.msra.gmra.mrb[8].mxu1 %vm1180_vm4, %v2510_v7  ;;  %8752 = vmatpush3.bf16.msra.mxu0 %v11331_v4  ;;  %v1237_v7 = vld [vmem:[#allocation16] sm:$0xff] }
 0xfc4   : > { %8676 = vmatpush3.bf16.msra.mxu1 %v11283_v9  ;;  %8677 = vmatprep.mubr.msk.bf16.mxu1 %vm10439_vm0, %v12356_v0  ;;  %v11336_v27 = vpack.c.bf16 %v1238_v8, %v1237_v7  ;;  %v1239_v32 = vld [vmem:[#allocation16 + $0x10] sm:$0xff] }
 0xfc5   : > { %8693 = vmatprep.subr.bf16.mxu1 %v12356_v0  ;;  %8765 = vmatprep.subr.bf16.mxu0 %v12356_v0  ;;  %v11340_v10 = vpack.c.bf16 %v1240_v40, %v1239_v32  ;;  %v11364_v40 = vld [vmem:[#allocation22 + $0x10] sm:$0xff] }
 0xfcf   : > { %8678 = vmatmul.mubr.msk.bf16.vlgmr.msra.gmra.mrb[8].mxu1 %vm1180_vm4, %v2399_v38  ;;  %v3152_v38 = vrot.slane %v11178_v46, 4 }
 0xfd0   : > { %8694 = vmatpush3.bf16.msra.mxu1 %v11292_v63  ;;  %8695 = vmatprep.mubr.msk.bf16.mxu1 %vm10439_vm0, %v12356_v0 }
 0xfd1   : > { %8711 = vmatprep.subr.bf16.mxu1 %v12356_v0  ;;  %v3153_v13 = vadd.f32 %v3152_v38, %v11178_v46  ;;  %v8137_v46 = vld [vmem:[#allocation8] ss:$0 sm:$0xff]  ;;  %v1250_v38 = vld [vmem:[#allocation22 + $0x18] sm:$0xff] }
 0xfdb   : > { %8696 = vmatmul.mubr.msk.bf16.vlgmr.msra.gmra.mrb[8].mxu1 %vm1180_vm4, %v2713_v42  ;;  %v3154_v42 = vrot.slane %v3153_v13, 2 }
 0xfdc   : > { %8712 = vmatpush3.bf16.msra.mxu1 %v11303_v16  ;;  %8713 = vmatprep.mubr.msk.bf16.mxu1 %vm10439_vm0, %v12356_v0 }
 0xfdd   : > { %8725 = vmatprep.subr.bf16.mxu1 %v12356_v0 }
0x1051   : > { %v2865_v18 = vpop.f32.mrb[40].mxu0 }
0x1052   : > { %v2871_v21 = vpack.c.bf16 %v2865_v18, %v2865_v18  ;;  %v8709_v24 = vpop.f32.mrb[41].mxu0 }
0x1053   : > { %v2868_v25 = vpop.f32.mrb[42].mxu0 }
0x1054   : > { %v8710_v30 = vpop.f32.mrb[43].mxu0  ;;  %8714 = vmatmul.mubr.msk.bf16.vlgmr.msra.gmra.mrb[8].mxu1 %vm1180_vm4, %v2871_v21  ;;  %v3155_v21 = vadd.f32 %v3154_v42, %v3153_v13 }
0x1055   : > { %8729 = vmatprep.mubr.msk.bf16.mxu1 %vm10439_vm0, %v12356_v0  ;;  %8726 = vmatpush3.bf16.msra.mxu1 %v11336_v27 }
0x1056   : > { %8727 = vmatprep.subr.bf16.mxu1 %v12356_v0  ;;  %v3156_v24 = vrot.slane %v3155_v21, 1 }
0x1058   : > { %v3157_v25 = vadd.f32 %v3156_v24, %v3155_v21  ;;  %v1227_v21 = vld [vmem:[#allocation11] sm:$0xff]  ;;  %v1228_v24 = vld [vmem:[#allocation11 + $0x8] sm:$0xff] }
0x1059   : > { %v2971_v31 = vpop.f32.mrb[44].mxu0  ;;  %8728 = vmatpush3.bf16.msra.mxu1 %v11340_v10 }
0x105a   : > { %v2972_v36 = vadd.f32 %v8163_v43, %v2971_v31  ;;  %v8723_v37 = vpop.f32.mrb[45].mxu0  ;;  %8741 = vmatprep.subr.bf16.mxu1 %v12356_v0 }
0x105b   : > { %v2974_v39 = vpop.f32.mrb[46].mxu0 }
0x105c   : > { %v11314_v41 = vmul.f32 %v2972_v36, %v10995_v14  ;;  %v2975_v45 = vadd.f32 %v8163_v43, %v2974_v39  ;;  %v8724_v49 = vpop.f32.mrb[47].mxu0 }
0x105d   : > { %v11354_v49 = vld [vmem:[#allocation22] sm:$0xff] }
0x105e   : > { %v11317_v50 = vmul.f32 %v2975_v45, %v10999_v19  ;;  %3284 = vrot.lane.b32.xlu1 %v11314_v41, %s12426_s22  ;;  %v11361_v7 = vpack.c.bf16 %v11356_v51, %v11354_v49 }
0x1060   : > { %3286 = vrot.lane.b32.xlu0 %v11317_v50, %s12426_s22 }
0x1082   : > { %3141 = vadd.xlane.f32.xlu1 %v3140_v44 }
0x10d0   : > { %v11346_v15 = vpop.permute.xlu1 %3284 }
0x110f   : > { %v3142_v18 = vpop.xlane.xlu1 %3141 }
0x1110   : > { %9696 = vrcp.f32 %v3142_v18  ;;  %v11369_v18 = vpack.c.bf16 %v1250_v38, %v11364_v40 }
0x1111   : > { %9698 = vrcp.f32 %v3146_v2 }
0x111a   : > { %v11348_v30 = vpop.eup %9696 }
0x111b   : > { %v3159_v43 = vmul.f32 %v11348_v30, %v3157_v25 }
0x111d   : > { %v3170_v31 = vmax.f32 %v3159_v43, 0.0 }
0x111f   : > { %v3171_v36 = vpack.c.bf16 %v3170_v31, %v3170_v31  ;;  %v11375_v31 = vpack.c.bf16 %v1228_v24, %v1227_v21 }
0x1121   : > { %8754 = vmatmul.mubr.msk.bf16.vlgmr.msra.gmra.mrb[52].mxu0 %vm1263_vm1, %v3171_v36  ;;  %12436 = vst [vmem:[#allocation61_spill] sm:$0xff] %v11375_v31 }
0x1122   : > { %8767 = vmatprep.mubr.msk.bf16.mxu0 %vm10439_vm0, %v12356_v0 }
0x1127   : > { %v2913_v37 = vpop.f32.mrb[8].mxu1 }
0x1128   : > { %v9279_v39 = vadd.f32 %v8137_v46, %v2913_v37  ;;  %v8715_v45 = vpop.f32.mrb[9].mxu1  ;;  %v1229_v46 = vld [vmem:[#allocation11 + $0x10] sm:$0xff]  ;;  %v1230_v37 = vld [vmem:[#allocation11 + $0x18] sm:$0xff] }
0x1129   : > { %v2916_v44 = vpop.f32.mrb[10].mxu1 }
0x112a   : > { %v2980_v59 = vmax.f32 %v9279_v39, 0.0  ;;  %v3160_v33 = vmul.f32 %v9279_v39, %v10997_v17  ;;  %v8716_v61 = vpop.f32.mrb[11].mxu1  ;;  %v3087_v36 = vpack.c.bf16 %v9279_v39, %v9279_v39  ;;  %v11378_v44 = vpop.eup %9698 }
0x112b   : > { %12437 = vst [vmem:[#allocation62_spill] sm:$0xff] %v11378_v44 }
0x112c   : > { %v2981_v8 = vpack.c.bf16 %v2980_v59, %v2980_v59  ;;  %v3161_v32 = vsel %vm1263_vm1, %v3160_v33, 0.0  ;;  %v11382_v33 = vpack.c.bf16 %v1230_v37, %v1229_v46 }
0x112d   : > { %v3162_v13 = vrot.slane %v3161_v32, 4 }
0x112e   : > { %8730 = vmatmul.mubr.msk.bf16.vlgmr.msra.gmra.mrb[44].mxu1 %vm1263_vm1, %v2981_v8  ;;  %12438 = vst [vmem:[#allocation63_spill] sm:$0xff] %v11382_v33 }
0x112f   : > { %v3163_v42 = vadd.f32 %v3162_v13, %v3161_v32  ;;  %8742 = vmatpush3.bf16.msra.mxu1 %v11361_v7  ;;  %8745 = vmatprep.mubr.msk.bf16.mxu1 %vm10439_vm0, %v12356_v0 }
0x1130   : > { %8743 = vmatprep.subr.bf16.mxu1 %v12356_v0 }
0x1131   : > { %v3164_v25 = vrot.slane %v3163_v42, 2 }
0x1133   : > { %v3165_v43 = vadd.f32 %v3164_v25, %v3163_v42  ;;  %8744 = vmatpush3.bf16.msra.mxu1 %v11369_v18 }
0x1134   : > { %8757 = vmatprep.subr.bf16.mxu1 %v12356_v0 }
0x1135   : > { %v3166_v45 = vrot.slane %v3165_v43, 1 }
0x1136   : > { %8746 = vmatmul.mubr.msk.bf16.vlgmr.msra.gmra.mrb[48].mxu1 %vm1263_vm1, %v3087_v36 }
0x1137   : > { %v3167_v59 = vadd.f32 %v3166_v45, %v3165_v43  ;;  %8758 = vmatpush3.bf16.msra.mxu1 %v11375_v31  ;;  %8761 = vmatprep.mubr.msk.bf16.mxu1 %vm10439_vm0, %v12356_v0  ;;  %v1231_v43 = vld [vmem:[#allocation13] sm:$0x1] }
0x1138   : > { %8759 = vmatprep.subr.bf16.mxu1 %v12356_v0 }
0x1139   : > { %v3169_v39 = vmul.f32 %v11378_v44, %v3167_v59 }
0x113b   : > { %8760 = vmatpush3.bf16.msra.mxu1 %v11382_v33  ;;  %v3223_v61 = vmax.f32 %v3169_v39, 0.0 }
0x113c   : > { %8771 = vmatprep.subr.bf16.mxu1 %v12356_v0 }
0x113d   : > { %v3224_v2 = vpack.c.bf16 %v3223_v61, %v3223_v61 }
0x113f   : > { %8762 = vmatmul.mubr.msk.bf16.vlgmr.msra.gmra.mrb[52].mxu1 %vm1263_vm1, %v3224_v2 }
0x1140   : > { %8773 = vmatprep.mubr.msk.bf16.mxu1 %vm10439_vm0, %v12356_v0 }
0x11f4   : > { %v11393_v8 = vpop.f32.mrb[52].mxu0 }
0x11f5   : > { %v8755_v32 = vpop.f32.mrb[53].mxu0 }
0x11f6   : > { %v3214_v38 = vpop.f32.mrb[54].mxu0 }
0x11f7   : > { %v8756_v13 = vpop.f32.mrb[55].mxu0 }
0x1201   : > { %v11395_v42 = vpop.f32.mrb[44].mxu1 }
0x1202   : > { %v8731_v21 = vpop.f32.mrb[45].mxu1 }
0x1203   : > { %v3030_v24 = vpop.f32.mrb[46].mxu1 }
0x1204   : > { %v8732_v25 = vpop.f32.mrb[47].mxu1  ;;  %v3287_v24 = vpop.permute.xlu0 %3286 }
0x1212   : > { %v3264_v36 = vpop.f32.mrb[52].mxu1 }
0x1213   : > { %v3265_v46 = vadd.f32 %v3264_v36, %v1231_v43  ;;  %v8763_v37 = vpop.f32.mrb[53].mxu1 }
0x1214   : > { %v3267_v45 = vpop.f32.mrb[54].mxu1  ;;  %v12439_v37 = vmov 0.0  }
0x1215   : > { %v8174_v59 = vmul.f32 -1.442695, %v3265_v46  ;;  %v8764_v39 = vpop.f32.mrb[55].mxu1 }
0x1217   : > { %9700 = vpow2.f32 %v8174_v59 }
0x1221   : > { %v9701_v61 = vpop.eup %9700 }
0x1222   : > { %v3273_v2 = vadd.f32 1.0, %v9701_v61 }
0x1224   : > { %9702 = vrcp.f32 %v3273_v2 }
0x122e   : > { %v9703_v0 = vpop.eup %9702 }
0x122f   : > { %v3276_v32 = vadd.f32 1.0, %v9703_v0 }
0x1231   : > { %v3281_v38 = vrot.slane %v3276_v32, %v10948_v35 }
0x1233   : > { %v3292_v13 = vmul.f32 %v3281_v38, %v11314_v41  ;;  %v3293_v21 = vmul.f32 %v3281_v38, %v11317_v50  ;;  %v3290_v43 = vmul.f32 %v11346_v15, %v3281_v38  ;;  %v3291_v36 = vmul.f32 %v3287_v24, %v3281_v38 }
0x1235   : > { %v11400_v25 = vpack.c.bf16 %v3293_v21, %v3292_v13  ;;  %v11407_v0 = vpack.c.bf16 %v3291_v36, %v3290_v43 }
0x1237   : > { %3423 = vrot.lane.b32.xlu0 %v11400_v25, %s12427_s11  ;;  %v3300_v46 = vsel %vm1180_vm4, %v11400_v25, 0 }
0x1238   : > { %8766 = vmatpush3.bf16.xpose.msra.mxu0 %v3300_v46 }
0x1239   : > { %8777 = vmatprep.subr.bf16.mxu0 %v12439_v37 }
0x123b   : > { %3420 = vrot.lane.b32.xlu0 %v11407_v0, %s12427_s11 }
0x123f   : > { %8768 = vmatmul.mubr.msk.bf16.vlgmr.msra.gmra.mrb[56].mxu0 %vm1180_vm4, %v11407_v0 }
0x1240   : > { %8779 = vmatprep.mubr.msk.bf16.mxu0 %vm10439_vm0, %v12439_v37 }
0x12a9   : > { %v3424_v15 = vpop.permute.xlu0 %3423 }
0x12aa   : > { %v3429_v45 = vsel %vm1180_vm4, %v3424_v15, 0 }
0x12ab   : > { %8778 = vmatpush3.bf16.xpose.msra.mxu0 %v3429_v45 }
0x12ac   : > { %8789 = vmatprep.subr.bf16.mxu0 %v12439_v37 }
0x12ad   : > { %v3421_v59 = vpop.permute.xlu0 %3420 }
0x12b2   : > { %8780 = vmatmul.mubr.msk.bf16.vlgmr.msra.gmra.mrb[60].mxu0 %vm1180_vm4, %v3421_v59 }
0x12b3   : > { %8791 = vmatprep.mubr.msk.bf16.mxu0 %vm10439_vm0, %v12439_v37 }
0x1312   : > { %v3336_v39 = vpop.f32.mrb[56].mxu0 }
0x1313   : > { %v3337_v61 = vadd.f32 %v3336_v39, %v11183_v53  ;;  %v8769_v2 = vpop.f32.mrb[57].mxu0 }
0x1314   : > { %v3339_v32 = vpop.f32.mrb[58].mxu0 }
0x1315   : > { %v3343_v38 = vmul.f32 0.35355338, %v3337_v61  ;;  %v3340_v13 = vadd.f32 %v3339_v32, %v11183_v53  ;;  %v8770_v21 = vpop.f32.mrb[59].mxu0 }
0x1316   : > { %v11431_v21 = vpack.c.bf16 %v11317_v50, %v11314_v41 }
0x1317   : > { %v3344_v24 = vmul.f32 0.35355338, %v3340_v13  ;;  %v3345_v43 = vsel %vm1166_vm3, %v3343_v38, -inf }
0x1318   : > { %3346 = vmax.xlane.f32.xlu0 %v3345_v43 }
0x1319   : > { %v3348_v36 = vsel %vm1166_vm3, %v3344_v24, -inf }
0x131a   : > { %3349 = vmax.xlane.f32.xlu1 %v3348_v36 }
0x1385   : > { %v3465_v46 = vpop.f32.mrb[60].mxu0 }
0x1386   : > { %v3466_v15 = vadd.f32 %v3465_v46, %v11183_v53  ;;  %v8781_v45 = vpop.f32.mrb[61].mxu0 }
0x1387   : > { %v3468_v59 = vpop.f32.mrb[62].mxu0 }
0x1388   : > { %v3472_v33 = vmul.f32 0.35355338, %v3466_v15  ;;  %v3469_v39 = vadd.f32 %v3468_v59, %v11183_v53  ;;  %v8782_v2 = vpop.f32.mrb[63].mxu0 }
0x138a   : > { %v3473_v61 = vmul.f32 0.35355338, %v3469_v39  ;;  %v3474_v32 = vsel %vm1166_vm3, %v3472_v33, -inf }
0x138b   : > { %3475 = vmax.xlane.f32.xlu1 %v3474_v32 }
0x138c   : > { %v3477_v13 = vsel %vm1166_vm3, %v3473_v61, -inf }
0x138f   : > { %3478 = vmax.xlane.f32.xlu1 %v3477_v13 }
0x13a0   : > { %3370 = vrot.lane.b32.xlu1 %v11431_v21, %s12431_s1 }
0x13a5   : > { %v3347_v15 = vpop.xlane.xlu0 %3346 }
0x13a6   : > { %v3351_v45 = vsub.f32 %v3343_v38, %v3347_v15 }
0x13a7   : > { %v3350_v43 = vpop.xlane.xlu1 %3349 }
0x13a8   : > { %v3352_v36 = vsub.f32 %v3344_v24, %v3350_v43  ;;  %v3353_v59 = vmul.f32 1.442695, %v3351_v45 }
0x13aa   : > { %v3355_v46 = vmul.f32 1.442695, %v3352_v36 }
0x13ac   : > { %9704 = vpow2.f32 %v3355_v46 }
0x13ad   : > { %9706 = vpow2.f32 %v3353_v59 }
0x13b6   : > { %v9705_v39 = vpop.eup %9704 }
0x13b7   : > { %v3360_v2 = vsel %vm1166_vm3, %v9705_v39, 0.0  ;;  %v9707_v32 = vpop.eup %9706 }
0x13b8   : > { %3361 = vadd.xlane.f32.xlu0 %v3360_v2  ;;  %v3357_v13 = vsel %vm1166_vm3, %v9707_v32, 0.0 }
0x13c4   : > { %3358 = vadd.xlane.f32.xlu1 %v3357_v13 }
0x1418   : > { %v3476_v41 = vpop.xlane.xlu1 %3475 }
0x1419   : > { %v3480_v50 = vsub.f32 %v3472_v33, %v3476_v41 }
0x141b   : > { %v3482_v44 = vmul.f32 1.442695, %v3480_v50 }
0x141c   : > { %v3479_v31 = vpop.xlane.xlu1 %3478 }
0x141d   : > { %9708 = vpow2.f32 %v3482_v44  ;;  %v3481_v24 = vsub.f32 %v3473_v61, %v3479_v31 }
0x141f   : > { %v3484_v43 = vmul.f32 1.442695, %v3481_v24 }
0x1420   : > { %v3371_v36 = vpop.permute.xlu1 %3370 }
0x1421   : > { %9710 = vpow2.f32 %v3484_v43  ;;  %8772 = vmatpush3.bf16.msra.mxu1 %v3371_v36 }
0x1422   : > { %8783 = vmatprep.subr.bf16.mxu1 %v12439_v37 }
0x1427   : > { %v9709_v38 = vpop.eup %9708 }
0x1428   : > { %v3486_v46 = vsel %vm1166_vm3, %v9709_v38, 0.0 }
0x1429   : > { %3487 = vadd.xlane.f32.xlu1 %v3486_v46 }
0x142b   : > { %v9711_v15 = vpop.eup %9710 }
0x142c   : > { %v3489_v45 = vsel %vm1166_vm3, %v9711_v15, 0.0 }
0x142d   : > { %3490 = vadd.xlane.f32.xlu0 %v3489_v45 }
0x143a   : > { %3642 = vrot.lane.b32.xlu1 %v11400_v25, %s12440_s26 }
0x143e   : > { %3640 = vrot.lane.b32.xlu1 %v11407_v0, %s12440_s26 }
0x1443   : > { %3497 = vrot.lane.b32.xlu0 %v11431_v21, %s12432_s2 }
0x1445   : > { %v3362_v31 = vpop.xlane.xlu0 %3361 }
0x1446   : > { %9712 = vrcp.f32 %v3362_v31 }
0x1450   : > { %v9713_v33 = vpop.eup %9712 }
0x1451   : > { %v3359_v44 = vpop.xlane.xlu1 %3358  ;;  %v3366_v59 = vmul.f32 %v9713_v33, %v9705_v39 }
0x1452   : > { %9714 = vrcp.f32 %v3359_v44 }
0x145c   : > { %v9715_v61 = vpop.eup %9714 }
0x145d   : > { %v3365_v2 = vmul.f32 %v9715_v61, %v9707_v32 }
0x145f   : > { %v3367_v13 = vpack.c.bf16 %v3366_v59, %v3365_v2 }
0x1461   : > { %8774 = vmatmul.mubr.msk.bf16.vlgmr.msra.gmra.mrb[56].mxu1 %vm1166_vm3, %v3367_v13 }
0x1462   : > { %8785 = vmatprep.mubr.msk.bf16.mxu1 %vm10439_vm0, %v12439_v37 }
0x14b6   : > { %v3488_v41 = vpop.xlane.xlu1 %3487 }
0x14b7   : > { %9716 = vrcp.f32 %v3488_v41  ;;  %v3418_v41 = vpack.c.bf16 %v11249_v54, %v11249_v54 }
0x14ba   : > { %v3491_v50 = vpop.xlane.xlu0 %3490  ;;  %v3643_v39 = vpop.permute.xlu1 %3642 }
0x14bb   : > { %9718 = vrcp.f32 %v3491_v50  ;;  %v3648_v31 = vsel %vm1180_vm4, %v3643_v39, 0 }
0x14be   : > { %v3498_v24 = vpop.permute.xlu0 %3497  ;;  %v3641_v44 = vpop.permute.xlu1 %3640 }
0x14bf   : > { %8784 = vmatpush3.bf16.msra.mxu1 %v3498_v24 }
0x14c0   : > { %8801 = vmatprep.subr.bf16.mxu1 %v12439_v37 }
0x14c1   : > { %v9717_v43 = vpop.eup %9716 }
0x14c2   : > { %v3494_v46 = vmul.f32 %v9717_v43, %v9709_v38  ;;  %v3545_v38 = vpack.c.bf16 %v11251_v55, %v11251_v55 }
0x14c5   : > { %v9719_v36 = vpop.eup %9718 }
0x14c6   : > { %v3495_v45 = vmul.f32 %v9719_v36, %v9711_v15  ;;  %v11461_v15 = vsel %vm1666_vm7, %v3545_v38, 0 }
0x14c7   : > { %8790 = vmatpush3.bf16.msra.mxu0 %v11461_v15 }
0x14c8   : > { %v3496_v32 = vpack.c.bf16 %v3495_v45, %v3494_v46  ;;  %8795 = vmatprep.subr.bf16.mxu0 %v12439_v37  ;;  %v11468_v46 = vsel %vm1666_vm7, %v3418_v41, 0 }
0x14ca   : > { %8786 = vmatmul.mubr.msk.bf16.vlgmr.msra.gmra.mrb[60].mxu1 %vm1166_vm3, %v3496_v32 }
0x14cb   : > { %8802 = vmatpush3.bf16.xpose.msra.mxu1 %v3648_v31  ;;  %8803 = vmatprep.mubr.msk.bf16.mxu1 %vm10439_vm0, %v12439_v37 }
0x14cc   : > { %8807 = vmatprep.subr.bf16.mxu1 %v12439_v37 }
0x14d2   : > { %8804 = vmatmul.mubr.msk.bf16.vlgmr.msra.gmra.mrb[64].mxu1 %vm1180_vm4, %v3641_v44 }
0x14d3   : > { %8809 = vmatprep.mubr.msk.bf16.mxu1 %vm10439_vm0, %v12439_v37 }
0x1534   : > { %v3410_v33 = vpop.f32.mrb[56].mxu1 }
0x1535   : > { %v8775_v61 = vpop.f32.mrb[57].mxu1 }
0x1536   : > { %v3413_v59 = vpop.f32.mrb[58].mxu1 }
0x1537   : > { %v3417_v2 = vpack.c.bf16 %v3413_v59, %v3410_v33  ;;  %v8776_v13 = vpop.f32.mrb[59].mxu1 }
0x159d   : > { %v3537_v50 = vpop.f32.mrb[60].mxu1 }
0x159e   : > { %v8787_v24 = vpop.f32.mrb[61].mxu1 }
0x159f   : > { %v3540_v43 = vpop.f32.mrb[62].mxu1 }
0x15a0   : > { %v3544_v36 = vpack.c.bf16 %v3540_v43, %v3537_v50  ;;  %v8788_v55 = vpop.f32.mrb[63].mxu1 }
0x15a2   : > { %8792 = vmatmul.mubr.msk.bf16.vlgmr.msra.gmra.mrb[48].mxu0 %vm1180_vm4, %v3544_v36 }
0x15a3   : > { %8796 = vmatpush3.bf16.msra.mxu0 %v11468_v46  ;;  %8797 = vmatprep.mubr.msk.bf16.mxu0 %vm10439_vm0, %v12439_v37 }
0x15a4   : > { %8813 = vmatprep.subr.bf16.mxu0 %v12439_v37 }
0x15a5   : > { %v3684_v45 = vpop.f32.mrb[64].mxu1 }
0x15a6   : > { %v3685_v54 = vadd.f32 %v3684_v45, %v11183_v53  ;;  %v8805_v39 = vpop.f32.mrb[65].mxu1 }
0x15a7   : > { %v3687_v32 = vpop.f32.mrb[66].mxu1 }
0x15a8   : > { %v3691_v31 = vmul.f32 0.35355338, %v3685_v54  ;;  %v3688_v44 = vadd.f32 %v3687_v32, %v11183_v53  ;;  %v8806_v38 = vpop.f32.mrb[67].mxu1 }
0x15aa   : > { %v3692_v33 = vmul.f32 0.35355338, %v3688_v44  ;;  %v3693_v61 = vsel %vm1166_vm3, %v3691_v31, -inf }
0x15ab   : > { %3694 = vmax.xlane.f32.xlu1 %v3693_v61 }
0x15ac   : > { %v3696_v59 = vsel %vm1166_vm3, %v3692_v33, -inf }
0x15ad   : > { %3697 = vmax.xlane.f32.xlu0 %v3696_v59 }
0x15ae   : > { %8798 = vmatmul.mubr.msk.bf16.vlgmr.msra.gmra.mrb[48].mxu0 %vm1180_vm4, %v3417_v2 }
0x15af   : > { %8815 = vmatprep.mubr.msk.bf16.mxu0 %vm10439_vm0, %v12439_v37 }
0x15bc   : > { %3716 = vrot.lane.b32.xlu1 %v11431_v21, %s12428_s18 }
0x15c0   : > { %3814 = vrot.lane.b32.xlu1 %v11407_v0, %s12430_s7  ;;  %v1226_v0 = vld [vmem:[#allocation10] sm:$0x1] }
0x15c1   : > { %v3212_v32 = vadd.f32 %v11393_v8, %v1226_v0 }
0x1638   : > { %v3695_v13 = vpop.xlane.xlu1 %3694 }
0x1639   : > { %v3699_v41 = vsub.f32 %v3691_v31, %v3695_v13  ;;  %v8172_v31 = vmul.f32 -1.442695, %v3212_v32  ;;  %v8165_v13 = vld [vmem:[#allocation17] ss:$0 sm:$0xff] }
0x163a   : > { %v3698_v50 = vpop.xlane.xlu0 %3697 }
0x163b   : > { %v3701_v24 = vmul.f32 1.442695, %v3699_v41  ;;  %v3700_v43 = vsub.f32 %v3692_v33, %v3698_v50 }
0x163c   : > { %v3717_v36 = vpop.permute.xlu1 %3716 }
0x163d   : > { %9720 = vpow2.f32 %v3701_v24  ;;  %v3703_v55 = vmul.f32 1.442695, %v3700_v43  ;;  %8808 = vmatpush3.bf16.msra.mxu1 %v3717_v36  ;;  %v3028_v24 = vadd.f32 %v8165_v13, %v11395_v42 }
0x163e   : > { %8819 = vmatprep.subr.bf16.mxu1 %v12439_v37 }
0x163f   : > { %9722 = vpow2.f32 %v3703_v55 }
0x1640   : > { %9724 = vpow2.f32 %v8172_v31  ;;  %v3764_v31 = vpack.c.bf16 %v11259_v57, %v11259_v57 }
0x1647   : > { %v9721_v2 = vpop.eup %9720 }
0x1648   : > { %v3705_v45 = vsel %vm1166_vm3, %v9721_v2, 0.0 }
0x1649   : > { %v9723_v54 = vpop.eup %9722  ;;  %3706 = vadd.xlane.f32.xlu0 %v3705_v45  ;;  %v11497_v45 = vmul.f32 %v3028_v24, %v10997_v17 }
0x164a   : > { %v3708_v39 = vsel %vm1166_vm3, %v9723_v54, 0.0  ;;  %v9725_v44 = vpop.eup %9724 }
0x164b   : > { %v3220_v38 = vadd.f32 1.0, %v9725_v44  ;;  %v11517_v44 = vsel %vm1666_vm7, %v3764_v31, 0 }
0x164c   : > { %8814 = vmatpush3.bf16.msra.mxu0 %v11517_v44 }
0x164d   : > { %3709 = vadd.xlane.f32.xlu0 %v3708_v39  ;;  %9726 = vrcp.f32 %v3220_v38  ;;  %8825 = vmatprep.subr.bf16.mxu0 %v12439_v37 }
0x1657   : > { %v9727_v59 = vpop.eup %9726 }
0x1658   : > { %v3277_v41 = vadd.f32 1.0, %v9727_v59 }
0x1663   : > { %3816 = vrot.lane.b32.xlu0 %v11400_v25, %s12430_s7  ;;  %v11494_v25 = vrot.slane %v3277_v41, %v10948_v35 }
0x1665   : > { %v3997_v0 = vmul.f32 %v11494_v25, %v11497_v45 }
0x1667   : > { %v11506_v42 = vpack.c.bf16 %v3997_v0, %v3997_v0 }
0x16d6   : > { %v3707_v33 = vpop.xlane.xlu0 %3706 }
0x16d7   : > { %9728 = vrcp.f32 %v3707_v33 }
0x16da   : > { %v3710_v61 = vpop.xlane.xlu0 %3709 }
0x16db   : > { %9730 = vrcp.f32 %v3710_v61 }
0x16de   : > { %v3817_v55 = vpop.permute.xlu0 %3816 }
0x16df   : > { %v3822_v32 = vsel %vm1180_vm4, %v3817_v55, 0 }
0x16e1   : > { %v9729_v50 = vpop.eup %9728 }
0x16e2   : > { %v3713_v8 = vmul.f32 %v9729_v50, %v9721_v2  ;;  %v3815_v2 = vpop.permute.xlu1 %3814 }
0x16e5   : > { %v9731_v43 = vpop.eup %9730 }
0x16e6   : > { %v3714_v36 = vmul.f32 %v9731_v43, %v9723_v54  ;;  %v4004_v54 = vsel %vm1180_vm4, %v11506_v42, 0 }
0x16e8   : > { %v3715_v39 = vpack.c.bf16 %v3714_v36, %v3713_v8 }
0x16ea   : > { %8810 = vmatmul.mubr.msk.bf16.vlgmr.msra.gmra.mrb[68].mxu1 %vm1166_vm3, %v3715_v39 }
0x16eb   : > { %8820 = vmatpush3.bf16.xpose.msra.mxu1 %v3822_v32  ;;  %8821 = vmatprep.mubr.msk.bf16.mxu1 %vm10439_vm0, %v12439_v37 }
0x16ec   : > { %8837 = vmatprep.subr.bf16.mxu1 %v12439_v37 }
0x16f2   : > { %8822 = vmatmul.mubr.msk.bf16.vlgmr.msra.gmra.mrb[72].mxu1 %vm1180_vm4, %v3815_v2 }
0x16f3   : > { %8838 = vmatpush3.bf16.xpose.msra.mxu1 %v4004_v54  ;;  %8839 = vmatprep.mubr.msk.bf16.mxu1 %vm10439_vm0, %v12439_v37 }
0x16f4   : > { %8843 = vmatprep.subr.bf16.mxu1 %v12439_v37 }
0x17bd   : > { %v3756_v38 = vpop.f32.mrb[68].mxu1 }
0x17be   : > { %v8811_v33 = vpop.f32.mrb[69].mxu1 }
0x17bf   : > { %v3759_v61 = vpop.f32.mrb[70].mxu1 }
0x17c0   : > { %v3763_v59 = vpack.c.bf16 %v3759_v61, %v3756_v38  ;;  %v8812_v13 = vpop.f32.mrb[71].mxu1 }
0x17c2   : > { %8816 = vmatmul.mubr.msk.bf16.vlgmr.msra.gmra.mrb[48].mxu0 %vm1180_vm4, %v3763_v59 }
0x17c3   : > { %8827 = vmatprep.mubr.msk.bf16.mxu0 %vm10439_vm0, %v12439_v37 }
0x17c5   : > { %v3858_v41 = vpop.f32.mrb[72].mxu1 }
0x17c6   : > { %v3859_v57 = vadd.f32 %v3858_v41, %v11183_v53  ;;  %v8823_v50 = vpop.f32.mrb[73].mxu1 }
0x17c7   : > { %v3861_v24 = vpop.f32.mrb[74].mxu1 }
0x17c8   : > { %v3865_v43 = vmul.f32 0.35355338, %v3859_v57  ;;  %v3862_v8 = vadd.f32 %v3861_v24, %v11183_v53  ;;  %v8824_v36 = vpop.f32.mrb[75].mxu1 }
0x17ca   : > { %v3866_v55 = vmul.f32 0.35355338, %v3862_v8  ;;  %v3867_v39 = vsel %vm1166_vm3, %v3865_v43, -inf }
0x17cb   : > { %3868 = vmax.xlane.f32.xlu1 %v3867_v39 }
0x17cc   : > { %v3870_v0 = vsel %vm1166_vm3, %v3866_v55, -inf }
0x17cd   : > { %3871 = vmax.xlane.f32.xlu0 %v3870_v0 }
0x1858   : > { %v3869_v32 = vpop.xlane.xlu1 %3868 }
0x1859   : > { %v3873_v2 = vsub.f32 %v3865_v43, %v3869_v32 }
0x185a   : > { %v3872_v54 = vpop.xlane.xlu0 %3871 }
0x185b   : > { %v3875_v31 = vmul.f32 1.442695, %v3873_v2  ;;  %v3874_v38 = vsub.f32 %v3866_v55, %v3872_v54 }
0x185d   : > { %9732 = vpow2.f32 %v3875_v31  ;;  %v3877_v33 = vmul.f32 1.442695, %v3874_v38 }
0x185f   : > { %9734 = vpow2.f32 %v3877_v33 }
0x1867   : > { %v9733_v61 = vpop.eup %9732 }
0x1868   : > { %v3879_v59 = vsel %vm1166_vm3, %v9733_v61, 0.0 }
0x1869   : > { %v9735_v13 = vpop.eup %9734  ;;  %3880 = vadd.xlane.f32.xlu0 %v3879_v59 }
0x186a   : > { %v3882_v41 = vsel %vm1166_vm3, %v9735_v13, 0.0 }
0x186b   : > { %3883 = vadd.xlane.f32.xlu1 %v3882_v41 }
0x187c   : > { %3993 = vrot.lane.b32.xlu1 %v11497_v45, %s12426_s22 }
0x187f   : > { %3890 = vrot.lane.b32.xlu0 %v11431_v21, %s12433_s3 }
0x1880   : > { %4115 = vrot.lane.b32.xlu1 %v11506_v42, %s12427_s11 }
0x1883   : > { %4320 = vrot.lane.b32.xlu0 %v11506_v42, %s12440_s26 }
0x18f6   : > { %v3881_v57 = vpop.xlane.xlu0 %3880 }
0x18f7   : > { %9736 = vrcp.f32 %v3881_v57 }
0x18f8   : > { %v3884_v50 = vpop.xlane.xlu1 %3883 }
0x18f9   : > { %9738 = vrcp.f32 %v3884_v50 }
0x18fa   : > { %v3891_v24 = vpop.permute.xlu0 %3890 }
0x18fb   : > { %8826 = vmatpush3.bf16.msra.mxu0 %v3891_v24 }
0x18fc   : > { %v3994_v43 = vpop.permute.xlu1 %3993  ;;  %8831 = vmatprep.subr.bf16.mxu0 %v12439_v37 }
0x18fd   : > { %v3996_v8 = vmul.f32 %v3994_v43, %v11494_v25  ;;  %v3938_v25 = vpack.c.bf16 %v11261_v34, %v11261_v34 }
0x18fe   : > { %v4321_v24 = vpop.permute.xlu0 %4320 }
0x18ff   : > { %v11540_v36 = vpack.c.bf16 %v3996_v8, %v3996_v8  ;;  %v11556_v2 = vsel %vm1666_vm7, %v3938_v25, 0  ;;  %v4326_v8 = vsel %vm1180_vm4, %v4321_v24, 0 }
0x1901   : > { %v9737_v21 = vpop.eup %9736  ;;  %4112 = vrot.lane.b32.xlu1 %v11540_v36, %s12427_s11  ;;  %8840 = vmatmul.mubr.msk.bf16.vlgmr.msra.gmra.mrb[76].mxu1 %vm1180_vm4, %v11540_v36 }
0x1902   : > { %8845 = vmatprep.mubr.msk.bf16.mxu1 %vm10439_vm0, %v12439_v37  ;;  %v3887_v39 = vmul.f32 %v9737_v21, %v9733_v61 }
0x1903   : > { %v9739_v55 = vpop.eup %9738 }
0x1904   : > { %v3888_v0 = vmul.f32 %v9739_v55, %v9735_v13  ;;  %v4116_v13 = vpop.permute.xlu1 %4115  ;;  %v8167_v55 = vld [vmem:[#allocation20] ss:$0 sm:$0xff] }
0x1905   : > { %4318 = vrot.lane.b32.xlu1 %v11540_v36, %s12440_s26  ;;  %v4121_v34 = vsel %vm1180_vm4, %v4116_v13, 0 }
0x1906   : > { %v3889_v32 = vpack.c.bf16 %v3888_v0, %v3887_v39 }
0x1908   : > { %8828 = vmatmul.mubr.msk.bf16.vlgmr.msra.gmra.mrb[64].mxu0 %vm1166_vm3, %v3889_v32 }
0x1909   : > { %8833 = vmatprep.mubr.msk.bf16.mxu0 %vm10439_vm0, %v12439_v37  ;;  %8832 = vmatpush3.bf16.msra.mxu0 %v11556_v2 }
0x190a   : > { %8849 = vmatprep.subr.bf16.mxu0 %v12439_v37 }
0x1973   : > { %v4113_v43 = vpop.permute.xlu1 %4112 }
0x1977   : > { %v4319_v21 = vpop.permute.xlu1 %4318 }
0x19d4   : > { %v11560_v54 = vpop.f32.mrb[76].mxu1 }
0x19d5   : > { %v8841_v31 = vpop.f32.mrb[77].mxu1 }
0x19d6   : > { %v4043_v38 = vpop.f32.mrb[78].mxu1 }
0x19d7   : > { %v8842_v33 = vpop.f32.mrb[79].mxu1 }
0x19db   : > { %v3930_v61 = vpop.f32.mrb[64].mxu0 }
0x19dc   : > { %v8829_v59 = vpop.f32.mrb[65].mxu0 }
0x19dd   : > { %v3933_v41 = vpop.f32.mrb[66].mxu0 }
0x19de   : > { %v3937_v57 = vpack.c.bf16 %v3933_v41, %v3930_v61  ;;  %v8830_v50 = vpop.f32.mrb[67].mxu0 }
0x19e0   : > { %8834 = vmatmul.mubr.msk.bf16.vlgmr.msra.gmra.mrb[48].mxu0 %vm1180_vm4, %v3937_v57 }
0x19e1   : > { %8850 = vmatpush3.bf16.xpose.msra.mxu0 %v4121_v34  ;;  %8851 = vmatprep.mubr.msk.bf16.mxu0 %vm10439_vm0, %v12439_v37 }
0x19e2   : > { %8873 = vmatprep.subr.bf16.mxu0 %v12439_v37 }
0x19e8   : > { %8852 = vmatmul.mubr.msk.bf16.vlgmr.msra.gmra.mrb[68].mxu0 %vm1180_vm4, %v4113_v43 }
0x19e9   : > { %8874 = vmatpush3.bf16.xpose.msra.mxu0 %v4326_v8  ;;  %8875 = vmatprep.mubr.msk.bf16.mxu0 %vm10439_vm0, %v12439_v37 }
0x19ea   : > { %8879 = vmatprep.subr.bf16.mxu0 %v12439_v37 }
0x19f0   : > { %8876 = vmatmul.mubr.msk.bf16.vlgmr.msra.gmra.mrb[72].mxu0 %vm1180_vm4, %v4319_v21 }
0x19f1   : > { %8881 = vmatprep.mubr.msk.bf16.mxu0 %vm10439_vm0, %v12439_v37 }
0x1ab3   : > { %v3979_v39 = vpop.f32.mrb[48].mxu0 }
0x1ab4   : > { %v11575_v0 = vadd.f32 %v8167_v55, %v3979_v39  ;;  %v8835_v32 = vpop.f32.mrb[49].mxu0 }
0x1ab5   : > { %v3982_v25 = vpop.f32.mrb[50].mxu0 }
0x1ab6   : > { %v11577_v31 = vadd.f32 %v8167_v55, %v3982_v25  ;;  %v8836_v38 = vpop.f32.mrb[51].mxu0  ;;  %v4641_v33 = vmax.f32 %v11575_v0, 0.0  ;;  %v11589_v25 = vpack.c.bf16 %v11497_v45, %v11497_v45 }
0x1ab8   : > { %v4642_v61 = vmax.f32 %v11577_v31, 0.0  ;;  %v4736_v59 = vpack.c.bf16 %v11577_v31, %v11575_v0 }
0x1aba   : > { %v11583_v13 = vpack.c.bf16 %v4642_v61, %v4641_v33 }
0x1abb   : > { %v4157_v41 = vpop.f32.mrb[68].mxu0 }
0x1abc   : > { %v8853_v57 = vpop.f32.mrb[69].mxu0  ;;  %v4158_v38 = vadd.f32 %v4157_v41, %v11028_v48 }
0x1abd   : > { %v4160_v50 = vpop.f32.mrb[70].mxu0 }
0x1abe   : > { %v8854_v34 = vpop.f32.mrb[71].mxu0  ;;  %v4163_v33 = vmul.f32 0.35355338, %v4158_v38 }
0x1ac0   : > { %v4164_v61 = vsel %vm1180_vm4, %v4163_v33, -inf }
0x1ac3   : > { %v4362_v24 = vpop.f32.mrb[72].mxu0 }
0x1ac4   : > { %v4363_v43 = vadd.f32 %v4362_v24, %v11028_v48  ;;  %v8877_v8 = vpop.f32.mrb[73].mxu0 }
0x1ac5   : > { %v4365_v21 = vpop.f32.mrb[74].mxu0 }
0x1ac6   : > { %v4368_v55 = vmul.f32 0.35355338, %v4363_v43  ;;  %v8878_v39 = vpop.f32.mrb[75].mxu0 }
0x1ac8   : > { %v4369_v32 = vsel %vm1180_vm4, %v4368_v55, -inf }
0x1ac9   : > { %4370 = vmax.xlane.f32.xlu0 %v4369_v32 }
0x1adf   : > { %4381 = vrot.lane.b32.xlu0 %v11589_v25, %s12428_s18 }
0x1ae3   : > { %4478 = vrot.lane.b32.xlu0 %v11540_v36, %s12430_s7 }
0x1b02   : > { %4165 = vmax.xlane.f32.xlu0 %v4164_v61 }
0x1b56   : > { %v4371_v57 = vpop.xlane.xlu0 %4370 }
0x1b57   : > { %v4372_v50 = vsub.f32 %v4368_v55, %v4371_v57  ;;  %v4041_v55 = vadd.f32 %v11560_v54, %v11028_v48 }
0x1b59   : > { %v4373_v34 = vmul.f32 1.442695, %v4372_v50  ;;  %v4046_v32 = vmul.f32 0.35355338, %v4041_v55 }
0x1b5a   : > { %v4382_v24 = vpop.permute.xlu0 %4381 }
0x1b5b   : > { %9740 = vpow2.f32 %v4373_v34  ;;  %v4387_v45 = vsel %vm1666_vm7, %v4382_v24, 0  ;;  %v4047_v38 = vsel %vm1180_vm4, %v4046_v32, -inf }
0x1b5c   : > { %8880 = vmatpush3.bf16.msra.mxu0 %v4387_v45 }
0x1b5d   : > { %8891 = vmatprep.subr.bf16.mxu0 %v12439_v37 }
0x1b5e   : > { %v4479_v36 = vpop.permute.xlu0 %4478 }
0x1b65   : > { %v9741_v43 = vpop.eup %9740 }
0x1b66   : > { %v4375_v8 = vsel %vm1180_vm4, %v9741_v43, 0.0 }
0x1b67   : > { %4376 = vadd.xlane.f32.xlu1 %v4375_v8 }
0x1b78   : > { %4480 = vrot.lane.b32.xlu1 %v11506_v42, %s12430_s7 }
0x1b8f   : > { %v4166_v41 = vpop.xlane.xlu0 %4165 }
0x1b90   : > { %v4167_v21 = vsub.f32 %v4163_v33, %v4166_v41 }
0x1b92   : > { %v4168_v39 = vmul.f32 1.442695, %v4167_v21 }
0x1b94   : > { %9742 = vpow2.f32 %v4168_v39 }
0x1b9c   : > { %4048 = vmax.xlane.f32.xlu1 %v4047_v38 }
0x1b9e   : > { %v11605_v61 = vpop.eup %9742 }
0x1b9f   : > { %v4170_v57 = vsel %vm1180_vm4, %v11605_v61, 0.0 }
0x1ba0   : > { %4171 = vadd.xlane.f32.xlu1 %v4170_v57 }
0x1bb1   : > { %4176 = vrot.lane.b32.xlu1 %v11589_v25, %s12432_s2 }
0x1bf4   : > { %v4377_v42 = vpop.xlane.xlu1 %4376 }
0x1bf5   : > { %9744 = vrcp.f32 %v4377_v42 }
0x1bf8   : > { %v4481_v34 = vpop.permute.xlu1 %4480 }
0x1bf9   : > { %v4486_v24 = vsel %vm1180_vm4, %v4481_v34, 0 }
0x1bff   : > { %v9745_v33 = vpop.eup %9744 }
0x1c00   : > { %v4379_v50 = vmul.f32 %v9745_v33, %v9741_v43 }
0x1c02   : > { %v4380_v54 = vpack.c.bf16 %v4379_v50, %v4379_v50 }
0x1c04   : > { %8882 = vmatmul.mubr.msk.bf16.vlgmr.msra.gmra.mrb[76].mxu0 %vm1180_vm4, %v4380_v54 }
0x1c05   : > { %8892 = vmatpush3.bf16.xpose.msra.mxu0 %v4486_v24  ;;  %8893 = vmatprep.mubr.msk.bf16.mxu0 %vm10439_vm0, %v12439_v37 }
0x1c06   : > { %8897 = vmatprep.subr.bf16.mxu0 %v12439_v37 }
0x1c0c   : > { %8894 = vmatmul.mubr.msk.bf16.vlgmr.msra.gmra.mrb[80].mxu0 %vm1180_vm4, %v4479_v36 }
0x1c0d   : > { %8899 = vmatprep.mubr.msk.bf16.mxu0 %vm10439_vm0, %v12439_v37 }
0x1c29   : > { %v4049_v45 = vpop.xlane.xlu1 %4048 }
0x1c2a   : > { %v4050_v8 = vsub.f32 %v4046_v32, %v4049_v45 }
0x1c2c   : > { %v4051_v43 = vmul.f32 1.442695, %v4050_v8 }
0x1c2e   : > { %9746 = vpow2.f32 %v4051_v43 }
0x1c38   : > { %v9747_v54 = vpop.eup %9746 }
0x1c39   : > { %v4053_v32 = vsel %vm1180_vm4, %v9747_v54, 0.0 }
0x1cd7   : > { %v11619_v41 = vpop.f32.mrb[76].mxu0 }
0x1cd8   : > { %v8883_v21 = vpop.f32.mrb[77].mxu0 }
0x1cd9   : > { %v4426_v39 = vpop.f32.mrb[78].mxu0  ;;  %v4172_v21 = vpop.xlane.xlu1 %4171 }
0x1cda   : > { %v8884_v55 = vpop.f32.mrb[79].mxu0 }
0x1cdf   : > { %v4522_v38 = vpop.f32.mrb[80].mxu0 }
0x1ce0   : > { %v4523_v57 = vadd.f32 %v4522_v38, %v11028_v48  ;;  %v8895_v42 = vpop.f32.mrb[81].mxu0 }
0x1ce1   : > { %v4525_v33 = vpop.f32.mrb[82].mxu0 }
0x1ce2   : > { %v4528_v50 = vmul.f32 0.35355338, %v4523_v57  ;;  %v8896_v34 = vpop.f32.mrb[83].mxu0 }
0x1ce3   : > { %v4177_v34 = vpop.permute.xlu1 %4176 }
0x1ce4   : > { %v4529_v36 = vsel %vm1180_vm4, %v4528_v50, -inf }
0x1ce5   : > { %4530 = vmax.xlane.f32.xlu0 %v4529_v36 }
0x1ce9   : > { %4054 = vadd.xlane.f32.xlu0 %v4053_v32 }
0x1cff   : > { %4061 = vrot.lane.b32.xlu0 %v11589_v25, %s12431_s1 }
0x1d03   : > { %4541 = vrot.lane.b32.xlu0 %v11589_v25, %s12433_s3 }
0x1d72   : > { %v4531_v24 = vpop.xlane.xlu0 %4530 }
0x1d73   : > { %v4532_v45 = vsub.f32 %v4528_v50, %v4531_v24  ;;  %v4182_v24 = vsel %vm1666_vm7, %v4177_v34, 0  ;;  %v4429_v34 = vpack.c.bf16 %v11619_v41, %v11619_v41 }
0x1d75   : > { %v4533_v8 = vmul.f32 1.442695, %v4532_v45 }
0x1d76   : > { %v4055_v43 = vpop.xlane.xlu0 %4054 }
0x1d77   : > { %9748 = vpow2.f32 %v4533_v8 }
0x1d78   : > { %9750 = vrcp.f32 %v4055_v43 }
0x1d79   : > { %9752 = vrcp.f32 %v4172_v21 }
0x1d7a   : > { %v4062_v39 = vpop.permute.xlu0 %4061 }
0x1d7b   : > { %v4067_v55 = vsel %vm1666_vm7, %v4062_v39, 0 }
0x1d7c   : > { %8844 = vmatpush3.bf16.msra.mxu1 %v4067_v55 }
0x1d7d   : > { %8855 = vmatprep.subr.bf16.mxu1 %v12439_v37 }
0x1d7e   : > { %v4542_v38 = vpop.permute.xlu0 %4541 }
0x1d7f   : > { %v4547_v57 = vsel %vm1666_vm7, %v4542_v38, 0 }
0x1d80   : > { %8898 = vmatpush3.bf16.msra.mxu0 %v4547_v57 }
0x1d81   : > { %v9749_v42 = vpop.eup %9748  ;;  %8909 = vmatprep.subr.bf16.mxu0 %v12439_v37 }
0x1d82   : > { %v9751_v25 = vpop.eup %9750  ;;  %v4535_v33 = vsel %vm1180_vm4, %v9749_v42, 0.0 }
0x1d83   : > { %4536 = vadd.xlane.f32.xlu1 %v4535_v33  ;;  %v4057_v50 = vmul.f32 %v9751_v25, %v9747_v54  ;;  %v9753_v32 = vpop.eup %9752  ;;  %v4225_v54 = vpack.c.bf16 %v11356_v51, %v11356_v51  ;;  %v9862_v33 = vld [vmem:[#allocation22 + $0x18] sm:$0xff] }
0x1d84   : > { %v4174_v45 = vmul.f32 %v9753_v32, %v11605_v61 }
0x1d85   : > { %v4058_v36 = vpack.c.bf16 %v4057_v50, %v4057_v50  ;;  %v11645_v43 = vsel %vm1666_vm7, %v4225_v54, 0  ;;  %v4590_v50 = vpack.c.bf16 %v9862_v33, %v9862_v33  ;;  %v9863_v54 = vld [vmem:[#allocation2] ss:$0 sm:$0xff]  ;;  %v9864_v33 = vld [vmem:[#allocation5] ss:$0 sm:$0xff] }
0x1d86   : > { %v4175_v8 = vpack.c.bf16 %v4174_v45, %v4174_v45 }
0x1d87   : > { %8846 = vmatmul.mubr.msk.bf16.vlgmr.msra.gmra.mrb[80].mxu1 %vm1180_vm4, %v4058_v36 }
0x1d88   : > { %8856 = vmatpush3.bf16.msra.mxu1 %v4182_v24  ;;  %8857 = vmatprep.mubr.msk.bf16.mxu1 %vm10439_vm0, %v12439_v37 }
0x1d89   : > { %8861 = vmatprep.subr.bf16.mxu1 %v12439_v37 }
0x1d8f   : > { %8858 = vmatmul.mubr.msk.bf16.vlgmr.msra.gmra.mrb[84].mxu1 %vm1180_vm4, %v4175_v8 }
0x1d90   : > { %8863 = vmatprep.mubr.msk.bf16.mxu1 %vm10439_vm0, %v12439_v37  ;;  %8862 = vmatpush3.bf16.msra.mxu1 %v11645_v43 }
0x1d91   : > { %8867 = vmatprep.subr.bf16.mxu1 %v12439_v37 }
0x1e10   : > { %v4537_v21 = vpop.xlane.xlu1 %4536 }
0x1e11   : > { %9754 = vrcp.f32 %v4537_v21 }
0x1e1b   : > { %v9755_v61 = vpop.eup %9754 }
0x1e1c   : > { %v4539_v39 = vmul.f32 %v9755_v61, %v9749_v42 }
0x1e1e   : > { %v4540_v55 = vpack.c.bf16 %v4539_v39, %v4539_v39 }
0x1e20   : > { %8900 = vmatmul.mubr.msk.bf16.vlgmr.msra.gmra.mrb[84].mxu0 %vm1180_vm4, %v4540_v55 }
0x1e21   : > { %8910 = vmatpush3.bf16.msra.mxu0 %v10912_v20  ;;  %8913 = vmatprep.mubr.msk.bf16.mxu0 %vm10439_vm0, %v12439_v37 }
0x1e22   : > { %8911 = vmatprep.subr.bf16.mxu0 %v12439_v37 }
0x1e25   : > { %8912 = vmatpush3.bf16.msra.mxu0 %v10923_v26 }
0x1e26   : > { %8925 = vmatprep.subr.bf16.mxu0 %v12439_v37 }
0x1e28   : > { %8914 = vmatmul.mubr.msk.bf16.vlgmr.msra.gmra.mrb[88].mxu0 %vm1263_vm1, %v11583_v13  ;;  %v4110_v13 = vpack.c.bf16 %v11354_v49, %v11354_v49  ;;  %v4430_v49 = vpack.c.bf16 %v11364_v40, %v11364_v40  ;;  %v11693_v40 = vsel %vm1666_vm7, %v4590_v50, 0 }
0x1e29   : > { %8926 = vmatpush3.bf16.msra.mxu0 %v10965_v5  ;;  %8929 = vmatprep.mubr.msk.bf16.mxu0 %vm10439_vm0, %v12439_v37 }
0x1e2a   : > { %8927 = vmatprep.subr.bf16.mxu0 %v12439_v37  ;;  %v11673_v42 = vsel %vm1666_vm7, %v4110_v13, 0 }
0x1e2d   : > { %8928 = vmatpush3.bf16.msra.mxu0 %v10977_v12 }
0x1e2e   : > { %8941 = vmatprep.subr.bf16.mxu0 %v12439_v37 }
0x1e30   : > { %8930 = vmatmul.mubr.msk.bf16.vlgmr.msra.gmra.mrb[92].mxu0 %vm1263_vm1, %v4736_v59  ;;  %v11683_v59 = vsel %vm1666_vm7, %v4430_v49, 0 }
0x1e31   : > { %8943 = vmatprep.mubr.msk.bf16.mxu0 %vm10439_vm0, %v12439_v37 }
0x1e5a   : > { %v4103_v20 = vpop.f32.mrb[80].mxu1 }
0x1e5b   : > { %v8847_v26 = vpop.f32.mrb[81].mxu1  ;;  %v4109_v31 = vpack.c.bf16 %v4103_v20, %v4103_v20 }
0x1e5c   : > { %v4106_v5 = vpop.f32.mrb[82].mxu1 }
0x1e5d   : > { %v8848_v51 = vpop.f32.mrb[83].mxu1 }
0x1e5e   : > { %v8169_v51 = vld [vmem:[#allocation23] ss:$0 sm:$0xff] }
0x1e62   : > { %v4218_v38 = vpop.f32.mrb[84].mxu1 }
0x1e63   : > { %v4224_v57 = vpack.c.bf16 %v4218_v38, %v4218_v38  ;;  %v8859_v12 = vpop.f32.mrb[85].mxu1 }
0x1e64   : > { %v4221_v25 = vpop.f32.mrb[86].mxu1 }
0x1e65   : > { %v8860_v0 = vpop.f32.mrb[87].mxu1  ;;  %8864 = vmatmul.mubr.msk.bf16.vlgmr.msra.gmra.mrb[48].mxu1 %vm1180_vm4, %v4224_v57 }
0x1e66   : > { %8868 = vmatpush3.bf16.msra.mxu1 %v11673_v42  ;;  %8869 = vmatprep.mubr.msk.bf16.mxu1 %vm10439_vm0, %v12439_v37 }
0x1e67   : > { %8885 = vmatprep.subr.bf16.mxu1 %v12439_v37 }
0x1e71   : > { %8870 = vmatmul.mubr.msk.bf16.vlgmr.msra.gmra.mrb[48].mxu1 %vm1180_vm4, %v4109_v31 }
0x1e72   : > { %8886 = vmatpush3.bf16.msra.mxu1 %v11683_v59  ;;  %8887 = vmatprep.mubr.msk.bf16.mxu1 %vm10439_vm0, %v12439_v37 }
0x1e73   : > { %8903 = vmatprep.subr.bf16.mxu1 %v12439_v37 }
0x1e7d   : > { %8888 = vmatmul.mubr.msk.bf16.vlgmr.msra.gmra.mrb[48].mxu1 %vm1180_vm4, %v4429_v34 }
0x1e7e   : > { %8904 = vmatpush3.bf16.msra.mxu1 %v11693_v40  ;;  %8905 = vmatprep.mubr.msk.bf16.mxu1 %vm10439_vm0, %v12439_v37 }
0x1e7f   : > { %8917 = vmatprep.subr.bf16.mxu1 %v12439_v37 }
0x1ef3   : > { %v4583_v36 = vpop.f32.mrb[84].mxu0 }
0x1ef4   : > { %v4589_v32 = vpack.c.bf16 %v4583_v36, %v4583_v36  ;;  %v8901_v24 = vpop.f32.mrb[85].mxu0 }
0x1ef5   : > { %v4586_v45 = vpop.f32.mrb[86].mxu0 }
0x1ef6   : > { %v8902_v8 = vpop.f32.mrb[87].mxu0  ;;  %8906 = vmatmul.mubr.msk.bf16.vlgmr.msra.gmra.mrb[48].mxu1 %vm1180_vm4, %v4589_v32 }
0x1ef7   : > { %8918 = vmatpush3.bf16.msra.mxu1 %v10917_v23  ;;  %8921 = vmatprep.mubr.msk.bf16.mxu1 %vm10439_vm0, %v12439_v37 }
0x1ef8   : > { %8919 = vmatprep.subr.bf16.mxu1 %v12439_v37 }
0x1efb   : > { %v4681_v41 = vpop.f32.mrb[88].mxu0  ;;  %8920 = vmatpush3.bf16.msra.mxu1 %v10929_v29 }
0x1efc   : > { %v4682_v21 = vadd.f32 %v9863_v54, %v4681_v41  ;;  %v8915_v61 = vpop.f32.mrb[89].mxu0  ;;  %8933 = vmatprep.subr.bf16.mxu1 %v12439_v37 }
0x1efd   : > { %v4684_v39 = vpop.f32.mrb[90].mxu0 }
0x1efe   : > { %v4685_v55 = vadd.f32 %v9863_v54, %v4684_v39  ;;  %v8916_v20 = vpop.f32.mrb[91].mxu0  ;;  %v4688_v26 = vmul.f32 %v4682_v21, %v10995_v14 }
0x1f00   : > { %v4689_v23 = vmul.f32 %v4685_v55, %v10999_v19 }
0x1f02   : > { %v11709_v5 = vpack.c.bf16 %v4689_v23, %v4688_v26 }
0x1f04   : > { %4828 = vrot.lane.b32.xlu0 %v11709_v5, %s12426_s22 }
0x1f76   : > { %v4829_v45 = vpop.permute.xlu0 %4828 }
0x1fc9   : > { %v4631_v13 = vpop.f32.mrb[48].mxu1 }
0x1fca   : > { %v9282_v29 = vadd.f32 %v8169_v51, %v4631_v13  ;;  %v8907_v38 = vpop.f32.mrb[49].mxu1 }
0x1fcb   : > { %v4634_v57 = vpop.f32.mrb[50].mxu1 }
0x1fcc   : > { %v4690_v12 = vmax.f32 %v9282_v29, 0.0  ;;  %v8908_v25 = vpop.f32.mrb[51].mxu1  ;;  %v4781_v49 = vpack.c.bf16 %v9282_v29, %v9282_v29 }
0x1fce   : > { %v4691_v0 = vpack.c.bf16 %v4690_v12, %v4690_v12 }
0x1fd0   : > { %8922 = vmatmul.mubr.msk.bf16.vlgmr.msra.gmra.mrb[88].mxu1 %vm1263_vm1, %v4691_v0 }
0x1fd1   : > { %8934 = vmatpush3.bf16.msra.mxu1 %v10963_v3  ;;  %8937 = vmatprep.mubr.msk.bf16.mxu1 %vm10439_vm0, %v12439_v37 }
0x1fd2   : > { %8935 = vmatprep.subr.bf16.mxu1 %v12439_v37 }
0x1fd5   : > { %8936 = vmatpush3.bf16.msra.mxu1 %v10974_v11 }
0x1fd6   : > { %8947 = vmatprep.subr.bf16.mxu1 %v12439_v37 }
0x1fd8   : > { %8938 = vmatmul.mubr.msk.bf16.vlgmr.msra.gmra.mrb[92].mxu1 %vm1263_vm1, %v4781_v49 }
0x1fd9   : > { %8949 = vmatprep.mubr.msk.bf16.mxu1 %vm10439_vm0, %v12439_v37 }
0x20a3   : > { %v4729_v31 = vpop.f32.mrb[88].mxu1 }
0x20a4   : > { %v4730_v50 = vadd.f32 %v9864_v33, %v4729_v31  ;;  %v8923_v34 = vpop.f32.mrb[89].mxu1 }
0x20a5   : > { %v4732_v3 = vpop.f32.mrb[90].mxu1 }
0x20a6   : > { %v4735_v36 = vmul.f32 %v4730_v50, %v10997_v17  ;;  %v8924_v32 = vpop.f32.mrb[91].mxu1 }
0x20a8   : > { %v11724_v24 = vpack.c.bf16 %v4735_v36, %v4735_v36 }
0x20aa   : > { %4955 = vrot.lane.b32.xlu0 %v11724_v24, %s12427_s11  ;;  %v4834_v11 = vsel %vm1180_vm4, %v11724_v24, 0 }
0x20ab   : > { %8942 = vmatpush3.bf16.xpose.msra.mxu0 %v4834_v11 }
0x20ac   : > { %8953 = vmatprep.subr.bf16.mxu0 %v12439_v37 }
0x20ae   : > { %4953 = vrot.lane.b32.xlu0 %v11709_v5, %s12441_s4 }
0x20b2   : > { %8944 = vmatmul.mubr.msk.bf16.vlgmr.msra.gmra.mrb[96].mxu0 %vm1180_vm4, %v4829_v45 }
0x20b3   : > { %8955 = vmatprep.mubr.msk.bf16.mxu0 %vm10439_vm0, %v12439_v37 }
0x211c   : > { %v4956_v8 = vpop.permute.xlu0 %4955 }
0x211d   : > { %v4961_v41 = vsel %vm1180_vm4, %v4956_v8, 0 }
0x211e   : > { %8954 = vmatpush3.bf16.xpose.msra.mxu0 %v4961_v41 }
0x211f   : > { %8965 = vmatprep.subr.bf16.mxu0 %v12439_v37 }
0x2120   : > { %v4954_v54 = vpop.permute.xlu0 %4953 }
0x2125   : > { %8956 = vmatmul.mubr.msk.bf16.vlgmr.msra.gmra.mrb[100].mxu0 %vm1180_vm4, %v4954_v54 }
0x2126   : > { %8966 = vmatpush3.bf16.msra.mxu0 %v11067_v1  ;;  %8967 = vmatprep.mubr.msk.bf16.mxu0 %vm10439_vm0, %v12439_v37 }
0x2127   : > { %8971 = vmatprep.subr.bf16.mxu0 %v12439_v37 }
0x2185   : > { %v4870_v21 = vpop.f32.mrb[96].mxu0 }
0x2186   : > { %v4871_v61 = vadd.f32 %v4870_v21, %v11028_v48  ;;  %v8945_v39 = vpop.f32.mrb[97].mxu0 }
0x2187   : > { %v4873_v55 = vpop.f32.mrb[98].mxu0 }
0x2188   : > { %v4877_v20 = vmul.f32 0.35355338, %v4871_v61  ;;  %v4874_v26 = vadd.f32 %v4873_v55, %v11028_v48  ;;  %v8946_v23 = vpop.f32.mrb[99].mxu0 }
0x218a   : > { %v4878_v51 = vmul.f32 0.35355338, %v4874_v26  ;;  %v4879_v13 = vsel %vm1180_vm4, %v4877_v20, -inf }
0x218b   : > { %4880 = vmax.xlane.f32.xlu0 %v4879_v13 }
0x218c   : > { %v4882_v1 = vsel %vm1180_vm4, %v4878_v51, -inf }
0x218d   : > { %4883 = vmax.xlane.f32.xlu1 %v4882_v1 }
0x21f8   : > { %v4997_v29 = vpop.f32.mrb[100].mxu0 }
0x21f9   : > { %v4998_v38 = vadd.f32 %v4997_v29, %v11028_v48  ;;  %v8957_v57 = vpop.f32.mrb[101].mxu0 }
0x21fa   : > { %v5000_v12 = vpop.f32.mrb[102].mxu0 }
0x21fb   : > { %v5004_v25 = vmul.f32 0.35355338, %v4998_v38  ;;  %v5001_v0 = vadd.f32 %v5000_v12, %v11028_v48  ;;  %v8958_v49 = vpop.f32.mrb[103].mxu0 }
0x21fd   : > { %v5005_v31 = vmul.f32 0.35355338, %v5001_v0  ;;  %v5006_v33 = vsel %vm1180_vm4, %v5004_v25, -inf }
0x21fe   : > { %5007 = vmax.xlane.f32.xlu1 %v5006_v33 }
0x21ff   : > { %v5009_v50 = vsel %vm1180_vm4, %v5005_v31, -inf }
0x2202   : > { %5010 = vmax.xlane.f32.xlu1 %v5009_v50 }
0x2213   : > { %4903 = vrot.lane.b32.xlu1 %v11724_v24, %s12431_s1 }
0x2218   : > { %v4881_v32 = vpop.xlane.xlu0 %4880 }
0x2219   : > { %v4885_v11 = vsub.f32 %v4877_v20, %v4881_v32 }
0x221a   : > { %v4884_v34 = vpop.xlane.xlu1 %4883 }
0x221b   : > { %v4886_v3 = vsub.f32 %v4878_v51, %v4884_v34  ;;  %v4887_v45 = vmul.f32 1.442695, %v4885_v11 }
0x221d   : > { %v4889_v36 = vmul.f32 1.442695, %v4886_v3 }
0x221f   : > { %9756 = vpow2.f32 %v4889_v36 }
0x2220   : > { %9758 = vpow2.f32 %v4887_v45 }
0x2229   : > { %v9757_v8 = vpop.eup %9756 }
0x222a   : > { %v4894_v41 = vsel %vm1180_vm4, %v9757_v8, 0.0  ;;  %v9759_v54 = vpop.eup %9758 }
0x222b   : > { %4895 = vadd.xlane.f32.xlu0 %v4894_v41  ;;  %v4891_v21 = vsel %vm1180_vm4, %v9759_v54, 0.0 }
0x2237   : > { %4892 = vadd.xlane.f32.xlu1 %v4891_v21 }
0x228b   : > { %v5008_v61 = vpop.xlane.xlu1 %5007 }
0x228c   : > { %v5012_v39 = vsub.f32 %v5004_v25, %v5008_v61 }
0x228e   : > { %v5014_v55 = vmul.f32 1.442695, %v5012_v39 }
0x228f   : > { %v5011_v26 = vpop.xlane.xlu1 %5010 }
0x2290   : > { %9760 = vpow2.f32 %v5014_v55  ;;  %v5013_v23 = vsub.f32 %v5005_v31, %v5011_v26 }
0x2292   : > { %v5016_v51 = vmul.f32 1.442695, %v5013_v23 }
0x2293   : > { %v4904_v13 = vpop.permute.xlu1 %4903 }
0x2294   : > { %9762 = vpow2.f32 %v5016_v51  ;;  %v4909_v20 = vsel %vm1666_vm7, %v4904_v13, 0 }
0x2295   : > { %8948 = vmatpush3.bf16.msra.mxu1 %v4909_v20 }
0x2296   : > { %8959 = vmatprep.subr.bf16.mxu1 %v12439_v37 }
0x229a   : > { %v9761_v1 = vpop.eup %9760 }
0x229b   : > { %v5018_v29 = vsel %vm1180_vm4, %v9761_v1, 0.0 }
0x229c   : > { %5019 = vadd.xlane.f32.xlu1 %v5018_v29 }
0x229e   : > { %v9763_v38 = vpop.eup %9762 }
0x229f   : > { %v5021_v57 = vsel %vm1180_vm4, %v9763_v38, 0.0 }
0x22a0   : > { %5022 = vadd.xlane.f32.xlu0 %v5021_v57 }
0x22ad   : > { %5169 = vrot.lane.b32.xlu1 %v11724_v24, %s12440_s26 }
0x22b1   : > { %5167 = vrot.lane.b32.xlu1 %v11709_v5, %s12442_s5 }
0x22b6   : > { %5029 = vrot.lane.b32.xlu0 %v11724_v24, %s12432_s2 }
0x22b8   : > { %v4896_v12 = vpop.xlane.xlu0 %4895 }
0x22b9   : > { %9764 = vrcp.f32 %v4896_v12 }
0x22c3   : > { %v9765_v0 = vpop.eup %9764 }
0x22c4   : > { %v4893_v25 = vpop.xlane.xlu1 %4892  ;;  %v4900_v31 = vmul.f32 %v9765_v0, %v9757_v8 }
0x22c5   : > { %9766 = vrcp.f32 %v4893_v25 }
0x22cf   : > { %v9767_v49 = vpop.eup %9766 }
0x22d0   : > { %v4899_v33 = vmul.f32 %v9767_v49, %v9759_v54 }
0x22d2   : > { %v4901_v50 = vpack.c.bf16 %v4900_v31, %v4899_v33 }
0x22d4   : > { %8950 = vmatmul.mubr.msk.bf16.vlgmr.msra.gmra.mrb[96].mxu1 %vm1180_vm4, %v4901_v50 }
0x22d5   : > { %8961 = vmatprep.mubr.msk.bf16.mxu1 %vm10439_vm0, %v12439_v37 }
0x2329   : > { %v5020_v34 = vpop.xlane.xlu1 %5019 }
0x232a   : > { %9768 = vrcp.f32 %v5020_v34 }
0x232d   : > { %v5023_v3 = vpop.xlane.xlu0 %5022  ;;  %v5170_v54 = vpop.permute.xlu1 %5169 }
0x232e   : > { %9770 = vrcp.f32 %v5023_v3  ;;  %v5175_v61 = vsel %vm1180_vm4, %v5170_v54, 0 }
0x2331   : > { %v5030_v36 = vpop.permute.xlu0 %5029  ;;  %v5168_v39 = vpop.permute.xlu1 %5167 }
0x2332   : > { %v5035_v32 = vsel %vm1666_vm7, %v5030_v36, 0 }
0x2333   : > { %8960 = vmatpush3.bf16.msra.mxu1 %v5035_v32 }
0x2334   : > { %8977 = vmatprep.subr.bf16.mxu1 %v12439_v37  ;;  %v9769_v11 = vpop.eup %9768 }
0x2335   : > { %v5026_v8 = vmul.f32 %v9769_v11, %v9761_v1 }
0x2338   : > { %v9771_v45 = vpop.eup %9770 }
0x2339   : > { %v5027_v41 = vmul.f32 %v9771_v45, %v9763_v38 }
0x233b   : > { %v5028_v21 = vpack.c.bf16 %v5027_v41, %v5026_v8 }
0x233d   : > { %8962 = vmatmul.mubr.msk.bf16.vlgmr.msra.gmra.mrb[100].mxu1 %vm1180_vm4, %v5028_v21 }
0x233e   : > { %8978 = vmatpush3.bf16.xpose.msra.mxu1 %v5175_v61  ;;  %8979 = vmatprep.mubr.msk.bf16.mxu1 %vm10439_vm0, %v12439_v37 }
0x233f   : > { %8983 = vmatprep.subr.bf16.mxu1 %v12439_v37 }
0x2345   : > { %8980 = vmatmul.mubr.msk.bf16.vlgmr.msra.gmra.mrb[104].mxu1 %vm1180_vm4, %v5168_v39 }
0x2346   : > { %8985 = vmatprep.mubr.msk.bf16.mxu1 %vm10439_vm0, %v12439_v37 }
0x23a7   : > { %v4945_v55 = vpop.f32.mrb[96].mxu1 }
0x23a8   : > { %v8951_v26 = vpop.f32.mrb[97].mxu1 }
0x23a9   : > { %v4948_v23 = vpop.f32.mrb[98].mxu1 }
0x23aa   : > { %v4952_v51 = vpack.c.bf16 %v4948_v23, %v4945_v55  ;;  %v8952_v13 = vpop.f32.mrb[99].mxu1 }
0x2410   : > { %v5071_v20 = vpop.f32.mrb[100].mxu1 }
0x2411   : > { %v8963_v1 = vpop.f32.mrb[101].mxu1 }
0x2412   : > { %v5074_v29 = vpop.f32.mrb[102].mxu1 }
0x2413   : > { %v5078_v38 = vpack.c.bf16 %v5074_v29, %v5071_v20  ;;  %v8964_v57 = vpop.f32.mrb[103].mxu1 }
0x2415   : > { %8968 = vmatmul.mubr.msk.bf16.vlgmr.msra.gmra.mrb[92].mxu0 %vm1180_vm4, %v5078_v38 }
0x2416   : > { %8972 = vmatpush3.bf16.msra.mxu0 %v11073_v22  ;;  %8973 = vmatprep.mubr.msk.bf16.mxu0 %vm10439_vm0, %v12439_v37 }
0x2417   : > { %8989 = vmatprep.subr.bf16.mxu0 %v12439_v37 }
0x2418   : > { %v5211_v12 = vpop.f32.mrb[104].mxu1 }
0x2419   : > { %v5212_v25 = vadd.f32 %v5211_v12, %v11028_v48  ;;  %v8981_v0 = vpop.f32.mrb[105].mxu1 }
0x241a   : > { %v5214_v49 = vpop.f32.mrb[106].mxu1 }
0x241b   : > { %v5218_v31 = vmul.f32 0.35355338, %v5212_v25  ;;  %v5215_v33 = vadd.f32 %v5214_v49, %v11028_v48  ;;  %v8982_v50 = vpop.f32.mrb[107].mxu1  ;;  %v5517_v25 = vsel %vm1180_vm4, %v11709_v5, 0 }
0x241d   : > { %v5219_v34 = vmul.f32 0.35355338, %v5215_v33  ;;  %v5220_v3 = vsel %vm1180_vm4, %v5218_v31, -inf }
0x241e   : > { %5221 = vmax.xlane.f32.xlu1 %v5220_v3 }
0x241f   : > { %v5223_v22 = vsel %vm1180_vm4, %v5219_v34, -inf }
0x2420   : > { %5224 = vmax.xlane.f32.xlu0 %v5223_v22 }
0x2421   : > { %8974 = vmatmul.mubr.msk.bf16.vlgmr.msra.gmra.mrb[92].mxu0 %vm1180_vm4, %v4952_v51 }
0x2422   : > { %8990 = vmatpush3.bf16.msra.mxu0 %v11110_v6  ;;  %8991 = vmatprep.mubr.msk.bf16.mxu0 %vm10439_vm0, %v12439_v37 }
0x2423   : > { %9001 = vmatprep.subr.bf16.mxu0 %v12439_v37 }
0x242f   : > { %5243 = vrot.lane.b32.xlu1 %v11724_v24, %s12428_s18 }
0x2433   : > { %5339 = vrot.lane.b32.xlu1 %v11709_v5, %s12429_s0 }
0x24ab   : > { %v5222_v36 = vpop.xlane.xlu1 %5221 }
0x24ac   : > { %v5226_v32 = vsub.f32 %v5218_v31, %v5222_v36 }
0x24ad   : > { %v5225_v11 = vpop.xlane.xlu0 %5224 }
0x24ae   : > { %v5228_v45 = vmul.f32 1.442695, %v5226_v32  ;;  %v5227_v8 = vsub.f32 %v5219_v34, %v5225_v11 }
0x24af   : > { %v5244_v41 = vpop.permute.xlu1 %5243 }
0x24b0   : > { %9772 = vpow2.f32 %v5228_v45  ;;  %v5230_v54 = vmul.f32 1.442695, %v5227_v8  ;;  %v5249_v6 = vsel %vm1666_vm7, %v5244_v41, 0 }
0x24b1   : > { %8984 = vmatpush3.bf16.msra.mxu1 %v5249_v6 }
0x24b2   : > { %9774 = vpow2.f32 %v5230_v54  ;;  %8995 = vmatprep.subr.bf16.mxu1 %v12439_v37 }
0x24b3   : > { %v5340_v12 = vpop.permute.xlu1 %5339 }
0x24ba   : > { %v9773_v21 = vpop.eup %9772 }
0x24bb   : > { %v5232_v61 = vsel %vm1180_vm4, %v9773_v21, 0.0 }
0x24bc   : > { %v9775_v39 = vpop.eup %9774  ;;  %5233 = vadd.xlane.f32.xlu0 %v5232_v61 }
0x24bd   : > { %v5235_v55 = vsel %vm1180_vm4, %v9775_v39, 0.0 }
0x24c0   : > { %5236 = vadd.xlane.f32.xlu0 %v5235_v55 }
0x24d6   : > { %5341 = vrot.lane.b32.xlu0 %v11724_v24, %s12430_s7 }
0x2549   : > { %v5234_v26 = vpop.xlane.xlu0 %5233 }
0x254a   : > { %9776 = vrcp.f32 %v5234_v26 }
0x254d   : > { %v5237_v23 = vpop.xlane.xlu0 %5236 }
0x254e   : > { %9778 = vrcp.f32 %v5237_v23 }
0x2551   : > { %v5342_v29 = vpop.permute.xlu0 %5341 }
0x2552   : > { %v5347_v57 = vsel %vm1180_vm4, %v5342_v29, 0 }
0x2554   : > { %v9777_v51 = vpop.eup %9776 }
0x2555   : > { %v5240_v20 = vmul.f32 %v9777_v51, %v9773_v21 }
0x2558   : > { %v9779_v13 = vpop.eup %9778 }
0x2559   : > { %v5241_v1 = vmul.f32 %v9779_v13, %v9775_v39 }
0x255b   : > { %v5242_v38 = vpack.c.bf16 %v5241_v1, %v5240_v20 }
0x255d   : > { %8986 = vmatmul.mubr.msk.bf16.vlgmr.msra.gmra.mrb[108].mxu1 %vm1180_vm4, %v5242_v38 }
0x255e   : > { %8996 = vmatpush3.bf16.xpose.msra.mxu1 %v5347_v57  ;;  %8997 = vmatprep.mubr.msk.bf16.mxu1 %vm10439_vm0, %v12439_v37 }
0x255f   : > { %9013 = vmatprep.subr.bf16.mxu1 %v12439_v37 }
0x2565   : > { %8998 = vmatmul.mubr.msk.bf16.vlgmr.msra.gmra.mrb[112].mxu1 %vm1180_vm4, %v5340_v12 }
0x2566   : > { %9014 = vmatpush3.bf16.xpose.msra.mxu1 %v5517_v25  ;;  %9015 = vmatprep.mubr.msk.bf16.mxu1 %vm10439_vm0, %v12439_v37 }
0x2567   : > { %9019 = vmatprep.subr.bf16.mxu1 %v12439_v37 }
0x2630   : > { %v5285_v0 = vpop.f32.mrb[108].mxu1 }
0x2631   : > { %v8987_v49 = vpop.f32.mrb[109].mxu1 }
0x2632   : > { %v5288_v31 = vpop.f32.mrb[110].mxu1 }
0x2633   : > { %v5292_v33 = vpack.c.bf16 %v5288_v31, %v5285_v0  ;;  %v8988_v50 = vpop.f32.mrb[111].mxu1 }
0x2635   : > { %8992 = vmatmul.mubr.msk.bf16.vlgmr.msra.gmra.mrb[92].mxu0 %vm1180_vm4, %v5292_v33 }
0x2636   : > { %9003 = vmatprep.mubr.msk.bf16.mxu0 %vm10439_vm0, %v12439_v37 }
0x2638   : > { %v5383_v34 = vpop.f32.mrb[112].mxu1 }
0x2639   : > { %v5384_v3 = vadd.f32 %v5383_v34, %v11028_v48  ;;  %v8999_v22 = vpop.f32.mrb[113].mxu1 }
0x263a   : > { %v5386_v36 = vpop.f32.mrb[114].mxu1 }
0x263b   : > { %v5390_v32 = vmul.f32 0.35355338, %v5384_v3  ;;  %v5387_v11 = vadd.f32 %v5386_v36, %v11028_v48  ;;  %v9000_v45 = vpop.f32.mrb[115].mxu1 }
0x263d   : > { %v5391_v8 = vmul.f32 0.35355338, %v5387_v11  ;;  %v5392_v41 = vsel %vm1180_vm4, %v5390_v32, -inf }
0x263e   : > { %5393 = vmax.xlane.f32.xlu1 %v5392_v41 }
0x263f   : > { %v5395_v54 = vsel %vm1180_vm4, %v5391_v8, -inf }
0x2640   : > { %5396 = vmax.xlane.f32.xlu0 %v5395_v54 }
0x26cb   : > { %v5394_v6 = vpop.xlane.xlu1 %5393 }
0x26cc   : > { %v5398_v21 = vsub.f32 %v5390_v32, %v5394_v6 }
0x26cd   : > { %v5397_v61 = vpop.xlane.xlu0 %5396 }
0x26ce   : > { %v5400_v39 = vmul.f32 1.442695, %v5398_v21  ;;  %v5399_v55 = vsub.f32 %v5391_v8, %v5397_v61 }
0x26d0   : > { %9780 = vpow2.f32 %v5400_v39  ;;  %v5402_v26 = vmul.f32 1.442695, %v5399_v55  ;;  %v9865_v55 = vld [vmem:[#allocation7] ss:$0 sm:$0xff] }
0x26d2   : > { %9782 = vpow2.f32 %v5402_v26 }
0x26da   : > { %v9781_v23 = vpop.eup %9780 }
0x26db   : > { %v5404_v51 = vsel %vm1180_vm4, %v9781_v23, 0.0 }
0x26dc   : > { %v9783_v13 = vpop.eup %9782  ;;  %5405 = vadd.xlane.f32.xlu0 %v5404_v51 }
0x26dd   : > { %v5407_v20 = vsel %vm1180_vm4, %v9783_v13, 0.0 }
0x26de   : > { %5408 = vadd.xlane.f32.xlu1 %v5407_v20 }
0x26ef   : > { %5621 = vrot.lane.b32.xlu1 %v11709_v5, %s12427_s11 }
0x26f2   : > { %5415 = vrot.lane.b32.xlu0 %v11724_v24, %s12433_s3 }
0x26f3   : > { %5619 = vrot.lane.b32.xlu1 %v11724_v24, %s12441_s4 }
0x26f6   : > { %5815 = vrot.lane.b32.xlu0 %v11724_v24, %s12442_s5  ;;  %s12164_s5 = sand.u32 1, %s10383_s10  }
0x26f7   : > { %5817 = vrot.lane.b32.xlu1 %v11709_v5, %s12440_s26  ;;  %s8122_s4 = sshll.u32 %s12164_s5, 4 }
0x26fa   : > { %5511 = vrot.lane.b32.xlu0 %v11724_v24, %s12426_s22 }
0x2769   : > { %v5406_v1 = vpop.xlane.xlu0 %5405 }
0x276a   : > { %9784 = vrcp.f32 %v5406_v1 }
0x276b   : > { %v5409_v29 = vpop.xlane.xlu1 %5408 }
0x276c   : > { %9786 = vrcp.f32 %v5409_v29 }
0x276d   : > { %v5416_v38 = vpop.permute.xlu0 %5415 }
0x276e   : > { %v5421_v57 = vsel %vm1666_vm7, %v5416_v38, 0 }
0x276f   : > { %9002 = vmatpush3.bf16.msra.mxu0 %v5421_v57  ;;  %v5622_v36 = vpop.permute.xlu1 %5621 }
0x2770   : > { %9007 = vmatprep.subr.bf16.mxu0 %v12439_v37  ;;  %v5627_v21 = vsel %vm1180_vm4, %v5622_v36, 0 }
0x2771   : > { %v5816_v12 = vpop.permute.xlu0 %5815 }
0x2773   : > { %v5620_v6 = vpop.permute.xlu1 %5619 }
0x2774   : > { %v9785_v25 = vpop.eup %9784 }
0x2775   : > { %v5512_v0 = vpop.permute.xlu0 %5511  ;;  %v5412_v31 = vmul.f32 %v9785_v25, %v9781_v23 }
0x2776   : > { %v9787_v49 = vpop.eup %9786  ;;  %9016 = vmatmul.mubr.msk.bf16.vlgmr.msra.gmra.mrb[116].mxu1 %vm1180_vm4, %v5512_v0 }
0x2777   : > { %v5413_v33 = vmul.f32 %v9787_v49, %v9783_v13  ;;  %9021 = vmatprep.mubr.msk.bf16.mxu1 %vm10439_vm0, %v12439_v37 }
0x2779   : > { %v5414_v50 = vpack.c.bf16 %v5413_v33, %v5412_v31 }
0x277b   : > { %9004 = vmatmul.mubr.msk.bf16.vlgmr.msra.gmra.mrb[104].mxu0 %vm1180_vm4, %v5414_v50 }
0x277c   : > { %9008 = vmatpush3.bf16.msra.mxu0 %v11142_v62  ;;  %9009 = vmatprep.mubr.msk.bf16.mxu0 %vm10439_vm0, %v12439_v37  ;;  %v5818_v62 = vpop.permute.xlu1 %5817 }
0x277d   : > { %9025 = vmatprep.subr.bf16.mxu0 %v12439_v37  ;;  %v5823_v61 = vsel %vm1180_vm4, %v5818_v62, 0 }
0x2849   : > { %v5553_v34 = vpop.f32.mrb[116].mxu1 }
0x284a   : > { %v9017_v3 = vpop.f32.mrb[117].mxu1 }
0x284b   : > { %v5556_v22 = vpop.f32.mrb[118].mxu1 }
0x284c   : > { %v9018_v32 = vpop.f32.mrb[119].mxu1 }
0x284e   : > { %v5457_v11 = vpop.f32.mrb[104].mxu0 }
0x284f   : > { %v9005_v45 = vpop.f32.mrb[105].mxu0 }
0x2850   : > { %v5460_v8 = vpop.f32.mrb[106].mxu0 }
0x2851   : > { %v5464_v41 = vpack.c.bf16 %v5460_v8, %v5457_v11  ;;  %v9006_v54 = vpop.f32.mrb[107].mxu0 }
0x2853   : > { %9010 = vmatmul.mubr.msk.bf16.vlgmr.msra.gmra.mrb[92].mxu0 %vm1180_vm4, %v5464_v41 }
0x2854   : > { %9026 = vmatpush3.bf16.xpose.msra.mxu0 %v5627_v21  ;;  %9027 = vmatprep.mubr.msk.bf16.mxu0 %vm10439_vm0, %v12439_v37 }
0x2855   : > { %9049 = vmatprep.subr.bf16.mxu0 %v12439_v37 }
0x285b   : > { %9028 = vmatmul.mubr.msk.bf16.vlgmr.msra.gmra.mrb[108].mxu0 %vm1180_vm4, %v5620_v6  ;;  %v5554_v6 = vadd.f32 %v5553_v34, %v11183_v53 }
0x285c   : > { %9050 = vmatpush3.bf16.xpose.msra.mxu0 %v5823_v61  ;;  %9051 = vmatprep.mubr.msk.bf16.mxu0 %vm10439_vm0, %v12439_v37 }
0x285d   : > { %9055 = vmatprep.subr.bf16.mxu0 %v12439_v37  ;;  %v5559_v21 = vmul.f32 0.35355338, %v5554_v6 }
0x285f   : > { %v5560_v62 = vsel %vm1166_vm3, %v5559_v21, -inf }
0x2863   : > { %9052 = vmatmul.mubr.msk.bf16.vlgmr.msra.gmra.mrb[112].mxu0 %vm1180_vm4, %v5816_v12 }
0x2864   : > { %9057 = vmatprep.mubr.msk.bf16.mxu0 %vm10439_vm0, %v12439_v37 }
0x2926   : > { %v5502_v39 = vpop.f32.mrb[92].mxu0 }
0x2927   : > { %v11857_v26 = vadd.f32 %v9865_v55, %v5502_v39  ;;  %v9011_v23 = vpop.f32.mrb[93].mxu0 }
0x2928   : > { %v5505_v51 = vpop.f32.mrb[94].mxu0 }
0x2929   : > { %v6310_v13 = vmul.f32 %v11857_v26, %v10995_v14  ;;  %v11861_v20 = vadd.f32 %v9865_v55, %v5505_v51  ;;  %v9012_v1 = vpop.f32.mrb[95].mxu0  ;;  %v6126_v29 = vmax.f32 %v11857_v26, 0.0 }
0x292b   : > { %v6127_v38 = vmax.f32 %v11861_v20, 0.0  ;;  %v6221_v57 = vpack.c.bf16 %v11861_v20, %v11857_v26  ;;  %v6311_v12 = vmul.f32 %v11861_v20, %v10999_v19  ;;  %v6312_v25 = vsel %vm1263_vm1, %v6310_v13, 0.0 }
0x292d   : > { %v11870_v0 = vpack.c.bf16 %v6127_v38, %v6126_v29  ;;  %v6313_v49 = vsel %vm1263_vm1, %v6311_v12, 0.0 }
0x292e   : > { %v11873_v31 = vadd.f32 %v6313_v49, %v6312_v25  ;;  %v5663_v33 = vpop.f32.mrb[108].mxu0 }
0x292f   : > { %v9029_v50 = vpop.f32.mrb[109].mxu0  ;;  %v5664_v13 = vadd.f32 %v5663_v33, %v11183_v53 }
0x2930   : > { %v5666_v3 = vpop.f32.mrb[110].mxu0 }
0x2931   : > { %v9030_v22 = vpop.f32.mrb[111].mxu0 }
0x2936   : > { %v5859_v36 = vpop.f32.mrb[112].mxu0 }
0x2937   : > { %v5860_v32 = vadd.f32 %v5859_v36, %v11183_v53  ;;  %v9053_v11 = vpop.f32.mrb[113].mxu0 }
0x2938   : > { %v5862_v45 = vpop.f32.mrb[114].mxu0 }
0x2939   : > { %v5865_v8 = vmul.f32 0.35355338, %v5860_v32  ;;  %v9054_v41 = vpop.f32.mrb[115].mxu0 }
0x293b   : > { %v5866_v54 = vsel %vm1166_vm3, %v5865_v8, -inf }
0x293c   : > { %5867 = vmax.xlane.f32.xlu1 %v5866_v54 }
0x294d   : > { %5971 = vrot.lane.b32.xlu1 %v11709_v5, %s12430_s7 }
0x2951   : > { %5969 = vrot.lane.b32.xlu1 %v11724_v24, %s12429_s0  ;;  %v5669_v24 = vmul.f32 0.35355338, %v5664_v13  ;;  %s12167_s0 = scalar_lea.vmem [#allocation25], %s8122_s4 }
0x2953   : > { %v5670_v34 = vsel %vm1166_vm3, %v5669_v24, -inf }
0x2975   : > { %5561 = vmax.xlane.f32.xlu1 %v5560_v62 }
0x29c9   : > { %v5868_v61 = vpop.xlane.xlu1 %5867 }
0x29ca   : > { %v5869_v39 = vsub.f32 %v5865_v8, %v5868_v61 }
0x29cc   : > { %v5870_v55 = vmul.f32 1.442695, %v5869_v39 }
0x29cd   : > { %v5972_v25 = vpop.permute.xlu1 %5971 }
0x29ce   : > { %9788 = vpow2.f32 %v5870_v55  ;;  %v5977_v50 = vsel %vm1180_vm4, %v5972_v25, 0 }
0x29d1   : > { %v5970_v33 = vpop.permute.xlu1 %5969 }
0x29d8   : > { %v9789_v23 = vpop.eup %9788 }
0x29d9   : > { %v5872_v51 = vsel %vm1166_vm3, %v9789_v23, 0.0 }
0x29da   : > { %5873 = vadd.xlane.f32.xlu0 %v5872_v51 }
0x29f0   : > { %5878 = vrot.lane.b32.xlu0 %v11709_v5, %s12428_s18 }
0x2a02   : > { %v5562_v45 = vpop.xlane.xlu1 %5561 }
0x2a03   : > { %v5563_v8 = vsub.f32 %v5559_v21, %v5562_v45 }
0x2a05   : > { %v5564_v41 = vmul.f32 1.442695, %v5563_v8 }
0x2a0f   : > { %5671 = vmax.xlane.f32.xlu0 %v5670_v34 }
0x2a67   : > { %v5874_v1 = vpop.xlane.xlu0 %5873 }
0x2a68   : > { %9790 = vrcp.f32 %v5874_v1 }
0x2a6b   : > { %v5879_v29 = vpop.permute.xlu0 %5878 }
0x2a6c   : > { %9056 = vmatpush3.bf16.msra.mxu0 %v5879_v29 }
0x2a6d   : > { %9067 = vmatprep.subr.bf16.mxu0 %v12439_v37 }
0x2a72   : > { %v9791_v38 = vpop.eup %9790 }
0x2a73   : > { %v5876_v12 = vmul.f32 %v9791_v38, %v9789_v23 }
0x2a75   : > { %v5877_v49 = vpack.c.bf16 %v5876_v12, %v5876_v12 }
0x2a77   : > { %9058 = vmatmul.mubr.msk.bf16.vlgmr.msra.gmra.mrb[116].mxu0 %vm1166_vm3, %v5877_v49 }
0x2a78   : > { %9068 = vmatpush3.bf16.xpose.msra.mxu0 %v5977_v50  ;;  %9069 = vmatprep.mubr.msk.bf16.mxu0 %vm10439_vm0, %v12439_v37 }
0x2a79   : > { %9073 = vmatprep.subr.bf16.mxu0 %v12439_v37 }
0x2a7f   : > { %9070 = vmatmul.mubr.msk.bf16.vlgmr.msra.gmra.mrb[120].mxu0 %vm1180_vm4, %v5970_v33 }
0x2a80   : > { %9075 = vmatprep.mubr.msk.bf16.mxu0 %vm10439_vm0, %v12439_v37 }
0x2a9c   : > { %v5672_v3 = vpop.xlane.xlu0 %5671 }
0x2a9d   : > { %v5673_v22 = vsub.f32 %v5669_v24, %v5672_v3 }
0x2a9f   : > { %v5674_v36 = vmul.f32 1.442695, %v5673_v22 }
0x2aa1   : > { %9792 = vpow2.f32 %v5674_v36 }
0x2aa2   : > { %9794 = vpow2.f32 %v5564_v41 }
0x2aab   : > { %v9793_v32 = vpop.eup %9792 }
0x2aac   : > { %v5676_v11 = vsel %vm1166_vm3, %v9793_v32, 0.0  ;;  %v9795_v1 = vpop.eup %9794 }
0x2aad   : > { %5677 = vadd.xlane.f32.xlu1 %v5676_v11  ;;  %v5566_v21 = vsel %vm1166_vm3, %v9795_v1, 0.0 }
0x2abe   : > { %5682 = vrot.lane.b32.xlu1 %v11709_v5, %s12432_s2 }
0x2b3a   : > { %v5678_v49 = vpop.xlane.xlu1 %5677 }
0x2b3e   : > { %v5683_v8 = vpop.permute.xlu1 %5682 }
0x2b4a   : > { %v11900_v54 = vpop.f32.mrb[116].mxu0 }
0x2b4b   : > { %v9059_v6 = vpop.f32.mrb[117].mxu0 }
0x2b4c   : > { %v5921_v62 = vpop.f32.mrb[118].mxu0 }
0x2b4d   : > { %v9060_v61 = vpop.f32.mrb[119].mxu0 }
0x2b4e   : > { %v6315_v61 = vrot.slane %v11873_v31, 4 }
0x2b52   : > { %v6013_v39 = vpop.f32.mrb[120].mxu0 }
0x2b53   : > { %v6014_v55 = vadd.f32 %v6013_v39, %v11183_v53  ;;  %v9071_v23 = vpop.f32.mrb[121].mxu0  ;;  %v6316_v39 = vadd.f32 %v6315_v61, %v11873_v31 }
0x2b54   : > { %v6016_v51 = vpop.f32.mrb[122].mxu0 }
0x2b55   : > { %v6019_v13 = vmul.f32 0.35355338, %v6014_v55  ;;  %v9072_v24 = vpop.f32.mrb[123].mxu0  ;;  %v6317_v23 = vrot.slane %v6316_v39, 2 }
0x2b57   : > { %v6020_v34 = vsel %vm1166_vm3, %v6019_v13, -inf }
0x2b58   : > { %6021 = vmax.xlane.f32.xlu0 %v6020_v34 }
0x2b5c   : > { %5567 = vadd.xlane.f32.xlu0 %v5566_v21 }
0x2b72   : > { %5572 = vrot.lane.b32.xlu0 %v11709_v5, %s12431_s1 }
0x2b76   : > { %6032 = vrot.lane.b32.xlu0 %v11709_v5, %s12433_s3 }
0x2be5   : > { %v6022_v29 = vpop.xlane.xlu0 %6021 }
0x2be6   : > { %v6023_v38 = vsub.f32 %v6019_v13, %v6022_v29 }
0x2be8   : > { %v6024_v12 = vmul.f32 1.442695, %v6023_v38 }
0x2be9   : > { %v5568_v25 = vpop.xlane.xlu0 %5567 }
0x2bea   : > { %9796 = vpow2.f32 %v6024_v12 }
0x2beb   : > { %9798 = vrcp.f32 %v5568_v25 }
0x2bec   : > { %9800 = vrcp.f32 %v5678_v49 }
0x2bed   : > { %v5573_v50 = vpop.permute.xlu0 %5572 }
0x2bee   : > { %9020 = vmatpush3.bf16.msra.mxu1 %v5573_v50 }
0x2bef   : > { %9031 = vmatprep.subr.bf16.mxu1 %v12439_v37 }
0x2bf1   : > { %v6033_v33 = vpop.permute.xlu0 %6032 }
0x2bf2   : > { %9074 = vmatpush3.bf16.msra.mxu0 %v6033_v33 }
0x2bf3   : > { %9085 = vmatprep.subr.bf16.mxu0 %v12439_v37 }
0x2bf4   : > { %v9797_v3 = vpop.eup %9796 }
0x2bf5   : > { %v9799_v22 = vpop.eup %9798  ;;  %v6026_v5 = vsel %vm1166_vm3, %v9797_v3, 0.0 }
0x2bf6   : > { %v5570_v36 = vmul.f32 %v9799_v22, %v9795_v1  ;;  %6027 = vadd.xlane.f32.xlu1 %v6026_v5  ;;  %v9801_v45 = vpop.eup %9800  ;;  %v5924_v1 = vpack.c.bf16 %v11900_v54, %v11900_v54  ;;  %v9866_v54 = vld [vmem:[#allocation14] ss:$0 sm:$0xff] }
0x2bf7   : > { %v5680_v41 = vmul.f32 %v9801_v45, %v9793_v32  ;;  %v9867_v45 = vld [vmem:[#allocation8] ss:$0 sm:$0xff] }
0x2bf8   : > { %v5571_v11 = vpack.c.bf16 %v5570_v36, %v5570_v36 }
0x2bf9   : > { %v5681_v6 = vpack.c.bf16 %v5680_v41, %v5680_v41 }
0x2bfa   : > { %9022 = vmatmul.mubr.msk.bf16.vlgmr.msra.gmra.mrb[120].mxu1 %vm1166_vm3, %v5571_v11 }
0x2bfb   : > { %9032 = vmatpush3.bf16.msra.mxu1 %v5683_v8  ;;  %9033 = vmatprep.mubr.msk.bf16.mxu1 %vm10439_vm0, %v12439_v37 }
0x2bfc   : > { %9037 = vmatprep.subr.bf16.mxu1 %v12439_v37 }
0x2c02   : > { %9034 = vmatmul.mubr.msk.bf16.vlgmr.msra.gmra.mrb[124].mxu1 %vm1166_vm3, %v5681_v6 }
0x2c03   : > { %9038 = vmatpush3.bf16.msra.mxu1 %v11231_v28  ;;  %9039 = vmatprep.mubr.msk.bf16.mxu1 %vm10439_vm0, %v12439_v37  ;;  %v6318_v28 = vadd.f32 %v6317_v23, %v6316_v39 }
0x2c04   : > { %9043 = vmatprep.subr.bf16.mxu1 %v12439_v37 }
0x2c05   : > { %v6319_v13 = vrot.slane %v6318_v28, 1 }
0x2c83   : > { %v6028_v62 = vpop.xlane.xlu1 %6027 }
0x2c84   : > { %9802 = vrcp.f32 %v6028_v62 }
0x2c8e   : > { %v9803_v55 = vpop.eup %9802 }
0x2c8f   : > { %v6030_v32 = vmul.f32 %v9803_v55, %v9797_v3 }
0x2c91   : > { %v6031_v51 = vpack.c.bf16 %v6030_v32, %v6030_v32 }
0x2c93   : > { %9076 = vmatmul.mubr.msk.bf16.vlgmr.msra.gmra.mrb[124].mxu0 %vm1166_vm3, %v6031_v51 }
0x2c94   : > { %9086 = vmatpush3.bf16.msra.mxu0 %v11238_v47  ;;  %9089 = vmatprep.mubr.msk.bf16.mxu0 %vm10439_vm0, %v12439_v37  ;;  %v6320_v47 = vadd.f32 %v6319_v13, %v6318_v28 }
0x2c95   : > { %9087 = vmatprep.subr.bf16.mxu0 %v12439_v37 }
0x2c98   : > { %9088 = vmatpush3.bf16.msra.mxu0 %v11244_v52  ;;  %v6321_v52 = vmul.f32 %v11348_v30, %v6320_v47 }
0x2c99   : > { %9101 = vmatprep.subr.bf16.mxu0 %v12439_v37 }
0x2c9b   : > { %9090 = vmatmul.mubr.msk.bf16.vlgmr.msra.gmra.mrb[128].mxu0 %vm1263_vm1, %v11870_v0 }
0x2c9c   : > { %9102 = vmatpush3.bf16.msra.mxu0 %v11256_v56  ;;  %9105 = vmatprep.mubr.msk.bf16.mxu0 %vm10439_vm0, %v12439_v37  ;;  %v6331_v56 = vmax.f32 %v6321_v52, 0.0  ;;  %v12443_v52 = vld [vmem:[#allocation61_spill] sm:$0xff] }
0x2c9d   : > { %9103 = vmatprep.subr.bf16.mxu0 %v12439_v37 }
0x2ca0   : > { %9104 = vmatpush3.bf16.msra.mxu0 %v11268_v58  ;;  %v6332_v58 = vpack.c.bf16 %v6331_v56, %v6331_v56 }
0x2ca1   : > { %9117 = vmatprep.subr.bf16.mxu0 %v12439_v37 }
0x2ca3   : > { %9106 = vmatmul.mubr.msk.bf16.vlgmr.msra.gmra.mrb[132].mxu0 %vm1263_vm1, %v6221_v57 }
0x2ca4   : > { %9118 = vmatpush3.bf16.msra.mxu0 %v11326_v60  ;;  %9121 = vmatprep.mubr.msk.bf16.mxu0 %vm10439_vm0, %v12439_v37 }
0x2ca5   : > { %9119 = vmatprep.subr.bf16.mxu0 %v12439_v37 }
0x2ca8   : > { %9120 = vmatpush3.bf16.msra.mxu0 %v11331_v4 }
0x2ca9   : > { %9133 = vmatprep.subr.bf16.mxu0 %v12439_v37 }
0x2cab   : > { %9122 = vmatmul.mubr.msk.bf16.vlgmr.msra.gmra.mrb[136].mxu0 %vm1263_vm1, %v6332_v58  ;;  %v12445_v58 = vld [vmem:[#allocation63_spill] sm:$0xff] }
0x2cac   : > { %9135 = vmatprep.mubr.msk.bf16.mxu0 %vm10439_vm0, %v12439_v37 }
0x2ccd   : > { %v5612_v30 = vpop.f32.mrb[120].mxu1 }
0x2cce   : > { %v9023_v26 = vpop.f32.mrb[121].mxu1  ;;  %v5618_v4 = vpack.c.bf16 %v5612_v30, %v5612_v30 }
0x2ccf   : > { %v5615_v20 = vpop.f32.mrb[122].mxu1 }
0x2cd0   : > { %v9024_v60 = vpop.f32.mrb[123].mxu1 }
0x2cd5   : > { %v5722_v57 = vpop.f32.mrb[124].mxu1 }
0x2cd6   : > { %v5728_v0 = vpack.c.bf16 %v5722_v57, %v5722_v57  ;;  %v9035_v31 = vpop.f32.mrb[125].mxu1 }
0x2cd7   : > { %v5725_v24 = vpop.f32.mrb[126].mxu1  ;;  %v9868_v31 = vld [vmem:[#allocation13] sm:$0x1] }
0x2cd8   : > { %v9036_v34 = vpop.f32.mrb[127].mxu1  ;;  %9040 = vmatmul.mubr.msk.bf16.vlgmr.msra.gmra.mrb[92].mxu1 %vm1180_vm4, %v5728_v0 }
0x2cd9   : > { %9044 = vmatpush3.bf16.msra.mxu1 %v11283_v9  ;;  %9045 = vmatprep.mubr.msk.bf16.mxu1 %vm10439_vm0, %v12439_v37 }
0x2cda   : > { %9061 = vmatprep.subr.bf16.mxu1 %v12439_v37 }
0x2ce4   : > { %9046 = vmatmul.mubr.msk.bf16.vlgmr.msra.gmra.mrb[92].mxu1 %vm1180_vm4, %v5618_v4 }
0x2ce5   : > { %9062 = vmatpush3.bf16.msra.mxu1 %v11292_v63  ;;  %9063 = vmatprep.mubr.msk.bf16.mxu1 %vm10439_vm0, %v12439_v37 }
0x2ce6   : > { %9079 = vmatprep.subr.bf16.mxu1 %v12439_v37 }
0x2cf0   : > { %9064 = vmatmul.mubr.msk.bf16.vlgmr.msra.gmra.mrb[92].mxu1 %vm1180_vm4, %v5924_v1 }
0x2cf1   : > { %9080 = vmatpush3.bf16.msra.mxu1 %v11303_v16  ;;  %9081 = vmatprep.mubr.msk.bf16.mxu1 %vm10439_vm0, %v12439_v37 }
0x2cf2   : > { %9093 = vmatprep.subr.bf16.mxu1 %v12439_v37 }
0x2d66   : > { %v6072_v9 = vpop.f32.mrb[124].mxu0 }
0x2d67   : > { %v6078_v21 = vpack.c.bf16 %v6072_v9, %v6072_v9  ;;  %v9077_v63 = vpop.f32.mrb[125].mxu0 }
0x2d68   : > { %v6075_v29 = vpop.f32.mrb[126].mxu0 }
0x2d69   : > { %v9078_v38 = vpop.f32.mrb[127].mxu0  ;;  %9082 = vmatmul.mubr.msk.bf16.vlgmr.msra.gmra.mrb[92].mxu1 %vm1180_vm4, %v6078_v21 }
0x2d6a   : > { %9094 = vmatpush3.bf16.msra.mxu1 %v11336_v27  ;;  %9097 = vmatprep.mubr.msk.bf16.mxu1 %vm10439_vm0, %v12439_v37 }
0x2d6b   : > { %9095 = vmatprep.subr.bf16.mxu1 %v12439_v37 }
0x2d6e   : > { %v6166_v16 = vpop.f32.mrb[128].mxu0  ;;  %9096 = vmatpush3.bf16.msra.mxu1 %v11340_v10 }
0x2d6f   : > { %v6167_v12 = vadd.f32 %v9866_v54, %v6166_v16  ;;  %v9091_v25 = vpop.f32.mrb[129].mxu0  ;;  %9109 = vmatprep.subr.bf16.mxu1 %v12439_v37 }
0x2d70   : > { %v6169_v49 = vpop.f32.mrb[130].mxu0 }
0x2d71   : > { %v11977_v50 = vmul.f32 %v6167_v12, %v10995_v14  ;;  %v6170_v33 = vadd.f32 %v9866_v54, %v6169_v49  ;;  %v9092_v3 = vpop.f32.mrb[131].mxu0 }
0x2d73   : > { %6441 = vrot.lane.b32.xlu0 %v11977_v50, %s12426_s22  ;;  %v11982_v27 = vmul.f32 %v6170_v33, %v10999_v19 }
0x2d77   : > { %6443 = vrot.lane.b32.xlu0 %v11982_v27, %s12426_s22 }
0x2d7e   : > { %v11986_v10 = vpop.f32.mrb[136].mxu0 }
0x2d7f   : > { %v9123_v22 = vpop.f32.mrb[137].mxu0 }
0x2d80   : > { %v6373_v5 = vpop.f32.mrb[138].mxu0 }
0x2d81   : > { %v9124_v36 = vpop.f32.mrb[139].mxu0 }
0x2de5   : > { %v6442_v38 = vpop.permute.xlu0 %6441 }
0x2de9   : > { %v6444_v49 = vpop.permute.xlu0 %6443 }
0x2e3c   : > { %v6116_v11 = vpop.f32.mrb[92].mxu1 }
0x2e3d   : > { %v9285_v14 = vadd.f32 %v9867_v45, %v6116_v11  ;;  %v9083_v8 = vpop.f32.mrb[93].mxu1 }
0x2e3e   : > { %v6119_v41 = vpop.f32.mrb[94].mxu1 }
0x2e3f   : > { %v6175_v6 = vmax.f32 %v9285_v14, 0.0  ;;  %v6322_v62 = vmul.f32 %v9285_v14, %v10997_v17  ;;  %v9084_v61 = vpop.f32.mrb[95].mxu1  ;;  %v6266_v28 = vpack.c.bf16 %v9285_v14, %v9285_v14 }
0x2e41   : > { %v6176_v39 = vpack.c.bf16 %v6175_v6, %v6175_v6  ;;  %v6323_v19 = vsel %vm1263_vm1, %v6322_v62, 0.0 }
0x2e42   : > { %v6324_v55 = vrot.slane %v6323_v19, 4 }
0x2e43   : > { %9098 = vmatmul.mubr.msk.bf16.vlgmr.msra.gmra.mrb[128].mxu1 %vm1263_vm1, %v6176_v39 }
0x2e44   : > { %v6325_v32 = vadd.f32 %v6324_v55, %v6323_v19  ;;  %9110 = vmatpush3.bf16.msra.mxu1 %v11361_v7  ;;  %9113 = vmatprep.mubr.msk.bf16.mxu1 %vm10439_vm0, %v12439_v37  ;;  %v12444_v7 = vld [vmem:[#allocation62_spill] sm:$0xff] }
0x2e45   : > { %9111 = vmatprep.subr.bf16.mxu1 %v12439_v37 }
0x2e46   : > { %v6326_v23 = vrot.slane %v6325_v32, 2 }
0x2e48   : > { %v6327_v51 = vadd.f32 %v6326_v23, %v6325_v32  ;;  %9112 = vmatpush3.bf16.msra.mxu1 %v11369_v18 }
0x2e49   : > { %9125 = vmatprep.subr.bf16.mxu1 %v12439_v37 }
0x2e4a   : > { %v6328_v13 = vrot.slane %v6327_v51, 1 }
0x2e4b   : > { %9114 = vmatmul.mubr.msk.bf16.vlgmr.msra.gmra.mrb[132].mxu1 %vm1263_vm1, %v6266_v28 }
0x2e4c   : > { %v6329_v47 = vadd.f32 %v6328_v13, %v6327_v51  ;;  %9126 = vmatpush3.bf16.msra.mxu1 %v12443_v52  ;;  %9129 = vmatprep.mubr.msk.bf16.mxu1 %vm10439_vm0, %v12439_v37 }
0x2e4d   : > { %9127 = vmatprep.subr.bf16.mxu1 %v12439_v37 }
0x2e4e   : > { %v6330_v56 = vmul.f32 %v12444_v7, %v6329_v47 }
0x2e50   : > { %9128 = vmatpush3.bf16.msra.mxu1 %v12445_v58  ;;  %v6382_v30 = vmax.f32 %v6330_v56, 0.0 }
0x2e51   : > { %9139 = vmatprep.subr.bf16.mxu1 %v12439_v37 }
0x2e52   : > { %v6383_v18 = vpack.c.bf16 %v6382_v30, %v6382_v30 }
0x2e54   : > { %9130 = vmatmul.mubr.msk.bf16.vlgmr.msra.gmra.mrb[136].mxu1 %vm1263_vm1, %v6383_v18 }
0x2e55   : > { %9141 = vmatprep.mubr.msk.bf16.mxu1 %vm10439_vm0, %v12439_v37 }
0x2f16   : > { %v12008_v26 = vpop.f32.mrb[128].mxu1 }
0x2f17   : > { %v9099_v20 = vpop.f32.mrb[129].mxu1 }
0x2f18   : > { %v6217_v60 = vpop.f32.mrb[130].mxu1 }
0x2f19   : > { %v9100_v57 = vpop.f32.mrb[131].mxu1 }
0x2f27   : > { %v6421_v0 = vpop.f32.mrb[136].mxu1 }
0x2f28   : > { %v6422_v24 = vadd.f32 %v9868_v31, %v6421_v0  ;;  %v9131_v34 = vpop.f32.mrb[137].mxu1 }
0x2f29   : > { %v6424_v4 = vpop.f32.mrb[138].mxu1 }
0x2f2a   : > { %v8234_v1 = vmul.f32 -1.442695, %v6422_v24  ;;  %v9132_v9 = vpop.f32.mrb[139].mxu1 }
0x2f2b   : > { %v12047_v9 = vpack.c.bf16 %v11982_v27, %v11977_v50 }
0x2f2c   : > { %9804 = vpow2.f32 %v8234_v1 }
0x2f36   : > { %v9805_v21 = vpop.eup %9804 }
0x2f37   : > { %v6430_v63 = vadd.f32 1.0, %v9805_v21 }
0x2f39   : > { %9806 = vrcp.f32 %v6430_v63 }
0x2f43   : > { %v9807_v29 = vpop.eup %9806 }
0x2f44   : > { %v6433_v16 = vadd.f32 1.0, %v9807_v29 }
0x2f46   : > { %v6438_v54 = vrot.slane %v6433_v16, %v10948_v35 }
0x2f48   : > { %v6449_v12 = vmul.f32 %v6438_v54, %v11977_v50  ;;  %v6450_v25 = vmul.f32 %v6438_v54, %v11982_v27  ;;  %v6447_v3 = vmul.f32 %v6442_v38, %v6438_v54  ;;  %v6448_v22 = vmul.f32 %v6444_v49, %v6438_v54 }
0x2f4a   : > { %v12013_v33 = vpack.c.bf16 %v6450_v25, %v6449_v12  ;;  %v12019_v36 = vpack.c.bf16 %v6448_v22, %v6447_v3 }
0x2f4c   : > { %6579 = vrot.lane.b32.xlu0 %v12013_v33, %s12427_s11  ;;  %v6457_v5 = vsel %vm1180_vm4, %v12013_v33, 0 }
0x2f4d   : > { %9134 = vmatpush3.bf16.xpose.msra.mxu0 %v6457_v5 }
0x2f4e   : > { %9145 = vmatprep.subr.bf16.mxu0 %v12439_v37 }
0x2f50   : > { %6576 = vrot.lane.b32.xlu0 %v12019_v36, %s12427_s11 }
0x2f54   : > { %9136 = vmatmul.mubr.msk.bf16.vlgmr.msra.gmra.mrb[140].mxu0 %vm1180_vm4, %v12019_v36 }
0x2f55   : > { %9147 = vmatprep.mubr.msk.bf16.mxu0 %vm10439_vm0, %v12439_v37 }
0x2fbe   : > { %v6580_v11 = vpop.permute.xlu0 %6579 }
0x2fbf   : > { %v6585_v45 = vsel %vm1180_vm4, %v6580_v11, 0 }
0x2fc0   : > { %9146 = vmatpush3.bf16.xpose.msra.mxu0 %v6585_v45 }
0x2fc1   : > { %9157 = vmatprep.subr.bf16.mxu0 %v12439_v37 }
0x2fc2   : > { %v6577_v14 = vpop.permute.xlu0 %6576 }
0x2fc7   : > { %9148 = vmatmul.mubr.msk.bf16.vlgmr.msra.gmra.mrb[144].mxu0 %vm1180_vm4, %v6577_v14 }
0x2fc8   : > { %9158 = vmatpush3.bf16.msra.mxu0 %v11461_v15  ;;  %9159 = vmatprep.mubr.msk.bf16.mxu0 %vm10439_vm0, %v12439_v37 }
0x2fc9   : > { %9163 = vmatprep.subr.bf16.mxu0 %v12439_v37 }
0x3027   : > { %v6493_v8 = vpop.f32.mrb[140].mxu0 }
0x3028   : > { %v6494_v41 = vadd.f32 %v6493_v8, %v11183_v53  ;;  %v9137_v6 = vpop.f32.mrb[141].mxu0 }
0x3029   : > { %v6496_v62 = vpop.f32.mrb[142].mxu0 }
0x302a   : > { %v6500_v61 = vmul.f32 0.35355338, %v6494_v41  ;;  %v6497_v39 = vadd.f32 %v6496_v62, %v11183_v53  ;;  %v9138_v19 = vpop.f32.mrb[143].mxu0 }
0x302c   : > { %v6501_v55 = vmul.f32 0.35355338, %v6497_v39  ;;  %v6502_v32 = vsel %vm1166_vm3, %v6500_v61, -inf }
0x302d   : > { %6503 = vmax.xlane.f32.xlu0 %v6502_v32 }
0x302e   : > { %v6505_v15 = vsel %vm1166_vm3, %v6501_v55, -inf }
0x302f   : > { %6506 = vmax.xlane.f32.xlu1 %v6505_v15 }
0x309a   : > { %v6621_v23 = vpop.f32.mrb[144].mxu0 }
0x309b   : > { %v6622_v51 = vadd.f32 %v6621_v23, %v11183_v53  ;;  %v9149_v28 = vpop.f32.mrb[145].mxu0 }
0x309c   : > { %v6624_v13 = vpop.f32.mrb[146].mxu0 }
0x309d   : > { %v6628_v47 = vmul.f32 0.35355338, %v6622_v51  ;;  %v6625_v52 = vadd.f32 %v6624_v13, %v11183_v53  ;;  %v9150_v7 = vpop.f32.mrb[147].mxu0 }
0x309f   : > { %v6629_v56 = vmul.f32 0.35355338, %v6625_v52  ;;  %v6630_v58 = vsel %vm1166_vm3, %v6628_v47, -inf }
0x30a0   : > { %6631 = vmax.xlane.f32.xlu1 %v6630_v58 }
0x30a1   : > { %v6633_v30 = vsel %vm1166_vm3, %v6629_v56, -inf }
0x30a4   : > { %6634 = vmax.xlane.f32.xlu1 %v6633_v30 }
0x30ba   : > { %v6504_v18 = vpop.xlane.xlu0 %6503 }
0x30bb   : > { %v6508_v20 = vsub.f32 %v6500_v61, %v6504_v18 }
0x30bc   : > { %v6507_v60 = vpop.xlane.xlu1 %6506 }
0x30bd   : > { %v6510_v57 = vmul.f32 1.442695, %v6508_v20  ;;  %v6509_v0 = vsub.f32 %v6501_v55, %v6507_v60 }
0x30bf   : > { %9808 = vpow2.f32 %v6510_v57  ;;  %v6512_v31 = vmul.f32 1.442695, %v6509_v0 }
0x30c1   : > { %9810 = vpow2.f32 %v6512_v31 }
0x30c9   : > { %v9809_v24 = vpop.eup %9808 }
0x30ca   : > { %v6514_v34 = vsel %vm1166_vm3, %v9809_v24, 0.0 }
0x30cb   : > { %v9811_v4 = vpop.eup %9810  ;;  %6515 = vadd.xlane.f32.xlu1 %v6514_v34 }
0x30cc   : > { %v6517_v1 = vsel %vm1166_vm3, %v9811_v4, 0.0 }
0x30cf   : > { %6518 = vadd.xlane.f32.xlu1 %v6517_v1 }
0x30e0   : > { %6653 = vrot.lane.b32.xlu1 %v12047_v9, %s12432_s2 }
0x312d   : > { %v6632_v21 = vpop.xlane.xlu1 %6631 }
0x312e   : > { %v6636_v63 = vsub.f32 %v6628_v47, %v6632_v21 }
0x3130   : > { %v6638_v29 = vmul.f32 1.442695, %v6636_v63 }
0x3131   : > { %v6635_v38 = vpop.xlane.xlu1 %6634 }
0x3132   : > { %9812 = vpow2.f32 %v6638_v29  ;;  %v6637_v16 = vsub.f32 %v6629_v56, %v6635_v38 }
0x3134   : > { %v6640_v54 = vmul.f32 1.442695, %v6637_v16 }
0x3136   : > { %9814 = vpow2.f32 %v6640_v54 }
0x313c   : > { %v9813_v12 = vpop.eup %9812 }
0x313d   : > { %v6642_v25 = vsel %vm1166_vm3, %v9813_v12, 0.0 }
0x313e   : > { %6643 = vadd.xlane.f32.xlu0 %v6642_v25 }
0x3140   : > { %v9815_v49 = vpop.eup %9814 }
0x3141   : > { %v6645_v3 = vsel %vm1166_vm3, %v9815_v49, 0.0 }
0x3142   : > { %6646 = vadd.xlane.f32.xlu1 %v6645_v3 }
0x3153   : > { %6791 = vrot.lane.b32.xlu1 %v12013_v33, %s12440_s26 }
0x3154   : > { %6527 = vrot.lane.b32.xlu0 %v12047_v9, %s12431_s1 }
0x3157   : > { %6789 = vrot.lane.b32.xlu1 %v12019_v36, %s12440_s26 }
0x3158   : > { %v6516_v50 = vpop.xlane.xlu1 %6515 }
0x315c   : > { %v6519_v27 = vpop.xlane.xlu1 %6518 }
0x315d   : > { %9816 = vrcp.f32 %v6519_v27 }
0x315e   : > { %9818 = vrcp.f32 %v6516_v50 }
0x3160   : > { %v6654_v5 = vpop.permute.xlu1 %6653 }
0x3167   : > { %v9817_v22 = vpop.eup %9816 }
0x3168   : > { %v9819_v45 = vpop.eup %9818  ;;  %v6523_v14 = vmul.f32 %v9817_v22, %v9811_v4 }
0x3169   : > { %v6522_v8 = vmul.f32 %v9819_v45, %v9809_v24 }
0x316b   : > { %v6524_v62 = vpack.c.bf16 %v6523_v14, %v6522_v8  ;;  %v9870_v8 = vld [vmem:[#allocation17] ss:$0 sm:$0xff] }
0x31cb   : > { %v6644_v11 = vpop.xlane.xlu0 %6643 }
0x31cc   : > { %9820 = vrcp.f32 %v6644_v11 }
0x31cf   : > { %v6528_v41 = vpop.permute.xlu0 %6527  ;;  %v6647_v6 = vpop.xlane.xlu1 %6646 }
0x31d0   : > { %9822 = vrcp.f32 %v6647_v6  ;;  %9140 = vmatpush3.bf16.msra.mxu1 %v6528_v41  ;;  %v6215_v41 = vadd.f32 %v9870_v8, %v12008_v26 }
0x31d1   : > { %9151 = vmatprep.subr.bf16.mxu1 %v12439_v37 }
0x31d3   : > { %9142 = vmatmul.mubr.msk.bf16.vlgmr.msra.gmra.mrb[140].mxu1 %vm1166_vm3, %v6524_v62  ;;  %v6792_v32 = vpop.permute.xlu1 %6791 }
0x31d4   : > { %9152 = vmatpush3.bf16.msra.mxu1 %v6654_v5  ;;  %9153 = vmatprep.mubr.msk.bf16.mxu1 %vm10439_vm0, %v12439_v37  ;;  %v6797_v23 = vsel %vm1180_vm4, %v6792_v32, 0 }
0x31d5   : > { %9169 = vmatprep.subr.bf16.mxu1 %v12439_v37 }
0x31d6   : > { %v9821_v61 = vpop.eup %9820 }
0x31d7   : > { %v6650_v19 = vmul.f32 %v9821_v61, %v9813_v12  ;;  %v6790_v51 = vpop.permute.xlu1 %6789  ;;  %v12098_v61 = vmul.f32 %v6215_v41, %v10997_v17 }
0x31da   : > { %v9823_v39 = vpop.eup %9822 }
0x31db   : > { %v6651_v55 = vmul.f32 %v9823_v39, %v9815_v49 }
0x31dd   : > { %v6652_v15 = vpack.c.bf16 %v6651_v55, %v6650_v19 }
0x31df   : > { %9154 = vmatmul.mubr.msk.bf16.vlgmr.msra.gmra.mrb[144].mxu1 %vm1166_vm3, %v6652_v15 }
0x31e0   : > { %9170 = vmatpush3.bf16.xpose.msra.mxu1 %v6797_v23  ;;  %9171 = vmatprep.mubr.msk.bf16.mxu1 %vm10439_vm0, %v12439_v37 }
0x31e1   : > { %9175 = vmatprep.subr.bf16.mxu1 %v12439_v37 }
0x31e7   : > { %9172 = vmatmul.mubr.msk.bf16.vlgmr.msra.gmra.mrb[148].mxu1 %vm1180_vm4, %v6790_v51 }
0x31e8   : > { %9177 = vmatprep.mubr.msk.bf16.mxu1 %vm10439_vm0, %v12439_v37 }
0x32a6   : > { %v6567_v28 = vpop.f32.mrb[140].mxu1 }
0x32a7   : > { %v9143_v13 = vpop.f32.mrb[141].mxu1 }
0x32a8   : > { %v6570_v47 = vpop.f32.mrb[142].mxu1 }
0x32a9   : > { %v6574_v52 = vpack.c.bf16 %v6570_v47, %v6567_v28  ;;  %v9144_v7 = vpop.f32.mrb[143].mxu1 }
0x32b2   : > { %v6693_v56 = vpop.f32.mrb[144].mxu1 }
0x32b3   : > { %v9155_v58 = vpop.f32.mrb[145].mxu1 }
0x32b4   : > { %v6696_v30 = vpop.f32.mrb[146].mxu1 }
0x32b5   : > { %v6700_v18 = vpack.c.bf16 %v6696_v30, %v6693_v56  ;;  %v9156_v20 = vpop.f32.mrb[147].mxu1 }
0x32b7   : > { %9160 = vmatmul.mubr.msk.bf16.vlgmr.msra.gmra.mrb[132].mxu0 %vm1180_vm4, %v6700_v18 }
0x32b8   : > { %9164 = vmatpush3.bf16.msra.mxu0 %v11468_v46  ;;  %9165 = vmatprep.mubr.msk.bf16.mxu0 %vm10439_vm0, %v12439_v37 }
0x32b9   : > { %9181 = vmatprep.subr.bf16.mxu0 %v12439_v37 }
0x32ba   : > { %v6833_v60 = vpop.f32.mrb[148].mxu1 }
0x32bb   : > { %v6834_v57 = vadd.f32 %v6833_v60, %v11183_v53  ;;  %v9173_v0 = vpop.f32.mrb[149].mxu1 }
0x32bc   : > { %v6836_v31 = vpop.f32.mrb[150].mxu1 }
0x32bd   : > { %v6840_v24 = vmul.f32 0.35355338, %v6834_v57  ;;  %v6837_v34 = vadd.f32 %v6836_v31, %v11183_v53  ;;  %v9174_v4 = vpop.f32.mrb[151].mxu1 }
0x32bf   : > { %v6841_v1 = vmul.f32 0.35355338, %v6837_v34  ;;  %v6842_v21 = vsel %vm1166_vm3, %v6840_v24, -inf }
0x32c0   : > { %6843 = vmax.xlane.f32.xlu0 %v6842_v21 }
0x32c1   : > { %v6845_v46 = vsel %vm1166_vm3, %v6841_v1, -inf }
0x32c2   : > { %6846 = vmax.xlane.f32.xlu1 %v6845_v46 }
0x32c3   : > { %9166 = vmatmul.mubr.msk.bf16.vlgmr.msra.gmra.mrb[132].mxu0 %vm1180_vm4, %v6574_v52 }
0x32c4   : > { %9182 = vmatpush3.bf16.msra.mxu0 %v11517_v44  ;;  %9183 = vmatprep.mubr.msk.bf16.mxu0 %vm10439_vm0, %v12439_v37 }
0x32c5   : > { %9193 = vmatprep.subr.bf16.mxu0 %v12439_v37 }
0x32d3   : > { %6961 = vrot.lane.b32.xlu1 %v12013_v33, %s12430_s7  ;;  %v9869_v33 = vld [vmem:[#allocation10] sm:$0x1] }
0x32d7   : > { %6959 = vrot.lane.b32.xlu1 %v12019_v36, %s12430_s7  ;;  %v6371_v36 = vadd.f32 %v9869_v33, %v11986_v10 }
0x32d9   : > { %v8232_v50 = vmul.f32 -1.442695, %v6371_v36 }
0x334d   : > { %v6844_v63 = vpop.xlane.xlu0 %6843 }
0x334e   : > { %v6848_v29 = vsub.f32 %v6840_v24, %v6844_v63 }
0x334f   : > { %v6847_v38 = vpop.xlane.xlu1 %6846 }
0x3350   : > { %v6850_v16 = vmul.f32 1.442695, %v6848_v29  ;;  %v6849_v54 = vsub.f32 %v6841_v1, %v6847_v38 }
0x3352   : > { %9824 = vpow2.f32 %v6850_v16  ;;  %v6852_v12 = vmul.f32 1.442695, %v6849_v54 }
0x3353   : > { %v6962_v55 = vpop.permute.xlu1 %6961 }
0x3354   : > { %9826 = vpow2.f32 %v6852_v12  ;;  %v6967_v51 = vsel %vm1180_vm4, %v6962_v55, 0 }
0x3355   : > { %9828 = vpow2.f32 %v8232_v50 }
0x3357   : > { %v6960_v26 = vpop.permute.xlu1 %6959 }
0x335c   : > { %v9825_v44 = vpop.eup %9824 }
0x335d   : > { %v6854_v25 = vsel %vm1166_vm3, %v9825_v44, 0.0 }
0x335e   : > { %v9827_v49 = vpop.eup %9826  ;;  %6855 = vadd.xlane.f32.xlu0 %v6854_v25 }
0x335f   : > { %v6857_v3 = vsel %vm1166_vm3, %v9827_v49, 0.0  ;;  %v9829_v27 = vpop.eup %9828 }
0x3360   : > { %v6379_v22 = vadd.f32 1.0, %v9829_v27 }
0x3362   : > { %6858 = vadd.xlane.f32.xlu0 %v6857_v3  ;;  %9830 = vrcp.f32 %v6379_v22 }
0x336c   : > { %v9831_v14 = vpop.eup %9830 }
0x336d   : > { %v6434_v62 = vadd.f32 1.0, %v9831_v14 }
0x336f   : > { %v7132_v32 = vrot.slane %v6434_v62, %v10948_v35 }
0x3371   : > { %v7138_v23 = vmul.f32 %v7132_v32, %v12098_v61 }
0x3373   : > { %v12107_v17 = vpack.c.bf16 %v7138_v23, %v7138_v23  ;;  %v9871_v23 = vld [vmem:[#allocation20] ss:$0 sm:$0xff] }
0x3375   : > { %v7145_v35 = vsel %vm1180_vm4, %v12107_v17, 0 }
0x3378   : > { %6865 = vrot.lane.b32.xlu0 %v12047_v9, %s12428_s18 }
0x33eb   : > { %v6856_v5 = vpop.xlane.xlu0 %6855 }
0x33ec   : > { %9832 = vrcp.f32 %v6856_v5 }
0x33ef   : > { %v6859_v11 = vpop.xlane.xlu0 %6858 }
0x33f0   : > { %9834 = vrcp.f32 %v6859_v11 }
0x33f3   : > { %v6866_v45 = vpop.permute.xlu0 %6865 }
0x33f4   : > { %9176 = vmatpush3.bf16.msra.mxu1 %v6866_v45 }
0x33f5   : > { %9187 = vmatprep.subr.bf16.mxu1 %v12439_v37 }
0x33f6   : > { %v9833_v6 = vpop.eup %9832 }
0x33f7   : > { %v6862_v39 = vmul.f32 %v9833_v6, %v9825_v44 }
0x33fa   : > { %v9835_v10 = vpop.eup %9834 }
0x33fb   : > { %v6863_v19 = vmul.f32 %v9835_v10, %v9827_v49 }
0x33fd   : > { %v6864_v15 = vpack.c.bf16 %v6863_v19, %v6862_v39 }
0x33ff   : > { %9178 = vmatmul.mubr.msk.bf16.vlgmr.msra.gmra.mrb[152].mxu1 %vm1166_vm3, %v6864_v15 }
0x3400   : > { %9188 = vmatpush3.bf16.xpose.msra.mxu1 %v6967_v51  ;;  %9189 = vmatprep.mubr.msk.bf16.mxu1 %vm10439_vm0, %v12439_v37 }
0x3401   : > { %9205 = vmatprep.subr.bf16.mxu1 %v12439_v37 }
0x3407   : > { %9190 = vmatmul.mubr.msk.bf16.vlgmr.msra.gmra.mrb[156].mxu1 %vm1180_vm4, %v6960_v26 }
0x3408   : > { %9206 = vmatpush3.bf16.xpose.msra.mxu1 %v7145_v35  ;;  %9207 = vmatprep.mubr.msk.bf16.mxu1 %vm10439_vm0, %v12439_v37 }
0x3409   : > { %9211 = vmatprep.subr.bf16.mxu1 %v12439_v37 }
0x34d2   : > { %v6905_v28 = vpop.f32.mrb[152].mxu1 }
0x34d3   : > { %v9179_v13 = vpop.f32.mrb[153].mxu1 }
0x34d4   : > { %v6908_v47 = vpop.f32.mrb[154].mxu1 }
0x34d5   : > { %v6912_v52 = vpack.c.bf16 %v6908_v47, %v6905_v28  ;;  %v9180_v7 = vpop.f32.mrb[155].mxu1 }
0x34d7   : > { %9184 = vmatmul.mubr.msk.bf16.vlgmr.msra.gmra.mrb[132].mxu0 %vm1180_vm4, %v6912_v52 }
0x34d8   : > { %9195 = vmatprep.mubr.msk.bf16.mxu0 %vm10439_vm0, %v12439_v37 }
0x34da   : > { %v7003_v56 = vpop.f32.mrb[156].mxu1 }
0x34db   : > { %v7004_v58 = vadd.f32 %v7003_v56, %v11183_v53  ;;  %v9191_v30 = vpop.f32.mrb[157].mxu1 }
0x34dc   : > { %v7006_v18 = vpop.f32.mrb[158].mxu1 }
0x34dd   : > { %v7010_v20 = vmul.f32 0.35355338, %v7004_v58  ;;  %v7007_v60 = vadd.f32 %v7006_v18, %v11183_v53  ;;  %v9192_v57 = vpop.f32.mrb[159].mxu1 }
0x34df   : > { %v7011_v0 = vmul.f32 0.35355338, %v7007_v60  ;;  %v7012_v31 = vsel %vm1166_vm3, %v7010_v20, -inf }
0x34e0   : > { %7013 = vmax.xlane.f32.xlu1 %v7012_v31 }
0x34e1   : > { %v7015_v24 = vsel %vm1166_vm3, %v7011_v0, -inf }
0x34e2   : > { %7016 = vmax.xlane.f32.xlu0 %v7015_v24 }
0x34f1   : > { %7035 = vrot.lane.b32.xlu1 %v12047_v9, %s12433_s3 }
0x34f5   : > { %7255 = vrot.lane.b32.xlu1 %v12107_v17, %s12427_s11 }
0x356d   : > { %v7014_v34 = vpop.xlane.xlu1 %7013 }
0x356e   : > { %v7018_v4 = vsub.f32 %v7010_v20, %v7014_v34 }
0x356f   : > { %v7017_v1 = vpop.xlane.xlu0 %7016 }
0x3570   : > { %v7020_v21 = vmul.f32 1.442695, %v7018_v4  ;;  %v7019_v46 = vsub.f32 %v7011_v0, %v7017_v1  ;;  %v7200_v4 = vpack.c.bf16 %v12098_v61, %v12098_v61 }
0x3571   : > { %v7036_v53 = vpop.permute.xlu1 %7035 }
0x3572   : > { %9836 = vpow2.f32 %v7020_v21  ;;  %v7022_v63 = vmul.f32 1.442695, %v7019_v46  ;;  %9194 = vmatpush3.bf16.msra.mxu0 %v7036_v53 }
0x3573   : > { %9199 = vmatprep.subr.bf16.mxu0 %v12439_v37 }
0x3574   : > { %9838 = vpow2.f32 %v7022_v63 }
0x3575   : > { %v7256_v14 = vpop.permute.xlu1 %7255 }
0x357c   : > { %v9837_v29 = vpop.eup %9836 }
0x357d   : > { %v7024_v38 = vsel %vm1166_vm3, %v9837_v29, 0.0 }
0x357e   : > { %v9839_v16 = vpop.eup %9838  ;;  %7025 = vadd.xlane.f32.xlu0 %v7024_v38 }
0x357f   : > { %v7027_v9 = vsel %vm1166_vm3, %v9839_v16, 0.0 }
0x3582   : > { %7028 = vadd.xlane.f32.xlu0 %v7027_v9 }
0x3598   : > { %7134 = vrot.lane.b32.xlu0 %v12098_v61, %s12426_s22  ;;  %s10451_s22 = smov [#allocation25]  }
0x360b   : > { %v7026_v54 = vpop.xlane.xlu0 %7025 }
0x360c   : > { %9840 = vrcp.f32 %v7026_v54 }
0x360f   : > { %v7029_v12 = vpop.xlane.xlu0 %7028 }
0x3610   : > { %9842 = vrcp.f32 %v7029_v12 }
0x3613   : > { %v7135_v44 = vpop.permute.xlu0 %7134 }
0x3614   : > { %v7137_v25 = vmul.f32 %v7135_v44, %v7132_v32 }
0x3616   : > { %v12131_v49 = vpack.c.bf16 %v7137_v25, %v7137_v25  ;;  %v9841_v3 = vpop.eup %9840 }
0x3617   : > { %v7032_v36 = vmul.f32 %v9841_v3, %v9837_v29 }
0x3618   : > { %7451 = vrot.lane.b32.xlu0 %v12131_v49, %s12440_s26  ;;  %7252 = vrot.lane.b32.xlu1 %v12131_v49, %s12427_s11  ;;  %s7770_s11 = scalar_lea.sflag [#allocation4], %s12164_s5 }
0x3619   : > { %9208 = vmatmul.mubr.msk.bf16.vlgmr.msra.gmra.mrb[160].mxu1 %vm1180_vm4, %v12131_v49 }
0x361a   : > { %v9843_v33 = vpop.eup %9842  ;;  %9213 = vmatprep.mubr.msk.bf16.mxu1 %vm10439_vm0, %v12439_v37 }
0x361b   : > { %v7033_v50 = vmul.f32 %v9843_v33, %v9839_v16 }
0x361c   : > { %7453 = vrot.lane.b32.xlu1 %v12107_v17, %s12440_s26 }
0x361d   : > { %v7034_v27 = vpack.c.bf16 %v7033_v50, %v7032_v36 }
0x361f   : > { %9196 = vmatmul.mubr.msk.bf16.vlgmr.msra.gmra.mrb[148].mxu0 %vm1166_vm3, %v7034_v27 }
0x3620   : > { %9200 = vmatpush3.bf16.msra.mxu0 %v11556_v2  ;;  %9201 = vmatprep.mubr.msk.bf16.mxu0 %vm10439_vm0, %v12439_v37  ;;  %v7261_v2 = vsel %vm1180_vm4, %v7256_v14, 0 }
0x3621   : > { %9217 = vmatprep.subr.bf16.mxu0 %v12439_v37 }
0x368a   : > { %v7253_v39 = vpop.permute.xlu1 %7252  ;;  %v7452_v32 = vpop.permute.xlu0 %7451 }
0x368e   : > { %v7454_v19 = vpop.permute.xlu1 %7453 }
0x368f   : > { %v7459_v55 = vsel %vm1180_vm4, %v7454_v19, 0 }
0x36ec   : > { %v12148_v22 = vpop.f32.mrb[160].mxu1 }
0x36ed   : > { %v9209_v5 = vpop.f32.mrb[161].mxu1  ;;  %v7182_v16 = vadd.f32 %v12148_v22, %v11028_v48 }
0x36ee   : > { %v7184_v11 = vpop.f32.mrb[162].mxu1 }
0x36ef   : > { %v9210_v45 = vpop.f32.mrb[163].mxu1  ;;  %v7187_v54 = vmul.f32 0.35355338, %v7182_v16 }
0x36f1   : > { %v7188_v12 = vsel %vm1180_vm4, %v7187_v54, -inf }
0x36f2   : > { %v7075_v8 = vpop.f32.mrb[148].mxu0 }
0x36f3   : > { %v9197_v41 = vpop.f32.mrb[149].mxu0 }
0x36f4   : > { %v7078_v6 = vpop.f32.mrb[150].mxu0 }
0x36f5   : > { %v7082_v62 = vpack.c.bf16 %v7078_v6, %v7075_v8  ;;  %v9198_v10 = vpop.f32.mrb[151].mxu0 }
0x36f7   : > { %9202 = vmatmul.mubr.msk.bf16.vlgmr.msra.gmra.mrb[132].mxu0 %vm1180_vm4, %v7082_v62 }
0x36f8   : > { %9218 = vmatpush3.bf16.xpose.msra.mxu0 %v7261_v2  ;;  %9219 = vmatprep.mubr.msk.bf16.mxu0 %vm10439_vm0, %v12439_v37 }
0x36f9   : > { %9241 = vmatprep.subr.bf16.mxu0 %v12439_v37 }
0x36ff   : > { %9220 = vmatmul.mubr.msk.bf16.vlgmr.msra.gmra.mrb[152].mxu0 %vm1180_vm4, %v7253_v39 }
0x3700   : > { %9242 = vmatpush3.bf16.xpose.msra.mxu0 %v7459_v55  ;;  %9243 = vmatprep.mubr.msk.bf16.mxu0 %vm10439_vm0, %v12439_v37 }
0x3701   : > { %9247 = vmatprep.subr.bf16.mxu0 %v12439_v37 }
0x3707   : > { %9244 = vmatmul.mubr.msk.bf16.vlgmr.msra.gmra.mrb[156].mxu0 %vm1180_vm4, %v7452_v32 }
0x3708   : > { %9249 = vmatprep.mubr.msk.bf16.mxu0 %vm10439_vm0, %v12439_v37 }
0x37ca   : > { %v7120_v15 = vpop.f32.mrb[132].mxu0 }
0x37cb   : > { %v9286_v51 = vadd.f32 %v9871_v23, %v7120_v15  ;;  %v9203_v26 = vpop.f32.mrb[133].mxu0 }
0x37cc   : > { %v7123_v35 = vpop.f32.mrb[134].mxu0 }
0x37cd   : > { %7766 = vst.msk [vmem:[%s12167_s0] sm:$0xff] %vm1263_vm1, %v9286_v51  ;;  %v9287_v28 = vadd.f32 %v9871_v23, %v7123_v35  ;;  %v9204_v13 = vpop.f32.mrb[135].mxu0 }
0x37cf   : > { %7767 = vst.msk [vmem:[%s12167_s0 + $0x8] sm:$0xff] %vm1263_vm1, %v9287_v28 }
0x37d2   : > { %v7297_v47 = vpop.f32.mrb[152].mxu0 }
0x37d3   : > { %v9221_v52 = vpop.f32.mrb[153].mxu0  ;;  %v7298_v31 = vadd.f32 %v7297_v47, %v11028_v48 }
0x37d4   : > { %v7300_v7 = vpop.f32.mrb[154].mxu0 }
0x37d5   : > { %v9222_v56 = vpop.f32.mrb[155].mxu0  ;;  %v7303_v24 = vmul.f32 0.35355338, %v7298_v31 }
0x37d7   : > { %v7304_v34 = vsel %vm1180_vm4, %v7303_v24, -inf }
0x37da   : > { %v7495_v58 = vpop.f32.mrb[156].mxu0 }
0x37db   : > { %v7496_v30 = vadd.f32 %v7495_v58, %v11028_v48  ;;  %v9245_v18 = vpop.f32.mrb[157].mxu0 }
0x37dc   : > { %v7498_v20 = vpop.f32.mrb[158].mxu0 }
0x37dd   : > { %v7501_v60 = vmul.f32 0.35355338, %v7496_v30  ;;  %v9246_v57 = vpop.f32.mrb[159].mxu0 }
0x37df   : > { %v7502_v0 = vsel %vm1180_vm4, %v7501_v60, -inf }
0x37e0   : > { %7503 = vmax.xlane.f32.xlu1 %v7502_v0 }
0x37f1   : > { %7609 = vrot.lane.b32.xlu1 %v12107_v17, %s12430_s7 }
0x37f5   : > { %7607 = vrot.lane.b32.xlu1 %v12131_v49, %s12430_s7  ;;  %s10269_s7 = sshll.u32 %s10451_s22, 4  ;;  %s10270_s7 = int_to_ptr.vmem [resolvable:$false] %s10269_s7 }
0x37f6   : > { %s10271_s26 = scalar_lea.vmem %s10270_s7, 512 }
0x3819   : > { %7305 = vmax.xlane.f32.xlu1 %v7304_v34 }
0x382a   : > { %7202 = vrot.lane.b32.xlu1 %v7200_v4, %s12431_s1 }
0x386d   : > { %v7504_v1 = vpop.xlane.xlu1 %7503 }
0x386e   : > { %v7505_v21 = vsub.f32 %v7501_v60, %v7504_v1 }
0x3870   : > { %v7506_v46 = vmul.f32 1.442695, %v7505_v21 }
0x3871   : > { %v7610_v63 = vpop.permute.xlu1 %7609 }
0x3872   : > { %9844 = vpow2.f32 %v7506_v46  ;;  %v7615_v50 = vsel %vm1180_vm4, %v7610_v63, 0 }
0x3875   : > { %v7608_v29 = vpop.permute.xlu1 %7607 }
0x387c   : > { %v9845_v53 = vpop.eup %9844 }
0x387d   : > { %v7508_v17 = vsel %vm1180_vm4, %v9845_v53, 0.0 }
0x387e   : > { %7509 = vadd.xlane.f32.xlu0 %v7508_v17 }
0x3894   : > { %7514 = vrot.lane.b32.xlu0 %v7200_v4, %s12428_s18 }
0x38a6   : > { %v7306_v38 = vpop.xlane.xlu1 %7305 }
0x38a7   : > { %v7307_v5 = vsub.f32 %v7303_v24, %v7306_v38 }
0x38a9   : > { %v7308_v6 = vmul.f32 1.442695, %v7307_v5 }
0x38aa   : > { %v7203_v9 = vpop.permute.xlu1 %7202 }
0x38ab   : > { %v7208_v61 = vsel %vm1666_vm7, %v7203_v9, 0 }
0x38ac   : > { %9212 = vmatpush3.bf16.msra.mxu1 %v7208_v61 }
0x38ad   : > { %9223 = vmatprep.subr.bf16.mxu1 %v12439_v37 }
0x38b3   : > { %7189 = vmax.xlane.f32.xlu0 %v7188_v12 }
0x390b   : > { %v7510_v44 = vpop.xlane.xlu0 %7509 }
0x390c   : > { %9846 = vrcp.f32 %v7510_v44 }
0x390f   : > { %v7515_v25 = vpop.permute.xlu0 %7514 }
0x3910   : > { %v7520_v49 = vsel %vm1666_vm7, %v7515_v25, 0 }
0x3911   : > { %9248 = vmatpush3.bf16.msra.mxu0 %v7520_v49 }
0x3912   : > { %9259 = vmatprep.subr.bf16.mxu0 %v12439_v37 }
0x3916   : > { %v9847_v3 = vpop.eup %9846 }
0x3917   : > { %v7512_v33 = vmul.f32 %v9847_v3, %v9845_v53 }
0x3919   : > { %v7513_v36 = vpack.c.bf16 %v7512_v33, %v7512_v33 }
0x391b   : > { %9250 = vmatmul.mubr.msk.bf16.vlgmr.msra.gmra.mrb[160].mxu0 %vm1180_vm4, %v7513_v36 }
0x391c   : > { %9260 = vmatpush3.bf16.xpose.msra.mxu0 %v7615_v50  ;;  %9261 = vmatprep.mubr.msk.bf16.mxu0 %vm10439_vm0, %v12439_v37 }
0x391d   : > { %9265 = vmatprep.subr.bf16.mxu0 %v12439_v37 }
0x3923   : > { %9262 = vmatmul.mubr.msk.bf16.vlgmr.msra.gmra.mrb[164].mxu0 %vm1180_vm4, %v7608_v29 }
0x3924   : > { %9267 = vmatprep.mubr.msk.bf16.mxu0 %vm10439_vm0, %v12439_v37 }
0x3940   : > { %v7190_v27 = vpop.xlane.xlu0 %7189 }
0x3941   : > { %v7191_v22 = vsub.f32 %v7187_v54, %v7190_v27 }
0x3943   : > { %v7192_v11 = vmul.f32 1.442695, %v7191_v22 }
0x3945   : > { %9848 = vpow2.f32 %v7192_v11 }
0x3946   : > { %9850 = vpow2.f32 %v7308_v6 }
0x394f   : > { %v9849_v15 = vpop.eup %9848 }
0x3950   : > { %v7194_v23 = vsel %vm1180_vm4, %v9849_v15, 0.0  ;;  %v9851_v51 = vpop.eup %9850 }
0x3951   : > { %v7310_v26 = vsel %vm1180_vm4, %v9851_v51, 0.0 }
0x39ee   : > { %v12201_v45 = vpop.f32.mrb[160].mxu0 }
0x39ef   : > { %v9251_v14 = vpop.f32.mrb[161].mxu0 }
0x39f0   : > { %v7559_v8 = vpop.f32.mrb[162].mxu0 }
0x39f1   : > { %v9252_v41 = vpop.f32.mrb[163].mxu0 }
0x39f6   : > { %v7651_v62 = vpop.f32.mrb[164].mxu0 }
0x39f7   : > { %v7652_v10 = vadd.f32 %v7651_v62, %v11028_v48  ;;  %v9263_v39 = vpop.f32.mrb[165].mxu0 }
0x39f8   : > { %v7654_v2 = vpop.f32.mrb[166].mxu0 }
0x39f9   : > { %v7657_v19 = vmul.f32 0.35355338, %v7652_v10  ;;  %v9264_v55 = vpop.f32.mrb[167].mxu0 }
0x39fb   : > { %v7658_v32 = vsel %vm1180_vm4, %v7657_v19, -inf }
0x39fc   : > { %7659 = vmax.xlane.f32.xlu0 %v7658_v32 }
0x3a00   : > { %7195 = vadd.xlane.f32.xlu0 %v7194_v23 }
0x3a04   : > { %7311 = vadd.xlane.f32.xlu0 %v7310_v26 }
0x3a1a   : > { %7316 = vrot.lane.b32.xlu0 %v7200_v4, %s12432_s2  ;;  %s8266_s2 = sshll.u32 %s10631_s15, 8 }
0x3a1b   : > { %s12244_s1 = scalar_lea.hbm %s10603_s9, %s8266_s2 }
0x3a1e   : > { %7670 = vrot.lane.b32.xlu0 %v7200_v4, %s12433_s3  ;;  %s7788_s3 = sshll.u32 %s12167_s0, 4  ;;  %s12240_s3 = int_to_ptr.vmem [resolvable:$true] %s7788_s3 }
0x3a1f   : > { %s10265_s18 = scalar_lea.vmem %s12240_s3, 256  ;;  %p10272_p9 = scmp.lt.s32.totalorder %s12240_s3, %s10270_s7 }
0x3a20   : > { %p10266_p4 = scmp.ne.s32.totalorder %s12240_s3, %s10265_s18  ;;  %p10273_p10 = scmp.lt.s32.totalorder %s10271_s26, %s10265_s18 }
0x3a22   : > { %p10267_p5 = pnand %p10266_p4, %p12446_p12  ;;  %p10274_p7 = por %p10273_p10, %p10272_p9 }
0x3a24   : > { %p10268_p6 = pneg %p10267_p5 }
0x3a26   : > { %p10275_p8 = pnand %p10274_p7, %p10268_p6 }
0x3a89   : > { %v7660_v48 = vpop.xlane.xlu0 %7659 }
0x3a8a   : > { %v7661_v35 = vsub.f32 %v7657_v19, %v7660_v48 }
0x3a8c   : > { %v7662_v28 = vmul.f32 1.442695, %v7661_v35 }
0x3a8d   : > { %v7196_v13 = vpop.xlane.xlu0 %7195 }
0x3a8e   : > { %9852 = vpow2.f32 %v7662_v28 }
0x3a8f   : > { %9854 = vrcp.f32 %v7196_v13 }
0x3a91   : > { %v7312_v47 = vpop.xlane.xlu0 %7311 }
0x3a92   : > { %9856 = vrcp.f32 %v7312_v47 }
0x3a95   : > { %v7317_v52 = vpop.permute.xlu0 %7316 }
0x3a96   : > { %v7322_v0 = vsel %vm1666_vm7, %v7317_v52, 0 }
0x3a98   : > { %v9853_v7 = vpop.eup %9852 }
0x3a99   : > { %v9855_v56 = vpop.eup %9854  ;;  %v7671_v58 = vpop.permute.xlu0 %7670  ;;  %v7664_v30 = vsel %vm1180_vm4, %v9853_v7, 0.0 }
0x3a9a   : > { %v7198_v18 = vmul.f32 %v9855_v56, %v9849_v15  ;;  %v7676_v20 = vsel %vm1666_vm7, %v7671_v58, 0  ;;  %7665 = vadd.xlane.f32.xlu1 %v7664_v30 }
0x3a9b   : > { %9266 = vmatpush3.bf16.msra.mxu0 %v7676_v20 }
0x3a9c   : > { %v7199_v60 = vpack.c.bf16 %v7198_v18, %v7198_v18  ;;  %v9857_v57 = vpop.eup %9856 }
0x3a9d   : > { %v7314_v31 = vmul.f32 %v9857_v57, %v9851_v51 }
0x3a9e   : > { %9214 = vmatmul.mubr.msk.bf16.vlgmr.msra.gmra.mrb[164].mxu1 %vm1180_vm4, %v7199_v60 }
0x3a9f   : > { %9224 = vmatpush3.bf16.msra.mxu1 %v7322_v0  ;;  %9225 = vmatprep.mubr.msk.bf16.mxu1 %vm10439_vm0, %v12439_v37  ;;  %v7315_v24 = vpack.c.bf16 %v7314_v31, %v7314_v31 }
0x3aa0   : > { %9229 = vmatprep.subr.bf16.mxu1 %v12439_v37 }
0x3aa6   : > { %9226 = vmatmul.mubr.msk.bf16.vlgmr.msra.gmra.mrb[168].mxu1 %vm1180_vm4, %v7315_v24 }
0x3aa7   : > { %9230 = vmatpush3.bf16.msra.mxu1 %v11645_v43  ;;  %9231 = vmatprep.mubr.msk.bf16.mxu1 %vm10439_vm0, %v12439_v37 }
0x3aa8   : > { %9235 = vmatprep.subr.bf16.mxu1 %v12439_v37 }
0x3b27   : > { %v7666_v34 = vpop.xlane.xlu1 %7665 }
0x3b28   : > { %9858 = vrcp.f32 %v7666_v34 }
0x3b32   : > { %v9859_v4 = vpop.eup %9858 }
0x3b33   : > { %v7668_v1 = vmul.f32 %v9859_v4, %v9853_v7 }
0x3b35   : > { %v7669_v21 = vpack.c.bf16 %v7668_v1, %v7668_v1 }
0x3b37   : > { %9268 = vmatmul.mubr.msk.bf16.vlgmr.msra.gmra.mrb[168].mxu0 %vm1180_vm4, %v7669_v21 }
0x3b71   : > { %v7244_v46 = vpop.f32.mrb[164].mxu1 }
0x3b72   : > { %v9215_v53 = vpop.f32.mrb[165].mxu1  ;;  %v7250_v61 = vpack.c.bf16 %v7244_v46, %v7244_v46 }
0x3b73   : > { %v7247_v17 = vpop.f32.mrb[166].mxu1 }
0x3b74   : > { %v9216_v63 = vpop.f32.mrb[167].mxu1 }
0x3b79   : > { %v7358_v29 = vpop.f32.mrb[168].mxu1 }
0x3b7a   : > { %v7364_v38 = vpack.c.bf16 %v7358_v29, %v7358_v29  ;;  %v9227_v16 = vpop.f32.mrb[169].mxu1 }
0x3b7b   : > { %v7361_v43 = vpop.f32.mrb[170].mxu1 }
0x3b7c   : > { %v9228_v9 = vpop.f32.mrb[171].mxu1  ;;  %9232 = vmatmul.mubr.msk.bf16.vlgmr.msra.gmra.mrb[132].mxu1 %vm1180_vm4, %v7364_v38 }
0x3b7d   : > { %9236 = vmatpush3.bf16.msra.mxu1 %v11673_v42  ;;  %9237 = vmatprep.mubr.msk.bf16.mxu1 %vm10439_vm0, %v12439_v37  ;;  %v7562_v42 = vpack.c.bf16 %v12201_v45, %v12201_v45 }
0x3b7e   : > { %9253 = vmatprep.subr.bf16.mxu1 %v12439_v37 }
0x3b88   : > { %9238 = vmatmul.mubr.msk.bf16.vlgmr.msra.gmra.mrb[132].mxu1 %vm1180_vm4, %v7250_v61 }
0x3b89   : > { %9254 = vmatpush3.bf16.msra.mxu1 %v11683_v59  ;;  %9255 = vmatprep.mubr.msk.bf16.mxu1 %vm10439_vm0, %v12439_v37 }
0x3b8a   : > { %9271 = vmatprep.subr.bf16.mxu1 %v12439_v37 }
0x3b94   : > { %9256 = vmatmul.mubr.msk.bf16.vlgmr.msra.gmra.mrb[132].mxu1 %vm1180_vm4, %v7562_v42 }
0x3b95   : > { %9272 = vmatpush3.bf16.msra.mxu1 %v11693_v40  ;;  %9273 = vmatprep.mubr.msk.bf16.mxu1 %vm10439_vm0, %v12439_v37 }
0x3c0a   : > { %v7712_v54 = vpop.f32.mrb[168].mxu0 }
0x3c0b   : > { %v7718_v59 = vpack.c.bf16 %v7712_v54, %v7712_v54  ;;  %v9269_v12 = vpop.f32.mrb[169].mxu0 }
0x3c0c   : > { %v7715_v44 = vpop.f32.mrb[170].mxu0 }
0x3c0d   : > { %v9270_v25 = vpop.f32.mrb[171].mxu0  ;;  %9274 = vmatmul.mubr.msk.bf16.vlgmr.msra.gmra.mrb[132].mxu1 %vm1180_vm4, %v7718_v59 }
0x3c0e   : > { %10278 = shalt.err (!%p10275_p8)
}
0x3c0f   : > { %s10279_s4 = scalar_lea.hbm %s12244_s1, 256  ;;  %s10283_s0 = scalar_lea.hbm %s10603_s9, 512 }
0x3c10   : > { %p10280_p11 = scmp.ne.s32.totalorder %s12244_s1, %s10279_s4  ;;  %p10284_p2 = scmp.lt.u32.totalorder %s12244_s1, %s10603_s9 }
0x3c11   : > { %p10285_p0 = scmp.lt.u32.totalorder %s10283_s0, %s10279_s4  ;;  %p10287_p4 = scmp.lt.u32.totalorder %s10279_s4, %s12244_s1 }
0x3c12   : > { %p10281_p13 = pnand %p10280_p11, %p12446_p12 }
0x3c13   : > { %p10286_p3 = por %p10285_p0, %p10284_p2 }
0x3c14   : > { %p10282_p1 = pneg %p10281_p13 }
0x3c15   : > { %p10288_p5 = por %p10287_p4, %p10286_p3 }
0x3c17   : > { %p10289_p6 = pnand %p10288_p5, %p10282_p1 }
0x3c19   : > { %10292 = shalt.err (!%p10289_p6)
}
0x3c1a   : > { %s10452_s2 = smov 128   ;;  %s10453_s18 = smov 8   ;;  %v9872_v40 = vld [vmem:[#allocation23] ss:$0 sm:$0xff] }
0x3c1b   : > { %9473 = dma.vmem_to_hbm [thread:$0]  (%p12446_p12), %s12240_s3, 256, %s12244_s1, %s7770_s11, %s10452_s2, %s10452_s2, %s10453_s18  }
0x3c1c   : > { %s8123_s22 = sshll.u32 %s12164_s5, 3  ;;  %s8263_s7 = sshll.u32 %s10631_s15, 7 }
0x3c1d   : > { %s1126_s26 = scalar_lea.vmem [#allocation26], %s8123_s22  ;;  %s12269_s0 = scalar_lea.hbm %s10608_s29, %s8263_s7 }
0x3c1e   : > { %s7804_s4 = sshll.u32 %s1126_s26, 4  ;;  %s7775_s3 = scalar_lea.sflag [#allocation27], %s12164_s5  ;;  %s12271_s4 = int_to_ptr.vmem [resolvable:$true] %s7804_s4 }
0x3c1f   : > { %s10293_s1 = scalar_lea.vmem %s12271_s4, 128  ;;  %s10454_s15 = smov [#allocation26]  }
0x3c20   : > { %p10294_p9 = scmp.ne.s32.totalorder %s12271_s4, %s10293_s1  ;;  %s10297_s11 = sshll.u32 %s10454_s15, 4  ;;  %s10298_s11 = int_to_ptr.vmem [resolvable:$false] %s10297_s11 }
0x3c21   : > { %s10299_s2 = scalar_lea.vmem %s10298_s11, 256  ;;  %p10300_p8 = scmp.lt.s32.totalorder %s12271_s4, %s10298_s11 }
0x3c22   : > { %p10295_p10 = pnand %p10294_p9, %p12446_p12  ;;  %p10301_p11 = scmp.lt.s32.totalorder %s10299_s2, %s10293_s1 }
0x3c24   : > { %p10296_p7 = pneg %p10295_p10  ;;  %p10302_p13 = por %p10301_p11, %p10300_p8 }
0x3c26   : > { %p10303_p1 = pnand %p10302_p13, %p10296_p7 }
0x3ce0   : > { %v7756_v37 = vpop.f32.mrb[132].mxu1 }
0x3ce1   : > { %v9288_v49 = vadd.f32 %v9872_v40, %v7756_v37  ;;  %v9275_v3 = vpop.f32.mrb[133].mxu1 }
0x3ce2   : > { %v7759_v33 = vpop.f32.mrb[134].mxu1 }
0x3ce3   : > { %v9276_v36 = vpop.f32.mrb[135].mxu1  ;;  %7768 = vst.msk [vmem:[%s1126_s26] sm:$0xff] %vm1263_vm1, %v9288_v49 }
0x3ce4   : > { %10306 = shalt.err (!%p10303_p1)
}
0x3ce5   : > { %s10307_s5 = scalar_lea.hbm %s12269_s0, 128  ;;  %s10311_s18 = scalar_lea.hbm %s10608_s29, 256 }
0x3ce6   : > { %p10308_p2 = scmp.ne.s32.totalorder %s12269_s0, %s10307_s5  ;;  %p10312_p4 = scmp.lt.u32.totalorder %s12269_s0, %s10608_s29 }
0x3ce7   : > { %p10313_p5 = scmp.lt.u32.totalorder %s10311_s18, %s10307_s5  ;;  %p10315_p9 = scmp.lt.u32.totalorder %s10307_s5, %s12269_s0 }
0x3ce8   : > { %p10309_p0 = pnand %p10308_p2, %p12446_p12 }
0x3ce9   : > { %p10314_p6 = por %p10313_p5, %p10312_p4 }
0x3cea   : > { %p10310_p3 = pneg %p10309_p0 }
0x3ceb   : > { %p10316_p10 = por %p10315_p9, %p10314_p6 }
0x3ced   : > { %p10317_p7 = pnand %p10316_p10, %p10310_p3 }
0x3cef   : > { %10320 = shalt.err (!%p10317_p7)
}
0x3cf0   : > { %9474 = dma.vmem_to_hbm [thread:$0]  (%p12446_p12), %s12271_s4, 128, %s12269_s0, %s7775_s3  }
0x3cf1 PF: > { %s12447_s22 = sld [smem:[#allocation57_spill]]  ;;  %s12448_s7 = sld [smem:[#allocation55_spill]] }
0x3cf2   : > { %s12449_s26 = sld [smem:[#allocation60_spill]] }
0x3cf7   : > { %p9555_p8 = scmp.ge.s32.totalorder %s12447_s22, 2  ;;  %s7816_s1 = sand.u32 1, %s12448_s7  }
0x3cf8   : > { %p12450_p11 = scmp.ne.s32.totalorder %s12449_s26, 0  ;;  %s7817_s15 = scalar_lea.sflag [#allocation4], %s7816_s1 }
0x3cfa   : > { %p9521_p13 = pnand %p9555_p8, %p12450_p11 }
0x3cfc   : > { %10370 = dma.done.wait (!%p9521_p13), %s7817_s15, 256  }
0x3cfd   : > { %10372 = vsyncadd (!%p9521_p13), %s7817_s15, 4294967040  ;;  %s7826_s11 = scalar_lea.sflag [#allocation27], %s7816_s1 }
0x3cfe   : > { %10374 = dma.done.wait (!%p9521_p13), %s7826_s11, 128  }
0x3cff   : > { %10376 = vsyncadd (!%p9521_p13), %s7826_s11, 4294967168  ;;  %s12451_s0 = sld [smem:[#allocation58_spill]]  ;;  %s12452_s28 = sld [smem:[#allocation56_spill]] }
0x3d00   : > { %s12453_s11 = sld [smem:[#allocation59_spill]]  ;;  %s12454_s7 = smov %s10383_s10 }
0x3d05   : > { %p81_p12 = scmp.ge.s32.totalorder %s12451_s0, 4   ;;  %s12455_s10 = smov %s12452_s28 }
0x3d07   :  { %83 = sbr.rel (!%p81_p12) target bundleno = 61 (0x3d), region = 279 }
0x3d0e   :  { %7831 = vsyncpa [#allocation3], 1 }
0x3d0f   :  { %7833 = vsyncpa [#allocation3 + $0x1], 1 }
0x3d10   :  { %7834 = vsyncpa [#allocation6], 1 }
0x3d11   :  { %7835 = vsyncpa [#allocation9], 1 }
0x3d12   :  { %7836 = vsyncpa [#allocation12], 1 }
0x3d13   :  { %7837 = vsyncpa [#allocation15], 1 }
0x3d14   :  { %7838 = vsyncpa [#allocation18], 1 }
0x3d15   :  { %7839 = vsyncpa [#allocation21], 1 }
0x3d16   :  { %7840 = vsyncpa [#allocation24], 1 }
0x3d17   :  { %7841 = vsyncpa [#allocation4], 1 }
0x3d18   :  { %7843 = vsyncpa [#allocation4 + $0x1], 1 }
0x3d19   :  { %7844 = vsyncpa [#allocation27], 1 }
0x3d1a   :  { %7846 = vsyncpa [#allocation27 + $0x1], 1 }

</bundles_post_ra>
